<compile_context>
chip_gen: v5e
topology: v5e:2x2
jax: 0.10.0
libtpu: 0.0.40
codegen_flags: <defaults>
</compile_context>

<pallas_src>
import functools

import jax
import jax.numpy as jnp
from jax import lax
from jax.experimental import pallas as pl
from jax.experimental.pallas import tpu as pltpu

# Only the VGG7 config is implemented by the fused trunk kernel:
#   [64, 'M', 128, 'M', 256, 'M', 512, 'M']
_VGG7_CHANNELS = (64, 128, 256, 512)


# ----------------------------------------------------------------------------
# Fused conv trunk: 4 x (conv3x3 + folded BN + ReLU + 2x2 maxpool), B images
# per grid step, all weights and activations resident in VMEM.
# ----------------------------------------------------------------------------
def _vgg7_trunk_kernel(x_ref,
                       w1_ref, s1_ref, b1_ref,
                       w2_ref, s2_ref, b2_ref,
                       w3_ref, s3_ref, b3_ref,
                       w4_ref, s4_ref, b4_ref,
                       o_ref,
                       pad2, pad3, pad4):
    # x_ref : (B, H, W, 9*Cin) bf16   im2col'd conv1 input (tap-major, cin-minor)
    # w1_ref: (9*Cin, 64) bf16        conv1 weight
    # wK_ref: (9, Cin, Cout) bf16     conv2..4 weights, tap = dy*3 + dx
    # sK/bK : (1, Cout) f32           folded BatchNorm scale / bias
    # o_ref : (B, H//16, W//16, 512)  pooled features for these images
    # padK  : (B, h+2, w+2, Cin) bf16 zero-padded inputs for stage K (scratch)
    B, H, W, K1 = x_ref.shape
    c1 = w1_ref.shape[1]

    def bn_relu(acc, s_ref, b_ref):
        return jnp.maximum(acc * s_ref[...] + b_ref[...], 0.0)

    def pool2x2(y):
        # (b, h, w, c) f32 -> (b, h//2, w//2, c): 2x2 max pool entirely in vregs.
        b, h, w, c = y.shape
        y = y.reshape(b, h // 2, 2, w, c)            # major-dim regroup (free)
        y2 = jnp.maximum(y[:, :, 0], y[:, :, 1])     # H pairs
        half_w = w // 2
        cols = [jnp.maximum(y2[:, :, 2 * j:2 * j + 1, :],
                            y2[:, :, 2 * j + 1:2 * j + 2, :])
                for j in range(half_w)]              # W pairs, kept in vregs
        return cols[0] if half_w == 1 else jnp.concatenate(cols, axis=2)

    def pool_to_pad(y, pad_ref):
        # Pool y and write the result with a SINGLE dense store into the zero
        # padded interior of the next stage's scratch buffer.
        b, hp, wp, c = pad_ref.shape
        m = pool2x2(y).astype(pad_ref.dtype)
        # Zero only the 1-pixel halo strips; the interior is fully rewritten.
        # (Done every step: with "parallel" semantics a core may never run
        #  step 0, so one-time zeroing would be incorrect.)
        zrow = jnp.zeros((b, 1, wp, c), pad_ref.dtype)
        pad_ref[:, 0:1, :, :] = zrow
        pad_ref[:, hp - 1:hp, :, :] = zrow
        zcol = jnp.zeros((b, hp, 1, c), pad_ref.dtype)
        pad_ref[:, :, 0:1, :] = zcol
        pad_ref[:, :, wp - 1:wp, :] = zcol
        pad_ref[:, 1:hp - 1, 1:wp - 1, :] = m

    def conv3x3(pad_ref, w_ref, s_ref, b_ref):
        # pad_ref: (b, h+2, w+2, cin) bf16 zero-padded input; w: (9, cin, cout).
        b, hp, wp, cin = pad_ref.shape
        h, w = hp - 2, wp - 2
        cout = w_ref.shape[2]
        xpad = pad_ref[...]
        # Hoist the dx shifts: 3 sublane-offset slabs instead of 9.
        slabs = [xpad[:, :, dx:dx + w, :] for dx in range(3)]
        acc = None
        for dy in range(3):
            for dx in range(3):
                patch = slabs[dx][:, dy:dy + h].reshape(b * h * w, cin)
                d = jnp.dot(patch, w_ref[dy * 3 + dx],
                            preferred_element_type=jnp.float32)
                acc = d if acc is None else acc + d
        return bn_relu(acc, s_ref, b_ref).reshape(b, h, w, cout)

    # ---- Stage 1: conv1 (single K=9*Cin bf16 matmul) + BN + ReLU + pool ----
    p = x_ref[...].reshape(B * H * W, K1)
    y = bn_relu(jnp.dot(p, w1_ref[...], preferred_element_type=jnp.float32),
                s1_ref, b1_ref).reshape(B, H, W, c1)
    pool_to_pad(y, pad2)

    # ---- Stages 2 and 3 ----
    pool_to_pad(conv3x3(pad2, w2_ref, s2_ref, b2_ref), pad3)
    pool_to_pad(conv3x3(pad3, w3_ref, s3_ref, b3_ref), pad4)

    # ---- Stage 4 -> output features ----
    y = conv3x3(pad4, w4_ref, s4_ref, b4_ref)
    o_ref[...] = pool2x2(y).astype(o_ref.dtype)


def _pick_batch_block(n):
    # Largest B in {8,4,2,1} dividing n while keeping >= 2 grid steps (so v7x's
    # two TensorCores can still split work); fall back to any divisor.
    for b in (8, 4, 2, 1):
        if n % b == 0 and n // b >= 2:
            return b
    for b in (8, 4, 2, 1):
        if n % b == 0:
            return b
    return 1


def vgg7_trunk(x, trunk, *, vmem_limit_bytes=32 << 20):
    # x: (N, H, W, Cin) NHWC.  Returns pooled features (N, H//16, W//16, 512).
    N, H, W, Cin = x.shape
    assert H % 16 == 0 and W % 16 == 0
    (w1, s1, b1), (w2, s2, b2), (w3, s3, b3), (w4, s4, b4) = trunk
    c_out = w4.shape[2]
    Hf, Wf = H // 16, W // 16
    B = _pick_batch_block(N)

    # conv1 im2col in XLA (tiny tensors): pack the 3x3xCin taps onto the lane
    # axis so the first conv is one K=9*Cin matmul.  Input cast to bf16 once.
    xb = x.astype(jnp.bfloat16)
    xp = jnp.pad(xb, ((0, 0), (1, 1), (1, 1), (0, 0)))
    cols = jnp.concatenate(
        [xp[:, dy:dy + H, dx:dx + W, :] for dy in range(3) for dx in range(3)],
        axis=-1)                                                # (N, H, W, 9*Cin)

    def full(shape):
        nd = len(shape)
        return pl.BlockSpec(tuple(shape), lambda *_: (0,) * nd)

    return pl.pallas_call(
        _vgg7_trunk_kernel,
        out_shape=jax.ShapeDtypeStruct((N, Hf, Wf, c_out), jnp.float32),
        grid_spec=pltpu.PrefetchScalarGridSpec(
            num_scalar_prefetch=0,
            grid=(N // B,),
            in_specs=[
                pl.BlockSpec((B, H, W, cols.shape[-1]), lambda n: (n, 0, 0, 0)),
                full(w1.shape), full(s1.shape), full(b1.shape),
                full(w2.shape), full(s2.shape), full(b2.shape),
                full(w3.shape), full(s3.shape), full(b3.shape),
                full(w4.shape), full(s4.shape), full(b4.shape),
            ],
            out_specs=pl.BlockSpec((B, Hf, Wf, c_out),
                                   lambda n: (n, 0, 0, 0)),
            scratch_shapes=[
                pltpu.VMEM((B, H // 2 + 2, W // 2 + 2, w2.shape[1]), jnp.bfloat16),
                pltpu.VMEM((B, H // 4 + 2, W // 4 + 2, w3.shape[1]), jnp.bfloat16),
                pltpu.VMEM((B, H // 8 + 2, W // 8 + 2, w4.shape[1]), jnp.bfloat16),
            ],
        ),
        compiler_params=pltpu.CompilerParams(
            dimension_semantics=("parallel",),
            vmem_limit_bytes=vmem_limit_bytes),
    )(cols, w1, s1, b1, w2, s2, b2, w3, s3, b3, w4, s4, b4)


# ----------------------------------------------------------------------------
# Linear with int8 weights: y = (x @ dequant(Wq)) * scale + b (optional ReLU).
# Full-K int8 weight tiles streamed from HBM (half the bytes of bf16), dequant
# to bf16 in VMEM, bf16 MXU matmul with f32 accumulation, per-column epilogue.
# ----------------------------------------------------------------------------
def _linear_int8_kernel(x_ref, w_ref, s_ref, b_ref, o_ref, *, apply_relu):
    w = w_ref[...].astype(jnp.bfloat16)          # int8 values are exact in bf16
    y = jnp.dot(x_ref[...], w, preferred_element_type=jnp.float32)
    y = y * s_ref[...] + b_ref[...]
    if apply_relu:
        y = jnp.maximum(y, 0.0)
    o_ref[...] = y.astype(o_ref.dtype)


def linear_int8(x, wq, scale, b, *, apply_relu, out_dtype=jnp.float32, tn=1024):
    M, K = x.shape
    Kw, Nout = wq.shape
    assert Kw == K
    tn = min(tn, Nout)
    assert Nout % tn == 0
    kernel = functools.partial(_linear_int8_kernel, apply_relu=apply_relu)
    return pl.pallas_call(
        kernel,
        out_shape=jax.ShapeDtypeStruct((M, Nout), out_dtype),
        grid_spec=pltpu.PrefetchScalarGridSpec(
            num_scalar_prefetch=0,
            grid=(Nout // tn,),
            in_specs=[
                pl.BlockSpec((M, K), lambda j: (0, 0)),       # activations resident
                pl.BlockSpec((K, tn), lambda j: (0, j)),      # int8 weight stream
                pl.BlockSpec((1, tn), lambda j: (0, j)),      # per-column scales
                pl.BlockSpec((1, tn), lambda j: (0, j)),      # bias
            ],
            out_specs=pl.BlockSpec((M, tn), lambda j: (0, j)),
        ),
        compiler_params=pltpu.CompilerParams(
            dimension_semantics=("parallel",),
            vmem_limit_bytes=40 << 20),
    )(x, wq, scale, b)


# ----------------------------------------------------------------------------
# Parameter init (deterministic, eval-mode BatchNorm folded into scale/bias,
# bf16 conv weights, int8 + per-column-scale fc weights).
# ----------------------------------------------------------------------------
def init_vgg_params(key, classes=10, in_ch=3, shape=(16, 16)):
    keys = iter(jax.random.split(key, 64))
    eps = 1e-5
    trunk = []
    c = in_ch
    for li, cout in enumerate(_VGG7_CHANNELS):
        w = jax.random.normal(next(keys), (3, 3, c, cout), jnp.float32)
        w = w / jnp.sqrt(9.0 * c)
        conv_b = 0.1 * jax.random.normal(next(keys), (cout,), jnp.float32)
        gamma = 1.0 + 0.1 * jax.random.normal(next(keys), (cout,), jnp.float32)
        beta = 0.1 * jax.random.normal(next(keys), (cout,), jnp.float32)
        mean = 0.1 * jax.random.normal(next(keys), (cout,), jnp.float32)
        var = jax.random.uniform(next(keys), (cout,), jnp.float32, 0.5, 1.5)
        scale = gamma / jnp.sqrt(var + eps)
        bias = (conv_b - mean) * scale + beta
        w9 = w.reshape(9, c, cout)
        if li == 0:                          # conv1: im2col'd -> (9*Cin, Cout)
            w9 = w9.reshape(9 * c, cout)
        trunk.append((w9.astype(jnp.bfloat16),
                      scale.reshape(1, cout), bias.reshape(1, cout)))
        c = cout

    fc_in = 2 * shape[0] * shape[1]

    def lin(kw, kb, kin, kout):
        w = jax.random.normal(kw, (kin, kout), jnp.float32) / jnp.sqrt(float(kin))
        b = 0.1 * jax.random.normal(kb, (kout,), jnp.float32)
        return w, b

    def quantize_cols(w):
        amax = jnp.max(jnp.abs(w), axis=0, keepdims=True)
        s = jnp.maximum(amax, 1e-6) / 127.0
        q = jnp.round(w / s).astype(jnp.int8)
        return q, s.astype(jnp.float32)

    w1, b1 = lin(next(keys), next(keys), fc_in, 4096)
    w2, b2 = lin(next(keys), next(keys), 4096, 4096)
    w3, b3 = lin(next(keys), next(keys), 4096, classes)
    npad = pl.cdiv(classes, 128) * 128       # pad fc3 outputs to a lane multiple
    w3 = jnp.pad(w3, ((0, 0), (0, npad - classes)))
    b3 = jnp.pad(b3, ((0, npad - classes),))
    fc = []
    for w, b in ((w1, b1), (w2, b2), (w3, b3)):
        q, s = quantize_cols(w)
        fc.append((q, s, b.reshape(1, -1)))
    return {'trunk': trunk, 'fc': fc}


# ----------------------------------------------------------------------------
# Forward (Pallas) and pure-JAX reference
# ----------------------------------------------------------------------------
def vgg_forward(x_nchw, params, classes):
    x = jnp.transpose(x_nchw, (0, 2, 3, 1))                      # NCHW -> NHWC
    feats = vgg7_trunk(x, params['trunk'])                       # (N, Hf, Wf, 512)
    n = feats.shape[0]
    # torch's y.view(N, -1) flattens NCHW features in (C, H, W) order.
    y = jnp.transpose(feats, (0, 3, 1, 2)).reshape(n, -1).astype(jnp.bfloat16)
    (w1, s1, b1), (w2, s2, b2), (w3, s3, b3) = params['fc']
    y = linear_int8(y, w1, s1, b1, apply_relu=True, out_dtype=jnp.bfloat16)
    # TODO(synk): nn.Dropout(p=0.5) is identity in eval mode; train-mode stochastic dropout not implemented.
    y = linear_int8(y, w2, s2, b2, apply_relu=True, out_dtype=jnp.bfloat16)
    y = linear_int8(y, w3, s3, b3, apply_relu=False, out_dtype=jnp.float32)
    return y[:, :classes]


def reference_forward(x_nchw, params, classes):
    # Pure-JAX reference using the SAME (bf16 conv / int8 fc) weights, so the
    # comparison only measures kernel-vs-XLA numeric differences.
    x = jnp.transpose(x_nchw, (0, 2, 3, 1)).astype(jnp.float32)
    for (w, s, b) in params['trunk']:
        cout = w.shape[-1]
        cin = w.shape[-2] if w.ndim == 3 else w.shape[0] // 9
        wh = w.astype(jnp.float32).reshape(3, 3, cin, cout)
        x = lax.conv_general_dilated(
            x, wh, (1, 1), 'SAME',
            dimension_numbers=('NHWC', 'HWIO', 'NHWC'))
        x = jnp.maximum(x * s.reshape(1, 1, 1, cout)
                        + b.reshape(1, 1, 1, cout), 0.0)
        x = lax.reduce_window(x, -jnp.inf, lax.max,
                              (1, 2, 2, 1), (1, 2, 2, 1), 'VALID')
    n = x.shape[0]
    y = jnp.transpose(x, (0, 3, 1, 2)).reshape(n, -1)
    for i, (q, s, b) in enumerate(params['fc']):
        w = q.astype(jnp.float32) * s
        y = y @ w + b
        if i < 2:
            y = jnp.maximum(y, 0.0)
    return y[:, :classes]


if __name__ == "__main__":
    # VGG7 on 3x16x16 input -> 4 maxpools -> 1x1x512 features == 2*16*16,
    # matching fc1's in_features for shape=(16, 16).
    N, C, H, W = 2, 3, 16, 16
    classes = 10

    key = jax.random.PRNGKey(0)
    pkey, xkey = jax.random.split(key)
    params = init_vgg_params(pkey, classes=classes, in_ch=C, shape=(H, W))
    x = jax.random.normal(xkey, (N, C, H, W), jnp.float32)

    out = jax.block_until_ready(vgg_forward(x, params, classes))
    assert out.shape == (N, classes), out.shape

    ref = reference_forward(x, params, classes)
    # Activations are bf16 end-to-end in the kernel path (reference is f32 with
    # the same quantized weights), so compare at a slightly relaxed tolerance.
    err = jnp.max(jnp.abs(out - ref))
    if not jnp.allclose(out, ref, rtol=2.5e-2, atol=4e-2):
        raise AssertionError(f"mismatch vs reference, max abs err={err}")

    print("KERNEL_OK")
</pallas_src>

<mosaic_0001>
module attributes {stable_mosaic.version = 11 : i64} {
  func.func @_vgg7_trunk_kernel(%arg0: i32, %arg1: memref<1x16x16x27xbf16, #tpu.memory_space<vmem>>, %arg2: memref<27x64xbf16, #tpu.memory_space<vmem>>, %arg3: memref<1x64xf32, #tpu.memory_space<vmem>>, %arg4: memref<1x64xf32, #tpu.memory_space<vmem>>, %arg5: memref<9x64x128xbf16, #tpu.memory_space<vmem>>, %arg6: memref<1x128xf32, #tpu.memory_space<vmem>>, %arg7: memref<1x128xf32, #tpu.memory_space<vmem>>, %arg8: memref<9x128x256xbf16, #tpu.memory_space<vmem>>, %arg9: memref<1x256xf32, #tpu.memory_space<vmem>>, %arg10: memref<1x256xf32, #tpu.memory_space<vmem>>, %arg11: memref<9x256x512xbf16, #tpu.memory_space<vmem>>, %arg12: memref<1x512xf32, #tpu.memory_space<vmem>>, %arg13: memref<1x512xf32, #tpu.memory_space<vmem>>, %arg14: memref<1x1x1x512xf32, #tpu.memory_space<vmem>>, %arg15: memref<1x10x10x64xbf16, #tpu.memory_space<vmem>>, %arg16: memref<1x6x6x128xbf16, #tpu.memory_space<vmem>>, %arg17: memref<1x4x4x256xbf16, #tpu.memory_space<vmem>>) attributes {dimension_semantics = [#tpu.dimension_semantics<parallel>], iteration_bounds = array<i64: 2>, scalar_prefetch = 0 : i64, scratch_operands = 3 : i64, tpu.core_type = #tpu.core_type<tc>, window_params = [{transform_indices = @transform_0, window_bounds = array<i64: 1, 16, 16, 27>}, {pipeline_mode = #tpu.pipeline_mode<synchronous>, transform_indices = @transform_1, window_bounds = array<i64: 27, 64>}, {pipeline_mode = #tpu.pipeline_mode<synchronous>, transform_indices = @transform_2, window_bounds = array<i64: 1, 64>}, {pipeline_mode = #tpu.pipeline_mode<synchronous>, transform_indices = @transform_3, window_bounds = array<i64: 1, 64>}, {pipeline_mode = #tpu.pipeline_mode<synchronous>, transform_indices = @transform_4, window_bounds = array<i64: 9, 64, 128>}, {pipeline_mode = #tpu.pipeline_mode<synchronous>, transform_indices = @transform_5, window_bounds = array<i64: 1, 128>}, {pipeline_mode = #tpu.pipeline_mode<synchronous>, transform_indices = @transform_6, window_bounds = array<i64: 1, 128>}, {pipeline_mode = #tpu.pipeline_mode<synchronous>, transform_indices = @transform_7, window_bounds = array<i64: 9, 128, 256>}, {pipeline_mode = #tpu.pipeline_mode<synchronous>, transform_indices = @transform_8, window_bounds = array<i64: 1, 256>}, {pipeline_mode = #tpu.pipeline_mode<synchronous>, transform_indices = @transform_9, window_bounds = array<i64: 1, 256>}, {pipeline_mode = #tpu.pipeline_mode<synchronous>, transform_indices = @transform_10, window_bounds = array<i64: 9, 256, 512>}, {pipeline_mode = #tpu.pipeline_mode<synchronous>, transform_indices = @transform_11, window_bounds = array<i64: 1, 512>}, {pipeline_mode = #tpu.pipeline_mode<synchronous>, transform_indices = @transform_12, window_bounds = array<i64: 1, 512>}, {transform_indices = @transform_13, window_bounds = array<i64: 1, 1, 1, 512>}]} {
    %c0 = arith.constant 0 : index
    %c0_0 = arith.constant 0 : index
    %c0_1 = arith.constant 0 : index
    %c0_2 = arith.constant 0 : index
    %0 = vector.load %arg1[%c0, %c0_0, %c0_1, %c0_2] : memref<1x16x16x27xbf16, #tpu.memory_space<vmem>>, vector<1x16x16x27xbf16>
    %1 = vector.shape_cast %0 : vector<1x16x16x27xbf16> to vector<256x27xbf16>
    %c0_3 = arith.constant 0 : index
    %c0_4 = arith.constant 0 : index
    %2 = vector.load %arg2[%c0_3, %c0_4] : memref<27x64xbf16, #tpu.memory_space<vmem>>, vector<27x64xbf16>
    %cst = arith.constant dense<0.000000e+00> : vector<256x64xf32>
    %3 = tpu.matmul %1, %2, %cst {dimension_numbers = #tpu.dot_dimension_numbers<[1], [0], [0], [1], [0, 0, 1, 1], [], []>} : vector<256x27xbf16>, vector<27x64xbf16>, vector<256x64xf32> -> vector<256x64xf32>
    %c0_5 = arith.constant 0 : index
    %c0_6 = arith.constant 0 : index
    %4 = vector.load %arg3[%c0_5, %c0_6] : memref<1x64xf32, #tpu.memory_space<vmem>>, vector<1x64xf32>
    %5 = vector.broadcast %4 : vector<1x64xf32> to vector<256x64xf32>
    %6 = arith.mulf %3, %5 : vector<256x64xf32>
    %c0_7 = arith.constant 0 : index
    %c0_8 = arith.constant 0 : index
    %7 = vector.load %arg4[%c0_7, %c0_8] : memref<1x64xf32, #tpu.memory_space<vmem>>, vector<1x64xf32>
    %8 = vector.broadcast %7 : vector<1x64xf32> to vector<256x64xf32>
    %9 = arith.addf %6, %8 : vector<256x64xf32>
    %cst_9 = arith.constant 0.000000e+00 : f32
    %10 = vector.broadcast %cst_9 : f32 to vector<256x64xf32>
    %11 = arith.maximumf %9, %10 : vector<256x64xf32>
    %12 = vector.shape_cast %11 : vector<256x64xf32> to vector<1x16x16x64xf32>
    %13 = vector.shape_cast %12 : vector<1x16x16x64xf32> to vector<1x8x2x16x64xf32>
    %14 = vector.extract_strided_slice %13 {offsets = [0, 0, 0, 0, 0], sizes = [1, 8, 1, 16, 64], strides = [1, 1, 1, 1, 1]} : vector<1x8x2x16x64xf32> to vector<1x8x1x16x64xf32>
    %15 = vector.shape_cast %14 : vector<1x8x1x16x64xf32> to vector<1x8x16x64xf32>
    %16 = vector.extract_strided_slice %13 {offsets = [0, 0, 1, 0, 0], sizes = [1, 8, 1, 16, 64], strides = [1, 1, 1, 1, 1]} : vector<1x8x2x16x64xf32> to vector<1x8x1x16x64xf32>
    %17 = vector.shape_cast %16 : vector<1x8x1x16x64xf32> to vector<1x8x16x64xf32>
    %18 = arith.maximumf %15, %17 : vector<1x8x16x64xf32>
    %19 = vector.extract_strided_slice %18 {offsets = [0, 0, 0, 0], sizes = [1, 8, 1, 64], strides = [1, 1, 1, 1]} : vector<1x8x16x64xf32> to vector<1x8x1x64xf32>
    %20 = vector.extract_strided_slice %18 {offsets = [0, 0, 1, 0], sizes = [1, 8, 1, 64], strides = [1, 1, 1, 1]} : vector<1x8x16x64xf32> to vector<1x8x1x64xf32>
    %21 = arith.maximumf %19, %20 : vector<1x8x1x64xf32>
    %22 = vector.extract_strided_slice %18 {offsets = [0, 0, 2, 0], sizes = [1, 8, 1, 64], strides = [1, 1, 1, 1]} : vector<1x8x16x64xf32> to vector<1x8x1x64xf32>
    %23 = vector.extract_strided_slice %18 {offsets = [0, 0, 3, 0], sizes = [1, 8, 1, 64], strides = [1, 1, 1, 1]} : vector<1x8x16x64xf32> to vector<1x8x1x64xf32>
    %24 = arith.maximumf %22, %23 : vector<1x8x1x64xf32>
    %25 = vector.extract_strided_slice %18 {offsets = [0, 0, 4, 0], sizes = [1, 8, 1, 64], strides = [1, 1, 1, 1]} : vector<1x8x16x64xf32> to vector<1x8x1x64xf32>
    %26 = vector.extract_strided_slice %18 {offsets = [0, 0, 5, 0], sizes = [1, 8, 1, 64], strides = [1, 1, 1, 1]} : vector<1x8x16x64xf32> to vector<1x8x1x64xf32>
    %27 = arith.maximumf %25, %26 : vector<1x8x1x64xf32>
    %28 = vector.extract_strided_slice %18 {offsets = [0, 0, 6, 0], sizes = [1, 8, 1, 64], strides = [1, 1, 1, 1]} : vector<1x8x16x64xf32> to vector<1x8x1x64xf32>
    %29 = vector.extract_strided_slice %18 {offsets = [0, 0, 7, 0], sizes = [1, 8, 1, 64], strides = [1, 1, 1, 1]} : vector<1x8x16x64xf32> to vector<1x8x1x64xf32>
    %30 = arith.maximumf %28, %29 : vector<1x8x1x64xf32>
    %31 = vector.extract_strided_slice %18 {offsets = [0, 0, 8, 0], sizes = [1, 8, 1, 64], strides = [1, 1, 1, 1]} : vector<1x8x16x64xf32> to vector<1x8x1x64xf32>
    %32 = vector.extract_strided_slice %18 {offsets = [0, 0, 9, 0], sizes = [1, 8, 1, 64], strides = [1, 1, 1, 1]} : vector<1x8x16x64xf32> to vector<1x8x1x64xf32>
    %33 = arith.maximumf %31, %32 : vector<1x8x1x64xf32>
    %34 = vector.extract_strided_slice %18 {offsets = [0, 0, 10, 0], sizes = [1, 8, 1, 64], strides = [1, 1, 1, 1]} : vector<1x8x16x64xf32> to vector<1x8x1x64xf32>
    %35 = vector.extract_strided_slice %18 {offsets = [0, 0, 11, 0], sizes = [1, 8, 1, 64], strides = [1, 1, 1, 1]} : vector<1x8x16x64xf32> to vector<1x8x1x64xf32>
    %36 = arith.maximumf %34, %35 : vector<1x8x1x64xf32>
    %37 = vector.extract_strided_slice %18 {offsets = [0, 0, 12, 0], sizes = [1, 8, 1, 64], strides = [1, 1, 1, 1]} : vector<1x8x16x64xf32> to vector<1x8x1x64xf32>
    %38 = vector.extract_strided_slice %18 {offsets = [0, 0, 13, 0], sizes = [1, 8, 1, 64], strides = [1, 1, 1, 1]} : vector<1x8x16x64xf32> to vector<1x8x1x64xf32>
    %39 = arith.maximumf %37, %38 : vector<1x8x1x64xf32>
    %40 = vector.extract_strided_slice %18 {offsets = [0, 0, 14, 0], sizes = [1, 8, 1, 64], strides = [1, 1, 1, 1]} : vector<1x8x16x64xf32> to vector<1x8x1x64xf32>
    %41 = vector.extract_strided_slice %18 {offsets = [0, 0, 15, 0], sizes = [1, 8, 1, 64], strides = [1, 1, 1, 1]} : vector<1x8x16x64xf32> to vector<1x8x1x64xf32>
    %42 = arith.maximumf %40, %41 : vector<1x8x1x64xf32>
    %43 = tpu.concatenate %21, %24, %27, %30, %33, %36, %39, %42 in 2 : vector<1x8x1x64xf32>, vector<1x8x1x64xf32>, vector<1x8x1x64xf32>, vector<1x8x1x64xf32>, vector<1x8x1x64xf32>, vector<1x8x1x64xf32>, vector<1x8x1x64xf32>, vector<1x8x1x64xf32> -> vector<1x8x8x64xf32>
    %44 = arith.truncf %43 : vector<1x8x8x64xf32> to vector<1x8x8x64xbf16>
    %cst_10 = arith.constant 0.000000e+00 : bf16
    %45 = vector.broadcast %cst_10 : bf16 to vector<1x1x10x64xbf16>
    %c0_11 = arith.constant 0 : index
    %c0_12 = arith.constant 0 : index
    %c0_13 = arith.constant 0 : index
    %c0_14 = arith.constant 0 : index
    %46 = vector.load %arg15[%c0_11, %c0_12, %c0_13, %c0_14] : memref<1x10x10x64xbf16, #tpu.memory_space<vmem>>, vector<1x1x10x64xbf16>
    tpu.vector_store %arg15[%c0_11, %c0_12, %c0_13, %c0_14], %45 {strides = array<i32>} : memref<1x10x10x64xbf16, #tpu.memory_space<vmem>>, vector<1x1x10x64xbf16>,
    %c0_15 = arith.constant 0 : index
    %c9 = arith.constant 9 : index
    %c0_16 = arith.constant 0 : index
    %c0_17 = arith.constant 0 : index
    %47 = vector.load %arg15[%c0_15, %c9, %c0_16, %c0_17] : memref<1x10x10x64xbf16, #tpu.memory_space<vmem>>, vector<1x1x10x64xbf16>
    tpu.vector_store %arg15[%c0_15, %c9, %c0_16, %c0_17], %45 {strides = array<i32>} : memref<1x10x10x64xbf16, #tpu.memory_space<vmem>>, vector<1x1x10x64xbf16>,
    %cst_18 = arith.constant 0.000000e+00 : bf16
    %48 = vector.broadcast %cst_18 : bf16 to vector<1x10x1x64xbf16>
    %c0_19 = arith.constant 0 : index
    %c0_20 = arith.constant 0 : index
    %c0_21 = arith.constant 0 : index
    %c0_22 = arith.constant 0 : index
    %49 = vector.load %arg15[%c0_19, %c0_20, %c0_21, %c0_22] : memref<1x10x10x64xbf16, #tpu.memory_space<vmem>>, vector<1x10x1x64xbf16>
    tpu.vector_store %arg15[%c0_19, %c0_20, %c0_21, %c0_22], %48 {strides = array<i32>} : memref<1x10x10x64xbf16, #tpu.memory_space<vmem>>, vector<1x10x1x64xbf16>,
    %c0_23 = arith.constant 0 : index
    %c0_24 = arith.constant 0 : index
    %c9_25 = arith.constant 9 : index
    %c0_26 = arith.constant 0 : index
    %50 = vector.load %arg15[%c0_23, %c0_24, %c9_25, %c0_26] : memref<1x10x10x64xbf16, #tpu.memory_space<vmem>>, vector<1x10x1x64xbf16>
    tpu.vector_store %arg15[%c0_23, %c0_24, %c9_25, %c0_26], %48 {strides = array<i32>} : memref<1x10x10x64xbf16, #tpu.memory_space<vmem>>, vector<1x10x1x64xbf16>,
    %c0_27 = arith.constant 0 : index
    %c1 = arith.constant 1 : index
    %c1_28 = arith.constant 1 : index
    %c0_29 = arith.constant 0 : index
    %51 = vector.load %arg15[%c0_27, %c1, %c1_28, %c0_29] : memref<1x10x10x64xbf16, #tpu.memory_space<vmem>>, vector<1x8x8x64xbf16>
    tpu.vector_store %arg15[%c0_27, %c1, %c1_28, %c0_29], %44 {strides = array<i32>} : memref<1x10x10x64xbf16, #tpu.memory_space<vmem>>, vector<1x8x8x64xbf16>,
    %c0_30 = arith.constant 0 : index
    %c0_31 = arith.constant 0 : index
    %c0_32 = arith.constant 0 : index
    %c0_33 = arith.constant 0 : index
    %52 = vector.load %arg15[%c0_30, %c0_31, %c0_32, %c0_33] : memref<1x10x10x64xbf16, #tpu.memory_space<vmem>>, vector<1x10x10x64xbf16>
    %53 = vector.extract_strided_slice %52 {offsets = [0, 0, 0, 0], sizes = [1, 10, 8, 64], strides = [1, 1, 1, 1]} : vector<1x10x10x64xbf16> to vector<1x10x8x64xbf16>
    %54 = vector.extract_strided_slice %52 {offsets = [0, 0, 1, 0], sizes = [1, 10, 8, 64], strides = [1, 1, 1, 1]} : vector<1x10x10x64xbf16> to vector<1x10x8x64xbf16>
    %55 = vector.extract_strided_slice %52 {offsets = [0, 0, 2, 0], sizes = [1, 10, 8, 64], strides = [1, 1, 1, 1]} : vector<1x10x10x64xbf16> to vector<1x10x8x64xbf16>
    %56 = vector.extract_strided_slice %53 {offsets = [0, 0, 0, 0], sizes = [1, 8, 8, 64], strides = [1, 1, 1, 1]} : vector<1x10x8x64xbf16> to vector<1x8x8x64xbf16>
    %57 = vector.shape_cast %56 : vector<1x8x8x64xbf16> to vector<64x64xbf16>
    %c0_34 = arith.constant 0 : index
    %c0_35 = arith.constant 0 : index
    %c0_36 = arith.constant 0 : index
    %58 = vector.load %arg5[%c0_34, %c0_35, %c0_36] : memref<9x64x128xbf16, #tpu.memory_space<vmem>>, vector<1x64x128xbf16>
    %59 = vector.shape_cast %58 : vector<1x64x128xbf16> to vector<64x128xbf16>
    %cst_37 = arith.constant dense<0.000000e+00> : vector<64x128xf32>
    %60 = tpu.matmul %57, %59, %cst_37 {dimension_numbers = #tpu.dot_dimension_numbers<[1], [0], [0], [1], [0, 0, 1, 1], [], []>} : vector<64x64xbf16>, vector<64x128xbf16>, vector<64x128xf32> -> vector<64x128xf32>
    %61 = vector.extract_strided_slice %54 {offsets = [0, 0, 0, 0], sizes = [1, 8, 8, 64], strides = [1, 1, 1, 1]} : vector<1x10x8x64xbf16> to vector<1x8x8x64xbf16>
    %62 = vector.shape_cast %61 : vector<1x8x8x64xbf16> to vector<64x64xbf16>
    %c1_38 = arith.constant 1 : index
    %c0_39 = arith.constant 0 : index
    %c0_40 = arith.constant 0 : index
    %63 = vector.load %arg5[%c1_38, %c0_39, %c0_40] : memref<9x64x128xbf16, #tpu.memory_space<vmem>>, vector<1x64x128xbf16>
    %64 = vector.shape_cast %63 : vector<1x64x128xbf16> to vector<64x128xbf16>
    %cst_41 = arith.constant dense<0.000000e+00> : vector<64x128xf32>
    %65 = tpu.matmul %62, %64, %cst_41 {dimension_numbers = #tpu.dot_dimension_numbers<[1], [0], [0], [1], [0, 0, 1, 1], [], []>} : vector<64x64xbf16>, vector<64x128xbf16>, vector<64x128xf32> -> vector<64x128xf32>
    %66 = arith.addf %60, %65 : vector<64x128xf32>
    %67 = vector.extract_strided_slice %55 {offsets = [0, 0, 0, 0], sizes = [1, 8, 8, 64], strides = [1, 1, 1, 1]} : vector<1x10x8x64xbf16> to vector<1x8x8x64xbf16>
    %68 = vector.shape_cast %67 : vector<1x8x8x64xbf16> to vector<64x64xbf16>
    %c2 = arith.constant 2 : index
    %c0_42 = arith.constant 0 : index
    %c0_43 = arith.constant 0 : index
    %69 = vector.load %arg5[%c2, %c0_42, %c0_43] : memref<9x64x128xbf16, #tpu.memory_space<vmem>>, vector<1x64x128xbf16>
    %70 = vector.shape_cast %69 : vector<1x64x128xbf16> to vector<64x128xbf16>
    %cst_44 = arith.constant dense<0.000000e+00> : vector<64x128xf32>
    %71 = tpu.matmul %68, %70, %cst_44 {dimension_numbers = #tpu.dot_dimension_numbers<[1], [0], [0], [1], [0, 0, 1, 1], [], []>} : vector<64x64xbf16>, vector<64x128xbf16>, vector<64x128xf32> -> vector<64x128xf32>
    %72 = arith.addf %66, %71 : vector<64x128xf32>
    %73 = vector.extract_strided_slice %53 {offsets = [0, 1, 0, 0], sizes = [1, 8, 8, 64], strides = [1, 1, 1, 1]} : vector<1x10x8x64xbf16> to vector<1x8x8x64xbf16>
    %74 = vector.shape_cast %73 : vector<1x8x8x64xbf16> to vector<64x64xbf16>
    %c3 = arith.constant 3 : index
    %c0_45 = arith.constant 0 : index
    %c0_46 = arith.constant 0 : index
    %75 = vector.load %arg5[%c3, %c0_45, %c0_46] : memref<9x64x128xbf16, #tpu.memory_space<vmem>>, vector<1x64x128xbf16>
    %76 = vector.shape_cast %75 : vector<1x64x128xbf16> to vector<64x128xbf16>
    %cst_47 = arith.constant dense<0.000000e+00> : vector<64x128xf32>
    %77 = tpu.matmul %74, %76, %cst_47 {dimension_numbers = #tpu.dot_dimension_numbers<[1], [0], [0], [1], [0, 0, 1, 1], [], []>} : vector<64x64xbf16>, vector<64x128xbf16>, vector<64x128xf32> -> vector<64x128xf32>
    %78 = arith.addf %72, %77 : vector<64x128xf32>
    %79 = vector.extract_strided_slice %54 {offsets = [0, 1, 0, 0], sizes = [1, 8, 8, 64], strides = [1, 1, 1, 1]} : vector<1x10x8x64xbf16> to vector<1x8x8x64xbf16>
    %80 = vector.shape_cast %79 : vector<1x8x8x64xbf16> to vector<64x64xbf16>
    %c4 = arith.constant 4 : index
    %c0_48 = arith.constant 0 : index
    %c0_49 = arith.constant 0 : index
    %81 = vector.load %arg5[%c4, %c0_48, %c0_49] : memref<9x64x128xbf16, #tpu.memory_space<vmem>>, vector<1x64x128xbf16>
    %82 = vector.shape_cast %81 : vector<1x64x128xbf16> to vector<64x128xbf16>
    %cst_50 = arith.constant dense<0.000000e+00> : vector<64x128xf32>
    %83 = tpu.matmul %80, %82, %cst_50 {dimension_numbers = #tpu.dot_dimension_numbers<[1], [0], [0], [1], [0, 0, 1, 1], [], []>} : vector<64x64xbf16>, vector<64x128xbf16>, vector<64x128xf32> -> vector<64x128xf32>
    %84 = arith.addf %78, %83 : vector<64x128xf32>
    %85 = vector.extract_strided_slice %55 {offsets = [0, 1, 0, 0], sizes = [1, 8, 8, 64], strides = [1, 1, 1, 1]} : vector<1x10x8x64xbf16> to vector<1x8x8x64xbf16>
    %86 = vector.shape_cast %85 : vector<1x8x8x64xbf16> to vector<64x64xbf16>
    %c5 = arith.constant 5 : index
    %c0_51 = arith.constant 0 : index
    %c0_52 = arith.constant 0 : index
    %87 = vector.load %arg5[%c5, %c0_51, %c0_52] : memref<9x64x128xbf16, #tpu.memory_space<vmem>>, vector<1x64x128xbf16>
    %88 = vector.shape_cast %87 : vector<1x64x128xbf16> to vector<64x128xbf16>
    %cst_53 = arith.constant dense<0.000000e+00> : vector<64x128xf32>
    %89 = tpu.matmul %86, %88, %cst_53 {dimension_numbers = #tpu.dot_dimension_numbers<[1], [0], [0], [1], [0, 0, 1, 1], [], []>} : vector<64x64xbf16>, vector<64x128xbf16>, vector<64x128xf32> -> vector<64x128xf32>
    %90 = arith.addf %84, %89 : vector<64x128xf32>
    %91 = vector.extract_strided_slice %53 {offsets = [0, 2, 0, 0], sizes = [1, 8, 8, 64], strides = [1, 1, 1, 1]} : vector<1x10x8x64xbf16> to vector<1x8x8x64xbf16>
    %92 = vector.shape_cast %91 : vector<1x8x8x64xbf16> to vector<64x64xbf16>
    %c6 = arith.constant 6 : index
    %c0_54 = arith.constant 0 : index
    %c0_55 = arith.constant 0 : index
    %93 = vector.load %arg5[%c6, %c0_54, %c0_55] : memref<9x64x128xbf16, #tpu.memory_space<vmem>>, vector<1x64x128xbf16>
    %94 = vector.shape_cast %93 : vector<1x64x128xbf16> to vector<64x128xbf16>
    %cst_56 = arith.constant dense<0.000000e+00> : vector<64x128xf32>
    %95 = tpu.matmul %92, %94, %cst_56 {dimension_numbers = #tpu.dot_dimension_numbers<[1], [0], [0], [1], [0, 0, 1, 1], [], []>} : vector<64x64xbf16>, vector<64x128xbf16>, vector<64x128xf32> -> vector<64x128xf32>
    %96 = arith.addf %90, %95 : vector<64x128xf32>
    %97 = vector.extract_strided_slice %54 {offsets = [0, 2, 0, 0], sizes = [1, 8, 8, 64], strides = [1, 1, 1, 1]} : vector<1x10x8x64xbf16> to vector<1x8x8x64xbf16>
    %98 = vector.shape_cast %97 : vector<1x8x8x64xbf16> to vector<64x64xbf16>
    %c7 = arith.constant 7 : index
    %c0_57 = arith.constant 0 : index
    %c0_58 = arith.constant 0 : index
    %99 = vector.load %arg5[%c7, %c0_57, %c0_58] : memref<9x64x128xbf16, #tpu.memory_space<vmem>>, vector<1x64x128xbf16>
    %100 = vector.shape_cast %99 : vector<1x64x128xbf16> to vector<64x128xbf16>
    %cst_59 = arith.constant dense<0.000000e+00> : vector<64x128xf32>
    %101 = tpu.matmul %98, %100, %cst_59 {dimension_numbers = #tpu.dot_dimension_numbers<[1], [0], [0], [1], [0, 0, 1, 1], [], []>} : vector<64x64xbf16>, vector<64x128xbf16>, vector<64x128xf32> -> vector<64x128xf32>
    %102 = arith.addf %96, %101 : vector<64x128xf32>
    %103 = vector.extract_strided_slice %55 {offsets = [0, 2, 0, 0], sizes = [1, 8, 8, 64], strides = [1, 1, 1, 1]} : vector<1x10x8x64xbf16> to vector<1x8x8x64xbf16>
    %104 = vector.shape_cast %103 : vector<1x8x8x64xbf16> to vector<64x64xbf16>
    %c8 = arith.constant 8 : index
    %c0_60 = arith.constant 0 : index
    %c0_61 = arith.constant 0 : index
    %105 = vector.load %arg5[%c8, %c0_60, %c0_61] : memref<9x64x128xbf16, #tpu.memory_space<vmem>>, vector<1x64x128xbf16>
    %106 = vector.shape_cast %105 : vector<1x64x128xbf16> to vector<64x128xbf16>
    %cst_62 = arith.constant dense<0.000000e+00> : vector<64x128xf32>
    %107 = tpu.matmul %104, %106, %cst_62 {dimension_numbers = #tpu.dot_dimension_numbers<[1], [0], [0], [1], [0, 0, 1, 1], [], []>} : vector<64x64xbf16>, vector<64x128xbf16>, vector<64x128xf32> -> vector<64x128xf32>
    %108 = arith.addf %102, %107 : vector<64x128xf32>
    %c0_63 = arith.constant 0 : index
    %c0_64 = arith.constant 0 : index
    %109 = vector.load %arg6[%c0_63, %c0_64] : memref<1x128xf32, #tpu.memory_space<vmem>>, vector<1x128xf32>
    %110 = vector.broadcast %109 : vector<1x128xf32> to vector<64x128xf32>
    %111 = arith.mulf %108, %110 : vector<64x128xf32>
    %c0_65 = arith.constant 0 : index
    %c0_66 = arith.constant 0 : index
    %112 = vector.load %arg7[%c0_65, %c0_66] : memref<1x128xf32, #tpu.memory_space<vmem>>, vector<1x128xf32>
    %113 = vector.broadcast %112 : vector<1x128xf32> to vector<64x128xf32>
    %114 = arith.addf %111, %113 : vector<64x128xf32>
    %cst_67 = arith.constant 0.000000e+00 : f32
    %115 = vector.broadcast %cst_67 : f32 to vector<64x128xf32>
    %116 = arith.maximumf %114, %115 : vector<64x128xf32>
    %117 = vector.shape_cast %116 : vector<64x128xf32> to vector<1x8x8x128xf32>
    %118 = vector.shape_cast %117 : vector<1x8x8x128xf32> to vector<1x4x2x8x128xf32>
    %119 = vector.extract_strided_slice %118 {offsets = [0, 0, 0, 0, 0], sizes = [1, 4, 1, 8, 128], strides = [1, 1, 1, 1, 1]} : vector<1x4x2x8x128xf32> to vector<1x4x1x8x128xf32>
    %120 = vector.shape_cast %119 : vector<1x4x1x8x128xf32> to vector<1x4x8x128xf32>
    %121 = vector.extract_strided_slice %118 {offsets = [0, 0, 1, 0, 0], sizes = [1, 4, 1, 8, 128], strides = [1, 1, 1, 1, 1]} : vector<1x4x2x8x128xf32> to vector<1x4x1x8x128xf32>
    %122 = vector.shape_cast %121 : vector<1x4x1x8x128xf32> to vector<1x4x8x128xf32>
    %123 = arith.maximumf %120, %122 : vector<1x4x8x128xf32>
    %124 = vector.extract_strided_slice %123 {offsets = [0, 0, 0, 0], sizes = [1, 4, 1, 128], strides = [1, 1, 1, 1]} : vector<1x4x8x128xf32> to vector<1x4x1x128xf32>
    %125 = vector.extract_strided_slice %123 {offsets = [0, 0, 1, 0], sizes = [1, 4, 1, 128], strides = [1, 1, 1, 1]} : vector<1x4x8x128xf32> to vector<1x4x1x128xf32>
    %126 = arith.maximumf %124, %125 : vector<1x4x1x128xf32>
    %127 = vector.extract_strided_slice %123 {offsets = [0, 0, 2, 0], sizes = [1, 4, 1, 128], strides = [1, 1, 1, 1]} : vector<1x4x8x128xf32> to vector<1x4x1x128xf32>
    %128 = vector.extract_strided_slice %123 {offsets = [0, 0, 3, 0], sizes = [1, 4, 1, 128], strides = [1, 1, 1, 1]} : vector<1x4x8x128xf32> to vector<1x4x1x128xf32>
    %129 = arith.maximumf %127, %128 : vector<1x4x1x128xf32>
    %130 = vector.extract_strided_slice %123 {offsets = [0, 0, 4, 0], sizes = [1, 4, 1, 128], strides = [1, 1, 1, 1]} : vector<1x4x8x128xf32> to vector<1x4x1x128xf32>
    %131 = vector.extract_strided_slice %123 {offsets = [0, 0, 5, 0], sizes = [1, 4, 1, 128], strides = [1, 1, 1, 1]} : vector<1x4x8x128xf32> to vector<1x4x1x128xf32>
    %132 = arith.maximumf %130, %131 : vector<1x4x1x128xf32>
    %133 = vector.extract_strided_slice %123 {offsets = [0, 0, 6, 0], sizes = [1, 4, 1, 128], strides = [1, 1, 1, 1]} : vector<1x4x8x128xf32> to vector<1x4x1x128xf32>
    %134 = vector.extract_strided_slice %123 {offsets = [0, 0, 7, 0], sizes = [1, 4, 1, 128], strides = [1, 1, 1, 1]} : vector<1x4x8x128xf32> to vector<1x4x1x128xf32>
    %135 = arith.maximumf %133, %134 : vector<1x4x1x128xf32>
    %136 = tpu.concatenate %126, %129, %132, %135 in 2 : vector<1x4x1x128xf32>, vector<1x4x1x128xf32>, vector<1x4x1x128xf32>, vector<1x4x1x128xf32> -> vector<1x4x4x128xf32>
    %137 = arith.truncf %136 : vector<1x4x4x128xf32> to vector<1x4x4x128xbf16>
    %cst_68 = arith.constant 0.000000e+00 : bf16
    %138 = vector.broadcast %cst_68 : bf16 to vector<1x1x6x128xbf16>
    %c0_69 = arith.constant 0 : index
    %c0_70 = arith.constant 0 : index
    %c0_71 = arith.constant 0 : index
    %c0_72 = arith.constant 0 : index
    %139 = vector.load %arg16[%c0_69, %c0_70, %c0_71, %c0_72] : memref<1x6x6x128xbf16, #tpu.memory_space<vmem>>, vector<1x1x6x128xbf16>
    tpu.vector_store %arg16[%c0_69, %c0_70, %c0_71, %c0_72], %138 {strides = array<i32>} : memref<1x6x6x128xbf16, #tpu.memory_space<vmem>>, vector<1x1x6x128xbf16>,
    %c0_73 = arith.constant 0 : index
    %c5_74 = arith.constant 5 : index
    %c0_75 = arith.constant 0 : index
    %c0_76 = arith.constant 0 : index
    %140 = vector.load %arg16[%c0_73, %c5_74, %c0_75, %c0_76] : memref<1x6x6x128xbf16, #tpu.memory_space<vmem>>, vector<1x1x6x128xbf16>
    tpu.vector_store %arg16[%c0_73, %c5_74, %c0_75, %c0_76], %138 {strides = array<i32>} : memref<1x6x6x128xbf16, #tpu.memory_space<vmem>>, vector<1x1x6x128xbf16>,
    %cst_77 = arith.constant 0.000000e+00 : bf16
    %141 = vector.broadcast %cst_77 : bf16 to vector<1x6x1x128xbf16>
    %c0_78 = arith.constant 0 : index
    %c0_79 = arith.constant 0 : index
    %c0_80 = arith.constant 0 : index
    %c0_81 = arith.constant 0 : index
    %142 = vector.load %arg16[%c0_78, %c0_79, %c0_80, %c0_81] : memref<1x6x6x128xbf16, #tpu.memory_space<vmem>>, vector<1x6x1x128xbf16>
    tpu.vector_store %arg16[%c0_78, %c0_79, %c0_80, %c0_81], %141 {strides = array<i32>} : memref<1x6x6x128xbf16, #tpu.memory_space<vmem>>, vector<1x6x1x128xbf16>,
    %c0_82 = arith.constant 0 : index
    %c0_83 = arith.constant 0 : index
    %c5_84 = arith.constant 5 : index
    %c0_85 = arith.constant 0 : index
    %143 = vector.load %arg16[%c0_82, %c0_83, %c5_84, %c0_85] : memref<1x6x6x128xbf16, #tpu.memory_space<vmem>>, vector<1x6x1x128xbf16>
    tpu.vector_store %arg16[%c0_82, %c0_83, %c5_84, %c0_85], %141 {strides = array<i32>} : memref<1x6x6x128xbf16, #tpu.memory_space<vmem>>, vector<1x6x1x128xbf16>,
    %c0_86 = arith.constant 0 : index
    %c1_87 = arith.constant 1 : index
    %c1_88 = arith.constant 1 : index
    %c0_89 = arith.constant 0 : index
    %144 = vector.load %arg16[%c0_86, %c1_87, %c1_88, %c0_89] : memref<1x6x6x128xbf16, #tpu.memory_space<vmem>>, vector<1x4x4x128xbf16>
    tpu.vector_store %arg16[%c0_86, %c1_87, %c1_88, %c0_89], %137 {strides = array<i32>} : memref<1x6x6x128xbf16, #tpu.memory_space<vmem>>, vector<1x4x4x128xbf16>,
    %c0_90 = arith.constant 0 : index
    %c0_91 = arith.constant 0 : index
    %c0_92 = arith.constant 0 : index
    %c0_93 = arith.constant 0 : index
    %145 = vector.load %arg16[%c0_90, %c0_91, %c0_92, %c0_93] : memref<1x6x6x128xbf16, #tpu.memory_space<vmem>>, vector<1x6x6x128xbf16>
    %146 = vector.extract_strided_slice %145 {offsets = [0, 0, 0, 0], sizes = [1, 6, 4, 128], strides = [1, 1, 1, 1]} : vector<1x6x6x128xbf16> to vector<1x6x4x128xbf16>
    %147 = vector.extract_strided_slice %145 {offsets = [0, 0, 1, 0], sizes = [1, 6, 4, 128], strides = [1, 1, 1, 1]} : vector<1x6x6x128xbf16> to vector<1x6x4x128xbf16>
    %148 = vector.extract_strided_slice %145 {offsets = [0, 0, 2, 0], sizes = [1, 6, 4, 128], strides = [1, 1, 1, 1]} : vector<1x6x6x128xbf16> to vector<1x6x4x128xbf16>
    %149 = vector.extract_strided_slice %146 {offsets = [0, 0, 0, 0], sizes = [1, 4, 4, 128], strides = [1, 1, 1, 1]} : vector<1x6x4x128xbf16> to vector<1x4x4x128xbf16>
    %150 = vector.shape_cast %149 : vector<1x4x4x128xbf16> to vector<16x128xbf16>
    %c0_94 = arith.constant 0 : index
    %c0_95 = arith.constant 0 : index
    %c0_96 = arith.constant 0 : index
    %151 = vector.load %arg8[%c0_94, %c0_95, %c0_96] : memref<9x128x256xbf16, #tpu.memory_space<vmem>>, vector<1x128x256xbf16>
    %152 = vector.shape_cast %151 : vector<1x128x256xbf16> to vector<128x256xbf16>
    %cst_97 = arith.constant dense<0.000000e+00> : vector<16x256xf32>
    %153 = tpu.matmul %150, %152, %cst_97 {dimension_numbers = #tpu.dot_dimension_numbers<[1], [0], [0], [1], [0, 0, 1, 1], [], []>} : vector<16x128xbf16>, vector<128x256xbf16>, vector<16x256xf32> -> vector<16x256xf32>
    %154 = vector.extract_strided_slice %147 {offsets = [0, 0, 0, 0], sizes = [1, 4, 4, 128], strides = [1, 1, 1, 1]} : vector<1x6x4x128xbf16> to vector<1x4x4x128xbf16>
    %155 = vector.shape_cast %154 : vector<1x4x4x128xbf16> to vector<16x128xbf16>
    %c1_98 = arith.constant 1 : index
    %c0_99 = arith.constant 0 : index
    %c0_100 = arith.constant 0 : index
    %156 = vector.load %arg8[%c1_98, %c0_99, %c0_100] : memref<9x128x256xbf16, #tpu.memory_space<vmem>>, vector<1x128x256xbf16>
    %157 = vector.shape_cast %156 : vector<1x128x256xbf16> to vector<128x256xbf16>
    %cst_101 = arith.constant dense<0.000000e+00> : vector<16x256xf32>
    %158 = tpu.matmul %155, %157, %cst_101 {dimension_numbers = #tpu.dot_dimension_numbers<[1], [0], [0], [1], [0, 0, 1, 1], [], []>} : vector<16x128xbf16>, vector<128x256xbf16>, vector<16x256xf32> -> vector<16x256xf32>
    %159 = arith.addf %153, %158 : vector<16x256xf32>
    %160 = vector.extract_strided_slice %148 {offsets = [0, 0, 0, 0], sizes = [1, 4, 4, 128], strides = [1, 1, 1, 1]} : vector<1x6x4x128xbf16> to vector<1x4x4x128xbf16>
    %161 = vector.shape_cast %160 : vector<1x4x4x128xbf16> to vector<16x128xbf16>
    %c2_102 = arith.constant 2 : index
    %c0_103 = arith.constant 0 : index
    %c0_104 = arith.constant 0 : index
    %162 = vector.load %arg8[%c2_102, %c0_103, %c0_104] : memref<9x128x256xbf16, #tpu.memory_space<vmem>>, vector<1x128x256xbf16>
    %163 = vector.shape_cast %162 : vector<1x128x256xbf16> to vector<128x256xbf16>
    %cst_105 = arith.constant dense<0.000000e+00> : vector<16x256xf32>
    %164 = tpu.matmul %161, %163, %cst_105 {dimension_numbers = #tpu.dot_dimension_numbers<[1], [0], [0], [1], [0, 0, 1, 1], [], []>} : vector<16x128xbf16>, vector<128x256xbf16>, vector<16x256xf32> -> vector<16x256xf32>
    %165 = arith.addf %159, %164 : vector<16x256xf32>
    %166 = vector.extract_strided_slice %146 {offsets = [0, 1, 0, 0], sizes = [1, 4, 4, 128], strides = [1, 1, 1, 1]} : vector<1x6x4x128xbf16> to vector<1x4x4x128xbf16>
    %167 = vector.shape_cast %166 : vector<1x4x4x128xbf16> to vector<16x128xbf16>
    %c3_106 = arith.constant 3 : index
    %c0_107 = arith.constant 0 : index
    %c0_108 = arith.constant 0 : index
    %168 = vector.load %arg8[%c3_106, %c0_107, %c0_108] : memref<9x128x256xbf16, #tpu.memory_space<vmem>>, vector<1x128x256xbf16>
    %169 = vector.shape_cast %168 : vector<1x128x256xbf16> to vector<128x256xbf16>
    %cst_109 = arith.constant dense<0.000000e+00> : vector<16x256xf32>
    %170 = tpu.matmul %167, %169, %cst_109 {dimension_numbers = #tpu.dot_dimension_numbers<[1], [0], [0], [1], [0, 0, 1, 1], [], []>} : vector<16x128xbf16>, vector<128x256xbf16>, vector<16x256xf32> -> vector<16x256xf32>
    %171 = arith.addf %165, %170 : vector<16x256xf32>
    %172 = vector.extract_strided_slice %147 {offsets = [0, 1, 0, 0], sizes = [1, 4, 4, 128], strides = [1, 1, 1, 1]} : vector<1x6x4x128xbf16> to vector<1x4x4x128xbf16>
    %173 = vector.shape_cast %172 : vector<1x4x4x128xbf16> to vector<16x128xbf16>
    %c4_110 = arith.constant 4 : index
    %c0_111 = arith.constant 0 : index
    %c0_112 = arith.constant 0 : index
    %174 = vector.load %arg8[%c4_110, %c0_111, %c0_112] : memref<9x128x256xbf16, #tpu.memory_space<vmem>>, vector<1x128x256xbf16>
    %175 = vector.shape_cast %174 : vector<1x128x256xbf16> to vector<128x256xbf16>
    %cst_113 = arith.constant dense<0.000000e+00> : vector<16x256xf32>
    %176 = tpu.matmul %173, %175, %cst_113 {dimension_numbers = #tpu.dot_dimension_numbers<[1], [0], [0], [1], [0, 0, 1, 1], [], []>} : vector<16x128xbf16>, vector<128x256xbf16>, vector<16x256xf32> -> vector<16x256xf32>
    %177 = arith.addf %171, %176 : vector<16x256xf32>
    %178 = vector.extract_strided_slice %148 {offsets = [0, 1, 0, 0], sizes = [1, 4, 4, 128], strides = [1, 1, 1, 1]} : vector<1x6x4x128xbf16> to vector<1x4x4x128xbf16>
    %179 = vector.shape_cast %178 : vector<1x4x4x128xbf16> to vector<16x128xbf16>
    %c5_114 = arith.constant 5 : index
    %c0_115 = arith.constant 0 : index
    %c0_116 = arith.constant 0 : index
    %180 = vector.load %arg8[%c5_114, %c0_115, %c0_116] : memref<9x128x256xbf16, #tpu.memory_space<vmem>>, vector<1x128x256xbf16>
    %181 = vector.shape_cast %180 : vector<1x128x256xbf16> to vector<128x256xbf16>
    %cst_117 = arith.constant dense<0.000000e+00> : vector<16x256xf32>
    %182 = tpu.matmul %179, %181, %cst_117 {dimension_numbers = #tpu.dot_dimension_numbers<[1], [0], [0], [1], [0, 0, 1, 1], [], []>} : vector<16x128xbf16>, vector<128x256xbf16>, vector<16x256xf32> -> vector<16x256xf32>
    %183 = arith.addf %177, %182 : vector<16x256xf32>
    %184 = vector.extract_strided_slice %146 {offsets = [0, 2, 0, 0], sizes = [1, 4, 4, 128], strides = [1, 1, 1, 1]} : vector<1x6x4x128xbf16> to vector<1x4x4x128xbf16>
    %185 = vector.shape_cast %184 : vector<1x4x4x128xbf16> to vector<16x128xbf16>
    %c6_118 = arith.constant 6 : index
    %c0_119 = arith.constant 0 : index
    %c0_120 = arith.constant 0 : index
    %186 = vector.load %arg8[%c6_118, %c0_119, %c0_120] : memref<9x128x256xbf16, #tpu.memory_space<vmem>>, vector<1x128x256xbf16>
    %187 = vector.shape_cast %186 : vector<1x128x256xbf16> to vector<128x256xbf16>
    %cst_121 = arith.constant dense<0.000000e+00> : vector<16x256xf32>
    %188 = tpu.matmul %185, %187, %cst_121 {dimension_numbers = #tpu.dot_dimension_numbers<[1], [0], [0], [1], [0, 0, 1, 1], [], []>} : vector<16x128xbf16>, vector<128x256xbf16>, vector<16x256xf32> -> vector<16x256xf32>
    %189 = arith.addf %183, %188 : vector<16x256xf32>
    %190 = vector.extract_strided_slice %147 {offsets = [0, 2, 0, 0], sizes = [1, 4, 4, 128], strides = [1, 1, 1, 1]} : vector<1x6x4x128xbf16> to vector<1x4x4x128xbf16>
    %191 = vector.shape_cast %190 : vector<1x4x4x128xbf16> to vector<16x128xbf16>
    %c7_122 = arith.constant 7 : index
    %c0_123 = arith.constant 0 : index
    %c0_124 = arith.constant 0 : index
    %192 = vector.load %arg8[%c7_122, %c0_123, %c0_124] : memref<9x128x256xbf16, #tpu.memory_space<vmem>>, vector<1x128x256xbf16>
    %193 = vector.shape_cast %192 : vector<1x128x256xbf16> to vector<128x256xbf16>
    %cst_125 = arith.constant dense<0.000000e+00> : vector<16x256xf32>
    %194 = tpu.matmul %191, %193, %cst_125 {dimension_numbers = #tpu.dot_dimension_numbers<[1], [0], [0], [1], [0, 0, 1, 1], [], []>} : vector<16x128xbf16>, vector<128x256xbf16>, vector<16x256xf32> -> vector<16x256xf32>
    %195 = arith.addf %189, %194 : vector<16x256xf32>
    %196 = vector.extract_strided_slice %148 {offsets = [0, 2, 0, 0], sizes = [1, 4, 4, 128], strides = [1, 1, 1, 1]} : vector<1x6x4x128xbf16> to vector<1x4x4x128xbf16>
    %197 = vector.shape_cast %196 : vector<1x4x4x128xbf16> to vector<16x128xbf16>
    %c8_126 = arith.constant 8 : index
    %c0_127 = arith.constant 0 : index
    %c0_128 = arith.constant 0 : index
    %198 = vector.load %arg8[%c8_126, %c0_127, %c0_128] : memref<9x128x256xbf16, #tpu.memory_space<vmem>>, vector<1x128x256xbf16>
    %199 = vector.shape_cast %198 : vector<1x128x256xbf16> to vector<128x256xbf16>
    %cst_129 = arith.constant dense<0.000000e+00> : vector<16x256xf32>
    %200 = tpu.matmul %197, %199, %cst_129 {dimension_numbers = #tpu.dot_dimension_numbers<[1], [0], [0], [1], [0, 0, 1, 1], [], []>} : vector<16x128xbf16>, vector<128x256xbf16>, vector<16x256xf32> -> vector<16x256xf32>
    %201 = arith.addf %195, %200 : vector<16x256xf32>
    %c0_130 = arith.constant 0 : index
    %c0_131 = arith.constant 0 : index
    %202 = vector.load %arg9[%c0_130, %c0_131] : memref<1x256xf32, #tpu.memory_space<vmem>>, vector<1x256xf32>
    %203 = vector.broadcast %202 : vector<1x256xf32> to vector<16x256xf32>
    %204 = arith.mulf %201, %203 : vector<16x256xf32>
    %c0_132 = arith.constant 0 : index
    %c0_133 = arith.constant 0 : index
    %205 = vector.load %arg10[%c0_132, %c0_133] : memref<1x256xf32, #tpu.memory_space<vmem>>, vector<1x256xf32>
    %206 = vector.broadcast %205 : vector<1x256xf32> to vector<16x256xf32>
    %207 = arith.addf %204, %206 : vector<16x256xf32>
    %cst_134 = arith.constant 0.000000e+00 : f32
    %208 = vector.broadcast %cst_134 : f32 to vector<16x256xf32>
    %209 = arith.maximumf %207, %208 : vector<16x256xf32>
    %210 = vector.shape_cast %209 : vector<16x256xf32> to vector<1x4x4x256xf32>
    %211 = vector.shape_cast %210 : vector<1x4x4x256xf32> to vector<1x2x2x4x256xf32>
    %212 = vector.extract_strided_slice %211 {offsets = [0, 0, 0, 0, 0], sizes = [1, 2, 1, 4, 256], strides = [1, 1, 1, 1, 1]} : vector<1x2x2x4x256xf32> to vector<1x2x1x4x256xf32>
    %213 = vector.shape_cast %212 : vector<1x2x1x4x256xf32> to vector<1x2x4x256xf32>
    %214 = vector.extract_strided_slice %211 {offsets = [0, 0, 1, 0, 0], sizes = [1, 2, 1, 4, 256], strides = [1, 1, 1, 1, 1]} : vector<1x2x2x4x256xf32> to vector<1x2x1x4x256xf32>
    %215 = vector.shape_cast %214 : vector<1x2x1x4x256xf32> to vector<1x2x4x256xf32>
    %216 = arith.maximumf %213, %215 : vector<1x2x4x256xf32>
    %217 = vector.extract_strided_slice %216 {offsets = [0, 0, 0, 0], sizes = [1, 2, 1, 256], strides = [1, 1, 1, 1]} : vector<1x2x4x256xf32> to vector<1x2x1x256xf32>
    %218 = vector.extract_strided_slice %216 {offsets = [0, 0, 1, 0], sizes = [1, 2, 1, 256], strides = [1, 1, 1, 1]} : vector<1x2x4x256xf32> to vector<1x2x1x256xf32>
    %219 = arith.maximumf %217, %218 : vector<1x2x1x256xf32>
    %220 = vector.extract_strided_slice %216 {offsets = [0, 0, 2, 0], sizes = [1, 2, 1, 256], strides = [1, 1, 1, 1]} : vector<1x2x4x256xf32> to vector<1x2x1x256xf32>
    %221 = vector.extract_strided_slice %216 {offsets = [0, 0, 3, 0], sizes = [1, 2, 1, 256], strides = [1, 1, 1, 1]} : vector<1x2x4x256xf32> to vector<1x2x1x256xf32>
    %222 = arith.maximumf %220, %221 : vector<1x2x1x256xf32>
    %223 = tpu.concatenate %219, %222 in 2 : vector<1x2x1x256xf32>, vector<1x2x1x256xf32> -> vector<1x2x2x256xf32>
    %224 = arith.truncf %223 : vector<1x2x2x256xf32> to vector<1x2x2x256xbf16>
    %cst_135 = arith.constant 0.000000e+00 : bf16
    %225 = vector.broadcast %cst_135 : bf16 to vector<1x1x4x256xbf16>
    %c0_136 = arith.constant 0 : index
    %c0_137 = arith.constant 0 : index
    %c0_138 = arith.constant 0 : index
    %c0_139 = arith.constant 0 : index
    %226 = vector.load %arg17[%c0_136, %c0_137, %c0_138, %c0_139] : memref<1x4x4x256xbf16, #tpu.memory_space<vmem>>, vector<1x1x4x256xbf16>
    tpu.vector_store %arg17[%c0_136, %c0_137, %c0_138, %c0_139], %225 {strides = array<i32>} : memref<1x4x4x256xbf16, #tpu.memory_space<vmem>>, vector<1x1x4x256xbf16>,
    %c0_140 = arith.constant 0 : index
    %c3_141 = arith.constant 3 : index
    %c0_142 = arith.constant 0 : index
    %c0_143 = arith.constant 0 : index
    %227 = vector.load %arg17[%c0_140, %c3_141, %c0_142, %c0_143] : memref<1x4x4x256xbf16, #tpu.memory_space<vmem>>, vector<1x1x4x256xbf16>
    tpu.vector_store %arg17[%c0_140, %c3_141, %c0_142, %c0_143], %225 {strides = array<i32>} : memref<1x4x4x256xbf16, #tpu.memory_space<vmem>>, vector<1x1x4x256xbf16>,
    %cst_144 = arith.constant 0.000000e+00 : bf16
    %228 = vector.broadcast %cst_144 : bf16 to vector<1x4x1x256xbf16>
    %c0_145 = arith.constant 0 : index
    %c0_146 = arith.constant 0 : index
    %c0_147 = arith.constant 0 : index
    %c0_148 = arith.constant 0 : index
    %229 = vector.load %arg17[%c0_145, %c0_146, %c0_147, %c0_148] : memref<1x4x4x256xbf16, #tpu.memory_space<vmem>>, vector<1x4x1x256xbf16>
    tpu.vector_store %arg17[%c0_145, %c0_146, %c0_147, %c0_148], %228 {strides = array<i32>} : memref<1x4x4x256xbf16, #tpu.memory_space<vmem>>, vector<1x4x1x256xbf16>,
    %c0_149 = arith.constant 0 : index
    %c0_150 = arith.constant 0 : index
    %c3_151 = arith.constant 3 : index
    %c0_152 = arith.constant 0 : index
    %230 = vector.load %arg17[%c0_149, %c0_150, %c3_151, %c0_152] : memref<1x4x4x256xbf16, #tpu.memory_space<vmem>>, vector<1x4x1x256xbf16>
    tpu.vector_store %arg17[%c0_149, %c0_150, %c3_151, %c0_152], %228 {strides = array<i32>} : memref<1x4x4x256xbf16, #tpu.memory_space<vmem>>, vector<1x4x1x256xbf16>,
    %c0_153 = arith.constant 0 : index
    %c1_154 = arith.constant 1 : index
    %c1_155 = arith.constant 1 : index
    %c0_156 = arith.constant 0 : index
    %231 = vector.load %arg17[%c0_153, %c1_154, %c1_155, %c0_156] : memref<1x4x4x256xbf16, #tpu.memory_space<vmem>>, vector<1x2x2x256xbf16>
    tpu.vector_store %arg17[%c0_153, %c1_154, %c1_155, %c0_156], %224 {strides = array<i32>} : memref<1x4x4x256xbf16, #tpu.memory_space<vmem>>, vector<1x2x2x256xbf16>,
    %c0_157 = arith.constant 0 : index
    %c0_158 = arith.constant 0 : index
    %c0_159 = arith.constant 0 : index
    %c0_160 = arith.constant 0 : index
    %232 = vector.load %arg17[%c0_157, %c0_158, %c0_159, %c0_160] : memref<1x4x4x256xbf16, #tpu.memory_space<vmem>>, vector<1x4x4x256xbf16>
    %233 = vector.extract_strided_slice %232 {offsets = [0, 0, 0, 0], sizes = [1, 4, 2, 256], strides = [1, 1, 1, 1]} : vector<1x4x4x256xbf16> to vector<1x4x2x256xbf16>
    %234 = vector.extract_strided_slice %232 {offsets = [0, 0, 1, 0], sizes = [1, 4, 2, 256], strides = [1, 1, 1, 1]} : vector<1x4x4x256xbf16> to vector<1x4x2x256xbf16>
    %235 = vector.extract_strided_slice %232 {offsets = [0, 0, 2, 0], sizes = [1, 4, 2, 256], strides = [1, 1, 1, 1]} : vector<1x4x4x256xbf16> to vector<1x4x2x256xbf16>
    %236 = vector.extract_strided_slice %233 {offsets = [0, 0, 0, 0], sizes = [1, 2, 2, 256], strides = [1, 1, 1, 1]} : vector<1x4x2x256xbf16> to vector<1x2x2x256xbf16>
    %237 = vector.shape_cast %236 : vector<1x2x2x256xbf16> to vector<4x256xbf16>
    %c0_161 = arith.constant 0 : index
    %c0_162 = arith.constant 0 : index
    %c0_163 = arith.constant 0 : index
    %238 = vector.load %arg11[%c0_161, %c0_162, %c0_163] : memref<9x256x512xbf16, #tpu.memory_space<vmem>>, vector<1x256x512xbf16>
    %239 = vector.shape_cast %238 : vector<1x256x512xbf16> to vector<256x512xbf16>
    %cst_164 = arith.constant dense<0.000000e+00> : vector<4x512xf32>
    %240 = tpu.matmul %237, %239, %cst_164 {dimension_numbers = #tpu.dot_dimension_numbers<[1], [0], [0], [1], [0, 0, 1, 1], [], []>} : vector<4x256xbf16>, vector<256x512xbf16>, vector<4x512xf32> -> vector<4x512xf32>
    %241 = vector.extract_strided_slice %234 {offsets = [0, 0, 0, 0], sizes = [1, 2, 2, 256], strides = [1, 1, 1, 1]} : vector<1x4x2x256xbf16> to vector<1x2x2x256xbf16>
    %242 = vector.shape_cast %241 : vector<1x2x2x256xbf16> to vector<4x256xbf16>
    %c1_165 = arith.constant 1 : index
    %c0_166 = arith.constant 0 : index
    %c0_167 = arith.constant 0 : index
    %243 = vector.load %arg11[%c1_165, %c0_166, %c0_167] : memref<9x256x512xbf16, #tpu.memory_space<vmem>>, vector<1x256x512xbf16>
    %244 = vector.shape_cast %243 : vector<1x256x512xbf16> to vector<256x512xbf16>
    %cst_168 = arith.constant dense<0.000000e+00> : vector<4x512xf32>
    %245 = tpu.matmul %242, %244, %cst_168 {dimension_numbers = #tpu.dot_dimension_numbers<[1], [0], [0], [1], [0, 0, 1, 1], [], []>} : vector<4x256xbf16>, vector<256x512xbf16>, vector<4x512xf32> -> vector<4x512xf32>
    %246 = arith.addf %240, %245 : vector<4x512xf32>
    %247 = vector.extract_strided_slice %235 {offsets = [0, 0, 0, 0], sizes = [1, 2, 2, 256], strides = [1, 1, 1, 1]} : vector<1x4x2x256xbf16> to vector<1x2x2x256xbf16>
    %248 = vector.shape_cast %247 : vector<1x2x2x256xbf16> to vector<4x256xbf16>
    %c2_169 = arith.constant 2 : index
    %c0_170 = arith.constant 0 : index
    %c0_171 = arith.constant 0 : index
    %249 = vector.load %arg11[%c2_169, %c0_170, %c0_171] : memref<9x256x512xbf16, #tpu.memory_space<vmem>>, vector<1x256x512xbf16>
    %250 = vector.shape_cast %249 : vector<1x256x512xbf16> to vector<256x512xbf16>
    %cst_172 = arith.constant dense<0.000000e+00> : vector<4x512xf32>
    %251 = tpu.matmul %248, %250, %cst_172 {dimension_numbers = #tpu.dot_dimension_numbers<[1], [0], [0], [1], [0, 0, 1, 1], [], []>} : vector<4x256xbf16>, vector<256x512xbf16>, vector<4x512xf32> -> vector<4x512xf32>
    %252 = arith.addf %246, %251 : vector<4x512xf32>
    %253 = vector.extract_strided_slice %233 {offsets = [0, 1, 0, 0], sizes = [1, 2, 2, 256], strides = [1, 1, 1, 1]} : vector<1x4x2x256xbf16> to vector<1x2x2x256xbf16>
    %254 = vector.shape_cast %253 : vector<1x2x2x256xbf16> to vector<4x256xbf16>
    %c3_173 = arith.constant 3 : index
    %c0_174 = arith.constant 0 : index
    %c0_175 = arith.constant 0 : index
    %255 = vector.load %arg11[%c3_173, %c0_174, %c0_175] : memref<9x256x512xbf16, #tpu.memory_space<vmem>>, vector<1x256x512xbf16>
    %256 = vector.shape_cast %255 : vector<1x256x512xbf16> to vector<256x512xbf16>
    %cst_176 = arith.constant dense<0.000000e+00> : vector<4x512xf32>
    %257 = tpu.matmul %254, %256, %cst_176 {dimension_numbers = #tpu.dot_dimension_numbers<[1], [0], [0], [1], [0, 0, 1, 1], [], []>} : vector<4x256xbf16>, vector<256x512xbf16>, vector<4x512xf32> -> vector<4x512xf32>
    %258 = arith.addf %252, %257 : vector<4x512xf32>
    %259 = vector.extract_strided_slice %234 {offsets = [0, 1, 0, 0], sizes = [1, 2, 2, 256], strides = [1, 1, 1, 1]} : vector<1x4x2x256xbf16> to vector<1x2x2x256xbf16>
    %260 = vector.shape_cast %259 : vector<1x2x2x256xbf16> to vector<4x256xbf16>
    %c4_177 = arith.constant 4 : index
    %c0_178 = arith.constant 0 : index
    %c0_179 = arith.constant 0 : index
    %261 = vector.load %arg11[%c4_177, %c0_178, %c0_179] : memref<9x256x512xbf16, #tpu.memory_space<vmem>>, vector<1x256x512xbf16>
    %262 = vector.shape_cast %261 : vector<1x256x512xbf16> to vector<256x512xbf16>
    %cst_180 = arith.constant dense<0.000000e+00> : vector<4x512xf32>
    %263 = tpu.matmul %260, %262, %cst_180 {dimension_numbers = #tpu.dot_dimension_numbers<[1], [0], [0], [1], [0, 0, 1, 1], [], []>} : vector<4x256xbf16>, vector<256x512xbf16>, vector<4x512xf32> -> vector<4x512xf32>
    %264 = arith.addf %258, %263 : vector<4x512xf32>
    %265 = vector.extract_strided_slice %235 {offsets = [0, 1, 0, 0], sizes = [1, 2, 2, 256], strides = [1, 1, 1, 1]} : vector<1x4x2x256xbf16> to vector<1x2x2x256xbf16>
    %266 = vector.shape_cast %265 : vector<1x2x2x256xbf16> to vector<4x256xbf16>
    %c5_181 = arith.constant 5 : index
    %c0_182 = arith.constant 0 : index
    %c0_183 = arith.constant 0 : index
    %267 = vector.load %arg11[%c5_181, %c0_182, %c0_183] : memref<9x256x512xbf16, #tpu.memory_space<vmem>>, vector<1x256x512xbf16>
    %268 = vector.shape_cast %267 : vector<1x256x512xbf16> to vector<256x512xbf16>
    %cst_184 = arith.constant dense<0.000000e+00> : vector<4x512xf32>
    %269 = tpu.matmul %266, %268, %cst_184 {dimension_numbers = #tpu.dot_dimension_numbers<[1], [0], [0], [1], [0, 0, 1, 1], [], []>} : vector<4x256xbf16>, vector<256x512xbf16>, vector<4x512xf32> -> vector<4x512xf32>
    %270 = arith.addf %264, %269 : vector<4x512xf32>
    %271 = vector.extract_strided_slice %233 {offsets = [0, 2, 0, 0], sizes = [1, 2, 2, 256], strides = [1, 1, 1, 1]} : vector<1x4x2x256xbf16> to vector<1x2x2x256xbf16>
    %272 = vector.shape_cast %271 : vector<1x2x2x256xbf16> to vector<4x256xbf16>
    %c6_185 = arith.constant 6 : index
    %c0_186 = arith.constant 0 : index
    %c0_187 = arith.constant 0 : index
    %273 = vector.load %arg11[%c6_185, %c0_186, %c0_187] : memref<9x256x512xbf16, #tpu.memory_space<vmem>>, vector<1x256x512xbf16>
    %274 = vector.shape_cast %273 : vector<1x256x512xbf16> to vector<256x512xbf16>
    %cst_188 = arith.constant dense<0.000000e+00> : vector<4x512xf32>
    %275 = tpu.matmul %272, %274, %cst_188 {dimension_numbers = #tpu.dot_dimension_numbers<[1], [0], [0], [1], [0, 0, 1, 1], [], []>} : vector<4x256xbf16>, vector<256x512xbf16>, vector<4x512xf32> -> vector<4x512xf32>
    %276 = arith.addf %270, %275 : vector<4x512xf32>
    %277 = vector.extract_strided_slice %234 {offsets = [0, 2, 0, 0], sizes = [1, 2, 2, 256], strides = [1, 1, 1, 1]} : vector<1x4x2x256xbf16> to vector<1x2x2x256xbf16>
    %278 = vector.shape_cast %277 : vector<1x2x2x256xbf16> to vector<4x256xbf16>
    %c7_189 = arith.constant 7 : index
    %c0_190 = arith.constant 0 : index
    %c0_191 = arith.constant 0 : index
    %279 = vector.load %arg11[%c7_189, %c0_190, %c0_191] : memref<9x256x512xbf16, #tpu.memory_space<vmem>>, vector<1x256x512xbf16>
    %280 = vector.shape_cast %279 : vector<1x256x512xbf16> to vector<256x512xbf16>
    %cst_192 = arith.constant dense<0.000000e+00> : vector<4x512xf32>
    %281 = tpu.matmul %278, %280, %cst_192 {dimension_numbers = #tpu.dot_dimension_numbers<[1], [0], [0], [1], [0, 0, 1, 1], [], []>} : vector<4x256xbf16>, vector<256x512xbf16>, vector<4x512xf32> -> vector<4x512xf32>
    %282 = arith.addf %276, %281 : vector<4x512xf32>
    %283 = vector.extract_strided_slice %235 {offsets = [0, 2, 0, 0], sizes = [1, 2, 2, 256], strides = [1, 1, 1, 1]} : vector<1x4x2x256xbf16> to vector<1x2x2x256xbf16>
    %284 = vector.shape_cast %283 : vector<1x2x2x256xbf16> to vector<4x256xbf16>
    %c8_193 = arith.constant 8 : index
    %c0_194 = arith.constant 0 : index
    %c0_195 = arith.constant 0 : index
    %285 = vector.load %arg11[%c8_193, %c0_194, %c0_195] : memref<9x256x512xbf16, #tpu.memory_space<vmem>>, vector<1x256x512xbf16>
    %286 = vector.shape_cast %285 : vector<1x256x512xbf16> to vector<256x512xbf16>
    %cst_196 = arith.constant dense<0.000000e+00> : vector<4x512xf32>
    %287 = tpu.matmul %284, %286, %cst_196 {dimension_numbers = #tpu.dot_dimension_numbers<[1], [0], [0], [1], [0, 0, 1, 1], [], []>} : vector<4x256xbf16>, vector<256x512xbf16>, vector<4x512xf32> -> vector<4x512xf32>
    %288 = arith.addf %282, %287 : vector<4x512xf32>
    %c0_197 = arith.constant 0 : index
    %c0_198 = arith.constant 0 : index
    %289 = vector.load %arg12[%c0_197, %c0_198] : memref<1x512xf32, #tpu.memory_space<vmem>>, vector<1x512xf32>
    %290 = vector.broadcast %289 : vector<1x512xf32> to vector<4x512xf32>
    %291 = arith.mulf %288, %290 : vector<4x512xf32>
    %c0_199 = arith.constant 0 : index
    %c0_200 = arith.constant 0 : index
    %292 = vector.load %arg13[%c0_199, %c0_200] : memref<1x512xf32, #tpu.memory_space<vmem>>, vector<1x512xf32>
    %293 = vector.broadcast %292 : vector<1x512xf32> to vector<4x512xf32>
    %294 = arith.addf %291, %293 : vector<4x512xf32>
    %cst_201 = arith.constant 0.000000e+00 : f32
    %295 = vector.broadcast %cst_201 : f32 to vector<4x512xf32>
    %296 = arith.maximumf %294, %295 : vector<4x512xf32>
    %297 = vector.shape_cast %296 : vector<4x512xf32> to vector<1x2x2x512xf32>
    %298 = vector.shape_cast %297 : vector<1x2x2x512xf32> to vector<1x1x2x2x512xf32>
    %299 = vector.extract_strided_slice %298 {offsets = [0, 0, 0, 0, 0], sizes = [1, 1, 1, 2, 512], strides = [1, 1, 1, 1, 1]} : vector<1x1x2x2x512xf32> to vector<1x1x1x2x512xf32>
    %300 = vector.shape_cast %299 : vector<1x1x1x2x512xf32> to vector<1x1x2x512xf32>
    %301 = vector.extract_strided_slice %298 {offsets = [0, 0, 1, 0, 0], sizes = [1, 1, 1, 2, 512], strides = [1, 1, 1, 1, 1]} : vector<1x1x2x2x512xf32> to vector<1x1x1x2x512xf32>
    %302 = vector.shape_cast %301 : vector<1x1x1x2x512xf32> to vector<1x1x2x512xf32>
    %303 = arith.maximumf %300, %302 : vector<1x1x2x512xf32>
    %304 = vector.extract_strided_slice %303 {offsets = [0, 0, 0, 0], sizes = [1, 1, 1, 512], strides = [1, 1, 1, 1]} : vector<1x1x2x512xf32> to vector<1x1x1x512xf32>
    %305 = vector.extract_strided_slice %303 {offsets = [0, 0, 1, 0], sizes = [1, 1, 1, 512], strides = [1, 1, 1, 1]} : vector<1x1x2x512xf32> to vector<1x1x1x512xf32>
    %306 = arith.maximumf %304, %305 : vector<1x1x1x512xf32>
    %c0_202 = arith.constant 0 : index
    %c0_203 = arith.constant 0 : index
    %c0_204 = arith.constant 0 : index
    %c0_205 = arith.constant 0 : index
    %307 = vector.load %arg14[%c0_202, %c0_203, %c0_204, %c0_205] : memref<1x1x1x512xf32, #tpu.memory_space<vmem>>, vector<1x1x1x512xf32>
    tpu.vector_store %arg14[%c0_202, %c0_203, %c0_204, %c0_205], %306 {strides = array<i32>} : memref<1x1x1x512xf32, #tpu.memory_space<vmem>>, vector<1x1x1x512xf32>,
    return
  }
  func.func @transform_0(%arg0: i32) -> (i32, i32, i32, i32) {
    %c0_i32 = arith.constant 0 : i32
    %c0_i32_0 = arith.constant 0 : i32
    %c0_i32_1 = arith.constant 0 : i32
    %c0_i32_2 = arith.constant 0 : i32
    return %arg0, %c0_i32, %c0_i32_0, %c0_i32_1 : i32, i32, i32, i32
  }
  func.func @transform_1(%arg0: i32) -> (i32, i32) {
    %c0_i32 = arith.constant 0 : i32
    %c0_i32_0 = arith.constant 0 : i32
    %c0_i32_1 = arith.constant 0 : i32
    return %c0_i32, %c0_i32_0 : i32, i32
  }
  func.func @transform_2(%arg0: i32) -> (i32, i32) {
    %c0_i32 = arith.constant 0 : i32
    %c0_i32_0 = arith.constant 0 : i32
    %c0_i32_1 = arith.constant 0 : i32
    return %c0_i32, %c0_i32_0 : i32, i32
  }
  func.func @transform_3(%arg0: i32) -> (i32, i32) {
    %c0_i32 = arith.constant 0 : i32
    %c0_i32_0 = arith.constant 0 : i32
    %c0_i32_1 = arith.constant 0 : i32
    return %c0_i32, %c0_i32_0 : i32, i32
  }
  func.func @transform_4(%arg0: i32) -> (i32, i32, i32) {
    %c0_i32 = arith.constant 0 : i32
    %c0_i32_0 = arith.constant 0 : i32
    %c0_i32_1 = arith.constant 0 : i32
    %c0_i32_2 = arith.constant 0 : i32
    return %c0_i32, %c0_i32_0, %c0_i32_1 : i32, i32, i32
  }
  func.func @transform_5(%arg0: i32) -> (i32, i32) {
    %c0_i32 = arith.constant 0 : i32
    %c0_i32_0 = arith.constant 0 : i32
    %c0_i32_1 = arith.constant 0 : i32
    return %c0_i32, %c0_i32_0 : i32, i32
  }
  func.func @transform_6(%arg0: i32) -> (i32, i32) {
    %c0_i32 = arith.constant 0 : i32
    %c0_i32_0 = arith.constant 0 : i32
    %c0_i32_1 = arith.constant 0 : i32
    return %c0_i32, %c0_i32_0 : i32, i32
  }
  func.func @transform_7(%arg0: i32) -> (i32, i32, i32) {
    %c0_i32 = arith.constant 0 : i32
    %c0_i32_0 = arith.constant 0 : i32
    %c0_i32_1 = arith.constant 0 : i32
    %c0_i32_2 = arith.constant 0 : i32
    return %c0_i32, %c0_i32_0, %c0_i32_1 : i32, i32, i32
  }
  func.func @transform_8(%arg0: i32) -> (i32, i32) {
    %c0_i32 = arith.constant 0 : i32
    %c0_i32_0 = arith.constant 0 : i32
    %c0_i32_1 = arith.constant 0 : i32
    return %c0_i32, %c0_i32_0 : i32, i32
  }
  func.func @transform_9(%arg0: i32) -> (i32, i32) {
    %c0_i32 = arith.constant 0 : i32
    %c0_i32_0 = arith.constant 0 : i32
    %c0_i32_1 = arith.constant 0 : i32
    return %c0_i32, %c0_i32_0 : i32, i32
  }
  func.func @transform_10(%arg0: i32) -> (i32, i32, i32) {
    %c0_i32 = arith.constant 0 : i32
    %c0_i32_0 = arith.constant 0 : i32
    %c0_i32_1 = arith.constant 0 : i32
    %c0_i32_2 = arith.constant 0 : i32
    return %c0_i32, %c0_i32_0, %c0_i32_1 : i32, i32, i32
  }
  func.func @transform_11(%arg0: i32) -> (i32, i32) {
    %c0_i32 = arith.constant 0 : i32
    %c0_i32_0 = arith.constant 0 : i32
    %c0_i32_1 = arith.constant 0 : i32
    return %c0_i32, %c0_i32_0 : i32, i32
  }
  func.func @transform_12(%arg0: i32) -> (i32, i32) {
    %c0_i32 = arith.constant 0 : i32
    %c0_i32_0 = arith.constant 0 : i32
    %c0_i32_1 = arith.constant 0 : i32
    return %c0_i32, %c0_i32_0 : i32, i32
  }
  func.func @transform_13(%arg0: i32) -> (i32, i32, i32, i32) {
    %c0_i32 = arith.constant 0 : i32
    %c0_i32_0 = arith.constant 0 : i32
    %c0_i32_1 = arith.constant 0 : i32
    %c0_i32_2 = arith.constant 0 : i32
    return %arg0, %c0_i32, %c0_i32_0, %c0_i32_1 : i32, i32, i32, i32
  }
}

</mosaic_0001>

<bundles_post_ra>
// kernel: tpu_custom_call.1
= control target key start
LH: loop header
LB: loop body
LE: loop exit
PB: predicated region body
PF: predicated region fallthrough
CT: control target
= control target key end

     0   :  { %s15445_s0 = inlined_call_operand.hbm [shape: bf16[2,16,16,27], index: 0, kind: input, shape index: {}]   ;;  %s15446_s1 = inlined_call_operand.hbm [shape: bf16[27,64], index: 1, kind: input, shape index: {}]   ;;  %s15447_s2 = inlined_call_operand.hbm [shape: f32[1,64], index: 2, kind: input, shape index: {}]   ;;  %s15448_s3 = inlined_call_operand.hbm [shape: f32[1,64], index: 3, kind: input, shape index: {}]   ;;  %s15449_s4 = inlined_call_operand.hbm [shape: bf16[9,64,128], index: 4, kind: input, shape index: {}]   ;;  %s15450_s5 = inlined_call_operand.hbm [shape: f32[1,128], index: 5, kind: input, shape index: {}]   ;;  %s15451_s6 = inlined_call_operand.hbm [shape: f32[1,128], index: 6, kind: input, shape index: {}]   ;;  %s15452_s7 = inlined_call_operand.hbm [shape: bf16[9,128,256], index: 7, kind: input, shape index: {}]   ;;  %s15453_s8 = inlined_call_operand.hbm [shape: f32[1,256], index: 8, kind: input, shape index: {}]   ;;  %s15454_s9 = inlined_call_operand.hbm [shape: f32[1,256], index: 9, kind: input, shape index: {}]   ;;  %s15455_s10 = inlined_call_operand.hbm [shape: bf16[9,256,512], index: 10, kind: input, shape index: {}]   ;;  %s15456_s11 = inlined_call_operand.hbm [shape: f32[1,512], index: 11, kind: input, shape index: {}]   ;;  %s15457_s12 = inlined_call_operand.hbm [shape: f32[1,512], index: 12, kind: input, shape index: {}]   ;;  %s15458_s13 = inlined_call_operand.hbm [shape: f32[2,1,1,512], index: 13, kind: output, shape index: {}]  }
   0x1   :  { %15474 = sst [smem:[#allocation36_spill]] %s15446_s1 }
   0x2   :  { %15475 = sst [smem:[#allocation37_spill]] %s15447_s2 }
   0x3   :  { %15476 = sst [smem:[#allocation38_spill]] %s15448_s3 }
   0x4   :  { %15477 = sst [smem:[#allocation39_spill]] %s15449_s4 }
   0x5   :  { %15478 = sst [smem:[#allocation40_spill]] %s15450_s5 }
   0x6   :  { %15479 = sst [smem:[#allocation41_spill]] %s15451_s6 }
   0x7   :  { %15480 = sst [smem:[#allocation42_spill]] %s15452_s7 }
   0x8   :  { %15481 = sst [smem:[#allocation43_spill]] %s15453_s8 }
   0x9   :  { %15482 = sst [smem:[#allocation44_spill]] %s15458_s13 }
   0xa   :  { %18 = vsyncpa [#allocation6], 0 }
   0xb   :  { %20 = vsyncpa [#allocation6 + $0x1], 0 }
   0xc   :  { %21 = vsyncpa [#allocation9], 0 }
   0xd   :  { %22 = vsyncpa [#allocation12], 0 }
   0xe   :  { %23 = vsyncpa [#allocation15], 0 }
   0xf   :  { %24 = vsyncpa [#allocation18], 0 }
  0x10   :  { %25 = vsyncpa [#allocation21], 0 }
  0x11   :  { %26 = vsyncpa [#allocation24], 0 }
  0x12   :  { %27 = vsyncpa [#allocation7], 0 }
  0x13   :  { %29 = vsyncpa [#allocation7 + $0x1], 0  ;;  %s13872_s25 = smov 0   ;;  %s13874_s26 = smov 0  }
  0x14   :  { %s13876_s27 = smov 0   ;;  %s13878_s28 = smov 0  }
  0x15 LB: > { %s15483_s1 = sld [smem:[#allocation36_spill]]  ;;  %s13896_s15 = sadd.s32 4294967295, %s13780_s28   ;;  %s13780_s28 = sphi %s13878_s28, %s15574_s28   ;;  %s13776_s27 = sphi %s13876_s27, %s15573_s27   ;;  %s13772_s26 = sphi %s13874_s26, %s15572_s26   ;;  %s13768_s25 = sphi %s13872_s25, %s15571_s25  }
  0x16   : > { %p9137_p0 = scmp.ge.s32.totalorder %s13780_s28, 1  ;;  %p56_p1 = scmp.eq.s32.totalorder %s13896_s15, 0 }
  0x17   : > { %p344_p2 = scmp.lt.s32.totalorder %s13780_s28, 3  ;;  %s13782_s17 = smov [#allocation8]  }
  0x18   : > { %s357_s18 = sshll.u32 %s13782_s17, 4  ;;  %s15486_s3 = sld [smem:[#allocation38_spill]]  ;;  %s358_s18 = int_to_ptr.vmem [resolvable:$true] %s357_s18 }
  0x19   : > { %p13901_p3 = pnand %p9137_p0, %p344_p2  ;;  %s15488_s5 = sld [smem:[#allocation40_spill]] }
  0x1a   : > { %s13783_s30 = smov [#allocation11]   ;;  %s15463_s13 = smov 4  }
  0x1b   : > { %s355_s14 = sshll.u32 %s15483_s1, 4  ;;  %p13171_p4 = pneg %p13901_p3  ;;  %s356_s14 = int_to_ptr.hbm [resolvable:$true] %s355_s14 }
  0x1c   : > { %s15484_s16 = scalar_select %p13901_p3, 1, 0 }
  0x1d   : > { %p13913_p6 = pnand %p13171_p4, %p56_p1  ;;  %s384_s17 = sshll.u32 %s13783_s30, 4  ;;  %s385_s17 = int_to_ptr.vmem [resolvable:$true] %s384_s17 }
  0x1e   : > { %15485 = sst [smem:[#allocation35_spill]] %s15484_s16  ;;  %s382_s21 = sshll.u32 %s15486_s3, 4  ;;  %s383_s21 = int_to_ptr.hbm [resolvable:$true] %s382_s21 }
  0x1f   : > { %s408_s29 = sshll.u32 %s15488_s5, 4  ;;  %s15461_s1 = smov 64   ;;  %s409_s29 = int_to_ptr.hbm [resolvable:$true] %s408_s29 }
  0x20   : > { %13174 = dma.hbm_to_vmem [thread:$0]  (!%p13913_p6), %s356_s14, 256, %s358_s18, [#allocation9], %s15461_s1, %s15461_s1, %s15463_s13  }
  0x21   : > { %13180 = dma.hbm_to_vmem [thread:$0]  (!%p13913_p6), %s383_s21, 16, %s385_s17, [#allocation12]  }
  0x22   : > { %s15489_s7 = sld [smem:[#allocation42_spill]]  ;;  %s13786_s23 = smov [#allocation14]  }
  0x23   : > { %s410_s24 = sshll.u32 %s13786_s23, 4  ;;  %s13787_s30 = smov [#allocation17]   ;;  %s411_s24 = int_to_ptr.vmem [resolvable:$true] %s410_s24 }
  0x24   : > { %13186 = dma.hbm_to_vmem [thread:$0]  (!%p13913_p6), %s409_s29, 16, %s411_s24, [#allocation15]  }
  0x25   : > { %s433_s5 = sshll.u32 %s13787_s30, 4  ;;  %s13788_s16 = smov 128   ;;  %s434_s5 = int_to_ptr.vmem [resolvable:$true] %s433_s5 }
  0x26   : > { %s13789_s14 = smov 8   ;;  %s458_s17 = sshll.u32 %s15454_s9, 4  ;;  %s459_s17 = int_to_ptr.hbm [resolvable:$true] %s458_s17 }
  0x27   : > { %s13790_s19 = smov [#allocation20]   ;;  %s484_s29 = sshll.u32 %s15456_s11, 4  ;;  %s485_s29 = int_to_ptr.hbm [resolvable:$true] %s484_s29 }
  0x28   : > { %s431_s3 = sshll.u32 %s15489_s7, 4  ;;  %s460_s20 = sshll.u32 %s13790_s19, 4  ;;  %s432_s3 = int_to_ptr.hbm [resolvable:$true] %s431_s3  ;;  %s461_s20 = int_to_ptr.vmem [resolvable:$true] %s460_s20 }
  0x29   : > { %13192 = dma.hbm_to_vmem [thread:$0]  (!%p13913_p6), %s432_s3, 18432, %s434_s5, [#allocation18], %s13788_s16, %s13788_s16, %s13789_s14  }
  0x2a   : > { %13198 = dma.hbm_to_vmem [thread:$0]  (!%p13913_p6), %s459_s17, 32, %s461_s20, [#allocation21]  }
  0x2b   : > { %s13791_s24 = smov [#allocation23]   ;;  %s15490_s2 = sld [smem:[#allocation37_spill]] }
  0x2c   : > { %s486_s30 = sshll.u32 %s13791_s24, 4  ;;  %s15491_s4 = sld [smem:[#allocation39_spill]]  ;;  %s487_s30 = int_to_ptr.vmem [resolvable:$true] %s486_s30 }
  0x2d   : > { %13204 = dma.hbm_to_vmem [thread:$0]  (!%p13913_p6), %s485_s29, 64, %s487_s30, [#allocation24]  }
  0x2e   : > { %s13792_s1 = smov [#allocation10]   ;;  %s13793_s17 = smov [#allocation13]  }
  0x2f   : > { %s372_s21 = sshll.u32 %s13792_s1, 4  ;;  %s395_s19 = sshll.u32 %s13793_s17, 4  ;;  %s373_s21 = int_to_ptr.vmem [resolvable:$true] %s372_s21  ;;  %s396_s19 = int_to_ptr.vmem [resolvable:$true] %s395_s19 }
  0x30   : > { %s15492_s6 = sld [smem:[#allocation41_spill]]  ;;  %s15493_s29 = smov 4  }
  0x31   : > { %s370_s5 = sshll.u32 %s15490_s2, 4  ;;  %s15494_s24 = smov 64   ;;  %s371_s5 = int_to_ptr.hbm [resolvable:$true] %s370_s5 }
  0x32   : > { %s393_s18 = sshll.u32 %s15491_s4, 4  ;;  %s15495_s8 = sld [smem:[#allocation43_spill]]  ;;  %s394_s18 = int_to_ptr.hbm [resolvable:$true] %s393_s18 }
  0x33   : > { %13177 = dma.hbm_to_vmem [thread:$0]  (!%p13913_p6), %s371_s5, 16, %s373_s21, [#allocation9]  }
  0x34   : > { %13183 = dma.hbm_to_vmem [thread:$0]  (!%p13913_p6), %s394_s18, 4608, %s396_s19, [#allocation12], %s15494_s24, %s15494_s24, %s15493_s29  }
  0x35   : > { %s13794_s14 = smov [#allocation16]   ;;  %s13795_s1 = smov [#allocation19]  }
  0x36   : > { %s420_s23 = sshll.u32 %s15492_s6, 4  ;;  %s422_s5 = sshll.u32 %s13794_s14, 4  ;;  %s421_s23 = int_to_ptr.hbm [resolvable:$true] %s420_s23  ;;  %s423_s5 = int_to_ptr.vmem [resolvable:$true] %s422_s5 }
  0x37   : > { %13189 = dma.hbm_to_vmem [thread:$0]  (!%p13913_p6), %s421_s23, 16, %s423_s5, [#allocation15]  }
  0x38   : > { %s446_s16 = sshll.u32 %s15495_s8, 4  ;;  %s448_s21 = sshll.u32 %s13795_s1, 4  ;;  %s447_s16 = int_to_ptr.hbm [resolvable:$true] %s446_s16  ;;  %s449_s21 = int_to_ptr.vmem [resolvable:$true] %s448_s21 }
  0x39   : > { %s469_s20 = sshll.u32 %s15455_s10, 4  ;;  %s13796_s18 = smov [#allocation22]   ;;  %s470_s20 = int_to_ptr.hbm [resolvable:$true] %s469_s20 }
  0x3a   : > { %13195 = dma.hbm_to_vmem [thread:$0]  (!%p13913_p6), %s447_s16, 32, %s449_s21, [#allocation18]  }
  0x3b   : > { %s471_s19 = sshll.u32 %s13796_s18, 4  ;;  %s496_s3 = sshll.u32 %s15457_s12, 4  ;;  %s472_s19 = int_to_ptr.vmem [resolvable:$true] %s471_s19  ;;  %s497_s3 = int_to_ptr.hbm [resolvable:$true] %s496_s3 }
  0x3c   : > { %s13797_s14 = smov 256   ;;  %s13798_s5 = smov 16  }
  0x3d   : > { %13201 = dma.hbm_to_vmem [thread:$0]  (!%p13913_p6), %s470_s20, 73728, %s472_s19, [#allocation21], %s13797_s14, %s13797_s14, %s13798_s5  }
  0x3e   : > { %s13799_s16 = smov [#allocation25]   ;;  %s9136_s21 = sadd.s32 4294967294, %s13780_s28  }
  0x3f   : > { %s498_s1 = sshll.u32 %s13799_s16, 4  ;;  %s13979_s17 = sadd.s32 1, %s13780_s28   ;;  %s499_s1 = int_to_ptr.vmem [resolvable:$true] %s498_s1 }
  0x40   : > { %13207 = dma.hbm_to_vmem [thread:$0]  (!%p13913_p6), %s497_s3, 64, %s499_s1, [#allocation24]  }
  0x41   : > { %s39_s13 = ssub.s32 %s13780_s28, %s13979_s17  ;;  %s42_s18 = sadd.s32 1, %s13776_s27 }
  0x42   : > { %p40_p7 = scmp.eq.s32.totalorder %s39_s13, 0  ;;  %p49_p8 = scmp.ne.s32.totalorder %s13776_s27, %s13772_s26 }
  0x43   : > { %p50_p9 = scmp.eq.s32.totalorder %s13780_s28, 0  ;;  %p55_p10 = scmp.ne.s32.totalorder %s13772_s26, %s13768_s25 }
  0x44   : > { %s13990_s20 = scalar_select %p40_p7, %s13776_s27, %s42_s18  }
  0x45   : > { %p13992_p11 = por %p50_p9, %p49_p8  ;;  %p13998_p12 = por %p56_p1, %p55_p10 }
  0x46   : > { %p331_p13 = scmp.eq.s32.totalorder %s13896_s15, 1  ;;  %p337_p0 = scmp.eq.s32.totalorder %s9136_s21, 1 }
  0x47   : > { %p13228_p2 = scmp.lt.s32.totalorder %s13780_s28, 2  ;;  %s509_s23 = sand.u32 1, %s13776_s27  }
  0x48   : > { %p14005_p4 = por %p331_p13, %p49_p8  ;;  %p14009_p6 = por %p337_p0, %p55_p10 }
  0x49   : > { %s9151_s14 = sshll.u32 %s509_s23, 7  ;;  %s12344_s5 = sshll.u32 %s13780_s28, 7 }
  0x4a   : > { %s518_s13 = scalar_lea.hbm %s15445_s0, %s12344_s5  ;;  %s513_s18 = scalar_lea.vmem [#allocation5], %s9151_s14 }
  0x4b   : > { %s521_s2 = sshll.u32 %s513_s18, 4  ;;  %s519_s4 = sshll.u32 %s518_s13, 4  ;;  %s522_s2 = int_to_ptr.vmem [resolvable:$true] %s521_s2  ;;  %s520_s4 = int_to_ptr.hbm [resolvable:$true] %s519_s4 }
  0x4c   : > { %p14019_p7 = pnand %p13228_p2, %p13992_p11  ;;  %s510_s6 = scalar_lea.sflag [#allocation6], %s509_s23 }
  0x4d   : > { %s13660_s7 = sshra.s32 %s520_s4, 4  ;;  %s13667_s16 = scalar_lea.hbm %s15445_s0, 256  ;;  %s13661_s7 = int_to_ptr.hbm [resolvable:$true] %s13660_s7 }
  0x4e   : > { %s13662_s8 = scalar_lea.hbm %s13661_s7, 128  ;;  %p13664_p9 = pneg %p14019_p7 }
  0x4f   : > { %p13663_p8 = scmp.ne.s32.totalorder %s13661_s7, %s13662_s8  ;;  %p13668_p11 = scmp.lt.s32.totalorder %s13661_s7, %s15445_s0 }
  0x50   : > { %p13669_p0 = scmp.lt.s32.totalorder %s13667_s16, %s13662_s8 }
  0x51   : > { %p13665_p10 = pnand %p13664_p9, %p13663_p8 }
  0x52   : > { %p13670_p2 = por %p13669_p0, %p13668_p11 }
  0x53   : > { %p13666_p13 = pneg %p13665_p10 }
  0x55   : > { %p13671_p5 = pnand %p13670_p2, %p13666_p13 }
  0x57   : > { %13674 = shalt.err (!%p13671_p5)
}
  0x58   : > { %13211 = dma.hbm_to_vmem [thread:$0]  (!%p14019_p7), %s520_s4, 2048, %s522_s2, %s510_s6, %s15494_s24, %s15494_s24, %s15493_s29  }
  0x59   : > { %533 = sbr.rel (%p13901_p3) target bundleno = 1790 (0x6fe), region = 72  ;;  %s14039_s13 = sand.u32 (!%p13901_p3), 1, %s13772_s26  }
  0x5a   : > { %s9155_s7 = sshll.u32 (!%p13901_p3), %s14039_s13, 7  ;;  %s536_s8 = scalar_lea.sflag (!%p13901_p3), [#allocation6], %s14039_s13 }
  0x5b   : > { %s14043_s18 = scalar_lea.vmem (!%p13901_p3), [#allocation5], %s9155_s7 }
  0x5e   : > { %13735 = dma.done.wait (%p13998_p12), %s536_s8, 2048  }
  0x5f   : > { %13737 = vsyncadd (%p13998_p12), %s536_s8, 4294965248 }
  0x60   : > { %13739 = dma.done.wait (%p56_p1), [#allocation9], 272  }
  0x61   : > { %13741 = vsyncadd (%p56_p1), [#allocation9], 4294967024 }
  0x62   : > { %13743 = dma.done.wait (%p56_p1), [#allocation12], 4624  }
  0x63   : > { %13745 = vsyncadd (%p56_p1), [#allocation12], 4294962672 }
  0x64   : > { %13747 = dma.done.wait (%p56_p1), [#allocation15], 32  }
  0x65   : > { %13749 = vsyncadd (%p56_p1), [#allocation15], 4294967264 }
  0x66   : > { %13751 = dma.done.wait (%p56_p1), [#allocation18], 18464  }
  0x67   : > { %13753 = vsyncadd (%p56_p1), [#allocation18], 4294948832 }
  0x68   : > { %13755 = dma.done.wait (%p56_p1), [#allocation21], 73760  }
  0x69   : > { %13757 = vsyncadd (%p56_p1), [#allocation21], 4294893536 }
  0x6a   : > { %13759 = dma.done.wait (%p56_p1), [#allocation24], 128  }
  0x6b   : > { %13761 = vsyncadd (%p56_p1), [#allocation24], 4294967168  ;;  %vm820_vm0 = vcmask 1044480   ;;  %vm15466_vm1 = vcmask 1045504   ;;  %v13800_v0 = vmov 65535   ;;  %v12361_v7 = vld [vmem:[#allocation8] sm:$0xff] }
  0x6c   : > { %v822_v1 = vsel %vm820_vm0, 4294967295, %v13800_v0  ;;  %v9239_v2 = vld [vmem:[#allocation8 + $0x8] sm:$0xf]  ;;  %v12362_v3 = vld [vmem:[#allocation8 + $0x8] sm:$0x30]  ;;  %v12345_v8 = vld [vmem:[%s14043_s18] sm:$0xff] }
  0x6d   : > { %v823_v4 = vsel %vm15466_vm1, %v822_v1, 0  ;;  %v9240_v5 = vor.u32 %v12362_v3, %v9239_v2  ;;  %vm771_vm2 = vcmask 220160   ;;  %v12346_v9 = vld [vmem:[%s14043_s18 + $0x8] sm:$0xff]  ;;  %v12347_v10 = vld [vmem:[%s14043_s18 + $0x10] sm:$0xff]  ;;  %v12348_v11 = vld [vmem:[%s14043_s18 + $0x18] sm:$0xff]  ;;  %vm1299_vm3 = vcmask 516096  }
  0x6e   : > { %v12349_v12 = vld [vmem:[%s14043_s18 + $0x20] sm:$0xff]  ;;  %v12350_v13 = vld [vmem:[%s14043_s18 + $0x28] sm:$0xff]  ;;  %v12351_v14 = vld [vmem:[%s14043_s18 + $0x30] sm:$0xff]  ;;  %vm15465_vm4 = vsmask.f32 256  ;;  %vm1297_vm7 = vcmask 519168  }
  0x6f   : > { %v825_v6 = vand.u32 %v9240_v5, %v823_v4  ;;  %v12352_v15 = vld [vmem:[%s14043_s18 + $0x38] sm:$0xff]  ;;  %v12353_v16 = vld [vmem:[%s14043_s18 + $0x40] sm:$0xff]  ;;  %v14093_v18 = vld [vmem:[#allocation10] ss:$0 sm:$0xff]  ;;  %vm1337_vm5 = vsmask.f32 7938 }
  0x70   : > { %vm14097_vm6 = vmand %vm1299_vm3, %vm15465_vm4  ;;  %v1310_v21 = vld [vmem:[#allocation2 + $0x8] sm:$0x1]  ;;  %v1342_v22 = vld [vmem:[#allocation2 + $0xc] sm:$0x1]  ;;  %v13801_v28 = vmov 0   ;;  %vm15473_vm9 = vcmask 1040384  }
  0x71   : > { %833 = vmatpush.bf16.msra.mxu0 %v825_v6  ;;  %v1311_v23 = vsel %vm14097_vm6, 0, %v1310_v21  ;;  %vm14105_vm8 = vmand %vm1299_vm3, %vm1337_vm5  ;;  %v14112_v27 = vld [vmem:[#allocation11] ss:$0 sm:$0xff]  ;;  %1298 = vst.msk [vmem:[#allocation2] sm:$0xf] %vm1297_vm7, %v13801_v28  ;;  %v12354_v29 = vld [vmem:[%s14043_s18 + $0x48] sm:$0xff] }
  0x72   : > { %1312 = vst [vmem:[#allocation2 + $0x8] sm:$0x1] %v1311_v23  ;;  %v1343_v25 = vsel %vm14105_vm8, 0, %v1342_v22  ;;  %v12366_v31 = vld [vmem:[#allocation13 + $0x18] sm:$0xff]  ;;  %v12365_v36 = vld [vmem:[#allocation13 + $0x10] sm:$0xff]  ;;  %v12364_v45 = vld [vmem:[#allocation13 + $0x8] sm:$0xff] }
  0x73   : > { %1344 = vst [vmem:[#allocation2 + $0xc] sm:$0x1] %v1343_v25  ;;  %1790 = vmatpush.bf16.msra.mxu2 %v12366_v31  ;;  %v12374_v35 = vld [vmem:[#allocation13 + $0x58] sm:$0xff]  ;;  %v12373_v43 = vld [vmem:[#allocation13 + $0x50] sm:$0xff]  ;;  %v12372_v54 = vld [vmem:[#allocation13 + $0x48] sm:$0xff]  ;;  %vm1237_vm10 = vcmask 1041408  }
  0x74   : > { %2574 = vst [vmem:[#allocation3] sm:$0x7] %v13801_v28  ;;  %1919 = vmatpush.bf16.msra.mxu3 %v12374_v35  ;;  %v12370_v49 = vld [vmem:[#allocation13 + $0x38] sm:$0xff]  ;;  %v12363_v55 = vld [vmem:[#allocation13] sm:$0xff]  ;;  %v12369_v59 = vld [vmem:[#allocation13 + $0x30] sm:$0xff]  ;;  %vm1246_vm11 = vcmask 1042432  }
  0x75   : > { %834 = vmatpush.bf16.msra.mxu0 %v12361_v7  ;;  %2576 = vst [vmem:[#allocation3 + $0x14] sm:$0x7] %v13801_v28  ;;  %1705 = vmatpush.bf16.msra.mxu1 %v12370_v49  ;;  %v12355_v62 = vld [vmem:[%s14043_s18 + $0x50] sm:$0xff]  ;;  %v12368_v3 = vld [vmem:[#allocation13 + $0x28] sm:$0xff]  ;;  %vm15472_vm12 = vcmask 1043456   ;;  %vm1280_vm13 = vcmask 1046528   ;;  %vm14148_vm14 = vmand %vm1297_vm7, %vm1337_vm5 }
  0x76   : > { %4161 = vst [vmem:[#allocation4] sm:$0xf] %v13801_v28  ;;  %v12371_v63 = vld [vmem:[#allocation13 + $0x40] sm:$0xff]  ;;  %v1345_v21 = vld [vmem:[#allocation2 + $0x14] sm:$0x1]  ;;  %vm1824_vm15 = vcmask 1046532  }
  0x77   : > { %4163 = vst [vmem:[#allocation4 + $0xc] sm:$0xf] %v13801_v28  ;;  %1791 = vmatpush.bf16.msra.mxu2 %v12365_v36  ;;  %v1346_v25 = vsel %vm14105_vm8, 0, %v1345_v21  ;;  %vm1688_vm5 = vcmask 523264   ;;  %vm1529_vm4 = vsmask.f32 7440 }
  0x78   : > { %9241 = vmatmul.msk.bf16.vlgmr.msra.gmra.mxu0 %vm771_vm2, %v12345_v8  ;;  %1300 = vst.msk [vmem:[#allocation2 + $0x4] sm:$0x1] %vm1299_vm3, %v13801_v28  ;;  %v1307_v37 = vld [vmem:[#allocation2] sm:$0x1]  ;;  %1920 = vmatpush.bf16.msra.mxu3 %v12373_v43  ;;  %v12398_v20 = vld [vmem:[#allocation13 + $0x118] sm:$0xff]  ;;  %s9168_s2 = sshll.u32 %s14039_s13, 2 }
  0x79   : > { %1302 = vst.msk [vmem:[#allocation2 + $0x48] sm:$0xf] %vm1297_vm7, %v13801_v28  ;;  %v1308_v41 = vsel %vm14097_vm6, 0, %v1307_v37  ;;  %1706 = vmatpush.bf16.msra.mxu1 %v12369_v59  ;;  %v1452_v36 = vld [vmem:[#allocation2 + $0x8] sm:$0xf]  ;;  %s12341_s4 = sshll.u32 %s13896_s15, 2 }
  0x7a   : > { %1303 = vst.msk [vmem:[#allocation2 + $0x4c] sm:$0x1] %vm1299_vm3, %v13801_v28  ;;  %v1455_v37 = vld [vmem:[#allocation2 + $0xc] sm:$0x1]  ;;  %vm14162_vm3 = vmor %vm1246_vm11, %vm1824_vm15  ;;  %vm1528_vm7 = vsmask.f32 3328 }
  0x7b   : > { %1309 = vst [vmem:[#allocation2] sm:$0x1] %v1308_v41  ;;  %1792 = vmatpush.bf16.msra.mxu2 %v12364_v45  ;;  %vm14181_vm15 = vmor %vm1528_vm7, %vm1529_vm4  ;;  %vm15469_vm4 = vcmask 1042434   ;;  %vm2725_vm7 = vsmask.f32 7448  ;;  %s15567_s24 = sld [smem:[#allocation44_spill]] }
  0x7c   : > { %1921 = vmatpush.bf16.msra.mxu3 %v12372_v54  ;;  %1347 = vst [vmem:[#allocation2 + $0x14] sm:$0x1] %v1346_v25  ;;  %s642_s21 = scalar_lea.vmem [#allocation26], %s9168_s2  ;;  %s8937_s15 = scalar_lea.sflag [#allocation7], %s14039_s13 }
  0x7d   : > { %1707 = vmatpush.bf16.msra.mxu1 %v12368_v3  ;;  %s8949_s14 = sshll.u32 %s642_s21, 4  ;;  %s8950_s14 = int_to_ptr.vmem [resolvable:$true] %s8949_s14 }
  0x7f   : > { %v1339_v50 = vld [vmem:[#allocation2 + $0x4] sm:$0x1]  ;;  %1793 = vmatpush.bf16.msra.mxu2 %v12363_v55 }
  0x80   : > { %v1340_v51 = vsel %vm14105_vm8, 0, %v1339_v50  ;;  %1922 = vmatpush.bf16.msra.mxu3 %v12371_v63 }
  0x81   : > { %1341 = vst [vmem:[#allocation2 + $0x4] sm:$0x1] %v1340_v51  ;;  %s8947_s22 = scalar_lea.hbm %s15567_s24, %s12341_s4  ;;  %s13710_s7 = scalar_lea.hbm %s15567_s24, 8 }
  0x82   : > { %s8951_s5 = sshll.u32 %s8947_s22, 4  ;;  %s8952_s5 = int_to_ptr.hbm [resolvable:$true] %s8951_s5 }
  0x83   : > { %s13704_s16 = sshra.s32 %s8952_s5, 4  ;;  %s13705_s16 = int_to_ptr.hbm [resolvable:$true] %s13704_s16 }
  0x84   : > { %s13706_s1 = scalar_lea.hbm %s13705_s16, 4  ;;  %p13711_p12 = scmp.lt.s32.totalorder %s13705_s16, %s15567_s24 }
  0x85   : > { %p13707_p1 = scmp.ne.s32.totalorder %s13705_s16, %s13706_s1  ;;  %p13712_p7 = scmp.lt.s32.totalorder %s13710_s7, %s13706_s1 }
  0x87   : > { %p13708_p3 = pnand %p13707_p1, %p14005_p4  ;;  %p13713_p8 = por %p13712_p7, %p13711_p12 }
  0x88   : > { %9242 = vmatmul.msk.bf16.gmra.mxu0 %vm771_vm2, %v12346_v9 }
  0x89   : > { %p13709_p5 = pneg %p13708_p3 }
  0x8b   : > { %p13714_p9 = pnand %p13713_p8, %p13709_p5 }
  0x98   : > { %9243 = vmatmul.msk.bf16.gmra.mxu0 %vm771_vm2, %v12347_v10  ;;  %v12367_v10 = vld [vmem:[#allocation13 + $0x20] sm:$0xff] }
  0x99   : > { %1708 = vmatpush.bf16.msra.mxu1 %v12367_v10 }
  0xa8   : > { %9244 = vmatmul.msk.bf16.gmra.mxu0 %vm771_vm2, %v12348_v11 }
  0xb8   : > { %9245 = vmatmul.msk.bf16.gmra.mxu0 %vm771_vm2, %v12349_v12 }
  0xc8   : > { %9246 = vmatmul.msk.bf16.gmra.mxu0 %vm771_vm2, %v12350_v13 }
  0xd8   : > { %9247 = vmatmul.msk.bf16.gmra.mxu0 %vm771_vm2, %v12351_v14 }
  0xe8   : > { %9248 = vmatmul.msk.bf16.gmra.mxu0 %vm771_vm2, %v12352_v15 }
  0xf5   : > { %v836_v17 = vpop.f32.mrf.mxu0 }
  0xf6   : > { %v920_v26 = vmul.f32 %v14093_v18, %v836_v17 }
  0xf8   : > { %9249 = vmatmul.msk.bf16.gmra.mxu0 %vm771_vm2, %v12353_v16  ;;  %v956_v32 = vadd.f32 %v14112_v27, %v920_v26  ;;  %v1500_v26 = vld [vmem:[#allocation2] sm:$0xf] }
  0xfa   : > { %v988_v38 = vmax.f32 %v956_v32, 0.0 }
  0xfd   : > { %v838_v19 = vpop.f32.mrf.mxu0 }
  0xfe   : > { %v921_v39 = vmul.f32 %v14093_v18, %v838_v19  ;;  %v1313_v19 = vld [vmem:[#allocation2 + $0x10] sm:$0x1] }
  0xff   : > { %v1314_v23 = vsel %vm14097_vm6, 0, %v1313_v19 }
 0x100   : > { %v957_v46 = vadd.f32 %v14112_v27, %v921_v39  ;;  %1315 = vst [vmem:[#allocation2 + $0x10] sm:$0x1] %v1314_v23 }
 0x102   : > { %v989_v56 = vmax.f32 %v957_v46, 0.0 }
 0x105   : > { %v841_v30 = vpop.f32.mrf.mxu0 }
 0x106   : > { %v922_v33 = vmul.f32 %v14093_v18, %v841_v30  ;;  %v1532_v30 = vshrl.u32 %v1500_v26, 16 }
 0x108   : > { %v958_v34 = vadd.f32 %v14112_v27, %v922_v33  ;;  %9250 = vmatmul.msk.bf16.gmra.mxu0 %vm771_vm2, %v12354_v29  ;;  %v12356_v33 = vld [vmem:[%s14043_s18 + $0x58] sm:$0xff]  ;;  %v1534_v43 = vrot.slane %v1532_v30, 4 }
 0x10a   : > { %v990_v40 = vmax.f32 %v958_v34, 0.0  ;;  %v1535_v34 = vshll.u32 %v1500_v26, 16 }
 0x10c   : > { %v1020_v42 = vmax.f32 %v988_v38, %v990_v40 }
 0x10d   : > { %v843_v44 = vpop.f32.mrf.mxu0 }
 0x10e   : > { %v1044_v47 = vrot.slane %v1020_v42, 1  ;;  %v923_v48 = vmul.f32 %v14093_v18, %v843_v44 }
 0x110   : > { %v1060_v52 = vmax.f32 %v1020_v42, %v1044_v47  ;;  %v959_v53 = vadd.f32 %v14112_v27, %v923_v48  ;;  %v1537_v47 = vrot.slane %v1535_v34, 5  ;;  %v1501_v48 = vld [vmem:[#allocation2 + $0x4] sm:$0x1] }
 0x111   : > { %v1828_v54 = vrot.slane %v1501_v48, 5 }
 0x112   : > { %v1108_v57 = vrot.slane %v1060_v52, 1  ;;  %v991_v58 = vmax.f32 %v959_v53, 0.0  ;;  %v1124_v60 = vrot.slane %v1060_v52, 2  ;;  %v1140_v6 = vrot.slane %v1060_v52, 3 }
 0x113   : > { %v9297_v53 = vrot.slane %v1500_v26, 9  ;;  %v1538_v55 = vor.u32 %v1537_v47, %v1534_v43 }
 0x114   : > { %v1021_v61 = vmax.f32 %v989_v56, %v991_v58  ;;  %v1229_v0 = vsel %vm15473_vm9, %v1060_v52, %v1108_v57 }
 0x115   : > { %v846_v1 = vpop.f32.mrf.mxu0  ;;  %v1238_v4 = vsel %vm1237_vm10, %v1229_v0, %v1124_v60  ;;  %v1539_v3 = vrot.slane %v1538_v55, 4 }
 0x116   : > { %v1076_v2 = vrot.slane %v1021_v61, 1  ;;  %v1247_v9 = vsel %vm1246_vm11, %v1238_v4, %v1140_v6  ;;  %v924_v29 = vmul.f32 %v14093_v18, %v846_v1 }
 0x118   : > { %v1092_v5 = vmax.f32 %v1021_v61, %v1076_v2  ;;  %9251 = vmatmul.msk.bf16.gmra.mxu0 %vm771_vm2, %v12355_v62  ;;  %v960_v41 = vadd.f32 %v14112_v27, %v924_v29  ;;  %v1541_v61 = vshll.u32 %v1501_v48, 16  ;;  %v1738_v62 = vunpack.c.l.b16 %v1500_v26 }
 0x119   : > { %v1829_v2 = vsel %vm14162_vm3, %v9297_v53, %v1828_v54 }
 0x11a   : > { %v1164_v7 = vrot.slane %v1092_v5, 4  ;;  %v1180_v8 = vrot.slane %v1092_v5, 5  ;;  %v1196_v11 = vrot.slane %v1092_v5, 6  ;;  %v1212_v13 = vrot.slane %v1092_v5, 7 }
 0x11b   : > { %v992_v49 = vmax.f32 %v960_v41, 0.0  ;;  %v1867_v23 = vunpack.c.l.b16 %v1829_v2  ;;  %v12358_v2 = vld [vmem:[%s14043_s18 + $0x68] sm:$0xff] }
 0x11c   : > { %v1256_v12 = vsel %vm15472_vm12, %v1247_v9, %v1164_v7 }
 0x11d   : > { %v1264_v14 = vsel %vm820_vm0, %v1256_v12, %v1180_v8  ;;  %v848_v15 = vpop.f32.mrf.mxu0  ;;  %v1543_v12 = vrot.slane %v1541_v61, 5 }
 0x11e   : > { %v1272_v16 = vsel %vm15466_vm1, %v1264_v14, %v1196_v11  ;;  %v925_v50 = vmul.f32 %v14093_v18, %v848_v15 }
 0x11f   : > { %v1281_v17 = vsel %vm1280_vm13, %v1272_v16, %v1212_v13 }
 0x120   : > { %v1289_v22 = vpack.c.bf16 %v1281_v17, %v1281_v17  ;;  %v961_v58 = vadd.f32 %v14112_v27, %v925_v50 }
 0x122   : > { %v1370_v28 = vshrl.u32 %v1289_v22, 16  ;;  %v1373_v32 = vshll.u32 %v1289_v22, 16  ;;  %v993_v9 = vmax.f32 %v961_v58, 0.0  ;;  %v12357_v22 = vld [vmem:[%s14043_s18 + $0x60] sm:$0xff] }
 0x123   : > { %v1348_v58 = vld [vmem:[#allocation2 + $0x1c] sm:$0x1] }
 0x124   : > { %v1372_v31 = vrot.slane %v1370_v28, 7 }
 0x125   : > { %v851_v38 = vpop.f32.mrf.mxu0 }
 0x126   : > { %v1375_v39 = vor.u32 %v1373_v32, %v1372_v31  ;;  %v1376_v40 = vrot.slane %v1372_v31, 4  ;;  %v926_v42 = vmul.f32 %v14093_v18, %v851_v38 }
 0x128   : > { %v1453_v44 = vsel %vm14148_vm14, %v1375_v39, %v1452_v36  ;;  %v1456_v45 = vsel %vm14097_vm6, %v1376_v40, %v1455_v37  ;;  %v962_v46 = vadd.f32 %v14112_v27, %v926_v42  ;;  %9252 = vmatmul.msk.bf16.gmra.mxu0 %vm771_vm2, %v12356_v33  ;;  %v1544_v33 = vsel %vm14181_vm15, %v1539_v3, %v1543_v12  ;;  %v1458_v3 = vld [vmem:[#allocation2 + $0x10] sm:$0xf] }
 0x129   : > { %1454 = vst [vmem:[#allocation2 + $0x8] sm:$0xf] %v1453_v44  ;;  %v1652_v42 = vunpack.c.l.b16 %v1544_v33 }
 0x12a   : > { %1457 = vst [vmem:[#allocation2 + $0xc] sm:$0x1] %v1456_v45  ;;  %v994_v51 = vmax.f32 %v962_v46, 0.0 }
 0x12c   : > { %v1022_v52 = vmax.f32 %v992_v49, %v994_v51 }
 0x12d   : > { %v853_v56 = vpop.f32.mrf.mxu0 }
 0x12e   : > { %v1045_v59 = vrot.slane %v1022_v52, 1  ;;  %v927_v60 = vmul.f32 %v14093_v18, %v853_v56  ;;  %v1316_v56 = vld [vmem:[#allocation2 + $0x18] sm:$0x1] }
 0x130   : > { %v1061_v63 = vmax.f32 %v1022_v52, %v1045_v59  ;;  %v963_v0 = vadd.f32 %v14112_v27, %v927_v60  ;;  %v14169_v1 = vld [vmem:[#allocation2 + $0x8] sm:$0xf]  ;;  %v1317_v59 = vsel %vm14097_vm6, 0, %v1316_v56  ;;  %v1349_v60 = vsel %vm14105_vm8, 0, %v1348_v58 }
 0x131   : > { %v1739_v4 = vunpack.c.l.b16 %v14169_v1  ;;  %v1503_v5 = vld [vmem:[#allocation2 + $0xc] sm:$0x1]  ;;  %v9298_v6 = vrot.slane %v14169_v1, 9  ;;  %v1546_v7 = vshrl.u32 %v14169_v1, 16  ;;  %v1549_v8 = vshll.u32 %v14169_v1, 16 }
 0x132   : > { %v1109_v10 = vrot.slane %v1061_v63, 1  ;;  %v995_v11 = vmax.f32 %v963_v0, 0.0  ;;  %v1832_v14 = vrot.slane %v1503_v5, 5  ;;  %v1125_v19 = vrot.slane %v1061_v63, 2  ;;  %1318 = vst [vmem:[#allocation2 + $0x18] sm:$0x1] %v1317_v59 }
 0x133   : > { %v1746_v13 = vpack.c.b16 %v1739_v4, %v1738_v62  ;;  %v1548_v16 = vrot.slane %v1546_v7, 4  ;;  %v1551_v17 = vrot.slane %v1549_v8, 5  ;;  %v1555_v25 = vshll.u32 %v1503_v5, 16  ;;  %1350 = vst [vmem:[#allocation2 + $0x1c] sm:$0x1] %v1349_v60 }
 0x134   : > { %v1023_v21 = vmax.f32 %v993_v9, %v995_v11  ;;  %v1230_v26 = vsel %vm15473_vm9, %v1061_v63, %v1109_v10  ;;  %v14190_v29 = vsel %vm14162_vm3, %v9298_v6, %v1832_v14  ;;  %v1141_v40 = vrot.slane %v1061_v63, 3  ;;  %v1461_v5 = vld [vmem:[#allocation2 + $0x14] sm:$0x1] }
 0x135   : > { %v856_v28 = vpop.f32.mrf.mxu0  ;;  %9293 = vmatmul.msk.bf16.vlgmr.msra.gmra.mxu2 %vm1688_vm5, %v1746_v13  ;;  %v1552_v30 = vor.u32 %v1551_v17, %v1548_v16  ;;  %v1868_v32 = vunpack.c.l.b16 %v14190_v29  ;;  %v1557_v36 = vrot.slane %v1555_v25, 5  ;;  %v1239_v37 = vsel %vm1237_vm10, %v1230_v26, %v1125_v19 }
 0x136   : > { %v1077_v31 = vrot.slane %v1023_v21, 1  ;;  %v1248_v45 = vsel %vm1246_vm11, %v1239_v37, %v1141_v40  ;;  %v928_v62 = vmul.f32 %v14093_v18, %v856_v28 }
 0x137   : > { %v1553_v34 = vrot.slane %v1552_v30, 4  ;;  %v1875_v39 = vpack.c.b16 %v1868_v32, %v1867_v23 }
 0x138   : > { %v1093_v38 = vmax.f32 %v1023_v21, %v1077_v31  ;;  %9253 = vmatmul.msk.bf16.gmra.mxu0 %vm771_vm2, %v12357_v22  ;;  %v964_v9 = vadd.f32 %v14112_v27, %v928_v62 }
 0x139   : > { %v1558_v41 = vsel %vm14181_vm15, %v1553_v34, %v1557_v36  ;;  %9321 = vmatmul.msk.bf16.vlgmr.msra.gmra.mxu3 %vm1688_vm5, %v1875_v39 }
 0x13a   : > { %v1165_v43 = vrot.slane %v1093_v38, 4  ;;  %v1181_v44 = vrot.slane %v1093_v38, 5  ;;  %v14203_v46 = vunpack.c.l.b16 %v1558_v41  ;;  %v1197_v47 = vrot.slane %v1093_v38, 6 }
 0x13b   : > { %v1213_v49 = vrot.slane %v1093_v38, 7  ;;  %v996_v14 = vmax.f32 %v964_v9, 0.0 }
 0x13c   : > { %v1257_v48 = vsel %vm15472_vm12, %v1248_v45, %v1165_v43  ;;  %v1660_v52 = vpack.c.b16 %v14203_v46, %v1652_v42 }
 0x13d   : > { %v1265_v50 = vsel %vm820_vm0, %v1257_v48, %v1181_v44  ;;  %v858_v51 = vpop.f32.mrf.mxu0  ;;  %v12359_v48 = vld [vmem:[%s14043_s18 + $0x70] sm:$0xff] }
 0x13e   : > { %v1273_v53 = vsel %vm15466_vm1, %v1265_v50, %v1197_v47  ;;  %9273 = vmatmul.msk.bf16.vlgmr.msra.gmra.mxu1 %vm1688_vm5, %v1660_v52  ;;  %v929_v16 = vmul.f32 %v14093_v18, %v858_v51 }
 0x13f   : > { %v1282_v54 = vsel %vm1280_vm13, %v1273_v53, %v1213_v49 }
 0x140   : > { %v1290_v55 = vpack.c.bf16 %v1282_v54, %v1282_v54  ;;  %v965_v22 = vadd.f32 %v14112_v27, %v929_v16 }
 0x142   : > { %v1378_v61 = vshrl.u32 %v1290_v55, 16  ;;  %v1381_v0 = vshll.u32 %v1290_v55, 16  ;;  %v997_v38 = vmax.f32 %v965_v22, 0.0  ;;  %v12360_v22 = vld [vmem:[%s14043_s18 + $0x78] sm:$0xff] }
 0x144   : > { %v1380_v63 = vrot.slane %v1378_v61, 7 }
 0x145   : > { %v861_v6 = vpop.f32.mrf.mxu0 }
 0x146   : > { %v1383_v7 = vor.u32 %v1381_v0, %v1380_v63  ;;  %v1384_v8 = vrot.slane %v1380_v63, 4  ;;  %v930_v10 = vmul.f32 %v14093_v18, %v861_v6 }
 0x148   : > { %v1459_v11 = vsel %vm14148_vm14, %v1383_v7, %v1458_v3  ;;  %v1462_v12 = vsel %vm14097_vm6, %v1384_v8, %v1461_v5  ;;  %v966_v13 = vadd.f32 %v14112_v27, %v930_v10  ;;  %9254 = vmatmul.msk.bf16.gmra.mxu0 %vm771_vm2, %v12358_v2 }
 0x149   : > { %1460 = vst [vmem:[#allocation2 + $0x10] sm:$0xf] %v1459_v11  ;;  %v1319_v11 = vld [vmem:[#allocation2 + $0x20] sm:$0x1] }
 0x14a   : > { %1463 = vst [vmem:[#allocation2 + $0x14] sm:$0x1] %v1462_v12  ;;  %v998_v17 = vmax.f32 %v966_v13, 0.0  ;;  %v1351_v12 = vld [vmem:[#allocation2 + $0x24] sm:$0x1]  ;;  %v1320_v13 = vsel %vm14097_vm6, 0, %v1319_v11 }
 0x14b   : > { %1321 = vst [vmem:[#allocation2 + $0x20] sm:$0x1] %v1320_v13 }
 0x14c   : > { %v1024_v19 = vmax.f32 %v996_v14, %v998_v17  ;;  %v1352_v14 = vsel %vm14105_vm8, 0, %v1351_v12 }
 0x14d   : > { %v863_v21 = vpop.f32.mrf.mxu0  ;;  %1353 = vst [vmem:[#allocation2 + $0x24] sm:$0x1] %v1352_v14 }
 0x14e   : > { %v1046_v23 = vrot.slane %v1024_v19, 1  ;;  %v931_v25 = vmul.f32 %v14093_v18, %v863_v21 }
 0x150   : > { %v1062_v26 = vmax.f32 %v1024_v19, %v1046_v23  ;;  %v967_v28 = vadd.f32 %v14112_v27, %v931_v25  ;;  %v14229_v30 = vld [vmem:[#allocation2 + $0x10] sm:$0xf]  ;;  %v1464_v23 = vld [vmem:[#allocation2 + $0x18] sm:$0xf]  ;;  %v1467_v25 = vld [vmem:[#allocation2 + $0x1c] sm:$0x1] }
 0x151   : > { %v1740_v31 = vunpack.c.l.b16 %v14229_v30  ;;  %v1505_v33 = vld [vmem:[#allocation2 + $0x14] sm:$0x1]  ;;  %v9299_v34 = vrot.slane %v14229_v30, 9  ;;  %v1560_v36 = vshrl.u32 %v14229_v30, 16  ;;  %v1563_v37 = vshll.u32 %v14229_v30, 16 }
 0x152   : > { %v1110_v39 = vrot.slane %v1062_v26, 1  ;;  %v999_v40 = vmax.f32 %v967_v28, 0.0  ;;  %v1836_v41 = vrot.slane %v1505_v33, 5  ;;  %v1569_v44 = vshll.u32 %v1505_v33, 16 }
 0x153   : > { %v1562_v42 = vrot.slane %v1560_v36, 4  ;;  %v1565_v43 = vrot.slane %v1563_v37, 5  ;;  %v1126_v45 = vrot.slane %v1062_v26, 2  ;;  %v14240_v49 = vpack.c.b16 %v1740_v31, %v1739_v4 }
 0x154   : > { %v1025_v47 = vmax.f32 %v997_v38, %v999_v40  ;;  %v1231_v50 = vsel %vm15473_vm9, %v1062_v26, %v1110_v39  ;;  %v14245_v52 = vsel %vm14162_vm3, %v9299_v34, %v1836_v41  ;;  %v1571_v58 = vrot.slane %v1569_v44, 5 }
 0x155   : > { %v866_v51 = vpop.f32.mrf.mxu0  ;;  %v1566_v53 = vor.u32 %v1565_v43, %v1562_v42  ;;  %v1869_v55 = vunpack.c.l.b16 %v14245_v52  ;;  %v1240_v59 = vsel %vm1237_vm10, %v1231_v50, %v1126_v45  ;;  %v1142_v60 = vrot.slane %v1062_v26, 3 }
 0x156   : > { %v1078_v54 = vrot.slane %v1025_v47, 1  ;;  %v932_v17 = vmul.f32 %v14093_v18, %v866_v51 }
 0x157   : > { %v1567_v56 = vrot.slane %v1566_v53, 4  ;;  %v14254_v4 = vpack.c.b16 %v1869_v55, %v1868_v32  ;;  %v1249_v0 = vsel %vm1246_vm11, %v1240_v59, %v1142_v60 }
 0x158   : > { %v1094_v1 = vmax.f32 %v1025_v47, %v1078_v54  ;;  %9255 = vmatmul.msk.bf16.gmra.mxu0 %vm771_vm2, %v12359_v48  ;;  %v968_v34 = vadd.f32 %v14112_v27, %v932_v17 }
 0x159   : > { %v1572_v61 = vsel %vm14181_vm15, %v1567_v56, %v1571_v58 }
 0x15a   : > { %v1166_v62 = vrot.slane %v1094_v1, 4  ;;  %v1182_v63 = vrot.slane %v1094_v1, 5  ;;  %v14259_v2 = vunpack.c.l.b16 %v1572_v61  ;;  %v1198_v3 = vrot.slane %v1094_v1, 6 }
 0x15b   : > { %v1214_v6 = vrot.slane %v1094_v1, 7  ;;  %v1000_v40 = vmax.f32 %v968_v34, 0.0 }
 0x15c   : > { %v1258_v5 = vsel %vm15472_vm12, %v1249_v0, %v1166_v62  ;;  %v2064_v32 = vpack.c.b16 %v14259_v2, %v14203_v46  ;;  %v12394_v46 = vld [vmem:[#allocation13 + $0xf8] sm:$0xff] }
 0x15d   : > { %v1266_v29 = vsel %vm820_vm0, %v1258_v5, %v1182_v63  ;;  %v868_v7 = vpop.f32.mrf.mxu0 }
 0x15e   : > { %v1274_v8 = vsel %vm15466_vm1, %v1266_v29, %v1198_v3  ;;  %v933_v41 = vmul.f32 %v14093_v18, %v868_v7 }
 0x15f   : > { %v1283_v9 = vsel %vm1280_vm13, %v1274_v8, %v1214_v6 }
 0x160   : > { %v1291_v10 = vpack.c.bf16 %v1283_v9, %v1283_v9  ;;  %v969_v45 = vadd.f32 %v14112_v27, %v933_v41  ;;  %v1354_v41 = vld [vmem:[#allocation2 + $0x2c] sm:$0x1] }
 0x162   : > { %v1386_v16 = vshrl.u32 %v1291_v10, 16  ;;  %v1389_v21 = vshll.u32 %v1291_v10, 16  ;;  %v1001_v60 = vmax.f32 %v969_v45, 0.0 }
 0x164   : > { %v1388_v19 = vrot.slane %v1386_v16, 7 }
 0x165   : > { %v871_v26 = vpop.f32.mrf.mxu0 }
 0x166   : > { %v1391_v28 = vor.u32 %v1389_v21, %v1388_v19  ;;  %v1392_v33 = vrot.slane %v1388_v19, 4  ;;  %v934_v36 = vmul.f32 %v14093_v18, %v871_v26 }
 0x168   : > { %v1465_v37 = vsel %vm14148_vm14, %v1391_v28, %v1464_v23  ;;  %v1468_v38 = vsel %vm14097_vm6, %v1392_v33, %v1467_v25  ;;  %v970_v39 = vadd.f32 %v14112_v27, %v934_v36  ;;  %9256 = vmatmul.msk.bf16.gmra.mxu0 %vm771_vm2, %v12360_v22 }
 0x169   : > { %1466 = vst [vmem:[#allocation2 + $0x18] sm:$0xf] %v1465_v37 }
 0x16a   : > { %1469 = vst [vmem:[#allocation2 + $0x1c] sm:$0x1] %v1468_v38  ;;  %v1002_v42 = vmax.f32 %v970_v39, 0.0 }
 0x16c   : > { %v1026_v43 = vmax.f32 %v1000_v40, %v1002_v42  ;;  %v1322_v40 = vld [vmem:[#allocation2 + $0x28] sm:$0x1] }
 0x16d   : > { %v873_v44 = vpop.f32.mrf.mxu0  ;;  %v1323_v42 = vsel %vm14097_vm6, 0, %v1322_v40 }
 0x16e   : > { %v1047_v47 = vrot.slane %v1026_v43, 1  ;;  %v935_v48 = vmul.f32 %v14093_v18, %v873_v44  ;;  %1324 = vst [vmem:[#allocation2 + $0x28] sm:$0x1] %v1323_v42 }
 0x170   : > { %v1063_v50 = vmax.f32 %v1026_v43, %v1047_v47  ;;  %v971_v51 = vadd.f32 %v14112_v27, %v935_v48  ;;  %v14285_v53 = vld [vmem:[#allocation2 + $0x18] sm:$0xf]  ;;  %v1355_v43 = vsel %vm14105_vm8, 0, %v1354_v41 }
 0x171   : > { %v1741_v54 = vunpack.c.l.b16 %v14285_v53  ;;  %v1507_v56 = vld [vmem:[#allocation2 + $0x1c] sm:$0x1]  ;;  %v9300_v58 = vrot.slane %v14285_v53, 9  ;;  %v1574_v59 = vshrl.u32 %v14285_v53, 16  ;;  %v1577_v1 = vshll.u32 %v14285_v53, 16 }
 0x172   : > { %v1111_v61 = vrot.slane %v1063_v50, 1  ;;  %v1003_v62 = vmax.f32 %v971_v51, 0.0  ;;  %v1840_v0 = vrot.slane %v1507_v56, 5  ;;  %v1127_v6 = vrot.slane %v1063_v50, 2  ;;  %1356 = vst [vmem:[#allocation2 + $0x2c] sm:$0x1] %v1355_v43 }
 0x173   : > { %v14295_v63 = vpack.c.b16 %v1741_v54, %v1740_v31  ;;  %v1576_v3 = vrot.slane %v1574_v59, 4  ;;  %v1579_v5 = vrot.slane %v1577_v1, 5  ;;  %v1583_v7 = vshll.u32 %v1507_v56, 16  ;;  %v1473_v51 = vld [vmem:[#allocation2 + $0x24] sm:$0x1] }
 0x174   : > { %v1027_v29 = vmax.f32 %v1001_v60, %v1003_v62  ;;  %v1232_v8 = vsel %vm15473_vm9, %v1063_v50, %v1111_v61  ;;  %v14302_v10 = vsel %vm14162_vm3, %v9300_v58, %v1840_v0  ;;  %v1143_v19 = vrot.slane %v1063_v50, 3  ;;  %v1470_v50 = vld [vmem:[#allocation2 + $0x20] sm:$0xf] }
 0x175   : > { %v876_v9 = vpop.f32.mrf.mxu0  ;;  %9294 = vmatmul.msk.bf16.gmra.mxu2 %vm1688_vm5, %v14295_v63  ;;  %v1580_v30 = vor.u32 %v1579_v5, %v1576_v3  ;;  %v1870_v31 = vunpack.c.l.b16 %v14302_v10  ;;  %v1585_v13 = vrot.slane %v1583_v7, 5  ;;  %v1241_v14 = vsel %vm1237_vm10, %v1232_v8, %v1127_v6 }
 0x176   : > { %v1079_v11 = vrot.slane %v1027_v29, 1  ;;  %v1250_v25 = vsel %vm1246_vm11, %v1241_v14, %v1143_v19  ;;  %v936_v45 = vmul.f32 %v14093_v18, %v876_v9 }
 0x177   : > { %v1581_v12 = vrot.slane %v1580_v30, 4  ;;  %v14310_v17 = vpack.c.b16 %v1870_v31, %v1869_v55 }
 0x178   : > { %v1095_v16 = vmax.f32 %v1027_v29, %v1079_v11  ;;  %v972_v1 = vadd.f32 %v14112_v27, %v936_v45 }
 0x179   : > { %v1586_v21 = vsel %vm14181_vm15, %v1581_v12, %v1585_v13  ;;  %9322 = vmatmul.msk.bf16.gmra.mxu3 %vm1688_vm5, %v14310_v17 }
 0x17a   : > { %v1167_v22 = vrot.slane %v1095_v16, 4  ;;  %v1183_v23 = vrot.slane %v1095_v16, 5  ;;  %v14317_v26 = vunpack.c.l.b16 %v1586_v21  ;;  %v1199_v28 = vrot.slane %v1095_v16, 6 }
 0x17b   : > { %v1215_v33 = vrot.slane %v1095_v16, 7  ;;  %v1004_v3 = vmax.f32 %v972_v1, 0.0 }
 0x17c   : > { %v1259_v52 = vsel %vm15472_vm12, %v1250_v25, %v1167_v22  ;;  %v14323_v36 = vpack.c.b16 %v14317_v26, %v14259_v2  ;;  %v12393_v2 = vld [vmem:[#allocation13 + $0xf0] sm:$0xff] }
 0x17d   : > { %v1267_v55 = vsel %vm820_vm0, %v1259_v52, %v1183_v23  ;;  %v878_v34 = vpop.f32.mrf.mxu0 }
 0x17e   : > { %v1275_v37 = vsel %vm15466_vm1, %v1267_v55, %v1199_v28  ;;  %9274 = vmatmul.msk.bf16.gmra.mxu1 %vm1688_vm5, %v14323_v36  ;;  %v937_v5 = vmul.f32 %v14093_v18, %v878_v34 }
 0x17f   : > { %v1284_v38 = vsel %vm1280_vm13, %v1275_v37, %v1215_v33 }
 0x180   : > { %v1292_v39 = vpack.c.bf16 %v1284_v38, %v1284_v38  ;;  %v973_v8 = vadd.f32 %v14112_v27, %v937_v5 }
 0x182   : > { %v1394_v44 = vshrl.u32 %v1292_v39, 16  ;;  %v1397_v48 = vshll.u32 %v1292_v39, 16  ;;  %v1005_v23 = vmax.f32 %v973_v8, 0.0  ;;  %v1357_v8 = vld [vmem:[#allocation2 + $0x34] sm:$0x1] }
 0x184   : > { %v1396_v47 = vrot.slane %v1394_v44, 7 }
 0x185   : > { %v881_v56 = vpop.f32.mrf.mxu0 }
 0x186   : > { %v1399_v58 = vor.u32 %v1397_v48, %v1396_v47  ;;  %v1400_v59 = vrot.slane %v1396_v47, 4  ;;  %v938_v60 = vmul.f32 %v14093_v18, %v881_v56 }
 0x188   : > { %v1471_v61 = vsel %vm14148_vm14, %v1399_v58, %v1470_v50  ;;  %v1474_v62 = vsel %vm14097_vm6, %v1400_v59, %v1473_v51  ;;  %v974_v0 = vadd.f32 %v14112_v27, %v938_v60 }
 0x189   : > { %1472 = vst [vmem:[#allocation2 + $0x20] sm:$0xf] %v1471_v61 }
 0x18a   : > { %1475 = vst [vmem:[#allocation2 + $0x24] sm:$0x1] %v1474_v62  ;;  %v1006_v6 = vmax.f32 %v974_v0, 0.0 }
 0x18c   : > { %v1028_v29 = vmax.f32 %v1004_v3, %v1006_v6 }
 0x18d   : > { %v883_v7 = vpop.f32.mrf.mxu0 }
 0x18e   : > { %v1048_v9 = vrot.slane %v1028_v29, 1  ;;  %v939_v30 = vmul.f32 %v14093_v18, %v883_v7  ;;  %v1325_v7 = vld [vmem:[#allocation2 + $0x30] sm:$0x1] }
 0x190   : > { %v1064_v11 = vmax.f32 %v1028_v29, %v1048_v9  ;;  %v975_v12 = vadd.f32 %v14112_v27, %v939_v30  ;;  %v14345_v13 = vld [vmem:[#allocation2 + $0x20] sm:$0xf]  ;;  %v1326_v9 = vsel %vm14097_vm6, 0, %v1325_v7  ;;  %v1358_v30 = vsel %vm14105_vm8, 0, %v1357_v8 }
 0x191   : > { %v1742_v14 = vunpack.c.l.b16 %v14345_v13  ;;  %v1509_v16 = vld [vmem:[#allocation2 + $0x24] sm:$0x1]  ;;  %v9301_v19 = vrot.slane %v14345_v13, 9  ;;  %v1588_v21 = vshrl.u32 %v14345_v13, 16  ;;  %v1591_v22 = vshll.u32 %v14345_v13, 16 }
 0x192   : > { %v1112_v25 = vrot.slane %v1064_v11, 1  ;;  %v1007_v28 = vmax.f32 %v975_v12, 0.0  ;;  %v1844_v52 = vrot.slane %v1509_v16, 5  ;;  %v1597_v34 = vshll.u32 %v1509_v16, 16  ;;  %1327 = vst [vmem:[#allocation2 + $0x30] sm:$0x1] %v1326_v9 }
 0x193   : > { %v1590_v33 = vrot.slane %v1588_v21, 4  ;;  %v1593_v55 = vrot.slane %v1591_v22, 5  ;;  %v1128_v37 = vrot.slane %v1064_v11, 2  ;;  %v14355_v39 = vpack.c.b16 %v1742_v14, %v1741_v54  ;;  %1359 = vst [vmem:[#allocation2 + $0x34] sm:$0x1] %v1358_v30 }
 0x194   : > { %v1029_v38 = vmax.f32 %v1005_v23, %v1007_v28  ;;  %v1233_v40 = vsel %vm15473_vm9, %v1064_v11, %v1112_v25  ;;  %v14360_v42 = vsel %vm14162_vm3, %v9301_v19, %v1844_v52  ;;  %v1599_v48 = vrot.slane %v1597_v34, 5  ;;  %v1476_v21 = vld [vmem:[#allocation2 + $0x28] sm:$0xf]  ;;  %v1479_v22 = vld [vmem:[#allocation2 + $0x2c] sm:$0x1] }
 0x195   : > { %v886_v41 = vpop.f32.mrf.mxu0  ;;  %v1594_v43 = vor.u32 %v1593_v55, %v1590_v33  ;;  %v1871_v45 = vunpack.c.l.b16 %v14360_v42  ;;  %v1242_v50 = vsel %vm1237_vm10, %v1233_v40, %v1128_v37  ;;  %v1144_v51 = vrot.slane %v1064_v11, 3 }
 0x196   : > { %v1080_v44 = vrot.slane %v1029_v38, 1  ;;  %v940_v12 = vmul.f32 %v14093_v18, %v886_v41 }
 0x197   : > { %v1595_v47 = vrot.slane %v1594_v43, 4  ;;  %v14368_v54 = vpack.c.b16 %v1871_v45, %v1870_v31  ;;  %v1251_v1 = vsel %vm1246_vm11, %v1242_v50, %v1144_v51 }
 0x198   : > { %v1096_v53 = vmax.f32 %v1029_v38, %v1080_v44  ;;  %v976_v52 = vadd.f32 %v14112_v27, %v940_v12 }
 0x199   : > { %v1600_v56 = vsel %vm14181_vm15, %v1595_v47, %v1599_v48 }
 0x19a   : > { %v1168_v58 = vrot.slane %v1096_v53, 4  ;;  %v1184_v59 = vrot.slane %v1096_v53, 5  ;;  %v14373_v60 = vunpack.c.l.b16 %v1600_v56  ;;  %v1200_v61 = vrot.slane %v1096_v53, 6 }
 0x19b   : > { %v1216_v0 = vrot.slane %v1096_v53, 7  ;;  %v1008_v38 = vmax.f32 %v976_v52, 0.0 }
 0x19c   : > { %v1260_v62 = vsel %vm15472_vm12, %v1251_v1, %v1168_v58  ;;  %v2065_v31 = vpack.c.b16 %v14373_v60, %v14317_v26  ;;  %v12392_v26 = vld [vmem:[#allocation13 + $0xe8] sm:$0xff] }
 0x19d   : > { %v1268_v10 = vsel %vm820_vm0, %v1260_v62, %v1184_v59  ;;  %v888_v3 = vpop.f32.mrf.mxu0 }
 0x19e   : > { %v1276_v5 = vsel %vm15466_vm1, %v1268_v10, %v1200_v61  ;;  %v941_v40 = vmul.f32 %v14093_v18, %v888_v3 }
 0x19f   : > { %v1285_v6 = vsel %vm1280_vm13, %v1276_v5, %v1216_v0 }
 0x1a0   : > { %v1293_v29 = vpack.c.bf16 %v1285_v6, %v1285_v6  ;;  %v977_v47 = vadd.f32 %v14112_v27, %v941_v40 }
 0x1a2   : > { %v1402_v11 = vshrl.u32 %v1293_v29, 16  ;;  %v1405_v19 = vshll.u32 %v1293_v29, 16  ;;  %v1009_v0 = vmax.f32 %v977_v47, 0.0 }
 0x1a4   : > { %v1404_v16 = vrot.slane %v1402_v11, 7 }
 0x1a5   : > { %v891_v23 = vpop.f32.mrf.mxu0 }
 0x1a6   : > { %v1407_v25 = vor.u32 %v1405_v19, %v1404_v16  ;;  %v1408_v28 = vrot.slane %v1404_v16, 4  ;;  %v942_v33 = vmul.f32 %v14093_v18, %v891_v23 }
 0x1a8   : > { %v1477_v55 = vsel %vm14148_vm14, %v1407_v25, %v1476_v21  ;;  %v1480_v34 = vsel %vm14097_vm6, %v1408_v28, %v1479_v22  ;;  %v978_v37 = vadd.f32 %v14112_v27, %v942_v33 }
 0x1a9   : > { %1478 = vst [vmem:[#allocation2 + $0x28] sm:$0xf] %v1477_v55 }
 0x1aa   : > { %1481 = vst [vmem:[#allocation2 + $0x2c] sm:$0x1] %v1480_v34  ;;  %v1010_v41 = vmax.f32 %v978_v37, 0.0 }
 0x1ac   : > { %v1030_v43 = vmax.f32 %v1008_v38, %v1010_v41 }
 0x1ad   : > { %v893_v44 = vpop.f32.mrf.mxu0 }
 0x1ae   : > { %v1049_v48 = vrot.slane %v1030_v43, 1  ;;  %v943_v50 = vmul.f32 %v14093_v18, %v893_v44 }
 0x1b0   : > { %v1065_v53 = vmax.f32 %v1030_v43, %v1049_v48  ;;  %v979_v51 = vadd.f32 %v14112_v27, %v943_v50  ;;  %v14397_v56 = vld [vmem:[#allocation2 + $0x28] sm:$0xf] }
 0x1b1   : > { %v1743_v58 = vunpack.c.l.b16 %v14397_v56  ;;  %v1511_v59 = vld [vmem:[#allocation2 + $0x2c] sm:$0x1]  ;;  %v9302_v1 = vrot.slane %v14397_v56, 9  ;;  %v1602_v61 = vshrl.u32 %v14397_v56, 16  ;;  %v1605_v62 = vshll.u32 %v14397_v56, 16 }
 0x1b2   : > { %v1113_v10 = vrot.slane %v1065_v53, 1  ;;  %v1011_v3 = vmax.f32 %v979_v51, 0.0  ;;  %v1848_v27 = vrot.slane %v1511_v59, 5  ;;  %v1129_v29 = vrot.slane %v1065_v53, 2 }
 0x1b3   : > { %v14407_v18 = vpack.c.b16 %v1743_v58, %v1742_v14  ;;  %v1604_v5 = vrot.slane %v1602_v61, 4  ;;  %v1607_v6 = vrot.slane %v1605_v62, 5  ;;  %v1611_v8 = vshll.u32 %v1511_v59, 16  ;;  %v1360_v61 = vld [vmem:[#allocation2 + $0x3c] sm:$0x1] }
 0x1b4   : > { %v1031_v7 = vmax.f32 %v1009_v0, %v1011_v3  ;;  %v1234_v9 = vsel %vm15473_vm9, %v1065_v53, %v1113_v10  ;;  %v14414_v11 = vsel %vm14162_vm3, %v9302_v1, %v1848_v27  ;;  %v1145_v25 = vrot.slane %v1065_v53, 3  ;;  %v1328_v1 = vld [vmem:[#allocation2 + $0x38] sm:$0x1]  ;;  %v14447_v3 = vld [vmem:[#allocation10] ss:$0 sm:$0xff] }
 0x1b5   : > { %v896_v30 = vpop.f32.mrf.mxu0  ;;  %9295 = vmatmul.msk.bf16.gmra.mxu2 %vm1688_vm5, %v14407_v18  ;;  %v1608_v13 = vor.u32 %v1607_v6, %v1604_v5  ;;  %v1872_v14 = vunpack.c.l.b16 %v14414_v11  ;;  %v1613_v19 = vrot.slane %v1611_v8, 5  ;;  %v1243_v21 = vsel %vm1237_vm10, %v1234_v9, %v1129_v29  ;;  %v1482_v29 = vld [vmem:[#allocation2 + $0x30] sm:$0xf] }
 0x1b6   : > { %v1081_v12 = vrot.slane %v1031_v7, 1  ;;  %v1252_v55 = vsel %vm1246_vm11, %v1243_v21, %v1145_v25  ;;  %v1329_v62 = vsel %vm14097_vm6, 0, %v1328_v1  ;;  %v1361_v0 = vsel %vm14105_vm8, 0, %v1360_v61 }
 0x1b7   : > { %v1609_v16 = vrot.slane %v1608_v13, 4  ;;  %v14422_v23 = vpack.c.b16 %v1872_v14, %v1871_v45  ;;  %v944_v27 = vmul.f32 %v14447_v3, %v896_v30  ;;  %1330 = vst [vmem:[#allocation2 + $0x38] sm:$0x1] %v1329_v62 }
 0x1b8   : > { %v1097_v22 = vmax.f32 %v1031_v7, %v1081_v12  ;;  %v1795_v38 = vpop.f32.mrf.mxu2  ;;  %1362 = vst [vmem:[#allocation2 + $0x3c] sm:$0x1] %v1361_v0  ;;  %v1485_v7 = vld [vmem:[#allocation2 + $0x34] sm:$0x1]  ;;  %v14450_v12 = vld [vmem:[#allocation11] ss:$0 sm:$0xff] }
 0x1b9   : > { %v1614_v28 = vsel %vm14181_vm15, %v1609_v16, %v1613_v19  ;;  %9323 = vmatmul.msk.bf16.gmra.mxu3 %vm1688_vm5, %v14422_v23  ;;  %v980_v16 = vadd.f32 %v14450_v12, %v944_v27  ;;  %v12382_v0 = vld [vmem:[#allocation13 + $0x98] sm:$0xff] }
 0x1ba   : > { %v1169_v52 = vrot.slane %v1097_v22, 4  ;;  %v1185_v33 = vrot.slane %v1097_v22, 5  ;;  %v14429_v34 = vunpack.c.l.b16 %v1614_v28  ;;  %v1201_v37 = vrot.slane %v1097_v22, 6  ;;  %2108 = vmatpush.bf16.msrb.mxu2 %v12382_v0 }
 0x1bb   : > { %v1710_v40 = vpop.f32.mrf.mxu1  ;;  %v1217_v45 = vrot.slane %v1097_v22, 7  ;;  %v1012_v25 = vmax.f32 %v980_v16, 0.0 }
 0x1bc   : > { %v1261_v42 = vsel %vm15472_vm12, %v1252_v55, %v1169_v52  ;;  %v1796_v43 = vadd.f32 %v1795_v38, %v1710_v40  ;;  %v14435_v47 = vpack.c.b16 %v14429_v34, %v14373_v60  ;;  %v1924_v50 = vpop.f32.mrf.mxu3  ;;  %v12390_v60 = vld [vmem:[#allocation13 + $0xd8] sm:$0xff] }
 0x1bd   : > { %v1269_v41 = vsel %vm820_vm0, %v1261_v42, %v1185_v33  ;;  %v898_v44 = vpop.f32.mrf.mxu0 }
 0x1be   : > { %v1277_v48 = vsel %vm15466_vm1, %v1269_v41, %v1201_v37  ;;  %v14439_v51 = vadd.f32 %v1924_v50, %v1796_v43  ;;  %9275 = vmatmul.msk.bf16.gmra.mxu1 %vm1688_vm5, %v14435_v47  ;;  %v945_v28 = vmul.f32 %v14447_v3, %v898_v44 }
 0x1bf   : > { %v1286_v53 = vsel %vm1280_vm13, %v1277_v48, %v1217_v45 }
 0x1c0   : > { %v1294_v59 = vpack.c.bf16 %v1286_v53, %v1286_v53  ;;  %v981_v37 = vadd.f32 %v14450_v12, %v945_v28 }
 0x1c2   : > { %v1410_v10 = vshrl.u32 %v1294_v59, 16  ;;  %v1413_v6 = vshll.u32 %v1294_v59, 16  ;;  %v1013_v41 = vmax.f32 %v981_v37, 0.0 }
 0x1c4   : > { %v1412_v5 = vrot.slane %v1410_v10, 7 }
 0x1c5   : > { %v901_v8 = vpop.f32.mrf.mxu0 }
 0x1c6   : > { %v1415_v9 = vor.u32 %v1413_v6, %v1412_v5  ;;  %v1416_v13 = vrot.slane %v1412_v5, 4  ;;  %v946_v19 = vmul.f32 %v14447_v3, %v901_v8 }
 0x1c8   : > { %v1483_v21 = vsel %vm14148_vm14, %v1415_v9, %v1482_v29  ;;  %v1486_v30 = vsel %vm14097_vm6, %v1416_v13, %v1485_v7  ;;  %v982_v22 = vadd.f32 %v14450_v12, %v946_v19  ;;  %v12386_v29 = vld [vmem:[#allocation13 + $0xb8] sm:$0xff]  ;;  %v12381_v9 = vld [vmem:[#allocation13 + $0x90] sm:$0xff] }
 0x1c9   : > { %1484 = vst [vmem:[#allocation2 + $0x30] sm:$0xf] %v1483_v21  ;;  %2200 = vmatpush.bf16.msrb.mxu3 %v12386_v29  ;;  %2109 = vmatpush.bf16.msrb.mxu2 %v12381_v9  ;;  %v12383_v29 = vld [vmem:[#allocation13 + $0xa0] sm:$0xff] }
 0x1ca   : > { %1487 = vst [vmem:[#allocation2 + $0x34] sm:$0x1] %v1486_v30  ;;  %v1014_v52 = vmax.f32 %v982_v22, 0.0 }
 0x1cc   : > { %v1032_v33 = vmax.f32 %v1012_v25, %v1014_v52  ;;  %v12385_v25 = vld [vmem:[#allocation13 + $0xb0] sm:$0xff] }
 0x1cd   : > { %v903_v55 = vpop.f32.mrf.mxu0  ;;  %v1331_v52 = vld [vmem:[#allocation2 + $0x40] sm:$0x1]  ;;  %2201 = vmatpush.bf16.msrb.mxu3 %v12385_v25 }
 0x1ce   : > { %v1050_v42 = vrot.slane %v1032_v33, 1  ;;  %v947_v38 = vmul.f32 %v14447_v3, %v903_v55  ;;  %v12380_v55 = vld [vmem:[#allocation13 + $0x88] sm:$0xff]  ;;  %v1332_v37 = vsel %vm14097_vm6, 0, %v1331_v52  ;;  %v1334_v52 = vld [vmem:[#allocation2 + $0x48] sm:$0x1] }
 0x1cf   : > { %1333 = vst [vmem:[#allocation2 + $0x40] sm:$0x1] %v1332_v37  ;;  %2110 = vmatpush.bf16.msrb.mxu2 %v12380_v55 }
 0x1d0   : > { %v1066_v40 = vmax.f32 %v1032_v33, %v1050_v42  ;;  %v983_v45 = vadd.f32 %v14450_v12, %v947_v38  ;;  %v1363_v33 = vld [vmem:[#allocation2 + $0x44] sm:$0x1] }
 0x1d1   : > { %v1364_v42 = vsel %vm14105_vm8, 0, %v1363_v33  ;;  %v12378_v38 = vld [vmem:[#allocation13 + $0x78] sm:$0xff]  ;;  %v1366_v33 = vld [vmem:[#allocation2 + $0x4c] sm:$0x1] }
 0x1d2   : > { %v1114_v43 = vrot.slane %v1066_v40, 1  ;;  %v1015_v48 = vmax.f32 %v983_v45, 0.0  ;;  %v1130_v50 = vrot.slane %v1066_v40, 2  ;;  %v1146_v10 = vrot.slane %v1066_v40, 3  ;;  %1365 = vst [vmem:[#allocation2 + $0x44] sm:$0x1] %v1364_v42  ;;  %2007 = vmatpush.bf16.msrb.mxu1 %v12378_v38 }
 0x1d3   : > { %v1367_v42 = vsel %vm14105_vm8, 0, %v1366_v33 }
 0x1d4   : > { %v1033_v53 = vmax.f32 %v1013_v41, %v1015_v48  ;;  %v1235_v59 = vsel %vm15473_vm9, %v1066_v40, %v1114_v43  ;;  %v14476_v41 = vld [vmem:[#allocation2 + $0x30] sm:$0xf]  ;;  %v12384_v43 = vld [vmem:[#allocation13 + $0xa8] sm:$0xff]  ;;  %1368 = vst [vmem:[#allocation2 + $0x4c] sm:$0x1] %v1367_v42 }
 0x1d5   : > { %v906_v1 = vpop.f32.mrf.mxu0  ;;  %v1244_v61 = vsel %vm1237_vm10, %v1235_v59, %v1130_v50  ;;  %v1488_v59 = vld [vmem:[#allocation2 + $0x38] sm:$0xf]  ;;  %2202 = vmatpush.bf16.msrb.mxu3 %v12384_v43  ;;  %v9303_v43 = vrot.slane %v14476_v41, 9 }
 0x1d6   : > { %v1082_v44 = vrot.slane %v1033_v53, 1  ;;  %v1253_v6 = vsel %vm1246_vm11, %v1244_v61, %v1146_v10  ;;  %v948_v22 = vmul.f32 %v14447_v3, %v906_v1  ;;  %v1491_v1 = vld [vmem:[#allocation2 + $0x3c] sm:$0x1] }
 0x1d7   : > { %v12377_v61 = vld [vmem:[#allocation13 + $0x70] sm:$0xff] }
 0x1d8   : > { %v1098_v62 = vmax.f32 %v1033_v53, %v1082_v44  ;;  %v984_v45 = vadd.f32 %v14450_v12, %v948_v22  ;;  %v12379_v53 = vld [vmem:[#allocation13 + $0x80] sm:$0xff]  ;;  %2008 = vmatpush.bf16.msrb.mxu1 %v12377_v61 }
 0x1d9   : > { %2111 = vmatpush.bf16.msrb.mxu2 %v12379_v53  ;;  %2203 = vmatpush.bf16.msrb.mxu3 %v12383_v29 }
 0x1da   : > { %v1170_v27 = vrot.slane %v1098_v62, 4  ;;  %v1186_v5 = vrot.slane %v1098_v62, 5  ;;  %v1202_v7 = vrot.slane %v1098_v62, 6  ;;  %v1218_v13 = vrot.slane %v1098_v62, 7 }
 0x1dc   : > { %v1262_v8 = vsel %vm15472_vm12, %v1253_v6, %v1170_v27  ;;  %v1616_v27 = vshrl.u32 %v14476_v41, 16  ;;  %v1619_v6 = vshll.u32 %v14476_v41, 16 }
 0x1dd   : > { %v1270_v16 = vsel %vm820_vm0, %v1262_v8, %v1186_v5  ;;  %v908_v19 = vpop.f32.mrf.mxu0  ;;  %v1016_v5 = vmax.f32 %v984_v45, 0.0  ;;  %2365 = vmatpush.bf16.msra.mxu2 %v12394_v46  ;;  %2445 = vmatpush.bf16.msra.mxu3 %v12398_v20 }
 0x1de   : > { %v1278_v21 = vsel %vm15466_vm1, %v1270_v16, %v1202_v7  ;;  %v949_v9 = vmul.f32 %v14447_v3, %v908_v19  ;;  %v12376_v16 = vld [vmem:[#allocation13 + $0x68] sm:$0xff]  ;;  %v1618_v22 = vrot.slane %v1616_v27, 4  ;;  %v1621_v25 = vrot.slane %v1619_v6, 5 }
 0x1df   : > { %v1287_v30 = vsel %vm1280_vm13, %v1278_v21, %v1218_v13  ;;  %2009 = vmatpush.bf16.msrb.mxu1 %v12376_v16  ;;  %v1335_v19 = vsel %vm14097_vm6, 0, %v1334_v52  ;;  %v14512_v16 = vpop.f32.mrf.mxu2 }
 0x1e0   : > { %v1295_v28 = vpack.c.bf16 %v1287_v30, %v1287_v30  ;;  %v1513_v30 = vld [vmem:[#allocation2 + $0x34] sm:$0x1]  ;;  %v985_v55 = vadd.f32 %v14450_v12, %v949_v9  ;;  %1336 = vst [vmem:[#allocation2 + $0x48] sm:$0x1] %v1335_v19  ;;  %v1622_v24 = vor.u32 %v1621_v25, %v1618_v22  ;;  %v14523_v19 = vpop.f32.mrf.mxu3 }
 0x1e1   : > { %v1625_v53 = vshll.u32 %v1513_v30, 16  ;;  %2366 = vmatpush.bf16.msra.mxu2 %v12393_v2 }
 0x1e2   : > { %v1418_v40 = vshrl.u32 %v1295_v28, 16  ;;  %v1421_v50 = vshll.u32 %v1295_v28, 16  ;;  %v12375_v28 = vld [vmem:[#allocation13 + $0x60] sm:$0xff]  ;;  %v1623_v25 = vrot.slane %v1622_v24, 4 }
 0x1e3   : > { %2010 = vmatpush.bf16.msrb.mxu1 %v12375_v28 }
 0x1e4   : > { %v1420_v48 = vrot.slane %v1418_v40, 7 }
 0x1e5   : > { %v911_v44 = vpop.f32.mrf.mxu0  ;;  %2367 = vmatpush.bf16.msra.mxu2 %v12392_v26 }
 0x1e6   : > { %v1423_v62 = vor.u32 %v1421_v50, %v1420_v48  ;;  %v1424_v0 = vrot.slane %v1420_v48, 4  ;;  %v950_v10 = vmul.f32 %v14447_v3, %v911_v44  ;;  %v1852_v48 = vrot.slane %v1513_v30, 5 }
 0x1e7   : > { %v1744_v50 = vunpack.c.l.b16 %v14476_v41  ;;  %2276 = vmatpush.bf16.msra.mxu1 %v12390_v60 }
 0x1e8   : > { %v1489_v7 = vsel %vm14148_vm14, %v1423_v62, %v1488_v59  ;;  %v1492_v8 = vsel %vm14097_vm6, %v1424_v0, %v1491_v1  ;;  %v986_v13 = vadd.f32 %v14450_v12, %v950_v10  ;;  %v1017_v59 = vmax.f32 %v985_v55, 0.0 }
 0x1e9   : > { %1490 = vst [vmem:[#allocation2 + $0x38] sm:$0xf] %v1489_v7  ;;  %v14504_v7 = vsel %vm14162_vm3, %v9303_v43, %v1852_v48  ;;  %v1627_v55 = vrot.slane %v1625_v53, 5 }
 0x1ea   : > { %1493 = vst [vmem:[#allocation2 + $0x3c] sm:$0x1] %v1492_v8  ;;  %v1018_v21 = vmax.f32 %v986_v13, 0.0 }
 0x1eb   : > { %v1628_v53 = vsel %vm14181_vm15, %v1623_v25, %v1627_v55 }
 0x1ec   : > { %v1034_v37 = vmax.f32 %v1016_v5, %v1018_v21  ;;  %v14514_v21 = vpop.f32.mrf.mxu1 }
 0x1ed   : > { %v913_v38 = vpop.f32.mrf.mxu0 }
 0x1ee   : > { %v1051_v40 = vrot.slane %v1034_v37, 1  ;;  %v951_v45 = vmul.f32 %v14447_v3, %v913_v38 }
 0x1f0   : > { %v1067_v1 = vmax.f32 %v1034_v37, %v1051_v40  ;;  %v987_v44 = vadd.f32 %v14450_v12, %v951_v45  ;;  %v14496_v61 = vld [vmem:[#allocation2 + $0x38] sm:$0xf]  ;;  %v1873_v40 = vunpack.c.l.b16 %v14504_v7 }
 0x1f1   : > { %v1745_v62 = vunpack.c.l.b16 %v14496_v61  ;;  %v1515_v0 = vld [vmem:[#allocation2 + $0x3c] sm:$0x1]  ;;  %v9304_v3 = vrot.slane %v14496_v61, 9  ;;  %v1630_v10 = vshrl.u32 %v14496_v61, 16  ;;  %v1633_v27 = vshll.u32 %v14496_v61, 16 }
 0x1f2   : > { %v1115_v5 = vrot.slane %v1067_v1, 1  ;;  %v1131_v6 = vrot.slane %v1067_v1, 2  ;;  %v1019_v29 = vmax.f32 %v987_v44, 0.0  ;;  %v1856_v8 = vrot.slane %v1515_v0, 5 }
 0x1f3   : > { %v14510_v12 = vpack.c.b16 %v1745_v62, %v1744_v50  ;;  %v1632_v9 = vrot.slane %v1630_v10, 4  ;;  %v1635_v13 = vrot.slane %v1633_v27, 5  ;;  %v1639_v28 = vshll.u32 %v1515_v0, 16 }
 0x1f4   : > { %v1236_v30 = vsel %vm15473_vm9, %v1067_v1, %v1115_v5  ;;  %v1035_v22 = vmax.f32 %v1017_v59, %v1019_v29  ;;  %v1147_v52 = vrot.slane %v1067_v1, 3  ;;  %v14521_v33 = vsel %vm14162_vm3, %v9304_v3, %v1856_v8 }
 0x1f5   : > { %9296 = vmatmul.msk.bf16.gmra.mxu2 %vm1688_vm5, %v14510_v12  ;;  %v1636_v37 = vor.u32 %v1635_v13, %v1632_v9  ;;  %v1245_v42 = vsel %vm1237_vm10, %v1236_v30, %v1131_v6  ;;  %v1874_v45 = vunpack.c.l.b16 %v14521_v33  ;;  %v1641_v48 = vrot.slane %v1639_v28, 5  ;;  %v1518_v33 = vld [vmem:[#allocation2 + $0x48] sm:$0xf] }
 0x1f6   : > { %v1083_v38 = vrot.slane %v1035_v22, 1  ;;  %v1254_v44 = vsel %vm1246_vm11, %v1245_v42, %v1147_v52  ;;  %v1658_v5 = vunpack.c.l.b16 %v1628_v53  ;;  %v2310_v61 = vshrl.u32 %v1518_v33, 16 }
 0x1f7   : > { %v1637_v43 = vrot.slane %v1636_v37, 4  ;;  %v14532_v1 = vpack.c.b16 %v1874_v45, %v1873_v40  ;;  %v2243_v60 = vunpack.c.l.b16 %v1518_v33 }
 0x1f8   : > { %v1099_v59 = vmax.f32 %v1035_v22, %v1083_v38  ;;  %v1800_v8 = vpop.f32.mrf.mxu2 }
 0x1f9   : > { %v1642_v24 = vsel %vm14181_vm15, %v1637_v43, %v1641_v48  ;;  %9324 = vmatmul.msk.bf16.gmra.mxu3 %vm1688_vm5, %v14532_v1  ;;  %v1494_v48 = vld [vmem:[#allocation2 + $0x40] sm:$0xf] }
 0x1fa   : > { %v1171_v0 = vrot.slane %v1099_v59, 4  ;;  %v1187_v3 = vrot.slane %v1099_v59, 5  ;;  %v1203_v10 = vrot.slane %v1099_v59, 6  ;;  %v1219_v27 = vrot.slane %v1099_v59, 7  ;;  %v1497_v59 = vld [vmem:[#allocation2 + $0x44] sm:$0x1] }
 0x1fb   : > { %v14541_v6 = vunpack.c.l.b16 %v1642_v24  ;;  %v1715_v9 = vpop.f32.mrf.mxu1 }
 0x1fc   : > { %v1263_v29 = vsel %vm15472_vm12, %v1254_v44, %v1171_v0  ;;  %v1801_v30 = vadd.f32 %v1800_v8, %v1715_v9  ;;  %v1929_v28 = vpop.f32.mrf.mxu3  ;;  %v12389_v9 = vld [vmem:[#allocation13 + $0xd0] sm:$0xff] }
 0x1fd   : > { %v1271_v13 = vsel %vm820_vm0, %v1263_v29, %v1187_v3  ;;  %v14546_v22 = vpack.c.b16 %v14541_v6, %v1658_v5  ;;  %2277 = vmatpush.bf16.msra.mxu1 %v12389_v9  ;;  %vm15512_vm0 = vsmask.f32 256 }
 0x1fe   : > { %v1279_v25 = vsel %vm15466_vm1, %v1271_v13, %v1203_v10  ;;  %v14550_v55 = vadd.f32 %v1929_v28, %v1801_v30  ;;  %v12396_v10 = vld [vmem:[#allocation13 + $0x108] sm:$0xff]  ;;  %vm14681_vm2 = vmand %vm15473_vm9, %vm15512_vm0  ;;  %vm4346_vm1 = vsmask.f32 4368 }
 0x1ff   : > { %v1288_v52 = vsel %vm1280_vm13, %v1279_v25, %v1219_v27  ;;  %9276 = vmatmul.msk.bf16.gmra.mxu1 %vm1688_vm5, %v14546_v22  ;;  %v2066_v27 = vpack.c.b16 %v1658_v5, %v14429_v34  ;;  %v12388_v30 = vld [vmem:[#allocation13 + $0xc8] sm:$0xff]  ;;  %v2158_v25 = vpack.c.b16 %v1873_v40, %v1872_v14  ;;  %vm15471_vm13 = vcmask 1043458   ;;  %vm14744_vm0 = vmor %vm15473_vm9, %vm15469_vm4 }
 0x200   : > { %v1296_v37 = vpack.c.bf16 %v1288_v52, %v1288_v52  ;;  %v12387_v52 = vld [vmem:[#allocation13 + $0xc0] sm:$0xff] }
 0x201   : > { %2278 = vmatpush.bf16.msra.mxu1 %v12388_v30 }
 0x202   : > { %v1426_v42 = vshrl.u32 %v1296_v37, 16  ;;  %v1429_v43 = vshll.u32 %v1296_v37, 16  ;;  %v1965_v37 = vpack.c.b16 %v1744_v50, %v1743_v58 }
 0x204   : > { %v1428_v38 = vrot.slane %v1426_v42, 7  ;;  %v14601_v58 = vpop.f32.mrf.mxu3 }
 0x205   : > { %9361 = vmatmul.msk.bf16.vlgmr.msrb.gmra.mxu2 %vm1688_vm5, %v2064_v32  ;;  %2279 = vmatpush.bf16.msra.mxu1 %v12387_v52 }
 0x206   : > { %v1431_v53 = vor.u32 %v1429_v43, %v1428_v38  ;;  %v1432_v44 = vrot.slane %v1428_v38, 4  ;;  %v14596_v38 = vpop.f32.mrf.mxu2  ;;  %v14598_v43 = vpop.f32.mrf.mxu1 }
 0x208   : > { %v1495_v24 = vsel %vm14148_vm14, %v1431_v53, %v1494_v48  ;;  %v1498_v0 = vsel %vm14097_vm6, %v1432_v44, %v1497_v59  ;;  %vm2598_vm6 = vsmask.f32 7946  ;;  %vm2720_vm14 = vsmask.f32 1280 }
 0x209   : > { %1496 = vst [vmem:[#allocation2 + $0x40] sm:$0xf] %v1495_v24  ;;  %9382 = vmatmul.msk.bf16.vlgmr.msrb.gmra.mxu3 %vm1688_vm5, %v14254_v4  ;;  %vm14692_vm8 = vmand %vm15469_vm4, %vm2598_vm6  ;;  %vm3039_vm6 = vcmask 1044484  }
 0x20a   : > { %1499 = vst [vmem:[#allocation2 + $0x44] sm:$0x1] %v1498_v0  ;;  %v1519_v0 = vld [vmem:[#allocation2 + $0x4c] sm:$0x1] }
 0x20b   : > { %v2401_v20 = vrot.slane %v1519_v0, 5 }
 0x20f   : > { %9341 = vmatmul.msk.bf16.vlgmr.msrb.gmra.mxu1 %vm1688_vm5, %v14240_v49  ;;  %v12397_v49 = vld [vmem:[#allocation13 + $0x110] sm:$0xff] }
 0x210   : > { %v14570_v35 = vld [vmem:[#allocation2 + $0x40] sm:$0xf]  ;;  %2446 = vmatpush.bf16.msra.mxu3 %v12397_v49 }
 0x211   : > { %v2041_v32 = vshrl.u32 %v14570_v35, 16  ;;  %v2044_v4 = vshll.u32 %v14570_v35, 16  ;;  %v1517_v29 = vld [vmem:[#allocation2 + $0x44] sm:$0x1]  ;;  %v9365_v11 = vrot.slane %v14570_v35, 9  ;;  %v1962_v50 = vunpack.c.l.b16 %v14570_v35 }
 0x212   : > { %v2050_v13 = vshll.u32 %v1517_v29, 16  ;;  %v2144_v42 = vrot.slane %v1517_v29, 5 }
 0x213   : > { %v2046_v3 = vrot.slane %v2044_v4, 5 }
 0x214   : > { %2447 = vmatpush.bf16.msra.mxu3 %v12396_v10  ;;  %v2052_v34 = vrot.slane %v2050_v13, 5  ;;  %v2145_v7 = vsel %vm14162_vm3, %v9365_v11, %v2144_v42  ;;  %v2244_v10 = vpack.c.b16 %v2243_v60, %v1962_v50 }
 0x215   : > { %9362 = vmatmul.msk.bf16.gmra.mxu2 %vm1688_vm5, %v2065_v31  ;;  %v2043_v31 = vrot.slane %v2041_v32, 4  ;;  %v2155_v56 = vunpack.c.l.b16 %v2145_v7 }
 0x217   : > { %v2047_v8 = vor.u32 %v2046_v3, %v2043_v31  ;;  %v2159_v41 = vpack.c.b16 %v2155_v56, %v1874_v45  ;;  %v2312_v45 = vrot.slane %v2310_v61, 4 }
 0x219   : > { %9383 = vmatmul.msk.bf16.gmra.mxu3 %vm1688_vm5, %v14368_v54  ;;  %v12391_v54 = vld [vmem:[#allocation13 + $0xe0] sm:$0xff]  ;;  %v2048_v28 = vrot.slane %v2047_v8, 4 }
 0x21a   : > { %2368 = vmatpush.bf16.msra.mxu2 %v12391_v54 }
 0x21b   : > { %v2053_v5 = vsel %vm14181_vm15, %v2048_v28, %v2052_v34 }
 0x21c   : > { %v2063_v14 = vunpack.c.l.b16 %v2053_v5 }
 0x21e   : > { %v2067_v40 = vpack.c.b16 %v2063_v14, %v14541_v6  ;;  %v1966_v6 = vpack.c.b16 %v1962_v50, %v1745_v62  ;;  %v2313_v62 = vshll.u32 %v1518_v33, 16 }
 0x21f   : > { %9342 = vmatmul.msk.bf16.gmra.mxu1 %vm1688_vm5, %v14355_v39  ;;  %v12395_v39 = vld [vmem:[#allocation13 + $0x100] sm:$0xff] }
 0x220   : > { %2448 = vmatpush.bf16.msra.mxu3 %v12395_v39 }
 0x225   : > { %9363 = vmatmul.msk.bf16.gmra.mxu2 %vm1688_vm5, %v2066_v27 }
 0x229   : > { %9384 = vmatmul.msk.bf16.gmra.mxu3 %vm1688_vm5, %v2158_v25 }
 0x22f   : > { %9343 = vmatmul.msk.bf16.gmra.mxu1 %vm1688_vm5, %v1965_v37 }
 0x235   : > { %9364 = vmatmul.msk.bf16.gmra.mxu2 %vm1688_vm5, %v2067_v40 }
 0x238   : > { %v1805_v48 = vpop.f32.mrf.mxu2 }
 0x239   : > { %9385 = vmatmul.msk.bf16.gmra.mxu3 %vm1688_vm5, %v2159_v41 }
 0x23b   : > { %v1720_v59 = vpop.f32.mrf.mxu1 }
 0x23c   : > { %v1806_v53 = vadd.f32 %v1805_v48, %v1720_v59  ;;  %v1934_v44 = vpop.f32.mrf.mxu3 }
 0x23e   : > { %v14609_v24 = vadd.f32 %v1934_v44, %v1806_v53 }
 0x23f   : > { %9344 = vmatmul.msk.bf16.gmra.mxu1 %vm1688_vm5, %v1966_v6 }
 0x240   : > { %v14632_v2 = vpop.f32.mrf.mxu2 }
 0x243   : > { %v14636_v4 = vpop.f32.mrf.mxu1 }
 0x244   : > { %v14638_v26 = vpop.f32.mrf.mxu3 }
 0x245   : > { %9422 = vmatmul.msk.bf16.vlgmr.msra.gmra.mxu2 %vm1688_vm5, %v14323_v36  ;;  %v2315_v36 = vrot.slane %v2313_v62, 5 }
 0x247   : > { %v2316_v46 = vor.u32 %v2315_v36, %v2312_v45 }
 0x249   : > { %9443 = vmatmul.msk.bf16.vlgmr.msra.gmra.mxu3 %vm1688_vm5, %v14310_v17  ;;  %v2319_v17 = vshll.u32 %v1519_v0, 16 }
 0x24b   : > { %v2321_v35 = vrot.slane %v2319_v17, 5 }
 0x24f   : > { %9402 = vmatmul.msk.bf16.vlgmr.msra.gmra.mxu1 %vm1688_vm5, %v14295_v63  ;;  %v2317_v63 = vrot.slane %v2316_v46, 4 }
 0x255   : > { %9423 = vmatmul.msk.bf16.gmra.mxu2 %vm1688_vm5, %v14435_v47  ;;  %v9426_v47 = vrot.slane %v1518_v33, 9 }
 0x257   : > { %v2402_v32 = vsel %vm14162_vm3, %v9426_v47, %v2401_v20  ;;  %vm2721_vm3 = vsmask.f32 3336 }
 0x258   : > { %v2412_v49 = vunpack.c.l.b16 %v2402_v32 }
 0x259   : > { %9444 = vmatmul.msk.bf16.gmra.mxu3 %vm1688_vm5, %v14422_v23  ;;  %v2322_v23 = vsel %vm14181_vm15, %v2317_v63, %v2321_v35  ;;  %v1798_v63 = vadd.f32 %v14512_v16, %v14514_v21  ;;  %vm14737_vm15 = vmor %vm2720_vm14, %vm2721_vm3 }
 0x25a   : > { %vm14759_vm3 = vmor %vm14744_vm0, %vm3039_vm6  ;;  %vm2651_vm0 = vsmask.f32 2306 }
 0x25b   : > { %v1945_v47 = vadd.f32 %v14523_v19, %v1798_v63  ;;  %v2594_v19 = vld [vmem:[#allocation3 + $0x14] sm:$0x1]  ;;  %vm14798_vm6 = vmand %vm1246_vm11, %vm2651_vm0 }
 0x25c   : > { %v2595_v60 = vsel %vm14681_vm2, 0, %v2594_v19  ;;  %v12429_v19 = vld [vmem:[#allocation17 + $0xf4] sm:$0xf] }
 0x25d   : > { %2596 = vst [vmem:[#allocation3 + $0x14] sm:$0x1] %v2595_v60 }
 0x25f   : > { %9403 = vmatmul.msk.bf16.gmra.mxu1 %vm1688_vm5, %v14407_v18  ;;  %v2332_v18 = vunpack.c.l.b16 %v2322_v23 }
 0x265   : > { %9424 = vmatmul.msk.bf16.gmra.mxu2 %vm1688_vm5, %v14546_v22  ;;  %v2333_v22 = vpack.c.b16 %v2332_v18, %v2063_v14 }
 0x269   : > { %9445 = vmatmul.msk.bf16.gmra.mxu3 %vm1688_vm5, %v14532_v1  ;;  %v2413_v1 = vpack.c.b16 %v2412_v49, %v2155_v56  ;;  %v2582_v49 = vld [vmem:[#allocation3 + $0x4] sm:$0x1] }
 0x26a   : > { %v2583_v21 = vsel %vm14681_vm2, 0, %v2582_v49  ;;  %v9505_v49 = vld [vmem:[#allocation17 + $0xf0] sm:$0xf] }
 0x26b   : > { %2584 = vst [vmem:[#allocation3 + $0x4] sm:$0x1] %v2583_v21 }
 0x26f   : > { %9404 = vmatmul.msk.bf16.gmra.mxu1 %vm1688_vm5, %v14510_v12 }
 0x275   : > { %9425 = vmatmul.msk.bf16.gmra.mxu2 %vm1688_vm5, %v2333_v22  ;;  %v2579_v22 = vld [vmem:[#allocation3] sm:$0x1] }
 0x276   : > { %v2580_v16 = vsel %vm14681_vm2, 0, %v2579_v22 }
 0x277   : > { %2581 = vst [vmem:[#allocation3] sm:$0x1] %v2580_v16 }
 0x278   : > { %v1810_v15 = vpop.f32.mrf.mxu2 }
 0x279   : > { %9446 = vmatmul.msk.bf16.gmra.mxu3 %vm1688_vm5, %v2413_v1 }
 0x27c   : > { %v1725_v12 = vpop.f32.mrf.mxu1  ;;  %v1939_v3 = vpop.f32.mrf.mxu3 }
 0x27d   : > { %v1811_v31 = vadd.f32 %v1810_v15, %v1725_v12  ;;  %v9693_v12 = vld [vmem:[#allocation17 + $0x1e0] sm:$0xf] }
 0x27f   : > { %v1950_v54 = vadd.f32 %v1939_v3, %v1811_v31  ;;  %9405 = vmatmul.msk.bf16.gmra.mxu1 %vm1688_vm5, %v2244_v10  ;;  %v2600_v31 = vld [vmem:[#allocation3] sm:$0x4]  ;;  %vm2723_vm5 = vsmask.f32 5392 }
 0x280   : > { %v14643_v57 = vpop.f32.mrf.mxu2  ;;  %vm14751_vm14 = vmor %vm14737_vm15, %vm2723_vm5  ;;  %vm3041_vm5 = vcmask 1046534  }
 0x281   : > { %vm14766_vm15 = vmor %vm14751_vm14, %vm2725_vm7  ;;  %vm15468_vm14 = vcmask 1041409  }
 0x282   : > { %vm14779_vm7 = vmor %vm14759_vm3, %vm3041_vm5  ;;  %vm4180_vm3 = vsmask.f32 7942  ;;  %vm15467_vm5 = vcmask 1043459  }
 0x284   : > { %v14645_v27 = vpop.f32.mrf.mxu1  ;;  %v14647_v29 = vpop.f32.mrf.mxu3 }
 0x288   : > { %v2113_v8 = vpop.f32.mrf.mxu2 }
 0x28c   : > { %v2012_v9 = vpop.f32.mrf.mxu1  ;;  %v2205_v39 = vpop.f32.mrf.mxu3 }
 0x28d   : > { %v2032_v13 = vadd.f32 %v2012_v9, %v14439_v51 }
 0x28f   : > { %v2133_v30 = vadd.f32 %v2113_v8, %v2032_v13  ;;  %v2603_v8 = vld [vmem:[#allocation3 + $0x4] sm:$0x4] }
 0x290   : > { %v2115_v25 = vpop.f32.mrf.mxu2  ;;  %v2604_v13 = vsel %vm14692_vm8, 0, %v2603_v8 }
 0x291   : > { %v2225_v28 = vadd.f32 %v2205_v39, %v2133_v30  ;;  %v2615_v39 = vld [vmem:[#allocation3 + $0x14] sm:$0x4]  ;;  %2605 = vst [vmem:[#allocation3 + $0x4] sm:$0x4] %v2604_v13  ;;  %v9497_v13 = vld [vmem:[#allocation17 + $0xe0] sm:$0xf] }
 0x294   : > { %v2014_v34 = vpop.f32.mrf.mxu1  ;;  %v2207_v5 = vpop.f32.mrf.mxu3 }
 0x295   : > { %v2033_v20 = vadd.f32 %v2014_v34, %v1945_v47  ;;  %v2616_v34 = vsel %vm14692_vm8, 0, %v2615_v39  ;;  %v2606_v47 = vld [vmem:[#allocation3 + $0x8] sm:$0x4] }
 0x296   : > { %2617 = vst [vmem:[#allocation3 + $0x14] sm:$0x4] %v2616_v34  ;;  %v2607_v22 = vsel %vm14692_vm8, 0, %v2606_v47  ;;  %v12425_v47 = vld [vmem:[#allocation17 + $0xd4] sm:$0xf] }
 0x297   : > { %v2134_v3 = vadd.f32 %v2115_v25, %v2033_v20  ;;  %v1803_v25 = vadd.f32 %v14596_v38, %v14598_v43  ;;  %2608 = vst [vmem:[#allocation3 + $0x8] sm:$0x4] %v2607_v22 }
 0x298   : > { %v2118_v52 = vpop.f32.mrf.mxu2 }
 0x29c   : > { %v2017_v37 = vpop.f32.mrf.mxu1  ;;  %v2210_v42 = vpop.f32.mrf.mxu3 }
 0x29d   : > { %v2034_v11 = vadd.f32 %v2017_v37, %v14550_v55 }
 0x29f   : > { %v2135_v14 = vadd.f32 %v2118_v52, %v2034_v11  ;;  %v2226_v52 = vadd.f32 %v2207_v5, %v2134_v3 }
 0x2a0   : > { %v14651_v7 = vpop.f32.mrf.mxu2 }
 0x2a1   : > { %v14653_v40 = vadd.f32 %v2210_v42, %v2135_v14  ;;  %v14707_v42 = vld [vmem:[#allocation16] ss:$0 sm:$0xff] }
 0x2a4   : > { %v14655_v56 = vpop.f32.mrf.mxu1  ;;  %v14657_v41 = vpop.f32.mrf.mxu3 }
 0x2a8   : > { %v2123_v51 = vpop.f32.mrf.mxu2 }
 0x2ac   : > { %v2022_v50 = vpop.f32.mrf.mxu1  ;;  %v2215_v59 = vpop.f32.mrf.mxu3 }
 0x2ad   : > { %v2036_v48 = vadd.f32 %v2022_v50, %v14609_v24  ;;  %v1947_v50 = vadd.f32 %v14601_v58, %v1803_v25 }
 0x2af   : > { %v2137_v53 = vadd.f32 %v2123_v51, %v2036_v48 }
 0x2b0   : > { %v14660_v6 = vpop.f32.mrf.mxu2 }
 0x2b1   : > { %v14662_v44 = vadd.f32 %v2215_v59, %v2137_v53  ;;  %v2035_v59 = vadd.f32 %v14655_v56, %v1947_v50  ;;  %v12427_v50 = vld [vmem:[#allocation17 + $0xe4] sm:$0xf] }
 0x2b3   : > { %v2136_v5 = vadd.f32 %v14651_v7, %v2035_v59 }
 0x2b4   : > { %v14664_v55 = vpop.f32.mrf.mxu1  ;;  %v14666_v33 = vpop.f32.mrf.mxu3 }
 0x2b8   : > { %v2128_v61 = vpop.f32.mrf.mxu2 }
 0x2bc   : > { %v2027_v62 = vpop.f32.mrf.mxu1  ;;  %v2220_v36 = vpop.f32.mrf.mxu3 }
 0x2bd   : > { %v2038_v45 = vadd.f32 %v2027_v62, %v1950_v54  ;;  %v2601_v54 = vsel %vm14692_vm8, 0, %v2600_v31 }
 0x2be   : > { %2602 = vst [vmem:[#allocation3] sm:$0x4] %v2601_v54 }
 0x2bf   : > { %v2139_v0 = vadd.f32 %v2128_v61, %v2038_v45 }
 0x2c0   : > { %v14668_v46 = vpop.f32.mrf.mxu2 }
 0x2c1   : > { %v14670_v17 = vadd.f32 %v2220_v36, %v2139_v0 }
 0x2c4   : > { %v14672_v24 = vpop.f32.mrf.mxu1  ;;  %v14676_v35 = vpop.f32.mrf.mxu3 }
 0x2c5   : > { %v14712_v38 = vld [vmem:[#allocation3] sm:$0x7] }
 0x2c6   : > { %v2691_v45 = vrot.slane %v14712_v38, 2 }
 0x2c8   : > { %v2370_v23 = vpop.f32.mrf.mxu2  ;;  %v14721_v20 = vsel %vm1237_vm10, %v14712_v38, %v2691_v45 }
 0x2c9   : > { %v2730_v54 = vshll.u32 %v14721_v20, 16 }
 0x2cb   : > { %v2732_v34 = vrot.slane %v2730_v54, 7 }
 0x2cc   : > { %v2281_v18 = vpop.f32.mrf.mxu1  ;;  %v2450_v1 = vpop.f32.mrf.mxu3 }
 0x2cd   : > { %v2301_v15 = vadd.f32 %v2281_v18, %v2225_v28  ;;  %v14700_v28 = vld [vmem:[#allocation14] ss:$0 sm:$0xff]  ;;  %v14725_v18 = vsel %vm15471_vm13, %v14712_v38, %v2691_v45 }
 0x2ce   : > { %v2701_v16 = vrot.slane %v14725_v18, 2 }
 0x2cf   : > { %v2390_v10 = vadd.f32 %v2370_v23, %v2301_v15  ;;  %v2585_v23 = vld [vmem:[#allocation3 + $0x8] sm:$0x1]  ;;  %v12430_v15 = vld [vmem:[#allocation17 + $0xf4] sm:$0xf0] }
 0x2d0   : > { %v2372_v9 = vpop.f32.mrf.mxu2  ;;  %v2586_v7 = vsel %vm14681_vm2, 0, %v2585_v23  ;;  %v9506_v21 = vor.u32 %v12430_v15, %v9505_v49  ;;  %v2736_v8 = vshll.u32 %v2701_v16, 16  ;;  %v12490_v23 = vld [vmem:[#allocation17 + $0x2d4] sm:$0xf0] }
 0x2d1   : > { %v2470_v30 = vadd.f32 %v2450_v1, %v2390_v10  ;;  %2587 = vst [vmem:[#allocation3 + $0x8] sm:$0x1] %v2586_v7  ;;  %v2727_v10 = vshrl.u32 %v14721_v20, 16 }
 0x2d2   : > { %2889 = vmatpush.bf16.msrb.mxu1 %v9506_v21 }
 0x2d3   : > { %v2482_v11 = vmul.f32 %v14700_v28, %v2470_v30  ;;  %v2729_v30 = vrot.slane %v2727_v10, 6  ;;  %v12414_v10 = vld [vmem:[#allocation17 + $0x74] sm:$0xf0] }
 0x2d4   : > { %v2283_v37 = vpop.f32.mrf.mxu1  ;;  %v2452_v51 = vpop.f32.mrf.mxu3 }
 0x2d5   : > { %v2302_v14 = vadd.f32 %v2283_v37, %v2226_v52  ;;  %v2494_v61 = vadd.f32 %v14707_v42, %v2482_v11  ;;  %v12428_v52 = vld [vmem:[#allocation17 + $0xe4] sm:$0xf0] }
 0x2d7   : > { %v2391_v48 = vadd.f32 %v2372_v9, %v2302_v14  ;;  %v2502_v0 = vmax.f32 %v2494_v61, 0.0  ;;  %v9507_v9 = vld [vmem:[#allocation17 + $0xf8] sm:$0xf0]  ;;  %v2738_v61 = vrot.slane %v2736_v8, 7  ;;  %v9481_v8 = vld [vmem:[#allocation17 + $0xc0] sm:$0xf] }
 0x2d8   : > { %v2375_v53 = vpop.f32.mrf.mxu2  ;;  %v9510_v25 = vor.u32 %v12429_v19, %v9507_v9  ;;  %v9575_v19 = vrot.slane %v14721_v20, 9  ;;  %v12424_v9 = vld [vmem:[#allocation17 + $0xc4] sm:$0xf0] }
 0x2d9   : > { %v2471_v62 = vadd.f32 %v2452_v51, %v2391_v48  ;;  %v9498_v51 = vor.u32 %v12428_v52, %v9497_v13  ;;  %v9499_v48 = vld [vmem:[#allocation17 + $0xe8] sm:$0xf0] }
 0x2da   : > { %2903 = vmatpush.bf16.msrb.mxu2 %v9510_v25  ;;  %v9502_v45 = vor.u32 %v12427_v50, %v9499_v48  ;;  %v9561_v25 = vld [vmem:[#allocation17 + $0x60] sm:$0xf]  ;;  %v2588_v48 = vld [vmem:[#allocation3 + $0xc] sm:$0x1] }
 0x2db   : > { %v2483_v43 = vmul.f32 %v14700_v28, %v2471_v62  ;;  %2890 = vmatpush.bf16.msrb.mxu1 %v9498_v51 }
 0x2dc   : > { %v2286_v36 = vpop.f32.mrf.mxu1  ;;  %v2455_v56 = vpop.f32.mrf.mxu3 }
 0x2dd   : > { %v2495_v63 = vadd.f32 %v14707_v42, %v2483_v43  ;;  %v2303_v58 = vadd.f32 %v2286_v36, %v14653_v40  ;;  %v1808_v40 = vadd.f32 %v14632_v2, %v14636_v4  ;;  %v2228_v2 = vadd.f32 %v14657_v41, %v2136_v5  ;;  %v9489_v36 = vld [vmem:[#allocation17 + $0xd0] sm:$0xf] }
 0x2de   : > { %2904 = vmatpush.bf16.msrb.mxu2 %v9502_v45 }
 0x2df   : > { %v2503_v1 = vmax.f32 %v2495_v63, 0.0  ;;  %v2392_v60 = vadd.f32 %v2375_v53, %v2303_v58  ;;  %v1949_v37 = vadd.f32 %v14638_v26, %v1808_v40  ;;  %v2733_v26 = vor.u32 %v2732_v34, %v2729_v30  ;;  %v9491_v40 = vld [vmem:[#allocation17 + $0xd8] sm:$0xf0]  ;;  %v12423_v30 = vld [vmem:[#allocation17 + $0xc4] sm:$0xf] }
 0x2e0   : > { %v2377_v31 = vpop.f32.mrf.mxu2  ;;  %v9494_v4 = vor.u32 %v12425_v47, %v9491_v40  ;;  %v9483_v34 = vld [vmem:[#allocation17 + $0xc8] sm:$0xf0]  ;;  %v2653_v47 = vld [vmem:[#allocation3 + $0x4] sm:$0x7] }
 0x2e1   : > { %v2510_v3 = vmax.f32 %v2502_v0, %v2503_v1  ;;  %v2472_v41 = vadd.f32 %v2455_v56, %v2392_v60  ;;  %v2037_v5 = vadd.f32 %v14664_v55, %v1949_v37  ;;  %v12426_v0 = vld [vmem:[#allocation17 + $0xd4] sm:$0xf0]  ;;  %v2734_v56 = vrot.slane %v2733_v26, 2  ;;  %v9991_v55 = vld [vmem:[#allocation17 + $0x430] sm:$0xf] }
 0x2e2   : > { %v9490_v15 = vor.u32 %v12426_v0, %v9489_v36  ;;  %v3045_v60 = vrot.slane %v2701_v16, 7  ;;  %2905 = vmatpush.bf16.msrb.mxu2 %v9494_v4  ;;  %v9486_v53 = vor.u32 %v12423_v30, %v9483_v34  ;;  %v12421_v4 = vld [vmem:[#allocation17 + $0xb4] sm:$0xf] }
 0x2e3   : > { %v2518_v39 = vrot.slane %v2510_v3, 1  ;;  %v2484_v7 = vmul.f32 %v14700_v28, %v2472_v41  ;;  %v2739_v21 = vsel %vm14766_vm15, %v2734_v56, %v2738_v61  ;;  %v2138_v45 = vadd.f32 %v14660_v6, %v2037_v5 }
 0x2e4   : > { %v2288_v14 = vpop.f32.mrf.mxu1  ;;  %v2457_v43 = vpop.f32.mrf.mxu3  ;;  %2797 = vst [vmem:[#allocation1] ss:$4 sm:$0xff] %v2739_v21  ;;  %2891 = vmatpush.bf16.msrb.mxu1 %v9490_v15  ;;  %v14786_v16 = vsel %vm14779_vm7, %v9575_v19, %v3045_v60  ;;  %v9473_v60 = vld [vmem:[#allocation17 + $0xb0] sm:$0xf] }
 0x2e5   : > { %v2526_v59 = vmax.f32 %v2510_v3, %v2518_v39  ;;  %v2304_v62 = vadd.f32 %v2288_v14, %v2228_v2  ;;  %v9569_v3 = vld [vmem:[#allocation17 + $0x70] sm:$0xf]  ;;  %v9482_v39 = vor.u32 %v12424_v9, %v9481_v8  ;;  %v2496_v37 = vadd.f32 %v14707_v42, %v2484_v7  ;;  %v12412_v14 = vld [vmem:[#allocation17 + $0x64] sm:$0xf0]  ;;  %v9475_v8 = vld [vmem:[#allocation17 + $0xb8] sm:$0xf0] }
 0x2e6   : > { %v9570_v13 = vor.u32 %v12414_v10, %v9569_v3  ;;  %v9562_v26 = vor.u32 %v12412_v14, %v9561_v25  ;;  %2906 = vmatpush.bf16.msrb.mxu2 %v9486_v53  ;;  %v12422_v3 = vld [vmem:[#allocation17 + $0xb4] sm:$0xf0]  ;;  %v9553_v9 = vld [vmem:[#allocation17 + $0x50] sm:$0xf] }
 0x2e7   : > { %v2534_v63 = vrot.slane %v2526_v59, 1  ;;  %v2542_v58 = vrot.slane %v2526_v59, 2  ;;  %v2550_v18 = vrot.slane %v2526_v59, 3  ;;  %v2393_v22 = vadd.f32 %v2377_v31, %v2304_v62 }
 0x2e8   : > { %v2380_v49 = vpop.f32.mrf.mxu2  ;;  %3006 = vmatpush.bf16.msrb.mxu3 %v9570_v13  ;;  %2892 = vmatpush.bf16.msrb.mxu1 %v9482_v39 }
 0x2e9   : > { %v2558_v1 = vsel %vm15473_vm9, %v2526_v59, %v2534_v63  ;;  %v2473_v2 = vadd.f32 %v2457_v43, %v2393_v22  ;;  %v2609_v59 = vld [vmem:[#allocation3 + $0xc] sm:$0x4]  ;;  %v2589_v43 = vsel %vm14681_vm2, 0, %v2588_v48  ;;  %v1813_v22 = vadd.f32 %v14643_v57, %v14645_v27  ;;  %v9545_v48 = vld [vmem:[#allocation17 + $0x40] sm:$0xf] }
 0x2ea   : > { %v2562_v54 = vsel %vm1237_vm10, %v2558_v1, %v2542_v58  ;;  %2590 = vst [vmem:[#allocation3 + $0xc] sm:$0x1] %v2589_v43  ;;  %v2504_v58 = vmax.f32 %v2496_v37, 0.0  ;;  %v12420_v37 = vld [vmem:[#allocation17 + $0xa4] sm:$0xf0] }
 0x2eb   : > { %v2566_v20 = vsel %vm1246_vm11, %v2562_v54, %v2550_v18  ;;  %v2485_v11 = vmul.f32 %v14700_v28, %v2473_v2  ;;  %v9474_v2 = vor.u32 %v12422_v3, %v9473_v60  ;;  %v1951_v57 = vadd.f32 %v14647_v29, %v1813_v22 }
 0x2ec   : > { %v2570_v52 = vpack.c.bf16 %v2566_v20, %v2566_v20  ;;  %v2291_v41 = vpop.f32.mrf.mxu1  ;;  %v2460_v50 = vpop.f32.mrf.mxu3  ;;  %3007 = vmatpush.bf16.msrb.mxu3 %v9562_v26  ;;  %v12410_v20 = vld [vmem:[#allocation17 + $0x54] sm:$0xf0] }
 0x2ed   : > { %v2305_v51 = vadd.f32 %v2291_v41, %v14662_v44  ;;  %v2497_v62 = vadd.f32 %v14707_v42, %v2485_v11  ;;  %v2610_v44 = vsel %vm14692_vm8, 0, %v2609_v59  ;;  %2893 = vmatpush.bf16.msrb.mxu1 %v9474_v2  ;;  %v9554_v34 = vor.u32 %v12410_v20, %v9553_v9  ;;  %v12419_v11 = vld [vmem:[#allocation17 + $0xa4] sm:$0xf]  ;;  %v12408_v59 = vld [vmem:[#allocation17 + $0x44] sm:$0xf0] }
 0x2ee   : > { %v2619_v61 = vshrl.u32 %v2570_v52, 16  ;;  %v2622_v63 = vshll.u32 %v2570_v52, 16  ;;  %2611 = vst [vmem:[#allocation3 + $0xc] sm:$0x4] %v2610_v44  ;;  %v9465_v52 = vld [vmem:[#allocation17 + $0xa0] sm:$0xf]  ;;  %v2039_v41 = vadd.f32 %v14672_v24, %v1951_v57 }
 0x2ef   : > { %v2394_v36 = vadd.f32 %v2380_v49, %v2305_v51  ;;  %v2505_v56 = vmax.f32 %v2497_v62, 0.0  ;;  %v2230_v49 = vadd.f32 %v14666_v33, %v2138_v45  ;;  %v9478_v33 = vor.u32 %v12421_v4, %v9475_v8  ;;  %v12462_v57 = vld [vmem:[#allocation17 + $0x1f4] sm:$0xf0] }
 0x2f0   : > { %v2621_v0 = vrot.slane %v2619_v61, 7  ;;  %v2382_v7 = vpop.f32.mrf.mxu2  ;;  %3008 = vmatpush.bf16.msrb.mxu3 %v9554_v34  ;;  %v9466_v29 = vor.u32 %v12420_v37, %v9465_v52  ;;  %v9546_v62 = vor.u32 %v12408_v59, %v9545_v48  ;;  %v2612_v48 = vld [vmem:[#allocation3 + $0x10] sm:$0x4] }
 0x2f1   : > { %v2511_v6 = vmax.f32 %v2504_v58, %v2505_v56  ;;  %v2474_v5 = vadd.f32 %v2460_v50, %v2394_v36  ;;  %2907 = vmatpush.bf16.msrb.mxu2 %v9478_v33  ;;  %v9467_v50 = vld [vmem:[#allocation17 + $0xa8] sm:$0xf0]  ;;  %v9457_v56 = vld [vmem:[#allocation17 + $0x90] sm:$0xf] }
 0x2f2   : > { %v2624_v18 = vor.u32 %v2622_v63, %v2621_v0  ;;  %v9470_v61 = vor.u32 %v12419_v11, %v9467_v50  ;;  %2894 = vmatpush.bf16.msrb.mxu1 %v9466_v29  ;;  %v12415_v11 = vld [vmem:[#allocation17 + $0x84] sm:$0xf]  ;;  %v2591_v50 = vld [vmem:[#allocation3 + $0x10] sm:$0x1] }
 0x2f3   : > { %v2519_v40 = vrot.slane %v2511_v6, 1  ;;  %v2486_v54 = vmul.f32 %v14700_v28, %v2474_v5  ;;  %v12417_v5 = vld [vmem:[#allocation17 + $0x94] sm:$0xf] }
 0x2f4   : > { %v2654_v15 = vsel %vm14798_vm6, %v2624_v18, %v2653_v47  ;;  %v2293_v1 = vpop.f32.mrf.mxu1  ;;  %v2462_v19 = vpop.f32.mrf.mxu3  ;;  %v12418_v47 = vld [vmem:[#allocation17 + $0x94] sm:$0xf0]  ;;  %v2140_v18 = vadd.f32 %v14668_v46, %v2039_v41  ;;  %3009 = vmatpush.bf16.msrb.mxu3 %v9546_v62  ;;  %v9451_v41 = vld [vmem:[#allocation17 + $0x88] sm:$0xf0] }
 0x2f5   : > { %2655 = vst [vmem:[#allocation3 + $0x4] sm:$0x7] %v2654_v15  ;;  %v2306_v21 = vadd.f32 %v2293_v1, %v2230_v49  ;;  %v2527_v10 = vmax.f32 %v2511_v6, %v2519_v40  ;;  %v2498_v51 = vadd.f32 %v14707_v42, %v2486_v54  ;;  %2908 = vmatpush.bf16.msrb.mxu2 %v9470_v61  ;;  %v9537_v1 = vld [vmem:[#allocation17 + $0x30] sm:$0xf] }
 0x2f6   : > { %v9458_v6 = vor.u32 %v12418_v47, %v9457_v56  ;;  %v9701_v54 = vld [vmem:[#allocation17 + $0x1f0] sm:$0xf]  ;;  %v2232_v33 = vadd.f32 %v14676_v35, %v2140_v18  ;;  %v12404_v35 = vld [vmem:[#allocation17 + $0x24] sm:$0xf0] }
 0x2f7   : > { %v2395_v27 = vadd.f32 %v2382_v7, %v2306_v21  ;;  %v2535_v13 = vrot.slane %v2527_v10, 1  ;;  %v2543_v39 = vrot.slane %v2527_v10, 2  ;;  %v2551_v30 = vrot.slane %v2527_v10, 3  ;;  %v9459_v7 = vld [vmem:[#allocation17 + $0x98] sm:$0xf0] }
 0x2f8   : > { %v2385_v24 = vpop.f32.mrf.mxu2  ;;  %v2506_v40 = vmax.f32 %v2498_v51, 0.0  ;;  %v12406_v21 = vld [vmem:[#allocation17 + $0x34] sm:$0xf0]  ;;  %2895 = vmatpush.bf16.msrb.mxu1 %v9458_v6  ;;  %v9462_v9 = vor.u32 %v12417_v5, %v9459_v7  ;;  %v9702_v59 = vor.u32 %v12462_v57, %v9701_v54  ;;  %v9454_v6 = vor.u32 %v12415_v11, %v9451_v41  ;;  %v9637_v5 = vld [vmem:[#allocation17 + $0x170] sm:$0xf] }
 0x2f9   : > { %v2475_v25 = vadd.f32 %v2462_v19, %v2395_v27  ;;  %v2559_v14 = vsel %vm15473_vm9, %v2527_v10, %v2535_v13  ;;  %v2656_v10 = vld [vmem:[#allocation3 + $0x8] sm:$0x7]  ;;  %v9449_v27 = vld [vmem:[#allocation17 + $0x80] sm:$0xf]  ;;  %v9538_v37 = vor.u32 %v12406_v21, %v9537_v1  ;;  %v12446_v7 = vld [vmem:[#allocation17 + $0x174] sm:$0xf0] }
 0x2fa   : > { %v2563_v53 = vsel %vm1237_vm10, %v2559_v14, %v2543_v39  ;;  %2909 = vmatpush.bf16.msrb.mxu2 %v9462_v9  ;;  %v9529_v14 = vld [vmem:[#allocation17 + $0x20] sm:$0xf]  ;;  %3308 = vmatpush.bf16.msrb.mxu0 %v9702_v59  ;;  %v12460_v1 = vld [vmem:[#allocation17 + $0x1e4] sm:$0xf0]  ;;  %v9638_v54 = vor.u32 %v12446_v7, %v9637_v5  ;;  %v12411_v9 = vld [vmem:[#allocation17 + $0x64] sm:$0xf] }
 0x2fb   : > { %v2487_v26 = vmul.f32 %v14700_v28, %v2475_v25  ;;  %v2567_v45 = vsel %vm1246_vm11, %v2563_v53, %v2551_v30  ;;  %v12416_v30 = vld [vmem:[#allocation17 + $0x84] sm:$0xf0]  ;;  %3010 = vmatpush.bf16.msrb.mxu3 %v9538_v37  ;;  %v12458_v37 = vld [vmem:[#allocation17 + $0x1d4] sm:$0xf0]  ;;  %v9513_v11 = vld [vmem:[#allocation17] sm:$0xf] }
 0x2fc   : > { %v14814_v43 = vld [vmem:[#allocation3 + $0x4] sm:$0x7]  ;;  %v2296_v36 = vpop.f32.mrf.mxu1  ;;  %v2571_v0 = vpack.c.bf16 %v2567_v45, %v2567_v45  ;;  %v12413_v45 = vld [vmem:[#allocation17 + $0x74] sm:$0xf]  ;;  %v2659_v5 = vld [vmem:[#allocation3 + $0xc] sm:$0x7] }
 0x2fd   : > { %v2692_v44 = vrot.slane %v14814_v43, 2  ;;  %v2499_v63 = vadd.f32 %v14707_v42, %v2487_v26  ;;  %v2307_v58 = vadd.f32 %v2296_v36, %v14670_v17  ;;  %v2465_v17 = vpop.f32.mrf.mxu3  ;;  %v12456_v7 = vld [vmem:[#allocation17 + $0x1c4] sm:$0xf0] }
 0x2fe   : > { %v2626_v15 = vshrl.u32 %v2571_v0, 16  ;;  %v2629_v3 = vshll.u32 %v2571_v0, 16  ;;  %v2592_v0 = vsel %vm14681_vm2, 0, %v2591_v50  ;;  %2910 = vmatpush.bf16.msrb.mxu2 %v9454_v6  ;;  %v12400_v50 = vld [vmem:[#allocation17 + $0x4] sm:$0xf0] }
 0x2ff   : > { %v14823_v22 = vsel %vm1237_vm10, %v14814_v43, %v2692_v44  ;;  %v14827_v49 = vsel %vm15471_vm13, %v14814_v43, %v2692_v44  ;;  %v2507_v4 = vmax.f32 %v2499_v63, 0.0  ;;  %v2396_v8 = vadd.f32 %v2385_v24, %v2307_v58  ;;  %v9571_v24 = vld [vmem:[#allocation17 + $0x78] sm:$0xf0]  ;;  %2593 = vst [vmem:[#allocation3 + $0x10] sm:$0x1] %v2592_v0 }
 0x300   : > { %v2707_v19 = vrot.slane %v14827_v49, 2  ;;  %v2740_v46 = vshrl.u32 %v14823_v22, 16  ;;  %v2743_v60 = vshll.u32 %v14823_v22, 16  ;;  %v2628_v2 = vrot.slane %v2626_v15, 7  ;;  %v2387_v44 = vpop.f32.mrf.mxu2 }
 0x301   : > { %v2512_v25 = vmax.f32 %v2506_v40, %v2507_v4  ;;  %v2476_v52 = vadd.f32 %v2465_v17, %v2396_v8  ;;  %v2613_v63 = vsel %vm14692_vm8, 0, %v2612_v48  ;;  %v9450_v58 = vor.u32 %v12416_v30, %v9449_v27  ;;  %v9521_v4 = vld [vmem:[#allocation17 + $0x10] sm:$0xf]  ;;  %v12402_v8 = vld [vmem:[#allocation17 + $0x14] sm:$0xf0] }
 0x302   : > { %v2742_v20 = vrot.slane %v2740_v46, 6  ;;  %v2745_v13 = vrot.slane %v2743_v60, 7  ;;  %v2749_v39 = vshll.u32 %v2707_v19, 16  ;;  %v2631_v34 = vor.u32 %v2629_v3, %v2628_v2  ;;  %2614 = vst [vmem:[#allocation3 + $0x10] sm:$0x4] %v2613_v63  ;;  %3169 = vmatpush.bf16.msra.mxu2 %v9638_v54 }
 0x303   : > { %v2520_v61 = vrot.slane %v2512_v25, 1  ;;  %v2488_v47 = vmul.f32 %v14700_v28, %v2476_v52  ;;  %2896 = vmatpush.bf16.msrb.mxu1 %v9450_v58  ;;  %v9530_v40 = vor.u32 %v12404_v35, %v9529_v14  ;;  %v9574_v17 = vor.u32 %v12413_v45, %v9571_v24  ;;  %v9685_v52 = vld [vmem:[#allocation17 + $0x1d0] sm:$0xf]  ;;  %v12409_v48 = vld [vmem:[#allocation17 + $0x54] sm:$0xf] }
 0x304   : > { %v2746_v51 = vor.u32 %v2745_v13, %v2742_v20  ;;  %v2298_v29 = vpop.f32.mrf.mxu1  ;;  %v2751_v53 = vrot.slane %v2749_v39, 7  ;;  %v2657_v26 = vsel %vm14798_vm6, %v2631_v34, %v2656_v10  ;;  %v9694_v2 = vor.u32 %v12460_v1, %v9693_v12  ;;  %v9563_v20 = vld [vmem:[#allocation17 + $0x68] sm:$0xf0]  ;;  %v9629_v13 = vld [vmem:[#allocation17 + $0x160] sm:$0xf] }
 0x305   : > { %v2308_v62 = vadd.f32 %v2298_v29, %v2232_v33  ;;  %2658 = vst [vmem:[#allocation3 + $0x8] sm:$0x7] %v2657_v26  ;;  %v2528_v56 = vmax.f32 %v2512_v25, %v2520_v61  ;;  %v2467_v3 = vpop.f32.mrf.mxu3  ;;  %3011 = vmatpush.bf16.msrb.mxu3 %v9530_v40  ;;  %v2500_v27 = vadd.f32 %v14707_v42, %v2488_v47  ;;  %v12444_v39 = vld [vmem:[#allocation17 + $0x164] sm:$0xf0]  ;;  %v9555_v26 = vld [vmem:[#allocation17 + $0x58] sm:$0xf0] }
 0x306   : > { %v2747_v36 = vrot.slane %v2746_v51, 2  ;;  %v9522_v33 = vor.u32 %v12402_v8, %v9521_v4  ;;  %3309 = vmatpush.bf16.msrb.mxu0 %v9694_v2  ;;  %v9566_v25 = vor.u32 %v12411_v9, %v9563_v20  ;;  %v9630_v51 = vor.u32 %v12444_v39, %v9629_v13  ;;  %v12442_v45 = vld [vmem:[#allocation17 + $0x154] sm:$0xf0]  ;;  %v12445_v24 = vld [vmem:[#allocation17 + $0x174] sm:$0xf] }
 0x307   : > { %v2397_v18 = vadd.f32 %v2387_v44, %v2308_v62  ;;  %v2536_v21 = vrot.slane %v2528_v56, 1  ;;  %v2544_v46 = vrot.slane %v2528_v56, 2  ;;  %v2552_v60 = vrot.slane %v2528_v56, 3  ;;  %3020 = vmatpush.bf16.msra.mxu1 %v9574_v17  ;;  %v9621_v62 = vld [vmem:[#allocation17 + $0x150] sm:$0xf] }
 0x308   : > { %v14844_v15 = vsel %vm14766_vm15, %v2747_v36, %v2751_v53  ;;  %v9686_v29 = vor.u32 %v12458_v37, %v9685_v52  ;;  %v9558_v61 = vor.u32 %v12409_v48, %v9555_v26  ;;  %v2508_v63 = vmax.f32 %v2500_v27, 0.0  ;;  %3170 = vmatpush.bf16.msra.mxu2 %v9630_v51  ;;  %v9677_v58 = vld [vmem:[#allocation17 + $0x1c0] sm:$0xf]  ;;  %v12440_v9 = vld [vmem:[#allocation17 + $0x144] sm:$0xf0] }
 0x309   : > { %2800 = vst [vmem:[#allocation1 + $0x1] ss:$4 sm:$0xff] %v14844_v15  ;;  %v2477_v10 = vadd.f32 %v2467_v3, %v2397_v18  ;;  %v2560_v57 = vsel %vm15473_vm9, %v2528_v56, %v2536_v21  ;;  %3012 = vmatpush.bf16.msrb.mxu3 %v9522_v33  ;;  %v9622_v12 = vor.u32 %v12442_v45, %v9621_v62  ;;  %v12407_v21 = vld [vmem:[#allocation17 + $0x44] sm:$0xf]  ;;  %v9613_v54 = vld [vmem:[#allocation17 + $0x140] sm:$0xf] }
 0x30a   : > { %v2564_v30 = vsel %vm1237_vm10, %v2560_v57, %v2544_v46  ;;  %3310 = vmatpush.bf16.msrb.mxu0 %v9686_v29  ;;  %v9547_v46 = vld [vmem:[#allocation17 + $0x48] sm:$0xf0]  ;;  %v9678_v8 = vor.u32 %v12456_v7, %v9677_v58  ;;  %v12443_v57 = vld [vmem:[#allocation17 + $0x164] sm:$0xf]  ;;  %v9669_v13 = vld [vmem:[#allocation17 + $0x1b0] sm:$0xf] }
 0x30b   : > { %v2489_v34 = vmul.f32 %v14700_v28, %v2477_v10  ;;  %v2568_v14 = vsel %vm1246_vm11, %v2564_v30, %v2552_v60  ;;  %3021 = vmatpush.bf16.msra.mxu1 %v9566_v25  ;;  %v9514_v28 = vor.u32 %v12400_v50, %v9513_v11  ;;  %v9631_v27 = vld [vmem:[#allocation17 + $0x168] sm:$0xf0]  ;;  %v9550_v20 = vor.u32 %v12407_v21, %v9547_v46  ;;  %v12454_v39 = vld [vmem:[#allocation17 + $0x1b4] sm:$0xf0]  ;;  %v12405_v37 = vld [vmem:[#allocation17 + $0x34] sm:$0xf] }
 0x30c   : > { %v14851_v41 = vld [vmem:[#allocation3 + $0x8] sm:$0x7]  ;;  %v2572_v35 = vpack.c.bf16 %v2568_v14, %v2568_v14  ;;  %3171 = vmatpush.bf16.msra.mxu2 %v9622_v12  ;;  %v9614_v25 = vor.u32 %v12440_v9, %v9613_v54  ;;  %v9634_v52 = vor.u32 %v12443_v57, %v9631_v27  ;;  %v9539_v11 = vld [vmem:[#allocation17 + $0x38] sm:$0xf0]  ;;  %v9670_v29 = vor.u32 %v12454_v39, %v9669_v13  ;;  %v9605_v48 = vld [vmem:[#allocation17 + $0x130] sm:$0xf] }
 0x30d   : > { %v2693_v59 = vrot.slane %v14851_v41, 2  ;;  %v2501_v53 = vadd.f32 %v14707_v42, %v2489_v34  ;;  %v9639_v42 = vld [vmem:[#allocation17 + $0x178] sm:$0xf0]  ;;  %3013 = vmatpush.bf16.msrb.mxu3 %v9514_v28  ;;  %v9542_v50 = vor.u32 %v12405_v37, %v9539_v11  ;;  %v9661_v45 = vld [vmem:[#allocation17 + $0x1a0] sm:$0xf] }
 0x30e   : > { %v2633_v0 = vshrl.u32 %v2572_v35, 16  ;;  %v2636_v6 = vshll.u32 %v2572_v35, 16  ;;  %v9642_v1 = vor.u32 %v12445_v24, %v9639_v42  ;;  %3311 = vmatpush.bf16.msrb.mxu0 %v9678_v8  ;;  %v12438_v35 = vld [vmem:[#allocation17 + $0x134] sm:$0xf0]  ;;  %v9623_v28 = vld [vmem:[#allocation17 + $0x158] sm:$0xf0] }
 0x30f   : > { %v14858_v36 = vsel %vm1237_vm10, %v14851_v41, %v2693_v59  ;;  %v14862_v44 = vsel %vm15471_vm13, %v14851_v41, %v2693_v59  ;;  %v2509_v17 = vmax.f32 %v2501_v53, 0.0  ;;  %3022 = vmatpush.bf16.msra.mxu1 %v9558_v61  ;;  %v12441_v53 = vld [vmem:[#allocation17 + $0x154] sm:$0xf]  ;;  %v9606_v61 = vor.u32 %v12438_v35, %v9605_v48  ;;  %v12452_v24 = vld [vmem:[#allocation17 + $0x1a4] sm:$0xf0] }
 0x310   : > { %v2713_v56 = vrot.slane %v14862_v44, 2  ;;  %v2753_v47 = vshrl.u32 %v14858_v36, 16  ;;  %v2756_v18 = vshll.u32 %v14858_v36, 16  ;;  %v2635_v40 = vrot.slane %v2633_v0, 7  ;;  %3172 = vmatpush.bf16.msra.mxu2 %v9614_v25  ;;  %v12403_v0 = vld [vmem:[#allocation17 + $0x24] sm:$0xf] }
 0x311   : > { %v2513_v4 = vmax.f32 %v2508_v63, %v2509_v17  ;;  %3183 = vmatpush.bf16.msra.mxu3 %v9642_v1  ;;  %v9626_v62 = vor.u32 %v12441_v53, %v9623_v28  ;;  %v12439_v12 = vld [vmem:[#allocation17 + $0x144] sm:$0xf]  ;;  %v9615_v1 = vld [vmem:[#allocation17 + $0x148] sm:$0xf0]  ;;  %v9653_v21 = vld [vmem:[#allocation17 + $0x190] sm:$0xf] }
 0x312   : > { %v2755_v60 = vrot.slane %v2753_v47, 6  ;;  %v2758_v3 = vrot.slane %v2756_v18, 7  ;;  %v2762_v10 = vshll.u32 %v2713_v56, 16  ;;  %v2638_v2 = vor.u32 %v2636_v6, %v2635_v40  ;;  %3312 = vmatpush.bf16.msrb.mxu0 %v9670_v29  ;;  %v9531_v18 = vld [vmem:[#allocation17 + $0x28] sm:$0xf0] }
 0x313   : > { %v2521_v34 = vrot.slane %v2513_v4, 1  ;;  %3023 = vmatpush.bf16.msra.mxu1 %v9550_v20  ;;  %v9662_v47 = vor.u32 %v12452_v24, %v9661_v45  ;;  %v9597_v6 = vld [vmem:[#allocation17 + $0x120] sm:$0xf]  ;;  %v9534_v40 = vor.u32 %v12403_v0, %v9531_v18  ;;  %v9523_v54 = vld [vmem:[#allocation17 + $0x18] sm:$0xf0]  ;;  %v9577_v49 = vrot.slane %v14858_v36, 9 }
 0x314   : > { %v2759_v33 = vor.u32 %v2758_v3, %v2755_v60  ;;  %v2660_v30 = vsel %vm14798_vm6, %v2638_v2, %v2659_v5  ;;  %v2764_v51 = vrot.slane %v2762_v10, 7  ;;  %v12436_v5 = vld [vmem:[#allocation17 + $0x124] sm:$0xf0]  ;;  %3173 = vmatpush.bf16.msra.mxu2 %v9606_v61  ;;  %v9618_v60 = vor.u32 %v12439_v12, %v9615_v1  ;;  %v12450_v3 = vld [vmem:[#allocation17 + $0x194] sm:$0xf0] }
 0x315   : > { %2661 = vst [vmem:[#allocation3 + $0xc] sm:$0x7] %v2660_v30  ;;  %v2529_v59 = vmax.f32 %v2513_v4, %v2521_v34  ;;  %3184 = vmatpush.bf16.msra.mxu3 %v9634_v52  ;;  %v9598_v17 = vor.u32 %v12436_v5, %v9597_v6  ;;  %v12401_v10 = vld [vmem:[#allocation17 + $0x14] sm:$0xf]  ;;  %v9654_v8 = vor.u32 %v12450_v3, %v9653_v21  ;;  %v9589_v9 = vld [vmem:[#allocation17 + $0x110] sm:$0xf] }
 0x316   : > { %v2760_v14 = vrot.slane %v2759_v33, 2  ;;  %3313 = vmatpush.bf16.msrb.mxu0 %v9662_v47  ;;  %v12434_v57 = vld [vmem:[#allocation17 + $0x114] sm:$0xf0]  ;;  %v9526_v20 = vor.u32 %v12401_v10, %v9523_v54  ;;  %v12437_v13 = vld [vmem:[#allocation17 + $0x134] sm:$0xf] }
 0x317   : > { %v2537_v63 = vrot.slane %v2529_v59, 1  ;;  %v2545_v42 = vrot.slane %v2529_v59, 2  ;;  %v2553_v58 = vrot.slane %v2529_v59, 3  ;;  %3024 = vmatpush.bf16.msra.mxu1 %v9542_v50  ;;  %v9607_v39 = vld [vmem:[#allocation17 + $0x138] sm:$0xf0]  ;;  %v9590_v30 = vor.u32 %v12434_v57, %v9589_v9 }
 0x318   : > { %v14873_v26 = vsel %vm14766_vm15, %v2760_v14, %v2764_v51  ;;  %3174 = vmatpush.bf16.msra.mxu2 %v9598_v17  ;;  %v9610_v34 = vor.u32 %v12437_v13, %v9607_v39  ;;  %v9645_v25 = vld [vmem:[#allocation17 + $0x180] sm:$0xf]  ;;  %v12448_v52 = vld [vmem:[#allocation17 + $0x184] sm:$0xf0]  ;;  %v9830_v37 = vld [vmem:[#allocation17 + $0x2f0] sm:$0xf] }
 0x319   : > { %2803 = vst [vmem:[#allocation1 + $0x2] ss:$4 sm:$0xff] %v14873_v26  ;;  %v2561_v7 = vsel %vm15473_vm9, %v2529_v59, %v2537_v63  ;;  %3185 = vmatpush.bf16.msra.mxu3 %v9626_v62  ;;  %v12494_v29 = vld [vmem:[#allocation17 + $0x2f4] sm:$0xf0]  ;;  %v12399_v50 = vld [vmem:[#allocation17 + $0x4] sm:$0xf]  ;;  %v9646_v45 = vor.u32 %v12448_v52, %v9645_v25 }
 0x31a   : > { %v2565_v46 = vsel %vm1237_vm10, %v2561_v7, %v2545_v42  ;;  %v2662_v28 = vld [vmem:[#allocation3 + $0x10] sm:$0x7]  ;;  %3314 = vmatpush.bf16.msrb.mxu0 %v9654_v8  ;;  %v9515_v61 = vld [vmem:[#allocation17 + $0x8] sm:$0xf0]  ;;  %v9831_v24 = vor.u32 %v12494_v29, %v9830_v37  ;;  %v9581_v63 = vld [vmem:[#allocation17 + $0x100] sm:$0xf] }
 0x31b   : > { %v2569_v4 = vsel %vm1246_vm11, %v2565_v46, %v2553_v58  ;;  %3025 = vmatpush.bf16.msra.mxu1 %v9534_v40  ;;  %v9518_v0 = vor.u32 %v12399_v50, %v9515_v61  ;;  %v12432_v42 = vld [vmem:[#allocation17 + $0x104] sm:$0xf0]  ;;  %v12435_v6 = vld [vmem:[#allocation17 + $0x124] sm:$0xf]  ;;  %v9599_v40 = vld [vmem:[#allocation17 + $0x128] sm:$0xf0] }
 0x31c   : > { %v14878_v2 = vld [vmem:[#allocation3 + $0xc] sm:$0x7]  ;;  %v2573_v33 = vpack.c.bf16 %v2569_v4, %v2569_v4  ;;  %3175 = vmatpush.bf16.msra.mxu2 %v9590_v30  ;;  %v9582_v7 = vor.u32 %v12432_v42, %v9581_v63  ;;  %v9602_v12 = vor.u32 %v12435_v6, %v9599_v40  ;;  %v9822_v21 = vld [vmem:[#allocation17 + $0x2e0] sm:$0xf]  ;;  %v12492_v46 = vld [vmem:[#allocation17 + $0x2e4] sm:$0xf0] }
 0x31d   : > { %v2694_v27 = vrot.slane %v14878_v2, 2  ;;  %3186 = vmatpush.bf16.msra.mxu3 %v9618_v60  ;;  %v12433_v60 = vld [vmem:[#allocation17 + $0x114] sm:$0xf]  ;;  %v9823_v54 = vor.u32 %v12492_v46, %v9822_v21  ;;  %v9591_v4 = vld [vmem:[#allocation17 + $0x118] sm:$0xf0]  ;;  %v9576_v6 = vrot.slane %v14823_v22, 9 }
 0x31e   : > { %v2640_v51 = vshrl.u32 %v2573_v33, 16  ;;  %v2643_v53 = vshll.u32 %v2573_v33, 16  ;;  %3315 = vmatpush.bf16.msrb.mxu0 %v9646_v45  ;;  %v9594_v8 = vor.u32 %v12433_v60, %v9591_v4  ;;  %v9814_v57 = vld [vmem:[#allocation17 + $0x2d0] sm:$0xf]  ;;  %v12431_v33 = vld [vmem:[#allocation17 + $0x104] sm:$0xf] }
 0x31f   : > { %v14884_v11 = vsel %vm1237_vm10, %v14878_v2, %v2694_v27  ;;  %v14888_v14 = vsel %vm15471_vm13, %v14878_v2, %v2694_v27  ;;  %3026 = vmatpush.bf16.msra.mxu1 %v9526_v20  ;;  %v9815_v27 = vor.u32 %v12490_v23, %v9814_v57  ;;  %v9583_v20 = vld [vmem:[#allocation17 + $0x108] sm:$0xf0]  ;;  %v12461_v13 = vld [vmem:[#allocation17 + $0x1f4] sm:$0xf]  ;;  %v9703_v30 = vld [vmem:[#allocation17 + $0x1f8] sm:$0xf0] }
 0x320   : > { %v2719_v48 = vrot.slane %v14888_v14, 2  ;;  %v2766_v59 = vshrl.u32 %v14884_v11, 16  ;;  %v2769_v35 = vshll.u32 %v14884_v11, 16  ;;  %v2642_v62 = vrot.slane %v2640_v51, 7  ;;  %3176 = vmatpush.bf16.msra.mxu2 %v9582_v7  ;;  %v12478_v25 = vld [vmem:[#allocation17 + $0x274] sm:$0xf0] }
 0x321   : > { %3187 = vmatpush.bf16.msra.mxu3 %v9610_v34  ;;  %v9586_v39 = vor.u32 %v12431_v33, %v9583_v20  ;;  %v9765_v34 = vld [vmem:[#allocation17 + $0x270] sm:$0xf]  ;;  %v9806_v52 = vld [vmem:[#allocation17 + $0x2c0] sm:$0xf]  ;;  %v12488_v37 = vld [vmem:[#allocation17 + $0x2c4] sm:$0xf0]  ;;  %v9706_v51 = vor.u32 %v12461_v13, %v9703_v30 }
 0x322   : > { %v2768_v58 = vrot.slane %v2766_v59, 6  ;;  %v2771_v47 = vrot.slane %v2769_v35, 7  ;;  %v2775_v18 = vshll.u32 %v2719_v48, 16  ;;  %v2645_v5 = vor.u32 %v2643_v53, %v2642_v62  ;;  %3611 = vmatpush.bf16.msra.mxu0 %v9831_v24  ;;  %v12459_v50 = vld [vmem:[#allocation17 + $0x1e4] sm:$0xf] }
 0x323   : > { %3027 = vmatpush.bf16.msra.mxu1 %v9518_v0  ;;  %v9766_v29 = vor.u32 %v12478_v25, %v9765_v34  ;;  %v9695_v59 = vld [vmem:[#allocation17 + $0x1e8] sm:$0xf0]  ;;  %v9757_v35 = vld [vmem:[#allocation17 + $0x260] sm:$0xf]  ;;  %v12476_v53 = vld [vmem:[#allocation17 + $0x264] sm:$0xf0] }
 0x324   : > { %v2772_v17 = vor.u32 %v2771_v47, %v2768_v58  ;;  %v2663_v1 = vsel %vm14798_vm6, %v2645_v5, %v2662_v28  ;;  %v2777_v10 = vrot.slane %v2775_v18, 7  ;;  %v9807_v28 = vor.u32 %v12488_v37, %v9806_v52  ;;  %v9798_v61 = vld [vmem:[#allocation17 + $0x2b0] sm:$0xf]  ;;  %v12486_v45 = vld [vmem:[#allocation17 + $0x2b4] sm:$0xf0] }
 0x325   : > { %2664 = vst [vmem:[#allocation3 + $0x10] sm:$0x7] %v2663_v1  ;;  %3188 = vmatpush.bf16.msra.mxu3 %v9602_v12  ;;  %v9698_v24 = vor.u32 %v12459_v50, %v9695_v59  ;;  %v9758_v0 = vor.u32 %v12476_v53, %v9757_v35  ;;  %v12457_v63 = vld [vmem:[#allocation17 + $0x1d4] sm:$0xf]  ;;  %v9687_v42 = vld [vmem:[#allocation17 + $0x1d8] sm:$0xf0]  ;;  %v9799_v18 = vor.u32 %v12486_v45, %v9798_v61 }
 0x326   : > { %v2773_v3 = vrot.slane %v2772_v17, 2  ;;  %3612 = vmatpush.bf16.msra.mxu0 %v9823_v54  ;;  %v9749_v58 = vld [vmem:[#allocation17 + $0x250] sm:$0xf]  ;;  %v12474_v47 = vld [vmem:[#allocation17 + $0x254] sm:$0xf0]  ;;  %v9690_v17 = vor.u32 %v12457_v63, %v9687_v42  ;;  %v3057_v54 = vrot.slane %v2719_v48, 7 }
 0x327   : > { %v12477_v7 = vld [vmem:[#allocation17 + $0x274] sm:$0xf]  ;;  %v9790_v40 = vld [vmem:[#allocation17 + $0x2a0] sm:$0xf]  ;;  %v9750_v12 = vor.u32 %v12474_v47, %v9749_v58  ;;  %v9767_v1 = vld [vmem:[#allocation17 + $0x278] sm:$0xf0] }
 0x328   : > { %v14899_v9 = vsel %vm14766_vm15, %v2773_v3, %v2777_v10  ;;  %v12455_v21 = vld [vmem:[#allocation17 + $0x1c4] sm:$0xf]  ;;  %v12484_v46 = vld [vmem:[#allocation17 + $0x2a4] sm:$0xf0]  ;;  %v9679_v60 = vld [vmem:[#allocation17 + $0x1c8] sm:$0xf0]  ;;  %v9770_v57 = vor.u32 %v12477_v7, %v9767_v1 }
 0x329   : > { %2806 = vst [vmem:[#allocation1 + $0x3] ss:$4 sm:$0xff] %v14899_v9  ;;  %3189 = vmatpush.bf16.msra.mxu3 %v9594_v8  ;;  %v9741_v3 = vld [vmem:[#allocation17 + $0x240] sm:$0xf]  ;;  %v12472_v10 = vld [vmem:[#allocation17 + $0x244] sm:$0xf0]  ;;  %v9791_v22 = vor.u32 %v12484_v46, %v9790_v40  ;;  %v9682_v20 = vor.u32 %v12455_v21, %v9679_v60 }
 0x32a   : > { %3613 = vmatpush.bf16.msra.mxu0 %v9815_v27  ;;  %v9782_v8 = vld [vmem:[#allocation17 + $0x290] sm:$0xf]  ;;  %v12475_v23 = vld [vmem:[#allocation17 + $0x264] sm:$0xf]  ;;  %v9759_v27 = vld [vmem:[#allocation17 + $0x268] sm:$0xf0]  ;;  %v9742_v13 = vor.u32 %v12472_v10, %v9741_v3 }
 0x32b   : > { %v12482_v33 = vld [vmem:[#allocation17 + $0x294] sm:$0xf0]  ;;  %v9671_v30 = vld [vmem:[#allocation17 + $0x1b8] sm:$0xf0]  ;;  %v9733_v36 = vld [vmem:[#allocation17 + $0x230] sm:$0xf] }
 0x32c   : > { %v14909_v5 = vld [vmem:[#allocation3 + $0x10] sm:$0x7]  ;;  %v9578_v44 = vrot.slane %v14884_v11, 9  ;;  %v9783_v14 = vor.u32 %v12482_v33, %v9782_v8  ;;  %v9774_v25 = vld [vmem:[#allocation17 + $0x280] sm:$0xf] }
 0x32d   : > { %3190 = vmatpush.bf16.msra.mxu3 %v9586_v39  ;;  %v3341_v4 = vrot.slane %v14909_v5, 2  ;;  %v12453_v39 = vld [vmem:[#allocation17 + $0x1b4] sm:$0xf]  ;;  %v12480_v52 = vld [vmem:[#allocation17 + $0x284] sm:$0xf0] }
 0x32e   : > { %3614 = vmatpush.bf16.msra.mxu0 %v9807_v28  ;;  %v9751_v50 = vld [vmem:[#allocation17 + $0x258] sm:$0xf0]  ;;  %v9674_v59 = vor.u32 %v12453_v39, %v9671_v30  ;;  %v12451_v53 = vld [vmem:[#allocation17 + $0x1a4] sm:$0xf]  ;;  %v9663_v28 = vld [vmem:[#allocation17 + $0x1a8] sm:$0xf0]  ;;  %v9775_v45 = vor.u32 %v12480_v52, %v9774_v25 }
 0x32f   : > { %v14932_v11 = vsel %vm1237_vm10, %v14909_v5, %v3341_v4  ;;  %v9725_v61 = vld [vmem:[#allocation17 + $0x220] sm:$0xf]  ;;  %v9666_v42 = vor.u32 %v12451_v53, %v9663_v28  ;;  %v12471_v47 = vld [vmem:[#allocation17 + $0x244] sm:$0xf]  ;;  %v9717_v7 = vld [vmem:[#allocation17 + $0x210] sm:$0xf] }
 0x330   : > { %v2807_v62 = vld.sshfl [vmem:[#allocation1] sm:$0xff pattern:$0x73625140]  ;;  %v12466_v40 = vld [vmem:[#allocation17 + $0x214] sm:$0xf0] }
 0x331   : > { %2917 = vst [vmem:[#allocation1] ss:$4 sm:$0xff] %v14712_v38  ;;  %2897 = vmatmul.bf16.vlgmr.msrb.gmra.mxu1 %v2807_v62  ;;  %2911 = vmatmul.bf16.vlgmr.msrb.gmra.mxu2 %v2807_v62  ;;  %v3049_v38 = vrot.slane %v2707_v19, 7  ;;  %v3053_v19 = vrot.slane %v2713_v56, 7  ;;  %v12470_v56 = vld [vmem:[#allocation17 + $0x234] sm:$0xf0] }
 0x332   : > { %2919 = vst [vmem:[#allocation1 + $0x1] ss:$4 sm:$0xff] %v14814_v43  ;;  %3322 = vmatpush.bf16.msrb.mxu1 %v9706_v51  ;;  %3467 = vmatpush.bf16.msrb.mxu2 %v9766_v29  ;;  %v9762_v51 = vor.u32 %v12475_v23, %v9759_v27  ;;  %v12473_v29 = vld [vmem:[#allocation17 + $0x254] sm:$0xf]  ;;  %v9734_v35 = vor.u32 %v12470_v56, %v9733_v36  ;;  %v12468_v62 = vld [vmem:[#allocation17 + $0x224] sm:$0xf0] }
 0x333   : > { %2921 = vst [vmem:[#allocation1 + $0x2] ss:$4 sm:$0xff] %v14851_v41  ;;  %3615 = vmatpush.bf16.msra.mxu0 %v9799_v18  ;;  %v14920_v48 = vsel %vm14779_vm7, %v9576_v6, %v3049_v38  ;;  %v14925_v37 = vsel %vm14779_vm7, %v9577_v49, %v3053_v19  ;;  %v9754_v63 = vor.u32 %v12473_v29, %v9751_v50  ;;  %v9743_v18 = vld [vmem:[#allocation17 + $0x248] sm:$0xf0]  ;;  %v12449_v6 = vld [vmem:[#allocation17 + $0x194] sm:$0xf] }
 0x334   : > { %2923 = vst [vmem:[#allocation1 + $0x3] ss:$4 sm:$0xff] %v14878_v2  ;;  %v9726_v58 = vor.u32 %v12468_v62, %v9725_v61  ;;  %v9655_v38 = vld [vmem:[#allocation17 + $0x198] sm:$0xf0]  ;;  %v9746_v21 = vor.u32 %v12471_v47, %v9743_v18  ;;  %v12447_v46 = vld [vmem:[#allocation17 + $0x184] sm:$0xf] }
 0x335   : > { %v9735_v1 = vld [vmem:[#allocation17 + $0x238] sm:$0xf0]  ;;  %v9647_v60 = vld [vmem:[#allocation17 + $0x188] sm:$0xf0]  ;;  %v9709_v3 = vld [vmem:[#allocation17 + $0x200] sm:$0xf]  ;;  %v9658_v19 = vor.u32 %v12449_v6, %v9655_v38 }
 0x336   : > { %3323 = vmatpush.bf16.msrb.mxu1 %v9698_v24  ;;  %3468 = vmatpush.bf16.msrb.mxu2 %v9758_v0  ;;  %v3347_v24 = vshrl.u32 %v14932_v11, 16  ;;  %v3350_v0 = vshll.u32 %v14932_v11, 16  ;;  %v12464_v8 = vld [vmem:[#allocation17 + $0x204] sm:$0xf0]  ;;  %v9832_v23 = vld [vmem:[#allocation17 + $0x2f8] sm:$0xf0] }
 0x337   : > { %3616 = vmatpush.bf16.msra.mxu0 %v9791_v22  ;;  %v14946_v22 = vsel %vm15471_vm13, %v14909_v5, %v3341_v4  ;;  %v9894_v27 = vld [vmem:[#allocation17 + $0x370] sm:$0xf]  ;;  %v12510_v33 = vld [vmem:[#allocation17 + $0x374] sm:$0xf0]  ;;  %v9710_v39 = vor.u32 %v12464_v8, %v9709_v3  ;;  %v12467_v30 = vld [vmem:[#allocation17 + $0x224] sm:$0xf] }
 0x338   : > { %v3352_v49 = vrot.slane %v3350_v0, 7  ;;  %v3346_v4 = vrot.slane %v14946_v22, 2  ;;  %v9727_v36 = vld [vmem:[#allocation17 + $0x228] sm:$0xf0]  ;;  %v12491_v25 = vld [vmem:[#allocation17 + $0x2e4] sm:$0xf] }
 0x339   : > { %v9824_v52 = vld [vmem:[#allocation17 + $0x2e8] sm:$0xf0]  ;;  %v9730_v29 = vor.u32 %v12467_v30, %v9727_v36  ;;  %v9886_v50 = vld [vmem:[#allocation17 + $0x360] sm:$0xf]  ;;  %v9719_v53 = vld [vmem:[#allocation17 + $0x218] sm:$0xf0] }
 0x33a   : > { %3324 = vmatpush.bf16.msrb.mxu1 %v9690_v17  ;;  %3469 = vmatpush.bf16.msrb.mxu2 %v9750_v12  ;;  %v3349_v17 = vrot.slane %v3347_v24, 6  ;;  %v12469_v12 = vld [vmem:[#allocation17 + $0x234] sm:$0xf]  ;;  %v9950_v62 = vld [vmem:[#allocation17 + $0x3e0] sm:$0xf]  ;;  %v9827_v24 = vor.u32 %v12491_v25, %v9824_v52  ;;  %v3502_v36 = vrot.slane %v3346_v4, 7 }
 0x33b   : > { %v2924_v34 = vld.sshfl [vmem:[#allocation1] sm:$0xff pattern:$0x73625140]  ;;  %3617 = vmatpush.bf16.msra.mxu0 %v9783_v14  ;;  %v12526_v14 = vld [vmem:[#allocation17 + $0x3f4] sm:$0xf0]  ;;  %v9771_v52 = vrot.slane %v14932_v11, 9 }
 0x33c   : > { %3077 = vst [vmem:[#allocation1] ss:$4 sm:$0xff] %v14786_v16  ;;  %3014 = vmatmul.bf16.vlgmr.msrb.gmra.mxu3 %v2924_v34  ;;  %v14936_v16 = vsel %vm14779_vm7, %v9578_v44, %v3057_v54  ;;  %v9718_v54 = vor.u32 %v12466_v40, %v9717_v7  ;;  %v9958_v44 = vld [vmem:[#allocation17 + $0x3f0] sm:$0xf]  ;;  %v12506_v38 = vld [vmem:[#allocation17 + $0x354] sm:$0xf0] }
 0x33d   : > { %3080 = vst [vmem:[#allocation1 + $0x1] ss:$4 sm:$0xff] %v14920_v48  ;;  %3481 = vmatpush.bf16.msrb.mxu3 %v9770_v57  ;;  %v12493_v57 = vld [vmem:[#allocation17 + $0x2f4] sm:$0xf]  ;;  %v9959_v61 = vor.u32 %v12526_v14, %v9958_v44  ;;  %v9942_v7 = vld [vmem:[#allocation17 + $0x3d0] sm:$0xf] }
 0x33e   : > { %3083 = vst [vmem:[#allocation1 + $0x2] ss:$4 sm:$0xff] %v14925_v37  ;;  %3325 = vmatpush.bf16.msrb.mxu1 %v9682_v20  ;;  %3470 = vmatpush.bf16.msrb.mxu2 %v9742_v13  ;;  %v9738_v20 = vor.u32 %v12469_v12, %v9735_v1  ;;  %v9650_v13 = vor.u32 %v12447_v46, %v9647_v60  ;;  %v12522_v40 = vld [vmem:[#allocation17 + $0x3d4] sm:$0xf0]  ;;  %v9711_v12 = vld [vmem:[#allocation17 + $0x208] sm:$0xf0] }
 0x33f   : > { %3086 = vst [vmem:[#allocation1 + $0x3] ss:$4 sm:$0xff] %v14936_v16  ;;  %3618 = vmatpush.bf16.msra.mxu0 %v9775_v45  ;;  %v9835_v56 = vor.u32 %v12493_v57, %v9832_v23  ;;  %v12524_v45 = vld [vmem:[#allocation17 + $0x3e4] sm:$0xf0]  ;;  %v12509_v46 = vld [vmem:[#allocation17 + $0x374] sm:$0xf] }
 0x340   : > { %v9951_v1 = vor.u32 %v12524_v45, %v9950_v62  ;;  %v9896_v60 = vld [vmem:[#allocation17 + $0x378] sm:$0xf0]  ;;  %v12504_v8 = vld [vmem:[#allocation17 + $0x344] sm:$0xf0]  ;;  %v9934_v23 = vld [vmem:[#allocation17 + $0x3c0] sm:$0xf] }
 0x341   : > { %3482 = vmatpush.bf16.msrb.mxu3 %v9762_v51  ;;  %3028 = vmatmul.bf16.vlgmr.msra.gmra.mxu1 %v2924_v34  ;;  %v3353_v34 = vor.u32 %v3352_v49, %v3349_v17  ;;  %v3356_v51 = vshll.u32 %v3346_v4, 16  ;;  %v12463_v17 = vld [vmem:[#allocation17 + $0x204] sm:$0xf]  ;;  %v9808_v49 = vld [vmem:[#allocation17 + $0x2c8] sm:$0xf0]  ;;  %v9899_v57 = vor.u32 %v12509_v46, %v9896_v60 }
 0x342   : > { %3326 = vmatpush.bf16.msrb.mxu1 %v9674_v59  ;;  %3471 = vmatpush.bf16.msrb.mxu2 %v9734_v35  ;;  %v12508_v59 = vld [vmem:[#allocation17 + $0x364] sm:$0xf0]  ;;  %v12465_v35 = vld [vmem:[#allocation17 + $0x214] sm:$0xf]  ;;  %v9862_v14 = vld [vmem:[#allocation17 + $0x330] sm:$0xf] }
 0x343   : > { %v3354_v28 = vrot.slane %v3353_v34, 2  ;;  %v9887_v0 = vor.u32 %v12508_v59, %v9886_v50  ;;  %v3358_v18 = vrot.slane %v3356_v51, 7  ;;  %v9722_v6 = vor.u32 %v12465_v35, %v9719_v53  ;;  %v14963_v30 = vld [vmem:[#allocation3 + $0x14] sm:$0x7]  ;;  %v12502_v25 = vld [vmem:[#allocation17 + $0x334] sm:$0xf0] }
 0x344   : > { %v12485_v44 = vld [vmem:[#allocation17 + $0x2b4] sm:$0xf]  ;;  %v12518_v50 = vld [vmem:[#allocation17 + $0x3b4] sm:$0xf0]  ;;  %v9880_v35 = vld [vmem:[#allocation17 + $0x358] sm:$0xf0]  ;;  %v9863_v62 = vor.u32 %v12502_v25, %v9862_v14 }
 0x345   : > { %3483 = vmatpush.bf16.msrb.mxu3 %v9754_v63  ;;  %v12489_v63 = vld [vmem:[#allocation17 + $0x2d4] sm:$0xf]  ;;  %v14959_v3 = vsel %vm14766_vm15, %v3354_v28, %v3358_v18  ;;  %v12483_v53 = vld [vmem:[#allocation17 + $0x2a4] sm:$0xf]  ;;  %v9792_v45 = vld [vmem:[#allocation17 + $0x2a8] sm:$0xf0] }
 0x346   : > { %v3087_v10 = vld.sshfl [vmem:[#allocation1] sm:$0xff pattern:$0x73625140]  ;;  %3327 = vmatpush.bf16.msrb.mxu1 %v9666_v42  ;;  %3472 = vmatpush.bf16.msrb.mxu2 %v9726_v58  ;;  %v9816_v42 = vld [vmem:[#allocation17 + $0x2d8] sm:$0xf0] }
 0x347   : > { %3222 = vst [vmem:[#allocation1 + $0x2] ss:$4 sm:$0xff] %v14878_v2  ;;  %3177 = vmatmul.bf16.vlgmr.msra.gmra.mxu2 %v3087_v10  ;;  %v9878_v58 = vld [vmem:[#allocation17 + $0x350] sm:$0xf]  ;;  %v12505_v4 = vld [vmem:[#allocation17 + $0x354] sm:$0xf] }
 0x348   : > { %3218 = vst [vmem:[#allocation1] ss:$4 sm:$0xff] %v14814_v43  ;;  %v9895_v43 = vor.u32 %v12510_v33, %v9894_v27  ;;  %v12520_v27 = vld [vmem:[#allocation17 + $0x3c4] sm:$0xf0]  ;;  %v9943_v33 = vor.u32 %v12522_v40, %v9942_v7  ;;  %v10023_v14 = vld [vmem:[#allocation17 + $0x470] sm:$0xf] }
 0x349   : > { %3220 = vst [vmem:[#allocation1 + $0x1] ss:$4 sm:$0xff] %v14851_v41  ;;  %3484 = vmatpush.bf16.msrb.mxu3 %v9746_v21  ;;  %v9819_v21 = vor.u32 %v12489_v63, %v9816_v42  ;;  %v9935_v59 = vor.u32 %v12520_v27, %v9934_v23  ;;  %v12500_v63 = vld [vmem:[#allocation17 + $0x324] sm:$0xf0]  ;;  %v9883_v42 = vor.u32 %v12505_v4, %v9880_v35  ;;  %v12542_v25 = vld [vmem:[#allocation17 + $0x474] sm:$0xf0] }
 0x34a   : > { %3225 = vst [vmem:[#allocation1 + $0x3] ss:$4 sm:$0xff] %v14909_v5  ;;  %3328 = vmatpush.bf16.msrb.mxu1 %v9658_v19  ;;  %3473 = vmatpush.bf16.msrb.mxu2 %v9718_v54  ;;  %v9714_v19 = vor.u32 %v12463_v17, %v9711_v12  ;;  %v9870_v54 = vld [vmem:[#allocation17 + $0x340] sm:$0xf]  ;;  %v12481_v17 = vld [vmem:[#allocation17 + $0x294] sm:$0xf] }
 0x34b   : > { %v9871_v34 = vor.u32 %v12504_v8, %v9870_v54  ;;  %v9784_v12 = vld [vmem:[#allocation17 + $0x298] sm:$0xf0]  ;;  %vm4164_vm11 = vsmask.f32 2304 }
 0x34c   : > { %3191 = vmatmul.bf16.vlgmr.msra.gmra.mxu3 %v3087_v10  ;;  %v12487_v10 = vld [vmem:[#allocation17 + $0x2c4] sm:$0xf]  ;;  %v9864_v54 = vld [vmem:[#allocation17 + $0x338] sm:$0xf0]  ;;  %vm4165_vm8 = vmand %vm15469_vm4, %vm4164_vm11  ;;  %vm15470_vm11 = vcmask 1042433  }
 0x34d   : > { %3485 = vmatpush.bf16.msrb.mxu3 %v9738_v20  ;;  %v9811_v20 = vor.u32 %v12487_v10, %v9808_v49  ;;  %v12514_v10 = vld [vmem:[#allocation17 + $0x394] sm:$0xf0]  ;;  %v12501_v49 = vld [vmem:[#allocation17 + $0x334] sm:$0xf] }
 0x34e   : > { %3329 = vmatpush.bf16.msrb.mxu1 %v9650_v13  ;;  %3474 = vmatpush.bf16.msrb.mxu2 %v9710_v39  ;;  %v12507_v13 = vld [vmem:[#allocation17 + $0x364] sm:$0xf]  ;;  %v9888_v39 = vld [vmem:[#allocation17 + $0x368] sm:$0xf0] }
 0x34f   : > { %v9891_v51 = vor.u32 %v12507_v13, %v9888_v39  ;;  %v9838_v13 = vld [vmem:[#allocation17 + $0x300] sm:$0xf]  ;;  %v12496_v39 = vld [vmem:[#allocation17 + $0x304] sm:$0xf0] }
 0x350   : > { %v9839_v35 = vor.u32 %v12496_v39, %v9838_v13  ;;  %v12539_v13 = vld [vmem:[#allocation17 + $0x464] sm:$0xf]  ;;  %v10017_v39 = vld [vmem:[#allocation17 + $0x468] sm:$0xf0] }
 0x351   : > { %v3226_v47 = vld.sshfl [vmem:[#allocation1] sm:$0xff pattern:$0x73625140]  ;;  %3486 = vmatpush.bf16.msrb.mxu3 %v9730_v29  ;;  %v9926_v29 = vld [vmem:[#allocation17 + $0x3b0] sm:$0xf] }
 0x352   : > { %3625 = vmatpush.bf16.msra.mxu1 %v9835_v56  ;;  %3750 = vmatpush.bf16.msra.mxu2 %v9895_v43  ;;  %3377 = vst [vmem:[#allocation1] ss:$4 sm:$0xff] %v14844_v15  ;;  %v9879_v15 = vor.u32 %v12506_v38, %v9878_v58  ;;  %v9800_v56 = vld [vmem:[#allocation17 + $0x2b8] sm:$0xf0]  ;;  %v3783_v43 = vrot.slane %v14963_v30, 2  ;;  %v9927_v18 = vor.u32 %v12518_v50, %v9926_v29 }
 0x353   : > { %3316 = vmatmul.bf16.vlgmr.msrb.gmra.mxu0 %v3226_v47  ;;  %3330 = vmatmul.bf16.vlgmr.msrb.gmra.mxu1 %v3226_v47  ;;  %3379 = vst [vmem:[#allocation1 + $0x1] ss:$4 sm:$0xff] %v14873_v26  ;;  %v9803_v22 = vor.u32 %v12485_v44, %v9800_v56  ;;  %v12516_v58 = vld [vmem:[#allocation17 + $0x3a4] sm:$0xf0]  ;;  %v12503_v47 = vld [vmem:[#allocation17 + $0x344] sm:$0xf]  ;;  %v9867_v44 = vor.u32 %v12501_v49, %v9864_v54 }
 0x354   : > { %3909 = vmatpush.bf16.msrb.mxu0 %v9959_v61  ;;  %3381 = vst [vmem:[#allocation1 + $0x2] ss:$4 sm:$0xff] %v14899_v9  ;;  %v14971_v61 = vsel %vm14779_vm7, %v9771_v52, %v3502_v36  ;;  %v14975_v11 = vsel %vm1237_vm10, %v14963_v30, %v3783_v43  ;;  %v9872_v38 = vld [vmem:[#allocation17 + $0x348] sm:$0xf0]  ;;  %v12525_v36 = vld [vmem:[#allocation17 + $0x3f4] sm:$0xf] }
 0x355   : > { %3384 = vst [vmem:[#allocation1 + $0x3] ss:$4 sm:$0xff] %v14959_v3  ;;  %3487 = vmatpush.bf16.msrb.mxu3 %v9722_v6  ;;  %v9795_v6 = vor.u32 %v12483_v53, %v9792_v45  ;;  %v3789_v7 = vshrl.u32 %v14975_v11, 16  ;;  %v9875_v60 = vor.u32 %v12503_v47, %v9872_v38  ;;  %v3792_v23 = vshll.u32 %v14975_v11, 16  ;;  %v9902_v56 = vld [vmem:[#allocation17 + $0x380] sm:$0xf] }
 0x356   : > { %3626 = vmatpush.bf16.msra.mxu1 %v9827_v24  ;;  %3751 = vmatpush.bf16.msra.mxu2 %v9887_v0  ;;  %v9918_v24 = vld [vmem:[#allocation17 + $0x3a0] sm:$0xf]  ;;  %v9952_v45 = vld [vmem:[#allocation17 + $0x3e8] sm:$0xf0]  ;;  %v9848_v47 = vld [vmem:[#allocation17 + $0x318] sm:$0xf0] }
 0x357   : > { %v9854_v0 = vld [vmem:[#allocation17 + $0x320] sm:$0xf]  ;;  %v9919_v46 = vor.u32 %v12516_v58, %v9918_v24  ;;  %v3794_v29 = vrot.slane %v3792_v23, 7  ;;  %v12497_v58 = vld [vmem:[#allocation17 + $0x314] sm:$0xf] }
 0x358   : > { %3910 = vmatpush.bf16.msrb.mxu0 %v9951_v1  ;;  %v9855_v40 = vor.u32 %v12500_v63, %v9854_v0  ;;  %v9846_v1 = vld [vmem:[#allocation17 + $0x310] sm:$0xf]  ;;  %v10015_v0 = vld [vmem:[#allocation17 + $0x460] sm:$0xf]  ;;  %v12540_v63 = vld [vmem:[#allocation17 + $0x464] sm:$0xf0] }
 0x359   : > { %3488 = vmatpush.bf16.msrb.mxu3 %v9714_v19  ;;  %v9787_v19 = vor.u32 %v12481_v17, %v9784_v12  ;;  %v9944_v38 = vld [vmem:[#allocation17 + $0x3d8] sm:$0xf0]  ;;  %v9936_v49 = vld [vmem:[#allocation17 + $0x3c8] sm:$0xf0]  ;;  %v12536_v23 = vld [vmem:[#allocation17 + $0x444] sm:$0xf0] }
 0x35a   : > { %3627 = vmatpush.bf16.msra.mxu1 %v9819_v21  ;;  %3752 = vmatpush.bf16.msra.mxu2 %v9879_v15  ;;  %v12498_v21 = vld [vmem:[#allocation17 + $0x314] sm:$0xf0]  ;;  %v9910_v15 = vld [vmem:[#allocation17 + $0x390] sm:$0xf] }
 0x35b   : > { %v9847_v27 = vor.u32 %v12498_v21, %v9846_v1  ;;  %v9840_v1 = vld [vmem:[#allocation17 + $0x308] sm:$0xf0] }
 0x35c   : > { %3911 = vmatpush.bf16.msrb.mxu0 %v9943_v33  ;;  %v3385_v28 = vld.sshfl [vmem:[#allocation1] sm:$0xff pattern:$0x73625140]  ;;  %v12479_v33 = vld [vmem:[#allocation17 + $0x284] sm:$0xf] }
 0x35d   : > { %3764 = vmatpush.bf16.msra.mxu3 %v9899_v57  ;;  %3528 = vst [vmem:[#allocation1 + $0x3] ss:$4 sm:$0xff] %v14971_v61  ;;  %3475 = vmatmul.bf16.vlgmr.msrb.gmra.mxu2 %v3385_v28  ;;  %v3791_v57 = vrot.slane %v3789_v7, 6  ;;  %v10007_v7 = vld [vmem:[#allocation17 + $0x450] sm:$0xf] }
 0x35e   : > { %3628 = vmatpush.bf16.msra.mxu1 %v9811_v20  ;;  %3753 = vmatpush.bf16.msra.mxu2 %v9871_v34  ;;  %3521 = vst [vmem:[#allocation1] ss:$4 sm:$0xff] %v14920_v48  ;;  %v14984_v48 = vsel %vm15471_vm13, %v14963_v30, %v3783_v43  ;;  %v9776_v20 = vld [vmem:[#allocation17 + $0x288] sm:$0xf0]  ;;  %v9960_v34 = vld [vmem:[#allocation17 + $0x3f8] sm:$0xf0] }
 0x35f   : > { %3489 = vmatmul.bf16.vlgmr.msrb.gmra.mxu3 %v3385_v28  ;;  %3523 = vst [vmem:[#allocation1 + $0x1] ss:$4 sm:$0xff] %v14925_v37  ;;  %v3788_v8 = vrot.slane %v14984_v48, 2  ;;  %v12499_v43 = vld [vmem:[#allocation17 + $0x324] sm:$0xf]  ;;  %v9779_v50 = vor.u32 %v12479_v33, %v9776_v20  ;;  %v9963_v53 = vor.u32 %v12525_v36, %v9960_v34  ;;  %v10024_v28 = vor.u32 %v12542_v25, %v10023_v14 }
 0x360   : > { %3912 = vmatpush.bf16.msrb.mxu0 %v9935_v59  ;;  %3525 = vst [vmem:[#allocation1 + $0x2] ss:$4 sm:$0xff] %v14936_v16  ;;  %v9856_v59 = vld [vmem:[#allocation17 + $0x328] sm:$0xf0]  ;;  %v12517_v34 = vld [vmem:[#allocation17 + $0x3b4] sm:$0xf] }
 0x361   : > { %3765 = vmatpush.bf16.msra.mxu3 %v9891_v51  ;;  %v9911_v51 = vor.u32 %v12514_v10, %v9910_v15  ;;  %v3798_v4 = vshll.u32 %v3788_v8, 16  ;;  %v9859_v24 = vor.u32 %v12499_v43, %v9856_v59  ;;  %v12519_v10 = vld [vmem:[#allocation17 + $0x3c4] sm:$0xf]  ;;  %v12537_v14 = vld [vmem:[#allocation17 + $0x454] sm:$0xf]  ;;  %v3944_v59 = vrot.slane %v3788_v8, 7 }
 0x362   : > { %3629 = vmatpush.bf16.msra.mxu1 %v9803_v22  ;;  %3754 = vmatpush.bf16.msra.mxu2 %v9863_v62  ;;  %v12512_v22 = vld [vmem:[#allocation17 + $0x384] sm:$0xf0]  ;;  %v12523_v62 = vld [vmem:[#allocation17 + $0x3e4] sm:$0xf]  ;;  %v9939_v20 = vor.u32 %v12519_v10, %v9936_v49  ;;  %vm4350_vm13 = vsmask.f32 6424 }
 0x363   : > { %v3800_v12 = vrot.slane %v3798_v4, 7 }
 0x364   : > { %3913 = vmatpush.bf16.msrb.mxu0 %v9927_v18  ;;  %v10016_v18 = vor.u32 %v12540_v63, %v10015_v0  ;;  %v9975_v0 = vld [vmem:[#allocation17 + $0x410] sm:$0xf]  ;;  %v12530_v63 = vld [vmem:[#allocation17 + $0x414] sm:$0xf0] }
 0x365   : > { %3766 = vmatpush.bf16.msra.mxu3 %v9883_v42  ;;  %v3795_v42 = vor.u32 %v3794_v29, %v3791_v57  ;;  %v12532_v29 = vld [vmem:[#allocation17 + $0x424] sm:$0xf0] }
 0x366   : > { %3630 = vmatpush.bf16.msra.mxu1 %v9795_v6  ;;  %3755 = vmatpush.bf16.msra.mxu2 %v9855_v40  ;;  %v12521_v6 = vld [vmem:[#allocation17 + $0x3d4] sm:$0xf]  ;;  %v12538_v40 = vld [vmem:[#allocation17 + $0x454] sm:$0xf0] }
 0x367   : > { %v3529_v52 = vld.sshfl [vmem:[#allocation1] sm:$0xff pattern:$0x73625140]  ;;  %v3796_v17 = vrot.slane %v3795_v42, 2  ;;  %v9947_v21 = vor.u32 %v12521_v6, %v9944_v38  ;;  %v10008_v15 = vor.u32 %v12538_v40, %v10007_v7  ;;  %v9993_v42 = vld [vmem:[#allocation17 + $0x438] sm:$0xf0] }
 0x368   : > { %3914 = vmatpush.bf16.msrb.mxu0 %v9919_v46  ;;  %3660 = vst [vmem:[#allocation1] ss:$4 sm:$0xff] %v14851_v41  ;;  %v9903_v41 = vor.u32 %v12512_v22, %v9902_v56  ;;  %v12541_v46 = vld [vmem:[#allocation17 + $0x474] sm:$0xf]  ;;  %v12534_v56 = vld [vmem:[#allocation17 + $0x434] sm:$0xf0] }
 0x369   : > { %3767 = vmatpush.bf16.msra.mxu3 %v9875_v60  ;;  %3619 = vmatmul.bf16.vlgmr.msra.gmra.mxu0 %v3529_v52  ;;  %3662 = vst [vmem:[#allocation1 + $0x1] ss:$4 sm:$0xff] %v14878_v2  ;;  %v9955_v2 = vor.u32 %v12523_v62, %v9952_v45  ;;  %v10025_v60 = vld [vmem:[#allocation17 + $0x478] sm:$0xf0]  ;;  %v9992_v25 = vor.u32 %v12534_v56, %v9991_v55  ;;  %v9985_v38 = vld [vmem:[#allocation17 + $0x428] sm:$0xf0] }
 0x36a   : > { %3631 = vmatpush.bf16.msra.mxu1 %v9787_v19  ;;  %3756 = vmatpush.bf16.msra.mxu2 %v9847_v27  ;;  %3664 = vst [vmem:[#allocation1 + $0x2] ss:$4 sm:$0xff] %v14909_v5  ;;  %v9851_v5 = vor.u32 %v12497_v58, %v9848_v47  ;;  %v9999_v19 = vld [vmem:[#allocation17 + $0x440] sm:$0xf]  ;;  %v3801_v27 = vsel %vm14766_vm15, %v3796_v17, %v3800_v12  ;;  %v12511_v47 = vld [vmem:[#allocation17 + $0x384] sm:$0xf]  ;;  %vm15027_vm15 = vmor %vm4165_vm8, %vm14681_vm2 }
 0x36b   : > { %3667 = vst [vmem:[#allocation1 + $0x3] ss:$4 sm:$0xff] %v14963_v30  ;;  %v12495_v30 = vld [vmem:[#allocation17 + $0x304] sm:$0xf]  ;;  %v10028_v33 = vor.u32 %v12541_v46, %v10025_v60  ;;  %v10000_v36 = vor.u32 %v12536_v23, %v9999_v19  ;;  %v9976_v58 = vor.u32 %v12530_v63, %v9975_v0  ;;  %v12529_v7 = vld [vmem:[#allocation17 + $0x414] sm:$0xf]  ;;  %vm4181_vm2 = vmand %vm15468_vm14, %vm4180_vm3 }
 0x36c   : > { %3915 = vmatpush.bf16.msrb.mxu0 %v9911_v51  ;;  %v9843_v57 = vor.u32 %v12495_v30, %v9840_v1  ;;  %v9920_v51 = vld [vmem:[#allocation17 + $0x3a8] sm:$0xf0]  ;;  %v9977_v40 = vld [vmem:[#allocation17 + $0x418] sm:$0xf0]  ;;  %v12527_v30 = vld [vmem:[#allocation17 + $0x404] sm:$0xf] }
 0x36d   : > { %3768 = vmatpush.bf16.msra.mxu3 %v9867_v44  ;;  %v9928_v44 = vld [vmem:[#allocation17 + $0x3b8] sm:$0xf0]  ;;  %v9980_v12 = vor.u32 %v12529_v7, %v9977_v40  ;;  %v9969_v1 = vld [vmem:[#allocation17 + $0x408] sm:$0xf0]  ;;  %v10275_v0 = vld [vmem:[#allocation22 + $0x3e0] sm:$0xf] }
 0x36e   : > { %3632 = vmatpush.bf16.msra.mxu1 %v9779_v50  ;;  %3757 = vmatpush.bf16.msra.mxu2 %v9839_v35  ;;  %v9931_v43 = vor.u32 %v12517_v34, %v9928_v44  ;;  %v9964_v50 = vrot.slane %v14975_v11, 9  ;;  %v12535_v35 = vld [vmem:[#allocation17 + $0x444] sm:$0xf]  ;;  %v4170_v7 = vld [vmem:[#allocation4 + $0x4] sm:$0x5] }
 0x36f   : > { %vm4340_vm8 = vsmask.f32 1284  ;;  %vm4342_vm3 = vsmask.f32 2312 }
 0x370   : > { %3916 = vmatpush.bf16.msrb.mxu0 %v9903_v41  ;;  %v3945_v11 = vsel %vm14779_vm7, %v9964_v50, %v3944_v59  ;;  %v12533_v41 = vld [vmem:[#allocation17 + $0x434] sm:$0xf]  ;;  %vm4183_vm7 = vsmask.f32 7950 }
 0x371   : > { %3769 = vmatpush.bf16.msra.mxu3 %v9859_v24  ;;  %3633 = vmatmul.bf16.vlgmr.msra.gmra.mxu1 %v3529_v52  ;;  %v12515_v52 = vld [vmem:[#allocation17 + $0x3a4] sm:$0xf]  ;;  %v9912_v24 = vld [vmem:[#allocation17 + $0x398] sm:$0xf0]  ;;  %v9996_v31 = vor.u32 %v12533_v41, %v9993_v42  ;;  %vm4184_vm0 = vmand %vm15467_vm5, %vm4183_vm7  ;;  %vm4344_vm7 = vsmask.f32 3340 }
 0x372   : > { %3923 = vmatpush.bf16.msrb.mxu1 %v9963_v53  ;;  %4053 = vmatpush.bf16.msrb.mxu2 %v10024_v28  ;;  %v3668_v54 = vld.sshfl [vmem:[#allocation1] sm:$0xff pattern:$0x73625140]  ;;  %v9923_v4 = vor.u32 %v12515_v52, %v9920_v51  ;;  %v12513_v28 = vld [vmem:[#allocation17 + $0x394] sm:$0xf]  ;;  %vm15044_vm6 = vmor %vm4184_vm0, %vm4181_vm2 }
 0x373   : > { %3819 = vst [vmem:[#allocation1] ss:$4 sm:$0xff] %v14873_v26  ;;  %3758 = vmatmul.bf16.vlgmr.msra.gmra.mxu2 %v3668_v54  ;;  %v10020_v26 = vor.u32 %v12539_v13, %v10017_v39  ;;  %v10001_v53 = vld [vmem:[#allocation17 + $0x448] sm:$0xf0]  ;;  %v9915_v8 = vor.u32 %v12513_v28, %v9912_v24  ;;  %v15019_v28 = vld [vmem:[#allocation19] sm:$0x3] }
 0x374   : > { %3821 = vst [vmem:[#allocation1 + $0x1] ss:$4 sm:$0xff] %v14899_v9  ;;  %v10009_v9 = vld [vmem:[#allocation17 + $0x458] sm:$0xf0]  ;;  %v10004_v48 = vor.u32 %v12535_v35, %v10001_v53  ;;  %v12637_v24 = vld [vmem:[#allocation22 + $0x2ec] sm:$0xf0] }
 0x375   : > { %3770 = vmatpush.bf16.msra.mxu3 %v9851_v5  ;;  %3823 = vst [vmem:[#allocation1 + $0x2] ss:$4 sm:$0xff] %v14959_v3  ;;  %v9983_v3 = vld [vmem:[#allocation17 + $0x420] sm:$0xf]  ;;  %v10012_v22 = vor.u32 %v12537_v14, %v10009_v9  ;;  %vm15535_vm2 = vsmask.f32 256 }
 0x376   : > { %3924 = vmatpush.bf16.msrb.mxu1 %v9955_v2  ;;  %4054 = vmatpush.bf16.msrb.mxu2 %v10016_v18  ;;  %3826 = vst [vmem:[#allocation1 + $0x3] ss:$4 sm:$0xff] %v3801_v27  ;;  %v9984_v45 = vor.u32 %v12532_v29, %v9983_v3  ;;  %v9904_v2 = vld [vmem:[#allocation17 + $0x388] sm:$0xf0]  ;;  %v12528_v18 = vld [vmem:[#allocation17 + $0x404] sm:$0xf0]  ;;  %vm4341_vm0 = vmor %vm15535_vm2, %vm4340_vm8 }
 0x377   : > { %v9907_v6 = vor.u32 %v12511_v47, %v9904_v2  ;;  %v12667_v2 = vld [vmem:[#allocation22 + $0x3e4] sm:$0xf] }
 0x379   : > { %3771 = vmatpush.bf16.msra.mxu3 %v9843_v57 }
 0x37a   : > { %3925 = vmatpush.bf16.msrb.mxu1 %v9947_v21  ;;  %4055 = vmatpush.bf16.msrb.mxu2 %v10008_v15  ;;  %v9972_v21 = vor.u32 %v12527_v30, %v9969_v1 }
 0x37c   : > { %3772 = vmatmul.bf16.vlgmr.msra.gmra.mxu3 %v3668_v54 }
 0x37d   : > { %4067 = vmatpush.bf16.msrb.mxu3 %v10028_v33  ;;  %v3827_v62 = vld.sshfl [vmem:[#allocation1] sm:$0xff pattern:$0x73625140] }
 0x37e   : > { %3926 = vmatpush.bf16.msrb.mxu1 %v9939_v20  ;;  %4056 = vmatpush.bf16.msrb.mxu2 %v10000_v36  ;;  %3963 = vst [vmem:[#allocation1] ss:$4 sm:$0xff] %v14925_v37  ;;  %v9967_v37 = vld [vmem:[#allocation17 + $0x400] sm:$0xf] }
 0x37f   : > { %3917 = vmatmul.bf16.vlgmr.msrb.gmra.mxu0 %v3827_v62  ;;  %3965 = vst [vmem:[#allocation1 + $0x1] ss:$4 sm:$0xff] %v14936_v16  ;;  %v12531_v16 = vld [vmem:[#allocation17 + $0x424] sm:$0xf]  ;;  %v9968_v5 = vor.u32 %v12528_v18, %v9967_v37  ;;  %v10277_v37 = vld [vmem:[#allocation22 + $0x3f0] sm:$0xf0] }
 0x380   : > { %3967 = vst [vmem:[#allocation1 + $0x2] ss:$4 sm:$0xff] %v14971_v61  ;;  %v9988_v61 = vor.u32 %v12531_v16, %v9985_v38 }
 0x381   : > { %4068 = vmatpush.bf16.msrb.mxu3 %v10020_v26  ;;  %3970 = vst [vmem:[#allocation1 + $0x3] ss:$4 sm:$0xff] %v3945_v11  ;;  %v12669_v11 = vld [vmem:[#allocation22 + $0x3ec] sm:$0xf0] }
 0x382   : > { %3927 = vmatpush.bf16.msrb.mxu1 %v9931_v43  ;;  %4057 = vmatpush.bf16.msrb.mxu2 %v9992_v25 }
 0x385   : > { %4069 = vmatpush.bf16.msrb.mxu3 %v10012_v22 }
 0x386   : > { %3928 = vmatpush.bf16.msrb.mxu1 %v9923_v4  ;;  %4058 = vmatpush.bf16.msrb.mxu2 %v9984_v45  ;;  %v10147_v45 = vld [vmem:[#allocation22 + $0x2e0] sm:$0xf] }
 0x387   : > { %v10148_v63 = vor.u32 %v12637_v24, %v10147_v45  ;;  %v10261_v45 = vld [vmem:[#allocation22 + $0x3d0] sm:$0xf0] }
 0x388   : > { %v3971_v17 = vld.sshfl [vmem:[#allocation1] sm:$0xff pattern:$0x73625140] }
 0x389   : > { %4070 = vmatpush.bf16.msrb.mxu3 %v10004_v48  ;;  %v12635_v48 = vld [vmem:[#allocation22 + $0x2e4] sm:$0xf]  ;;  %4764 = vmatpush.bf16.msra.mxu0 %v10148_v63 }
 0x38a   : > { %3929 = vmatpush.bf16.msrb.mxu1 %v9915_v8  ;;  %4059 = vmatpush.bf16.msrb.mxu2 %v9976_v58  ;;  %v10149_v8 = vld [vmem:[#allocation22 + $0x2f0] sm:$0xf0]  ;;  %v10276_v58 = vor.u32 %v12669_v11, %v10275_v0 }
 0x38b   : > { %v10152_v47 = vor.u32 %v12635_v48, %v10149_v8 }
 0x38d   : > { %4071 = vmatpush.bf16.msrb.mxu3 %v9996_v31  ;;  %v4087_v31 = vperm.slane %v15019_v28, 0 }
 0x38e   : > { %3930 = vmatpush.bf16.msrb.mxu1 %v9907_v6  ;;  %4060 = vmatpush.bf16.msrb.mxu2 %v9968_v5  ;;  %v10280_v6 = vor.u32 %v12667_v2, %v10277_v37 }
 0x391   : > { %4072 = vmatpush.bf16.msrb.mxu3 %v9988_v61  ;;  %3931 = vmatmul.bf16.vlgmr.msrb.gmra.mxu1 %v3827_v62  ;;  %v4167_v61 = vld [vmem:[#allocation4] sm:$0x5] }
 0x392   : > { %4061 = vmatmul.bf16.vlgmr.msrb.gmra.mxu2 %v3971_v17  ;;  %4777 = vmatpush.bf16.msra.mxu1 %v10276_v58 }
 0x393   : > { %4790 = vmatpush.bf16.msra.mxu2 %v10152_v47  ;;  %v12661_v47 = vld [vmem:[#allocation22 + $0x3ac] sm:$0xf0] }
 0x395   : > { %4073 = vmatpush.bf16.msrb.mxu3 %v9980_v12 }
 0x399   : > { %4074 = vmatpush.bf16.msrb.mxu3 %v9972_v21 }
 0x39c   : > { %4075 = vmatmul.bf16.vlgmr.msrb.gmra.mxu3 %v3971_v17  ;;  %v4176_v17 = vld [vmem:[#allocation4 + $0xc] sm:$0x5] }
 0x39d   : > { %4803 = vmatpush.bf16.msra.mxu3 %v10280_v6  ;;  %v4177_v32 = vsel %vm15027_vm15, 0, %v4176_v17  ;;  %v12627_v6 = vld [vmem:[#allocation22 + $0x2a4] sm:$0xf] }
 0x39e   : > { %4178 = vst [vmem:[#allocation4 + $0xc] sm:$0x5] %v4177_v32  ;;  %v12659_v17 = vld [vmem:[#allocation22 + $0x3a4] sm:$0xf] }
 0x3ae   : > { %v2898_v46 = vpop.f32.mrf.mxu1 }
 0x3b4   : > { %v2912_v60 = vpop.f32.mrf.mxu2 }
 0x3b6   : > { %v2900_v10 = vpop.f32.mrf.mxu1 }
 0x3bc   : > { %v2914_v49 = vpop.f32.mrf.mxu2 }
 0x3be   : > { %v3029_v54 = vpop.f32.mrf.mxu1 }
 0x3bf   : > { %v3015_v15 = vpop.f32.mrf.mxu3  ;;  %v3030_v3 = vadd.f32 %v3029_v54, %v2912_v60  ;;  %v4186_v60 = vld [vmem:[#allocation4] sm:$0xa]  ;;  %v4168_v54 = vsel %vm15027_vm15, 0, %v4167_v61 }
 0x3c0   : > { %v3016_v25 = vadd.f32 %v3015_v15, %v2898_v46  ;;  %v4189_v15 = vld [vmem:[#allocation4 + $0x4] sm:$0xa]  ;;  %4169 = vst [vmem:[#allocation4] sm:$0x5] %v4168_v54  ;;  %v10227_v54 = vld [vmem:[#allocation22 + $0x380] sm:$0xf] }
 0x3c6   : > { %v3031_v27 = vpop.f32.mrf.mxu1 }
 0x3c7   : > { %v3017_v19 = vpop.f32.mrf.mxu3  ;;  %v3032_v18 = vadd.f32 %v3031_v27, %v2914_v49 }
 0x3c8   : > { %v3018_v59 = vadd.f32 %v3017_v19, %v2900_v10  ;;  %v4088_v19 = vperm.slane %v15019_v28, 1 }
 0x3ca   : > { %v3178_v57 = vpop.f32.mrf.mxu2 }
 0x3cb   : > { %v3197_v52 = vadd.f32 %v3178_v57, %v3016_v25  ;;  %v4171_v57 = vsel %vm15027_vm15, 0, %v4170_v7 }
 0x3cc   : > { %4172 = vst [vmem:[#allocation4 + $0x4] sm:$0x5] %v4171_v57  ;;  %v12657_v57 = vld [vmem:[#allocation22 + $0x38c] sm:$0xf0] }
 0x3cf   : > { %v3192_v23 = vpop.f32.mrf.mxu3 }
 0x3d0   : > { %v3317_v20 = vpop.f32.mrf.mxu0  ;;  %v3331_v39 = vpop.f32.mrf.mxu1  ;;  %v3198_v22 = vadd.f32 %v3192_v23, %v3030_v3  ;;  %v4195_v23 = vld [vmem:[#allocation4 + $0xc] sm:$0xa] }
 0x3d1   : > { %v3336_v29 = vadd.f32 %v3317_v20, %v3197_v52  ;;  %v12633_v20 = vld [vmem:[#allocation22 + $0x2cc] sm:$0xf0]  ;;  %v4196_v25 = vsel %vm15044_vm6, 0, %v4195_v23 }
 0x3d2   : > { %v3180_v33 = vpop.f32.mrf.mxu2  ;;  %v3337_v41 = vadd.f32 %v3331_v39, %v3198_v22  ;;  %v15042_v39 = vld [vmem:[#allocation20] sm:$0x3]  ;;  %4197 = vst [vmem:[#allocation4 + $0xc] sm:$0xa] %v4196_v25 }
 0x3d3   : > { %v3199_v62 = vadd.f32 %v3180_v33, %v3018_v59  ;;  %v10131_v33 = vld [vmem:[#allocation22 + $0x2c0] sm:$0xf]  ;;  %v10133_v59 = vld [vmem:[#allocation22 + $0x2d0] sm:$0xf0]  ;;  %v4097_v11 = vperm.slane %v15042_v39, 0  ;;  %v4098_v8 = vperm.slane %v15042_v39, 1 }
 0x3d7   : > { %v3194_v13 = vpop.f32.mrf.mxu3 }
 0x3d8   : > { %v3319_v34 = vpop.f32.mrf.mxu0  ;;  %v15007_v55 = vpop.f32.mrf.mxu1  ;;  %v3200_v12 = vadd.f32 %v3194_v13, %v3032_v18 }
 0x3d9   : > { %v3338_v16 = vadd.f32 %v3319_v34, %v3199_v62  ;;  %v10132_v34 = vor.u32 %v12633_v20, %v10131_v33  ;;  %v12663_v62 = vld [vmem:[#allocation22 + $0x3c4] sm:$0xf]  ;;  %v10101_v20 = vld [vmem:[#allocation22 + $0x290] sm:$0xf0] }
 0x3da   : > { %v3339_v52 = vadd.f32 %v15007_v55, %v3200_v12  ;;  %v10264_v55 = vor.u32 %v12663_v62, %v10261_v45  ;;  %v10245_v12 = vld [vmem:[#allocation22 + $0x3b0] sm:$0xf0]  ;;  %v12623_v33 = vld [vmem:[#allocation22 + $0x284] sm:$0xf] }
 0x3db   : > { %4765 = vmatpush.bf16.msra.mxu0 %v10132_v34  ;;  %v10104_v34 = vor.u32 %v12623_v33, %v10101_v20  ;;  %v10197_v33 = vld [vmem:[#allocation22 + $0x350] sm:$0xf0] }
 0x3dc   : > { %4804 = vmatpush.bf16.msra.mxu3 %v10264_v55  ;;  %v10085_v55 = vld [vmem:[#allocation22 + $0x270] sm:$0xf0] }
 0x3e0   : > { %v3476_v36 = vpop.f32.mrf.mxu2 }
 0x3e1   : > { %v3495_v4 = vadd.f32 %v3476_v36, %v3336_v29  ;;  %v12631_v29 = vld [vmem:[#allocation22 + $0x2c4] sm:$0xf] }
 0x3e2   : > { %v3490_v44 = vpop.f32.mrf.mxu3 }
 0x3e3   : > { %v3496_v38 = vadd.f32 %v3490_v44, %v3337_v41  ;;  %v10259_v44 = vld [vmem:[#allocation22 + $0x3c0] sm:$0xf] }
 0x3e4   : > { %v10115_v41 = vld [vmem:[#allocation22 + $0x2a0] sm:$0xf] }
 0x3e6   : > { %v3620_v26 = vpop.f32.mrf.mxu0 }
 0x3e7   : > { %v3639_v42 = vadd.f32 %v3620_v26, %v3495_v4  ;;  %v10136_v4 = vor.u32 %v12631_v29, %v10133_v59 }
 0x3e8   : > { %v3478_v56 = vpop.f32.mrf.mxu2 }
 0x3e9   : > { %v3497_v30 = vadd.f32 %v3478_v56, %v3338_v16  ;;  %v12665_v56 = vld [vmem:[#allocation22 + $0x3cc] sm:$0xf0]  ;;  %4791 = vmatpush.bf16.msra.mxu2 %v10136_v4  ;;  %v10117_v16 = vld [vmem:[#allocation22 + $0x2b0] sm:$0xf0] }
 0x3ea   : > { %v15009_v43 = vpop.f32.mrf.mxu3  ;;  %v10260_v3 = vor.u32 %v12665_v56, %v10259_v44  ;;  %v10120_v7 = vor.u32 %v12627_v6, %v10117_v16  ;;  %v12655_v44 = vld [vmem:[#allocation22 + $0x384] sm:$0xf]  ;;  %v10229_v56 = vld [vmem:[#allocation22 + $0x390] sm:$0xf0]  ;;  %v10195_v16 = vld [vmem:[#allocation22 + $0x340] sm:$0xf] }
 0x3eb   : > { %v3498_v24 = vadd.f32 %v15009_v43, %v3339_v52  ;;  %v10243_v43 = vld [vmem:[#allocation22 + $0x3a0] sm:$0xf]  ;;  %v10232_v52 = vor.u32 %v12655_v44, %v10229_v56 }
 0x3ec   : > { %4778 = vmatpush.bf16.msra.mxu1 %v10260_v3  ;;  %v10244_v18 = vor.u32 %v12661_v47, %v10243_v43  ;;  %v10211_v3 = vld [vmem:[#allocation22 + $0x360] sm:$0xf]  ;;  %v10213_v43 = vld [vmem:[#allocation22 + $0x370] sm:$0xf0] }
 0x3ed   : > { %4792 = vmatpush.bf16.msra.mxu2 %v10120_v7  ;;  %v10051_v56 = vld [vmem:[#allocation22 + $0x220] sm:$0xf] }
 0x3ee   : > { %v3634_v14 = vpop.f32.mrf.mxu1  ;;  %v15013_v50 = vpop.f32.mrf.mxu0 }
 0x3ef   : > { %v3640_v21 = vadd.f32 %v3634_v14, %v3496_v38  ;;  %v4187_v14 = vsel %vm15044_vm6, 0, %v4186_v60  ;;  %v10248_v60 = vor.u32 %v12659_v17, %v10245_v12 }
 0x3f0   : > { %4188 = vst [vmem:[#allocation4] sm:$0xa] %v4187_v14  ;;  %4779 = vmatpush.bf16.msra.mxu1 %v10244_v18 }
 0x3f1   : > { %4805 = vmatpush.bf16.msra.mxu3 %v10248_v60  ;;  %4793 = vmatpush.bf16.msra.mxu2 %v10104_v34 }
 0x3f5   : > { %4806 = vmatpush.bf16.msra.mxu3 %v10232_v52  ;;  %v12645_v52 = vld [vmem:[#allocation22 + $0x32c] sm:$0xf0] }
 0x3f6   : > { %v3759_v9 = vpop.f32.mrf.mxu2  ;;  %v15015_v35 = vpop.f32.mrf.mxu1 }
 0x3f7   : > { %v3778_v5 = vadd.f32 %v3759_v9, %v3639_v42  ;;  %v4190_v9 = vsel %vm15044_vm6, 0, %v4189_v15  ;;  %v12629_v42 = vld [vmem:[#allocation22 + $0x2ac] sm:$0xf0]  ;;  %v3642_v2 = vadd.f32 %v15015_v35, %v3498_v24 }
 0x3f8   : > { %4191 = vst [vmem:[#allocation4 + $0x4] sm:$0xa] %v4190_v9  ;;  %v10116_v58 = vor.u32 %v12629_v42, %v10115_v41  ;;  %v12625_v15 = vld [vmem:[#allocation22 + $0x28c] sm:$0xf0] }
 0x3fa   : > { %4766 = vmatpush.bf16.msra.mxu0 %v10116_v58  ;;  %v12651_v58 = vld [vmem:[#allocation22 + $0x364] sm:$0xf] }
 0x3fb   : > { %v10216_v47 = vor.u32 %v12651_v58, %v10213_v43  ;;  %v10035_v43 = vld [vmem:[#allocation22 + $0x200] sm:$0xf] }
 0x3fc   : > { %v3918_v1 = vpop.f32.mrf.mxu0 }
 0x3fd   : > { %v3937_v27 = vadd.f32 %v3918_v1, %v3778_v5  ;;  %4807 = vmatpush.bf16.msra.mxu3 %v10216_v47 }
 0x3fe   : > { %v15017_v53 = vpop.f32.mrf.mxu2 }
 0x3ff   : > { %v15011_v51 = vpop.f32.mrf.mxu3 }
 0x400   : > { %v3779_v13 = vadd.f32 %v15011_v51, %v3640_v21  ;;  %v3641_v51 = vadd.f32 %v15013_v50, %v3497_v30  ;;  %v10099_v30 = vld [vmem:[#allocation22 + $0x280] sm:$0xf] }
 0x402   : > { %v3780_v0 = vadd.f32 %v15017_v53, %v3641_v51  ;;  %v12621_v51 = vld [vmem:[#allocation22 + $0x26c] sm:$0xf0] }
 0x404   : > { %v3920_v53 = vpop.f32.mrf.mxu0 }
 0x405   : > { %v3939_v5 = vadd.f32 %v3920_v53, %v3780_v0  ;;  %v12653_v0 = vld [vmem:[#allocation22 + $0x36c] sm:$0xf0]  ;;  %v10067_v53 = vld [vmem:[#allocation22 + $0x240] sm:$0xf] }
 0x406   : > { %v10212_v42 = vor.u32 %v12653_v0, %v10211_v3 }
 0x407   : > { %v15022_v40 = vpop.f32.mrf.mxu3 }
 0x408   : > { %v3781_v1 = vadd.f32 %v15022_v40, %v3642_v2  ;;  %v10228_v40 = vor.u32 %v12657_v57, %v10227_v54  ;;  %v12617_v2 = vld [vmem:[#allocation22 + $0x24c] sm:$0xf0] }
 0x40a   : > { %4780 = vmatpush.bf16.msra.mxu1 %v10228_v40  ;;  %v12647_v40 = vld [vmem:[#allocation22 + $0x344] sm:$0xf] }
 0x40b   : > { %v10200_v36 = vor.u32 %v12647_v40, %v10197_v33 }
 0x40d   : > { %4808 = vmatpush.bf16.msra.mxu3 %v10200_v36  ;;  %v10123_v36 = vld [vmem:[#allocation22 + $0x2a8] sm:$0xf] }
 0x40e   : > { %v3932_v10 = vpop.f32.mrf.mxu1  ;;  %4781 = vmatpush.bf16.msra.mxu1 %v10212_v42 }
 0x40f   : > { %v3938_v22 = vadd.f32 %v3932_v10, %v3779_v13  ;;  %v15070_v10 = vld [vmem:[#allocation4] sm:$0xf] }
 0x410   : > { %v4242_v29 = vrot.slane %v15070_v10, 1  ;;  %v4243_v59 = vrot.slane %v15070_v10, 2 }
 0x412   : > { %v4250_v41 = vsel %vm15473_vm9, %v15070_v10, %v4242_v29  ;;  %v4328_v18 = vsel %vm15468_vm14, %v15070_v10, %v4242_v29  ;;  %vm4343_vm14 = vmor %vm4341_vm0, %vm4342_vm3  ;;  %vm4352_vm9 = vsmask.f32 7452 }
 0x415   : > { %v4062_v49 = vpop.f32.mrf.mxu2 }
 0x416   : > { %v4081_v26 = vadd.f32 %v4062_v49, %v3937_v27  ;;  %v3934_v38 = vpop.f32.mrf.mxu1  ;;  %v10100_v49 = vor.u32 %v12625_v15, %v10099_v30 }
 0x417   : > { %v3940_v32 = vadd.f32 %v3934_v38, %v3781_v1  ;;  %v12649_v38 = vld [vmem:[#allocation22 + $0x34c] sm:$0xf0]  ;;  %v10068_v1 = vor.u32 %v12617_v2, %v10067_v53 }
 0x418   : > { %v4091_v50 = vmul.f32 %v4087_v31, %v4081_v26  ;;  %4767 = vmatpush.bf16.msra.mxu0 %v10100_v49  ;;  %v10083_v26 = vld [vmem:[#allocation22 + $0x260] sm:$0xf]  ;;  %v12641_v2 = vld [vmem:[#allocation22 + $0x30c] sm:$0xf0] }
 0x419   : > { %v10084_v4 = vor.u32 %v12621_v51, %v10083_v26  ;;  %v12613_v26 = vld [vmem:[#allocation22 + $0x22c] sm:$0xf0]  ;;  %v12611_v51 = vld [vmem:[#allocation22 + $0x224] sm:$0xf] }
 0x41a   : > { %v4101_v21 = vadd.f32 %v4097_v11, %v4091_v50 }
 0x41c   : > { %v4105_v14 = vmax.f32 %v4101_v21, 0.0  ;;  %4768 = vmatpush.bf16.msra.mxu0 %v10084_v4  ;;  %v10196_v21 = vor.u32 %v12649_v38, %v10195_v16  ;;  %v10037_v38 = vld [vmem:[#allocation22 + $0x210] sm:$0xf0] }
 0x41d   : > { %v4064_v61 = vpop.f32.mrf.mxu2 }
 0x41e   : > { %v4083_v23 = vadd.f32 %v4064_v61, %v3939_v5  ;;  %4782 = vmatpush.bf16.msra.mxu1 %v10196_v21 }
 0x41f   : > { %v4076_v63 = vpop.f32.mrf.mxu3 }
 0x420   : > { %v4082_v48 = vadd.f32 %v4076_v63, %v3938_v22  ;;  %v4244_v22 = vrot.slane %v15070_v10, 3  ;;  %v4093_v62 = vmul.f32 %v4087_v31, %v4083_v23  ;;  %v12619_v63 = vld [vmem:[#allocation22 + $0x264] sm:$0xf]  ;;  %4769 = vmatpush.bf16.msra.mxu0 %v10068_v1  ;;  %v4173_v23 = vld [vmem:[#allocation4 + $0x8] sm:$0x5] }
 0x421   : > { %v4174_v29 = vsel %vm15027_vm15, 0, %v4173_v23 }
 0x422   : > { %v4092_v37 = vmul.f32 %v4088_v19, %v4082_v48  ;;  %v4254_v31 = vsel %vm15469_vm4, %v4243_v59, %v4244_v22  ;;  %v4330_v6 = vsel %vm15467_vm5, %v4243_v59, %v4244_v22  ;;  %v4103_v17 = vadd.f32 %v4097_v11, %v4093_v62  ;;  %v12615_v11 = vld [vmem:[#allocation22 + $0x244] sm:$0xf]  ;;  %v10053_v22 = vld [vmem:[#allocation22 + $0x230] sm:$0xf0]  ;;  %4175 = vst [vmem:[#allocation4 + $0x8] sm:$0x5] %v4174_v29 }
 0x423   : > { %v4332_v5 = vsel %vm15470_vm11, %v4328_v18, %v4330_v6  ;;  %v15091_v61 = vsel %vm1237_vm10, %v4250_v41, %v4254_v31  ;;  %vm4224_vm5 = vsmask.f32 1282  ;;  %vm4348_vm4 = vsmask.f32 5396  ;;  %vm4345_vm11 = vmor %vm4343_vm14, %vm4344_vm7  ;;  %v12609_v31 = vld [vmem:[#allocation22 + $0x20c] sm:$0xf0] }
 0x424   : > { %v4102_v35 = vadd.f32 %v4098_v8, %v4092_v37  ;;  %v4334_v7 = vrot.slane %v4332_v5, 1  ;;  %vm4227_vm14 = vsmask.f32 3338  ;;  %v4107_v20 = vmax.f32 %v4103_v17, 0.0  ;;  %v4230_v18 = vld [vmem:[#allocation4 + $0x4] sm:$0xf] }
 0x425   : > { %v10056_v58 = vor.u32 %v12611_v51, %v10053_v22  ;;  %v10036_v53 = vor.u32 %v12609_v31, %v10035_v43  ;;  %v12639_v5 = vld [vmem:[#allocation22 + $0x304] sm:$0xf]  ;;  %v10165_v17 = vld [vmem:[#allocation22 + $0x310] sm:$0xf0]  ;;  %v12666_v51 = vld [vmem:[#allocation22 + $0x3d4] sm:$0xf0] }
 0x426   : > { %v4106_v27 = vmax.f32 %v4102_v35, 0.0  ;;  %v4354_v35 = vshrl.u32 %v15091_v61, 16  ;;  %v4359_v60 = vshll.u32 %v4334_v7, 16  ;;  %v10168_v21 = vor.u32 %v12639_v5, %v10165_v17  ;;  %v12632_v22 = vld [vmem:[#allocation22 + $0x2cc] sm:$0xf] }
 0x427   : > { %v4078_v13 = vpop.f32.mrf.mxu3  ;;  %v12628_v43 = vld [vmem:[#allocation22 + $0x2ac] sm:$0xf]  ;;  %v10125_v31 = vld [vmem:[#allocation22 + $0x2b8] sm:$0xf0]  ;;  %v12658_v5 = vld [vmem:[#allocation22 + $0x394] sm:$0xf0] }
 0x428   : > { %v4113_v9 = vrot.slane %v4106_v27, 4  ;;  %v4084_v25 = vadd.f32 %v4078_v13, %v3940_v32  ;;  %v10069_v32 = vld [vmem:[#allocation22 + $0x250] sm:$0xf0]  ;;  %v4192_v27 = vld [vmem:[#allocation4 + $0x8] sm:$0xa] }
 0x429   : > { %v4193_v59 = vsel %vm15044_vm6, 0, %v4192_v27  ;;  %v12648_v62 = vld [vmem:[#allocation22 + $0x34c] sm:$0xf] }
 0x42a   : > { %v4116_v45 = vsel %vm15472_vm12, %v4113_v9, %v4105_v14  ;;  %v4094_v24 = vmul.f32 %v4088_v19, %v4084_v25  ;;  %v4115_v50 = vsel %vm15472_vm12, %v4105_v14, %v4113_v9  ;;  %v10088_v19 = vor.u32 %v12619_v63, %v10085_v55  ;;  %vm4347_vm12 = vmor %vm4345_vm11, %vm4346_vm1  ;;  %v10179_v25 = vld [vmem:[#allocation22 + $0x320] sm:$0xf]  ;;  %4194 = vst [vmem:[#allocation4 + $0x8] sm:$0xa] %v4193_v59 }
 0x42b   : > { %v4117_v48 = vrot.slane %v4116_v45, 4  ;;  %vm4349_vm8 = vmor %vm4347_vm12, %vm4348_vm4  ;;  %vm15536_vm1 = vcmask 1040384   ;;  %vm15540_vm12 = vcmask 1043456   ;;  %vm15543_vm4 = vcmask 1043458  }
 0x42c   : > { %v4104_v28 = vadd.f32 %v4098_v8, %v4094_v24  ;;  %4794 = vmatpush.bf16.msra.mxu2 %v10088_v19  ;;  %vm4351_vm3 = vmor %vm4349_vm8, %vm4350_vm13  ;;  %v10072_v24 = vor.u32 %v12615_v11, %v10069_v32  ;;  %v10052_v63 = vor.u32 %v12613_v26, %v10051_v56  ;;  %v10180_v55 = vor.u32 %v12645_v52, %v10179_v25  ;;  %v10157_v11 = vld [vmem:[#allocation22 + $0x2f8] sm:$0xf0]  ;;  %v12668_v32 = vld [vmem:[#allocation22 + $0x3ec] sm:$0xf] }
 0x42d   : > { %v4125_v37 = vmax.f32 %v4115_v50, %v4117_v48  ;;  %vm15537_vm11 = vmmov %vm15536_vm1  ;;  %v12643_v50 = vld [vmem:[#allocation22 + $0x324] sm:$0xf]  ;;  %v10181_v48 = vld [vmem:[#allocation22 + $0x330] sm:$0xf0]  ;;  %vm15550_vm8 = vcmask 1042434  }
 0x42e   : > { %v4108_v12 = vmax.f32 %v4104_v28, 0.0  ;;  %vm15102_vm7 = vmor %vm4351_vm3, %vm4352_vm9  ;;  %v10163_v28 = vld [vmem:[#allocation22 + $0x300] sm:$0xf]  ;;  %4770 = vmatpush.bf16.msra.mxu0 %v10052_v63  ;;  %v10184_v47 = vor.u32 %v12643_v50, %v10181_v48  ;;  %4783 = vmatpush.bf16.msra.mxu1 %v10180_v55  ;;  %v10139_v56 = vld [vmem:[#allocation22 + $0x2c8] sm:$0xf]  ;;  %vm15552_vm3 = vcmask 1043459  }
 0x42f   : > { %v10029_v8 = vrot.slane %v4125_v37, 9  ;;  %v4361_v9 = vsel %vm15102_vm7, %v4354_v35, %v4359_v60  ;;  %vm15115_vm9 = vmand %vm1237_vm10, %vm4224_vm5  ;;  %v10164_v16 = vor.u32 %v12641_v2, %v10163_v28  ;;  %v12638_v35 = vld [vmem:[#allocation22 + $0x2f4] sm:$0xf0]  ;;  %v10283_v60 = vld [vmem:[#allocation22 + $0x3e8] sm:$0xf] }
 0x430   : > { %v4114_v15 = vrot.slane %v4108_v12, 4  ;;  %4436 = vst [vmem:[#allocation1] ss:$9 sm:$0xff] %v4361_v9  ;;  %vm15121_vm13 = vmand %vm15543_vm4, %vm4227_vm14  ;;  %4795 = vmatpush.bf16.msra.mxu2 %v10072_v24  ;;  %v10155_v12 = vld [vmem:[#allocation22 + $0x2e8] sm:$0xf]  ;;  %4809 = vmatpush.bf16.msra.mxu3 %v10184_v47  ;;  %v10128_v47 = vor.u32 %v12628_v43, %v10125_v31  ;;  %vm15551_vm14 = vcmask 1041409  }
 0x431   : > { %v4135_v30 = vmax.f32 %v4125_v37, %v10029_v8  ;;  %vm15546_vm15 = vmmov %vm15540_vm12  ;;  %v12607_v37 = vld [vmem:[#allocation22 + $0x204] sm:$0xf]  ;;  %v12634_v26 = vld [vmem:[#allocation22 + $0x2d4] sm:$0xf0] }
 0x432   : > { %v4119_v3 = vsel %vm15540_vm12, %v4114_v15, %v4107_v20  ;;  %v4118_v46 = vsel %vm15546_vm15, %v4107_v20, %v4114_v15  ;;  %vm4229_vm5 = vmor %vm15121_vm13, %vm15115_vm9  ;;  %v10040_v1 = vor.u32 %v12607_v37, %v10037_v38  ;;  %v12670_v15 = vld [vmem:[#allocation22 + $0x3f4] sm:$0xf0]  ;;  %4771 = vmatpush.bf16.msra.mxu0 %v10036_v53  ;;  %4784 = vmatpush.bf16.msra.mxu1 %v10164_v16  ;;  %v10267_v52 = vld [vmem:[#allocation22 + $0x3c8] sm:$0xf] }
 0x433   : > { %v4139_v49 = vperm.slane %v4135_v30, 0  ;;  %v4140_v54 = vperm.slane %v4135_v30, 4  ;;  %v4147_v57 = vperm.slane %v4135_v30, 2  ;;  %v4148_v39 = vperm.slane %v4135_v30, 6  ;;  %vm15547_vm6 = vmmov %vm15536_vm1  ;;  %v12630_v63 = vld [vmem:[#allocation22 + $0x2b4] sm:$0xf0] }
 0x434   : > { %v4120_v45 = vrot.slane %v4119_v3, 4  ;;  %4796 = vmatpush.bf16.msra.mxu2 %v10056_v58  ;;  %vm15548_vm2 = vmmov %vm15536_vm1  ;;  %4810 = vmatpush.bf16.msra.mxu3 %v10168_v21  ;;  %v10140_v29 = vor.u32 %v12634_v26, %v10139_v56  ;;  %v10268_v59 = vor.u32 %v12666_v51, %v10267_v52  ;;  %v10124_v48 = vor.u32 %v12630_v63, %v10123_v36  ;;  %v12660_v28 = vld [vmem:[#allocation22 + $0x3ac] sm:$0xf]  ;;  %v10253_v53 = vld [vmem:[#allocation22 + $0x3b8] sm:$0xf0] }
 0x435   : > { %v4155_v13 = vsel %vm15536_vm1, %v4139_v49, %v4147_v57  ;;  %v4156_v34 = vsel %vm15537_vm11, %v4140_v54, %v4148_v39  ;;  %v10156_v54 = vor.u32 %v12638_v35, %v10155_v12  ;;  %v10284_v57 = vor.u32 %v12670_v15, %v10283_v60  ;;  %v12636_v39 = vld [vmem:[#allocation22 + $0x2ec] sm:$0xf]  ;;  %v10107_v2 = vld [vmem:[#allocation22 + $0x288] sm:$0xf]  ;;  %v12626_v37 = vld [vmem:[#allocation22 + $0x294] sm:$0xf0] }
 0x436   : > { %v4159_v14 = vpack.c.bf16 %v4156_v34, %v4155_v13  ;;  %v4126_v42 = vmax.f32 %v4118_v46, %v4120_v45  ;;  %v10160_v13 = vor.u32 %v12636_v39, %v10157_v11  ;;  %v10285_v34 = vld [vmem:[#allocation22 + $0x3f8] sm:$0xf0]  ;;  %v12664_v45 = vld [vmem:[#allocation22 + $0x3cc] sm:$0xf]  ;;  %v10256_v16 = vor.u32 %v12660_v28, %v10253_v53  ;;  %v10235_v38 = vld [vmem:[#allocation22 + $0x388] sm:$0xf] }
 0x437   : > { %4816 = vmatpush.bf16.msrb.mxu0 %v10156_v54  ;;  %4829 = vmatpush.bf16.msrb.mxu1 %v10284_v57  ;;  %v10288_v25 = vor.u32 %v12668_v32, %v10285_v34  ;;  %v10269_v46 = vld [vmem:[#allocation22 + $0x3d8] sm:$0xf0]  ;;  %v10236_v17 = vor.u32 %v12658_v5, %v10235_v38  ;;  %v12624_v12 = vld [vmem:[#allocation22 + $0x28c] sm:$0xf]  ;;  %v10091_v39 = vld [vmem:[#allocation22 + $0x268] sm:$0xf] }
 0x438   : > { %v4200_v4 = vrot.slane %v4159_v14, 2  ;;  %v10030_v6 = vrot.slane %v4126_v42, 9  ;;  %4797 = vmatpush.bf16.msra.mxu2 %v10040_v1  ;;  %v10272_v50 = vor.u32 %v12664_v45, %v10269_v46  ;;  %v4233_v15 = vld [vmem:[#allocation4 + $0x8] sm:$0xf]  ;;  %v12622_v11 = vld [vmem:[#allocation22 + $0x274] sm:$0xf0]  ;;  %vm15549_vm0 = vmmov %vm15536_vm1 }
 0x439   : > { %4855 = vmatpush.bf16.msrb.mxu3 %v10288_v25  ;;  %v10237_v57 = vld [vmem:[#allocation22 + $0x398] sm:$0xf0]  ;;  %vm15553_vm1 = vcmask 1042433   ;;  %v12650_v46 = vld [vmem:[#allocation22 + $0x354] sm:$0xf0]  ;;  %vm15554_vm11 = vmmov %vm15549_vm0 }
 0x43a   : > { %v4204_v41 = vsel %vm1237_vm10, %v4159_v14, %v4200_v4  ;;  %v4136_v30 = vmax.f32 %v4126_v42, %v10030_v6  ;;  %v10141_v4 = vld [vmem:[#allocation22 + $0x2d8] sm:$0xf0]  ;;  %v12662_v42 = vld [vmem:[#allocation22 + $0x3b4] sm:$0xf0]  ;;  %v12616_v36 = vld [vmem:[#allocation22 + $0x24c] sm:$0xf] }
 0x43b   : > { %v4208_v19 = vshrl.u32 %v4204_v41, 16  ;;  %v4211_v7 = vshll.u32 %v4204_v41, 16  ;;  %v10144_v24 = vor.u32 %v12632_v22, %v10141_v4  ;;  %4817 = vmatpush.bf16.msrb.mxu0 %v10140_v29  ;;  %4830 = vmatpush.bf16.msrb.mxu1 %v10268_v59  ;;  %v10251_v41 = vld [vmem:[#allocation22 + $0x3a8] sm:$0xf]  ;;  %v10221_v25 = vld [vmem:[#allocation22 + $0x378] sm:$0xf0]  ;;  %vm15555_vm12 = vmmov %vm15550_vm8 }
 0x43c   : > { %v4141_v23 = vperm.slane %v4136_v30, 0  ;;  %v4142_v27 = vperm.slane %v4136_v30, 4  ;;  %v4149_v40 = vperm.slane %v4136_v30, 2  ;;  %v4150_v33 = vperm.slane %v4136_v30, 6  ;;  %4842 = vmatpush.bf16.msrb.mxu2 %v10160_v13  ;;  %v10109_v30 = vld [vmem:[#allocation22 + $0x298] sm:$0xf0]  ;;  %vm15556_vm9 = vmmov %vm15551_vm14 }
 0x43d   : > { %v4210_v8 = vrot.slane %v4208_v19, 7  ;;  %v10252_v58 = vor.u32 %v12662_v42, %v10251_v41  ;;  %4856 = vmatpush.bf16.msrb.mxu3 %v10272_v50  ;;  %v10112_v54 = vor.u32 %v12624_v12, %v10109_v30  ;;  %v12620_v13 = vld [vmem:[#allocation22 + $0x26c] sm:$0xf]  ;;  %v10075_v29 = vld [vmem:[#allocation22 + $0x248] sm:$0xf]  ;;  %vm15557_vm4 = vmmov %vm15552_vm3 }
 0x43e   : > { %v4157_v14 = vsel %vm15547_vm6, %v4141_v23, %v4149_v40  ;;  %v4158_v9 = vsel %vm15548_vm2, %v4142_v27, %v4150_v33  ;;  %v10219_v33 = vld [vmem:[#allocation22 + $0x368] sm:$0xf]  ;;  %v12618_v59 = vld [vmem:[#allocation22 + $0x254] sm:$0xf0]  ;;  %v10205_v42 = vld [vmem:[#allocation22 + $0x358] sm:$0xf0] }
 0x43f   : > { %v4213_v49 = vor.u32 %v4211_v7, %v4210_v8  ;;  %v4160_v3 = vpack.c.bf16 %v4158_v9, %v4157_v14  ;;  %4818 = vmatpush.bf16.msrb.mxu0 %v10124_v48  ;;  %4831 = vmatpush.bf16.msrb.mxu1 %v10252_v58  ;;  %v10108_v7 = vor.u32 %v12626_v37, %v10107_v2  ;;  %v10093_v14 = vld [vmem:[#allocation22 + $0x278] sm:$0xf0]  ;;  %v12652_v9 = vld [vmem:[#allocation22 + $0x36c] sm:$0xf]  ;;  %v10059_v58 = vld [vmem:[#allocation22 + $0x228] sm:$0xf] }
 0x440   : > { %4843 = vmatpush.bf16.msrb.mxu2 %v10144_v24  ;;  %v10096_v45 = vor.u32 %v12620_v13, %v10093_v14  ;;  %v10203_v24 = vld [vmem:[#allocation22 + $0x348] sm:$0xf]  ;;  %v10224_v50 = vor.u32 %v12652_v9, %v10221_v25  ;;  %v10077_v48 = vld [vmem:[#allocation22 + $0x258] sm:$0xf0]  ;;  %v10076_v0 = vor.u32 %v12618_v59, %v10075_v29  ;;  %v12614_v31 = vld [vmem:[#allocation22 + $0x234] sm:$0xf0]  ;;  %v10208_v2 = vor.u32 %v12648_v62, %v10205_v42 }
 0x441   : > { %v4231_v20 = vsel %vm4229_vm5, %v4213_v49, %v4230_v18  ;;  %v4201_v55 = vrot.slane %v4160_v3, 2  ;;  %v12656_v49 = vld [vmem:[#allocation22 + $0x38c] sm:$0xf]  ;;  %4857 = vmatpush.bf16.msrb.mxu3 %v10256_v16  ;;  %v10204_v41 = vor.u32 %v12650_v46, %v10203_v24  ;;  %v10187_v28 = vld [vmem:[#allocation22 + $0x328] sm:$0xf]  ;;  %v10060_v16 = vor.u32 %v12614_v31, %v10059_v58  ;;  %vm15558_vm13 = vmmov %vm15553_vm1 }
 0x442   : > { %4232 = vst [vmem:[#allocation4 + $0x4] sm:$0xf] %v4231_v20  ;;  %v12654_v20 = vld [vmem:[#allocation22 + $0x374] sm:$0xf0]  ;;  %v10240_v51 = vor.u32 %v12656_v49, %v10237_v57  ;;  %v12612_v53 = vld [vmem:[#allocation22 + $0x22c] sm:$0xf]  ;;  %vm15559_vm15 = vmmov %vm15549_vm0 }
 0x443   : > { %v4207_v19 = vsel %vm1237_vm10, %v4160_v3, %v4201_v55  ;;  %4819 = vmatpush.bf16.msrb.mxu0 %v10108_v7  ;;  %4832 = vmatpush.bf16.msrb.mxu1 %v10236_v17  ;;  %v10092_v3 = vor.u32 %v12622_v11, %v10091_v39  ;;  %v10220_v4 = vor.u32 %v12654_v20, %v10219_v33  ;;  %v10061_v37 = vld [vmem:[#allocation22 + $0x238] sm:$0xf0]  ;;  %v10043_v5 = vld [vmem:[#allocation22 + $0x208] sm:$0xf]  ;;  %v12610_v7 = vld [vmem:[#allocation22 + $0x214] sm:$0xf0] }
 0x444   : > { %v4214_v18 = vshrl.u32 %v4207_v19, 16  ;;  %v4217_v6 = vshll.u32 %v4207_v19, 16  ;;  %4844 = vmatpush.bf16.msrb.mxu2 %v10128_v47  ;;  %v12646_v19 = vld [vmem:[#allocation22 + $0x334] sm:$0xf0]  ;;  %v10080_v47 = vor.u32 %v12616_v36, %v10077_v48  ;;  %v10171_v17 = vld [vmem:[#allocation22 + $0x308] sm:$0xf]  ;;  %v10044_v11 = vor.u32 %v12610_v7, %v10043_v5  ;;  %vm15561_vm6 = vmmov %vm15552_vm3 }
 0x445   : > { %4858 = vmatpush.bf16.msrb.mxu3 %v10240_v51  ;;  %v10188_v38 = vor.u32 %v12646_v19, %v10187_v28  ;;  %v12642_v12 = vld [vmem:[#allocation22 + $0x314] sm:$0xf0]  ;;  %v12608_v30 = vld [vmem:[#allocation22 + $0x20c] sm:$0xf]  ;;  %v10531_v57 = vld [vmem:[#allocation22 + $0x1e0] sm:$0xf] }
 0x446   : > { %v4216_v60 = vrot.slane %v4214_v18, 7  ;;  %v12644_v18 = vld [vmem:[#allocation22 + $0x32c] sm:$0xf]  ;;  %v12605_v39 = vld [vmem:[#allocation22 + $0x1ec] sm:$0xf0]  ;;  %vm15562_vm2 = vmmov %vm15550_vm8 }
 0x447   : > { %4820 = vmatpush.bf16.msrb.mxu0 %v10092_v3  ;;  %4833 = vmatpush.bf16.msrb.mxu1 %v10220_v4  ;;  %v10533_v13 = vld [vmem:[#allocation22 + $0x1f0] sm:$0xf0]  ;;  %v10532_v9 = vor.u32 %v12605_v39, %v10531_v57  ;;  %v10387_v25 = vld [vmem:[#allocation22 + $0xc0] sm:$0xf]  ;;  %v12601_v59 = vld [vmem:[#allocation22 + $0x1cc] sm:$0xf0] }
 0x448   : > { %v4219_v26 = vor.u32 %v4217_v6, %v4216_v60  ;;  %4845 = vmatpush.bf16.msrb.mxu2 %v10112_v54  ;;  %v10189_v6 = vld [vmem:[#allocation22 + $0x338] sm:$0xf0]  ;;  %v12573_v54 = vld [vmem:[#allocation22 + $0xec] sm:$0xf0]  ;;  %v10515_v29 = vld [vmem:[#allocation22 + $0x1c0] sm:$0xf] }
 0x449   : > { %v15139_v8 = vld [vmem:[#allocation4 + $0x4] sm:$0xf]  ;;  %4859 = vmatpush.bf16.msrb.mxu3 %v10224_v50  ;;  %v10173_v60 = vld [vmem:[#allocation22 + $0x318] sm:$0xf0]  ;;  %v10192_v49 = vor.u32 %v12644_v18, %v10189_v6  ;;  %v12599_v4 = vld [vmem:[#allocation22 + $0x1c4] sm:$0xf]  ;;  %v10516_v46 = vor.u32 %v12601_v59, %v10515_v29 }
 0x44a   : > { %v4245_v1 = vrot.slane %v15139_v8, 1  ;;  %v4246_v21 = vrot.slane %v15139_v8, 2  ;;  %v4247_v35 = vrot.slane %v15139_v8, 3  ;;  %v4234_v22 = vsel %vm4229_vm5, %v4219_v26, %v4233_v15  ;;  %v10403_v15 = vld [vmem:[#allocation22 + $0xe0] sm:$0xf]  ;;  %vm15560_vm5 = vmmov %vm15556_vm9 }
 0x44b   : > { %4235 = vst [vmem:[#allocation4 + $0x8] sm:$0xf] %v4234_v22  ;;  %4821 = vmatpush.bf16.msrb.mxu0 %v10076_v0  ;;  %4834 = vmatpush.bf16.msrb.mxu1 %v10204_v41  ;;  %v10404_v26 = vor.u32 %v12573_v54, %v10403_v15  ;;  %v12567_v22 = vld [vmem:[#allocation22 + $0xc4] sm:$0xf]  ;;  %v10371_v36 = vld [vmem:[#allocation22 + $0xa0] sm:$0xf] }
 0x44c   : > { %v4258_v32 = vsel %vm15549_vm0, %v15139_v8, %v4245_v1  ;;  %v4261_v23 = vsel %vm15550_vm8, %v4246_v21, %v4247_v35  ;;  %v4335_v27 = vsel %vm15551_vm14, %v15139_v8, %v4245_v1  ;;  %v4336_v40 = vsel %vm15552_vm3, %v4246_v21, %v4247_v35  ;;  %4846 = vmatpush.bf16.msrb.mxu2 %v10096_v45  ;;  %v10045_v1 = vld [vmem:[#allocation22 + $0x218] sm:$0xf0]  ;;  %v12640_v35 = vld [vmem:[#allocation22 + $0x30c] sm:$0xf]  ;;  %v10517_v45 = vld [vmem:[#allocation22 + $0x1d0] sm:$0xf0] }
 0x44d   : > { %v15151_v34 = vsel %vm1237_vm10, %v4258_v32, %v4261_v23  ;;  %v4337_v56 = vsel %vm15553_vm1, %v4335_v27, %v4336_v40  ;;  %v10064_v21 = vor.u32 %v12612_v53, %v10061_v37  ;;  %4860 = vmatpush.bf16.msrb.mxu3 %v10208_v2  ;;  %v10172_v32 = vor.u32 %v12642_v12, %v10171_v17  ;;  %v12571_v23 = vld [vmem:[#allocation22 + $0xe4] sm:$0xf]  ;;  %v10405_v27 = vld [vmem:[#allocation22 + $0xf0] sm:$0xf0]  ;;  %v10499_v48 = vld [vmem:[#allocation22 + $0x1a0] sm:$0xf] }
 0x44e   : > { %v4339_v52 = vrot.slane %v4337_v56, 1  ;;  %v4362_v63 = vshrl.u32 %v15151_v34, 16  ;;  %v12603_v40 = vld [vmem:[#allocation22 + $0x1e4] sm:$0xf]  ;;  %v10048_v56 = vor.u32 %v12608_v30, %v10045_v1  ;;  %v10176_v14 = vor.u32 %v12640_v35, %v10173_v60  ;;  %v12597_v0 = vld [vmem:[#allocation22 + $0x1ac] sm:$0xf0]  ;;  %vm15563_vm0 = vmmov %vm15553_vm1 }
 0x44f   : > { %4822 = vmatpush.bf16.msrb.mxu0 %v10060_v16  ;;  %4835 = vmatpush.bf16.msrb.mxu1 %v10188_v38  ;;  %v10408_v51 = vor.u32 %v12571_v23, %v10405_v27  ;;  %v10536_v3 = vor.u32 %v12603_v40, %v10533_v13  ;;  %v10520_v50 = vor.u32 %v12599_v4, %v10517_v45  ;;  %v12563_v41 = vld [vmem:[#allocation22 + $0xa4] sm:$0xf]  ;;  %v10373_v62 = vld [vmem:[#allocation22 + $0xb0] sm:$0xf0]  ;;  %v10355_v19 = vld [vmem:[#allocation22 + $0x80] sm:$0xf] }
 0x450   : > { %v4367_v55 = vshll.u32 %v4339_v52, 16  ;;  %4847 = vmatpush.bf16.msrb.mxu2 %v10080_v47  ;;  %v12569_v52 = vld [vmem:[#allocation22 + $0xcc] sm:$0xf0]  ;;  %v12595_v42 = vld [vmem:[#allocation22 + $0x1a4] sm:$0xf]  ;;  %v10500_v28 = vor.u32 %v12597_v0, %v10499_v48  ;;  %v10376_v53 = vor.u32 %v12563_v41, %v10373_v62  ;;  %vm8907_vm8 = vcmask 1045508  }
 0x451   : > { %4861 = vmatpush.bf16.msrb.mxu3 %v10192_v49  ;;  %v10388_v24 = vor.u32 %v12569_v52, %v10387_v25  ;;  %v10501_v58 = vld [vmem:[#allocation22 + $0x1b0] sm:$0xf0]  ;;  %v12561_v47 = vld [vmem:[#allocation22 + $0x8c] sm:$0xf0]  ;;  %v10483_v37 = vld [vmem:[#allocation22 + $0x180] sm:$0xf] }
 0x452   : > { %v15162_v43 = vsel %vm15102_vm7, %v4362_v63, %v4367_v55  ;;  %v12565_v63 = vld [vmem:[#allocation22 + $0xac] sm:$0xf0]  ;;  %v10504_v2 = vor.u32 %v12595_v42, %v10501_v58  ;;  %v12559_v6 = vld [vmem:[#allocation22 + $0x84] sm:$0xf]  ;;  %v10357_v16 = vld [vmem:[#allocation22 + $0x90] sm:$0xf0]  ;;  %v10356_v7 = vor.u32 %v12561_v47, %v10355_v19 }
 0x453   : > { %4439 = vst [vmem:[#allocation1 + $0x1] ss:$9 sm:$0xff] %v15162_v43  ;;  %4823 = vmatpush.bf16.msrb.mxu0 %v10044_v11  ;;  %4836 = vmatpush.bf16.msrb.mxu1 %v10172_v32  ;;  %v10372_v31 = vor.u32 %v12565_v63, %v10371_v36  ;;  %v12593_v18 = vld [vmem:[#allocation22 + $0x18c] sm:$0xf0]  ;;  %v12591_v38 = vld [vmem:[#allocation22 + $0x184] sm:$0xf]  ;;  %v10360_v1 = vor.u32 %v12559_v6, %v10357_v16 }
 0x454   : > { %4848 = vmatpush.bf16.msrb.mxu2 %v10064_v21  ;;  %v10485_v5 = vld [vmem:[#allocation22 + $0x190] sm:$0xf0]  ;;  %v10484_v17 = vor.u32 %v12593_v18, %v10483_v37  ;;  %v10339_v12 = vld [vmem:[#allocation22 + $0x60] sm:$0xf]  ;;  %v12557_v30 = vld [vmem:[#allocation22 + $0x6c] sm:$0xf0] }
 0x455   : > { %4862 = vmatpush.bf16.msrb.mxu3 %v10176_v14  ;;  %v10488_v21 = vor.u32 %v12591_v38, %v10485_v5  ;;  %v10467_v35 = vld [vmem:[#allocation22 + $0x160] sm:$0xf]  ;;  %v12589_v60 = vld [vmem:[#allocation22 + $0x16c] sm:$0xf0]  ;;  %v12555_v15 = vld [vmem:[#allocation22 + $0x64] sm:$0xf]  ;;  %v10340_v39 = vor.u32 %v12557_v30, %v10339_v12 }
 0x456   : > { %v10341_v49 = vld [vmem:[#allocation22 + $0x70] sm:$0xf0]  ;;  %v12587_v54 = vld [vmem:[#allocation22 + $0x164] sm:$0xf]  ;;  %v10468_v11 = vor.u32 %v12589_v60, %v10467_v35  ;;  %v10323_v32 = vld [vmem:[#allocation22 + $0x40] sm:$0xf] }
 0x457   : > { %v10469_v57 = vld [vmem:[#allocation22 + $0x170] sm:$0xf0]  ;;  %v12553_v23 = vld [vmem:[#allocation22 + $0x4c] sm:$0xf0]  ;;  %v10344_v27 = vor.u32 %v12555_v15, %v10341_v49  ;;  %v10451_v13 = vld [vmem:[#allocation22 + $0x140] sm:$0xf] }
 0x458   : > { %4849 = vmatpush.bf16.msrb.mxu2 %v10048_v56  ;;  %v10472_v40 = vor.u32 %v12587_v54, %v10469_v57  ;;  %v12585_v56 = vld [vmem:[#allocation22 + $0x14c] sm:$0xf0]  ;;  %v10325_v14 = vld [vmem:[#allocation22 + $0x50] sm:$0xf0]  ;;  %v10324_v52 = vor.u32 %v12553_v23, %v10323_v32  ;;  %v10435_v59 = vld [vmem:[#allocation22 + $0x120] sm:$0xf] }
 0x459   : > { %v10453_v25 = vld [vmem:[#allocation22 + $0x150] sm:$0xf0]  ;;  %v10452_v29 = vor.u32 %v12585_v56, %v10451_v13  ;;  %v10419_v0 = vld [vmem:[#allocation22 + $0x100] sm:$0xf]  ;;  %v12577_v41 = vld [vmem:[#allocation22 + $0x10c] sm:$0xf0] }
 0x45a   : > { %v15165_v33 = vld [vmem:[#allocation1] sm:$0xff]  ;;  %v15167_v20 = vld [vmem:[#allocation1 + $0x9] sm:$0xff]  ;;  %v12606_v37 = vld [vmem:[#allocation22 + $0x1f4] sm:$0xf0]  ;;  %v10420_v16 = vor.u32 %v12577_v41, %v10419_v0  ;;  %vm8912_vm14 = vcmask 1045506   ;;  %vm15565_vm3 = vcmask 1045504  }
 0x45b   : > { %4772 = vmatmul.bf16.vlgmr.msra.gmra.mxu0 %v15165_v33  ;;  %4868 = vst [vmem:[#allocation1] ss:$9 sm:$0xff] %v15091_v61  ;;  %4785 = vmatmul.bf16.vlgmr.msra.gmra.mxu1 %v15167_v20  ;;  %v10389_v61 = vld [vmem:[#allocation22 + $0xd0] sm:$0xf0]  ;;  %v12543_v62 = vld [vmem:[#allocation22 + $0x4] sm:$0xf] }
 0x45c   : > { %4870 = vst [vmem:[#allocation1 + $0x1] ss:$9 sm:$0xff] %v15151_v34  ;;  %4798 = vmatmul.bf16.vlgmr.msra.gmra.mxu2 %v15165_v33  ;;  %4811 = vmatmul.bf16.vlgmr.msra.gmra.mxu3 %v15167_v20  ;;  %v10392_v55 = vor.u32 %v12567_v22, %v10389_v61  ;;  %v12581_v22 = vld [vmem:[#allocation22 + $0x12c] sm:$0xf0]  ;;  %v10437_v36 = vld [vmem:[#allocation22 + $0x130] sm:$0xf0] }
 0x45d   : > { %5195 = vmatpush.bf16.msra.mxu0 %v10404_v26  ;;  %5208 = vmatpush.bf16.msra.mxu1 %v10532_v9  ;;  %v12551_v26 = vld [vmem:[#allocation22 + $0x44] sm:$0xf]  ;;  %v10436_v48 = vor.u32 %v12581_v22, %v10435_v59  ;;  %v10421_v47 = vld [vmem:[#allocation22 + $0x110] sm:$0xf0]  ;;  %v12572_v18 = vld [vmem:[#allocation22 + $0xec] sm:$0xf] }
 0x45e   : > { %5221 = vmatpush.bf16.msra.mxu2 %v10408_v51  ;;  %5234 = vmatpush.bf16.msra.mxu3 %v10536_v3  ;;  %v12583_v9 = vld [vmem:[#allocation22 + $0x144] sm:$0xf]  ;;  %v10307_v51 = vld [vmem:[#allocation22 + $0x20] sm:$0xf]  ;;  %v12549_v3 = vld [vmem:[#allocation22 + $0x2c] sm:$0xf0]  ;;  %v10328_v4 = vor.u32 %v12551_v26, %v10325_v14 }
 0x45f   : > { %v10456_v45 = vor.u32 %v12583_v9, %v10453_v25  ;;  %v10308_v63 = vor.u32 %v12549_v3, %v10307_v51  ;;  %v12575_v19 = vld [vmem:[#allocation22 + $0x104] sm:$0xf]  ;;  %v10413_v6 = vld [vmem:[#allocation22 + $0xf8] sm:$0xf0]  ;;  %v12604_v5 = vld [vmem:[#allocation22 + $0x1ec] sm:$0xf] }
 0x460   : > { %v10424_v30 = vor.u32 %v12575_v19, %v10421_v47  ;;  %v12570_v35 = vld [vmem:[#allocation22 + $0xd4] sm:$0xf0]  ;;  %v10416_v15 = vor.u32 %v12572_v18, %v10413_v6  ;;  %v10523_v49 = vld [vmem:[#allocation22 + $0x1c8] sm:$0xf]  ;;  %v12600_v32 = vld [vmem:[#allocation22 + $0x1cc] sm:$0xf] }
 0x461   : > { %5196 = vmatpush.bf16.msra.mxu0 %v10388_v24  ;;  %5209 = vmatpush.bf16.msra.mxu1 %v10516_v46  ;;  %v10309_v24 = vld [vmem:[#allocation22 + $0x30] sm:$0xf0]  ;;  %v12602_v54 = vld [vmem:[#allocation22 + $0x1d4] sm:$0xf0]  ;;  %v10525_v23 = vld [vmem:[#allocation22 + $0x1d8] sm:$0xf0] }
 0x462   : > { %5222 = vmatpush.bf16.msra.mxu2 %v10392_v55  ;;  %5235 = vmatpush.bf16.msra.mxu3 %v10520_v50  ;;  %v10291_v55 = vld [vmem:[#allocation22] sm:$0xf]  ;;  %v12545_v50 = vld [vmem:[#allocation22 + $0xc] sm:$0xf0]  ;;  %v10379_v56 = vld [vmem:[#allocation22 + $0xa8] sm:$0xf]  ;;  %v10528_v9 = vor.u32 %v12600_v32, %v10525_v23 }
 0x463   : > { %v15179_v61 = vld [vmem:[#allocation1] sm:$0xff]  ;;  %v15181_v46 = vld [vmem:[#allocation1 + $0x9] sm:$0xff]  ;;  %v12566_v26 = vld [vmem:[#allocation22 + $0xb4] sm:$0xf0]  ;;  %vm15566_vm1 = vcmask 1043456  }
 0x464   : > { %5299 = vst [vmem:[#allocation1] sm:$0xff] %v15070_v10  ;;  %v12574_v10 = vld [vmem:[#allocation22 + $0xf4] sm:$0xf0]  ;;  %v10507_v14 = vld [vmem:[#allocation22 + $0x1a8] sm:$0xf]  ;;  %v10380_v59 = vor.u32 %v12566_v26, %v10379_v56 }
 0x465   : > { %5197 = vmatpush.bf16.msra.mxu0 %v10372_v31  ;;  %5210 = vmatpush.bf16.msra.mxu1 %v10500_v28  ;;  %5302 = vst [vmem:[#allocation1 + $0x10] sm:$0xff] %v15139_v8  ;;  %v10293_v31 = vld [vmem:[#allocation22 + $0x10] sm:$0xf0]  ;;  %v10411_v28 = vld [vmem:[#allocation22 + $0xe8] sm:$0xf] }
 0x466   : > { %5223 = vmatpush.bf16.msra.mxu2 %v10376_v53  ;;  %5236 = vmatpush.bf16.msra.mxu3 %v10504_v2  ;;  %v10539_v53 = vld [vmem:[#allocation22 + $0x1e8] sm:$0xf]  ;;  %v10292_v2 = vor.u32 %v12545_v50, %v10291_v55  ;;  %v10412_v38 = vor.u32 %v12574_v10, %v10411_v28  ;;  %v10296_v12 = vor.u32 %v12543_v62, %v10293_v31  ;;  %v12598_v25 = vld [vmem:[#allocation22 + $0x1b4] sm:$0xf0]  ;;  %v10381_v51 = vld [vmem:[#allocation22 + $0xb8] sm:$0xf0] }
 0x467   : > { %v10540_v60 = vor.u32 %v12606_v37, %v10539_v53  ;;  %v12596_v3 = vld [vmem:[#allocation22 + $0x1ac] sm:$0xf]  ;;  %v10508_v22 = vor.u32 %v12598_v25, %v10507_v14  ;;  %v10365_v55 = vld [vmem:[#allocation22 + $0x98] sm:$0xf0]  ;;  %v10475_v31 = vld [vmem:[#allocation22 + $0x168] sm:$0xf] }
 0x468   : > { %v12592_v50 = vld [vmem:[#allocation22 + $0x18c] sm:$0xf]  ;;  %v12590_v10 = vld [vmem:[#allocation22 + $0x174] sm:$0xf0]  ;;  %v10349_v47 = vld [vmem:[#allocation22 + $0x78] sm:$0xf0] }
 0x469   : > { %5198 = vmatpush.bf16.msra.mxu0 %v10356_v7  ;;  %5211 = vmatpush.bf16.msra.mxu1 %v10484_v17  ;;  %v10541_v7 = vld [vmem:[#allocation22 + $0x1f8] sm:$0xf0]  ;;  %v12556_v19 = vld [vmem:[#allocation22 + $0x6c] sm:$0xf]  ;;  %v10476_v18 = vor.u32 %v12590_v10, %v10475_v31  ;;  %v10299_v56 = vld [vmem:[#allocation22 + $0x8] sm:$0xf] }
 0x46a   : > { %5224 = vmatpush.bf16.msra.mxu2 %v10360_v1  ;;  %5237 = vmatpush.bf16.msra.mxu3 %v10488_v21  ;;  %v10395_v21 = vld [vmem:[#allocation22 + $0xc8] sm:$0xf]  ;;  %v10544_v57 = vor.u32 %v12604_v5, %v10541_v7  ;;  %v12588_v53 = vld [vmem:[#allocation22 + $0x16c] sm:$0xf]  ;;  %v10352_v6 = vor.u32 %v12556_v19, %v10349_v47  ;;  %v10317_v23 = vld [vmem:[#allocation22 + $0x38] sm:$0xf0] }
 0x46b   : > { %4824 = vmatmul.bf16.vlgmr.msrb.gmra.mxu0 %v15165_v33  ;;  %4837 = vmatmul.bf16.vlgmr.msrb.gmra.mxu1 %v15167_v20  ;;  %v5301_v17 = vld [vmem:[#allocation1 + $0x1] ss:$2 sm:$0xff]  ;;  %v12546_v26 = vld [vmem:[#allocation22 + $0x14] sm:$0xf0]  ;;  %v10643_v31 = vld [vmem:[#allocation22 + $0x4c0] sm:$0xf] }
 0x46c   : > { %4850 = vmatmul.bf16.vlgmr.msrb.gmra.mxu2 %v15165_v33  ;;  %4863 = vmatmul.bf16.vlgmr.msrb.gmra.mxu3 %v15167_v20  ;;  %v12547_v33 = vld [vmem:[#allocation22 + $0x24] sm:$0xf]  ;;  %v5304_v1 = vld [vmem:[#allocation1 + $0x11] ss:$2 sm:$0xff]  ;;  %v10459_v5 = vld [vmem:[#allocation22 + $0x148] sm:$0xf] }
 0x46d   : > { %5199 = vmatpush.bf16.msra.mxu0 %v10340_v39  ;;  %5212 = vmatpush.bf16.msra.mxu1 %v10468_v11  ;;  %v12579_v20 = vld [vmem:[#allocation22 + $0x124] sm:$0xf]  ;;  %v10312_v42 = vor.u32 %v12547_v33, %v10309_v24  ;;  %5370 = vst [vmem:[#allocation1] ss:$9 sm:$0xff] %v5301_v17  ;;  %v12568_v39 = vld [vmem:[#allocation22 + $0xcc] sm:$0xf] }
 0x46e   : > { %5225 = vmatpush.bf16.msra.mxu2 %v10344_v27  ;;  %5238 = vmatpush.bf16.msra.mxu3 %v10472_v40  ;;  %v10440_v58 = vor.u32 %v12579_v20, %v10437_v36  ;;  %5372 = vst [vmem:[#allocation1 + $0x1] ss:$9 sm:$0xff] %v5304_v1  ;;  %v10397_v11 = vld [vmem:[#allocation22 + $0xd8] sm:$0xf0]  ;;  %v10396_v27 = vor.u32 %v12570_v35, %v10395_v21  ;;  %v12562_v33 = vld [vmem:[#allocation22 + $0x94] sm:$0xf0] }
 0x46f   : > { %v10524_v40 = vor.u32 %v12602_v54, %v10523_v49  ;;  %v10400_v13 = vor.u32 %v12568_v39, %v10397_v11  ;;  %v10491_v24 = vld [vmem:[#allocation22 + $0x188] sm:$0xf]  ;;  %v12594_v36 = vld [vmem:[#allocation22 + $0x194] sm:$0xf0]  ;;  %v12584_v1 = vld [vmem:[#allocation22 + $0x14c] sm:$0xf] }
 0x470   : > { %v10492_v41 = vor.u32 %v12594_v36, %v10491_v24  ;;  %v12586_v17 = vld [vmem:[#allocation22 + $0x154] sm:$0xf0]  ;;  %v10461_v21 = vld [vmem:[#allocation22 + $0x158] sm:$0xf0]  ;;  %v10315_v49 = vld [vmem:[#allocation22 + $0x28] sm:$0xf]  ;;  %v10300_v24 = vor.u32 %v12546_v26, %v10299_v56 }
 0x471   : > { %5200 = vmatpush.bf16.msra.mxu0 %v10324_v52  ;;  %5213 = vmatpush.bf16.msra.mxu1 %v10452_v29  ;;  %v12564_v52 = vld [vmem:[#allocation22 + $0xac] sm:$0xf]  ;;  %v10509_v29 = vld [vmem:[#allocation22 + $0x1b8] sm:$0xf0]  ;;  %v12550_v54 = vld [vmem:[#allocation22 + $0x34] sm:$0xf0]  ;;  %v10464_v39 = vor.u32 %v12584_v1, %v10461_v21 }
 0x472   : > { %5226 = vmatpush.bf16.msra.mxu2 %v10328_v4  ;;  %5239 = vmatpush.bf16.msra.mxu3 %v10456_v45  ;;  %v10384_v4 = vor.u32 %v12564_v52, %v10381_v51  ;;  %v10363_v45 = vld [vmem:[#allocation22 + $0x88] sm:$0xf]  ;;  %v10512_v20 = vor.u32 %v12596_v3, %v10509_v29  ;;  %v12582_v11 = vld [vmem:[#allocation22 + $0x134] sm:$0xf0]  ;;  %v12548_v32 = vld [vmem:[#allocation22 + $0x2c] sm:$0xf] }
 0x473   : > { %v10364_v0 = vor.u32 %v12562_v33, %v10363_v45  ;;  %v10427_v25 = vld [vmem:[#allocation22 + $0x108] sm:$0xf]  ;;  %v12578_v52 = vld [vmem:[#allocation22 + $0x114] sm:$0xf0]  ;;  %v12544_v51 = vld [vmem:[#allocation22 + $0xc] sm:$0xf] }
 0x474   : > { %v10301_v29 = vld [vmem:[#allocation22 + $0x18] sm:$0xf0]  ;;  %v12701_v45 = vld [vmem:[#allocation22 + $0x4ec] sm:$0xf0]  ;;  %v10787_v33 = vld [vmem:[#allocation22 + $0x5e0] sm:$0xf] }
 0x475   : > { %5201 = vmatpush.bf16.msra.mxu0 %v10308_v63  ;;  %5214 = vmatpush.bf16.msra.mxu1 %v10436_v48  ;;  %v12560_v63 = vld [vmem:[#allocation22 + $0x8c] sm:$0xf]  ;;  %v10493_v48 = vld [vmem:[#allocation22 + $0x198] sm:$0xf0]  ;;  %v12699_v36 = vld [vmem:[#allocation22 + $0x4e4] sm:$0xf] }
 0x476   : > { %5227 = vmatpush.bf16.msra.mxu2 %v10312_v42  ;;  %5240 = vmatpush.bf16.msra.mxu3 %v10440_v58  ;;  %v10368_v62 = vor.u32 %v12560_v63, %v10365_v55  ;;  %v10347_v42 = vld [vmem:[#allocation22 + $0x68] sm:$0xf]  ;;  %v12558_v58 = vld [vmem:[#allocation22 + $0x74] sm:$0xf0]  ;;  %v10496_v28 = vor.u32 %v12592_v50, %v10493_v48  ;;  %v10661_v63 = vld [vmem:[#allocation22 + $0x4f0] sm:$0xf0]  ;;  %v10428_v55 = vor.u32 %v12578_v52, %v10427_v25 }
 0x477   : > { %v10348_v37 = vor.u32 %v12558_v58, %v10347_v42  ;;  %v10304_v50 = vor.u32 %v12544_v51, %v10301_v29  ;;  %v12731_v48 = vld [vmem:[#allocation22 + $0x5e4] sm:$0xf]  ;;  %v10664_v58 = vor.u32 %v12699_v36, %v10661_v63  ;;  %v10771_v10 = vld [vmem:[#allocation22 + $0x5c0] sm:$0xf]  ;;  %v12729_v47 = vld [vmem:[#allocation22 + $0x5cc] sm:$0xf0] }
 0x478   : > { %v10629_v1 = vld [vmem:[#allocation22 + $0x4b0] sm:$0xf0]  ;;  %v12717_v63 = vld [vmem:[#allocation22 + $0x56c] sm:$0xf0] }
 0x479   : > { %5202 = vmatpush.bf16.msra.mxu0 %v10292_v2  ;;  %5215 = vmatpush.bf16.msra.mxu1 %v10420_v16  ;;  %v10477_v2 = vld [vmem:[#allocation22 + $0x178] sm:$0xf0]  ;;  %v10331_v16 = vld [vmem:[#allocation22 + $0x48] sm:$0xf]  ;;  %v10613_v25 = vld [vmem:[#allocation22 + $0x490] sm:$0xf0] }
 0x47a   : > { %5228 = vmatpush.bf16.msra.mxu2 %v10296_v12  ;;  %5241 = vmatpush.bf16.msra.mxu3 %v10424_v30  ;;  %v10480_v7 = vor.u32 %v12588_v53, %v10477_v2  ;;  %v12552_v12 = vld [vmem:[#allocation22 + $0x4c] sm:$0xf]  ;;  %v10333_v30 = vld [vmem:[#allocation22 + $0x58] sm:$0xf0]  ;;  %v12695_v53 = vld [vmem:[#allocation22 + $0x4c4] sm:$0xf] }
 0x47b   : > { %v10645_v2 = vld [vmem:[#allocation22 + $0x4d0] sm:$0xf0] }
 0x47c   : > { %5203 = vmatmul.bf16.vlgmr.msra.gmra.mxu0 %v15179_v61  ;;  %5216 = vmatmul.bf16.vlgmr.msra.gmra.mxu1 %v15181_v46  ;;  %v10741_v29 = vld [vmem:[#allocation22 + $0x590] sm:$0xf0] }
 0x47d   : > { %5247 = vmatpush.bf16.msrb.mxu0 %v10412_v38  ;;  %5260 = vmatpush.bf16.msrb.mxu1 %v10540_v60  ;;  %v12554_v38 = vld [vmem:[#allocation22 + $0x54] sm:$0xf0]  ;;  %v10460_v60 = vor.u32 %v12586_v17, %v10459_v5  ;;  %v10755_v5 = vld [vmem:[#allocation22 + $0x5a0] sm:$0xf]  ;;  %v10648_v17 = vor.u32 %v12695_v53, %v10645_v2  ;;  %v12679_v53 = vld [vmem:[#allocation22 + $0x444] sm:$0xf] }
 0x47e   : > { %5273 = vmatpush.bf16.msrb.mxu2 %v10416_v15  ;;  %5286 = vmatpush.bf16.msrb.mxu3 %v10544_v57  ;;  %v10332_v35 = vor.u32 %v12554_v38, %v10331_v16  ;;  %v10336_v15 = vor.u32 %v12552_v12, %v10333_v30  ;;  %v10443_v57 = vld [vmem:[#allocation22 + $0x128] sm:$0xf]  ;;  %v10627_v16 = vld [vmem:[#allocation22 + $0x4a0] sm:$0xf]  ;;  %v12693_v38 = vld [vmem:[#allocation22 + $0x4ac] sm:$0xf0] }
 0x47f   : > { %5229 = vmatmul.bf16.vlgmr.msra.gmra.mxu2 %v15179_v61  ;;  %5242 = vmatmul.bf16.vlgmr.msra.gmra.mxu3 %v15181_v46  ;;  %v10444_v14 = vor.u32 %v12582_v11, %v10443_v57  ;;  %v12725_v12 = vld [vmem:[#allocation22 + $0x5ac] sm:$0xf0]  ;;  %v12691_v30 = vld [vmem:[#allocation22 + $0x4a4] sm:$0xf]  ;;  %v10581_v2 = vld [vmem:[#allocation22 + $0x450] sm:$0xf0] }
 0x481   : > { %5248 = vmatpush.bf16.msrb.mxu0 %v10396_v27  ;;  %5261 = vmatpush.bf16.msrb.mxu1 %v10524_v40  ;;  %v12580_v27 = vld [vmem:[#allocation22 + $0x12c] sm:$0xf]  ;;  %v10445_v40 = vld [vmem:[#allocation22 + $0x138] sm:$0xf0] }
 0x482   : > { %5274 = vmatpush.bf16.msrb.mxu2 %v10400_v13  ;;  %5287 = vmatpush.bf16.msrb.mxu3 %v10528_v9  ;;  %v10316_v13 = vor.u32 %v12550_v54, %v10315_v49  ;;  %v10320_v9 = vor.u32 %v12548_v32, %v10317_v23  ;;  %v10448_v3 = vor.u32 %v12580_v27, %v10445_v40  ;;  %v15194_v49 = vld [vmem:[#allocation1] sm:$0xff]  ;;  %v15196_v54 = vld [vmem:[#allocation1 + $0x9] sm:$0xff]  ;;  %v10611_v27 = vld [vmem:[#allocation22 + $0x480] sm:$0xf] }
 0x483   : > { %v10628_v32 = vor.u32 %v12693_v38, %v10627_v16  ;;  %v10756_v23 = vor.u32 %v12725_v12, %v10755_v5  ;;  %5881 = vst [vmem:[#allocation1] ss:$9 sm:$0xff] %v15151_v34  ;;  %v12689_v40 = vld [vmem:[#allocation22 + $0x48c] sm:$0xf0]  ;;  %v10691_v5 = vld [vmem:[#allocation22 + $0x520] sm:$0xf] }
 0x484   : > { %v12677_v16 = vld [vmem:[#allocation22 + $0x42c] sm:$0xf0] }
 0x485   : > { %5249 = vmatpush.bf16.msrb.mxu0 %v10380_v59  ;;  %5262 = vmatpush.bf16.msrb.mxu1 %v10508_v22  ;;  %v12576_v59 = vld [vmem:[#allocation22 + $0x10c] sm:$0xf]  ;;  %v10429_v22 = vld [vmem:[#allocation22 + $0x118] sm:$0xf0] }
 0x486   : > { %5275 = vmatpush.bf16.msrb.mxu2 %v10384_v4  ;;  %5288 = vmatpush.bf16.msrb.mxu3 %v10512_v20  ;;  %v10659_v4 = vld [vmem:[#allocation22 + $0x4e0] sm:$0xf]  ;;  %v12733_v20 = vld [vmem:[#allocation22 + $0x5ec] sm:$0xf0] }
 0x487   : > { %v10788_v42 = vor.u32 %v12733_v20, %v10787_v33  ;;  %v12685_v33 = vld [vmem:[#allocation22 + $0x46c] sm:$0xf0] }
 0x489   : > { %5250 = vmatpush.bf16.msrb.mxu0 %v10364_v0  ;;  %5263 = vmatpush.bf16.msrb.mxu1 %v10492_v41  ;;  %v10789_v0 = vld [vmem:[#allocation22 + $0x5f0] sm:$0xf0]  ;;  %v10432_v41 = vor.u32 %v12576_v59, %v10429_v22  ;;  %v10612_v59 = vor.u32 %v12689_v40, %v10611_v27  ;;  %v12673_v27 = vld [vmem:[#allocation22 + $0x40c] sm:$0xf0]  ;;  %v10675_v40 = vld [vmem:[#allocation22 + $0x500] sm:$0xf] }
 0x48a   : > { %5276 = vmatpush.bf16.msrb.mxu2 %v10368_v62  ;;  %5289 = vmatpush.bf16.msrb.mxu3 %v10496_v28  ;;  %v10660_v62 = vor.u32 %v12701_v45, %v10659_v4  ;;  %v12697_v28 = vld [vmem:[#allocation22 + $0x4cc] sm:$0xf0]  ;;  %v10792_v19 = vor.u32 %v12731_v48, %v10789_v0  ;;  %v10595_v45 = vld [vmem:[#allocation22 + $0x460] sm:$0xf]  ;;  %v12715_v48 = vld [vmem:[#allocation22 + $0x564] sm:$0xf] }
 0x48b   : > { %v10725_v0 = vld [vmem:[#allocation22 + $0x570] sm:$0xf0] }
 0x48d   : > { %5251 = vmatpush.bf16.msrb.mxu0 %v10348_v37  ;;  %5264 = vmatpush.bf16.msrb.mxu1 %v10476_v18  ;;  %v12727_v37 = vld [vmem:[#allocation22 + $0x5c4] sm:$0xf]  ;;  %v10773_v18 = vld [vmem:[#allocation22 + $0x5d0] sm:$0xf0] }
 0x48e   : > { %5277 = vmatpush.bf16.msrb.mxu2 %v10352_v6  ;;  %5290 = vmatpush.bf16.msrb.mxu3 %v10480_v7  ;;  %v10644_v6 = vor.u32 %v12697_v28, %v10643_v31  ;;  %v10772_v7 = vor.u32 %v12729_v47, %v10771_v10  ;;  %v10776_v21 = vor.u32 %v12727_v37, %v10773_v18  ;;  %v12681_v28 = vld [vmem:[#allocation22 + $0x44c] sm:$0xf0]  ;;  %v10707_v10 = vld [vmem:[#allocation22 + $0x540] sm:$0xf]  ;;  %v12711_v37 = vld [vmem:[#allocation22 + $0x544] sm:$0xf] }
 0x48f   : > { %v10728_v47 = vor.u32 %v12715_v48, %v10725_v0  ;;  %v10709_v18 = vld [vmem:[#allocation22 + $0x550] sm:$0xf0]  ;;  %v10651_v0 = vld [vmem:[#allocation22 + $0x4c8] sm:$0xf] }
 0x491   : > { %5252 = vmatpush.bf16.msrb.mxu0 %v10332_v35  ;;  %5265 = vmatpush.bf16.msrb.mxu1 %v10460_v60  ;;  %v12723_v35 = vld [vmem:[#allocation22 + $0x5a4] sm:$0xf]  ;;  %v10757_v60 = vld [vmem:[#allocation22 + $0x5b0] sm:$0xf0] }
 0x492   : > { %5278 = vmatpush.bf16.msrb.mxu2 %v10336_v15  ;;  %5291 = vmatpush.bf16.msrb.mxu3 %v10464_v39  ;;  %v15190_v15 = vld [vmem:[#allocation4 + $0x8] sm:$0xf] }
 0x493   : > { %v5806_v57 = vrot.slane %v15190_v15, 1  ;;  %v5807_v39 = vrot.slane %v15190_v15, 2  ;;  %v5808_v11 = vrot.slane %v15190_v15, 3 }
 0x495   : > { %5253 = vmatpush.bf16.msrb.mxu0 %v10316_v13  ;;  %5266 = vmatpush.bf16.msrb.mxu1 %v10444_v14  ;;  %v10739_v13 = vld [vmem:[#allocation22 + $0x580] sm:$0xf]  ;;  %v5811_v56 = vsel %vm15554_vm11, %v15190_v15, %v5806_v57  ;;  %v5814_v26 = vsel %vm15555_vm12, %v5807_v39, %v5808_v11  ;;  %v10760_v14 = vor.u32 %v12723_v35, %v10757_v60  ;;  %vm15568_vm12 = vmmov %vm15559_vm15 }
 0x496   : > { %5279 = vmatpush.bf16.msrb.mxu2 %v10320_v9  ;;  %5292 = vmatpush.bf16.msrb.mxu3 %v10448_v3  ;;  %v12721_v9 = vld [vmem:[#allocation22 + $0x58c] sm:$0xf0]  ;;  %v15207_v52 = vsel %vm1237_vm10, %v5811_v56, %v5814_v26  ;;  %v6316_v34 = vsel %vm15556_vm9, %v15190_v15, %v5806_v57  ;;  %v6317_v51 = vsel %vm15557_vm4, %v5807_v39, %v5808_v11  ;;  %v12719_v3 = vld [vmem:[#allocation22 + $0x584] sm:$0xf]  ;;  %v10565_v57 = vld [vmem:[#allocation22 + $0x430] sm:$0xf0] }
 0x497   : > { %5883 = vst [vmem:[#allocation1 + $0x1] ss:$9 sm:$0xff] %v15207_v52  ;;  %v10740_v22 = vor.u32 %v12721_v9, %v10739_v13  ;;  %v6318_v20 = vsel %vm15558_vm13, %v6316_v34, %v6317_v51  ;;  %v10744_v36 = vor.u32 %v12719_v3, %v10741_v29  ;;  %v10712_v60 = vor.u32 %v12711_v37, %v10709_v18  ;;  %v12707_v11 = vld [vmem:[#allocation22 + $0x524] sm:$0xf]  ;;  %v10677_v34 = vld [vmem:[#allocation22 + $0x510] sm:$0xf0]  ;;  %vm15569_vm9 = vmmov %vm15562_vm2 }
 0x498   : > { %v6321_v39 = vshrl.u32 %v15207_v52, 16  ;;  %v12671_v9 = vld [vmem:[#allocation22 + $0x404] sm:$0xf]  ;;  %v10667_v51 = vld [vmem:[#allocation22 + $0x4e8] sm:$0xf] }
 0x499   : > { %5254 = vmatpush.bf16.msrb.mxu0 %v10300_v24  ;;  %5267 = vmatpush.bf16.msrb.mxu1 %v10428_v55  ;;  %v10723_v24 = vld [vmem:[#allocation22 + $0x560] sm:$0xf]  ;;  %v12683_v55 = vld [vmem:[#allocation22 + $0x464] sm:$0xf]  ;;  %v12702_v3 = vld [vmem:[#allocation22 + $0x4f4] sm:$0xf0] }
 0x49a   : > { %5280 = vmatpush.bf16.msrb.mxu2 %v10304_v50  ;;  %5293 = vmatpush.bf16.msrb.mxu3 %v10432_v41  ;;  %v10597_v50 = vld [vmem:[#allocation22 + $0x470] sm:$0xf0]  ;;  %v10596_v41 = vor.u32 %v12685_v33, %v10595_v45  ;;  %v10795_v29 = vld [vmem:[#allocation22 + $0x5e8] sm:$0xf]  ;;  %v10669_v45 = vld [vmem:[#allocation22 + $0x4f8] sm:$0xf0] }
 0x49b   : > { %v10600_v31 = vor.u32 %v12683_v55, %v10597_v50  ;;  %v10668_v55 = vor.u32 %v12702_v3, %v10667_v51  ;;  %v12694_v18 = vld [vmem:[#allocation22 + $0x4b4] sm:$0xf0]  ;;  %v10731_v51 = vld [vmem:[#allocation22 + $0x568] sm:$0xf] }
 0x49c   : > { %5255 = vmatmul.bf16.vlgmr.msrb.gmra.mxu0 %v15179_v61  ;;  %5268 = vmatmul.bf16.vlgmr.msrb.gmra.mxu1 %v15181_v46 }
 0x49d   : > { %5697 = vmatpush.bf16.msra.mxu0 %v10660_v62  ;;  %5710 = vmatpush.bf16.msra.mxu1 %v10788_v42  ;;  %v10579_v62 = vld [vmem:[#allocation22 + $0x440] sm:$0xf]  ;;  %v6320_v42 = vrot.slane %v6318_v20, 1  ;;  %v12732_v20 = vld [vmem:[#allocation22 + $0x5ec] sm:$0xf] }
 0x49e   : > { %5723 = vmatpush.bf16.msra.mxu2 %v10664_v58  ;;  %5736 = vmatpush.bf16.msra.mxu3 %v10792_v19  ;;  %v10724_v58 = vor.u32 %v12717_v63, %v10723_v24  ;;  %v12713_v19 = vld [vmem:[#allocation22 + $0x54c] sm:$0xf0]  ;;  %v10580_v38 = vor.u32 %v12681_v28, %v10579_v62  ;;  %v10779_v62 = vld [vmem:[#allocation22 + $0x5c8] sm:$0xf]  ;;  %v10653_v28 = vld [vmem:[#allocation22 + $0x4d8] sm:$0xf0] }
 0x49f   : > { %5281 = vmatmul.bf16.vlgmr.msrb.gmra.mxu2 %v15179_v61  ;;  %5294 = vmatmul.bf16.vlgmr.msrb.gmra.mxu3 %v15181_v46  ;;  %v10632_v61 = vor.u32 %v12691_v30, %v10629_v1  ;;  %v12687_v46 = vld [vmem:[#allocation22 + $0x484] sm:$0xf]  ;;  %v10708_v12 = vor.u32 %v12713_v19, %v10707_v10  ;;  %v10584_v30 = vor.u32 %v12679_v53, %v10581_v2  ;;  %v15216_v35 = vld [vmem:[#allocation1 + $0x9] sm:$0xff]  ;;  %v10781_v19 = vld [vmem:[#allocation22 + $0x5d8] sm:$0xf0] }
 0x4a0   : > { %v10616_v4 = vor.u32 %v12687_v46, %v10613_v25  ;;  %v12675_v1 = vld [vmem:[#allocation22 + $0x424] sm:$0xf]  ;;  %v10549_v46 = vld [vmem:[#allocation22 + $0x410] sm:$0xf0]  ;;  %v12728_v10 = vld [vmem:[#allocation22 + $0x5cc] sm:$0xf] }
 0x4a1   : > { %5698 = vmatpush.bf16.msra.mxu0 %v10644_v6  ;;  %5711 = vmatpush.bf16.msra.mxu1 %v10772_v7  ;;  %v10563_v6 = vld [vmem:[#allocation22 + $0x420] sm:$0xf]  ;;  %v12709_v7 = vld [vmem:[#allocation22 + $0x52c] sm:$0xf0]  ;;  %v10568_v26 = vor.u32 %v12675_v1, %v10565_v57  ;;  %v12703_v25 = vld [vmem:[#allocation22 + $0x504] sm:$0xf]  ;;  %v10552_v24 = vor.u32 %v12671_v9, %v10549_v46 }
 0x4a2   : > { %5724 = vmatpush.bf16.msra.mxu2 %v10648_v17  ;;  %5737 = vmatpush.bf16.msra.mxu3 %v10776_v21  ;;  %v6326_v17 = vshll.u32 %v6320_v42, 16  ;;  %v15214_v21 = vld [vmem:[#allocation1] sm:$0xff]  ;;  %v10692_v56 = vor.u32 %v12709_v7, %v10691_v5  ;;  %v10680_v63 = vor.u32 %v12703_v25, %v10677_v34  ;;  %v12692_v5 = vld [vmem:[#allocation22 + $0x4ac] sm:$0xf]  ;;  %v10637_v7 = vld [vmem:[#allocation22 + $0x4b8] sm:$0xf0] }
 0x4a3   : > { %6394 = vst [vmem:[#allocation1] ss:$9 sm:$0xff] %v15162_v43  ;;  %v10635_v53 = vld [vmem:[#allocation22 + $0x4a8] sm:$0xf]  ;;  %v12686_v34 = vld [vmem:[#allocation22 + $0x474] sm:$0xf0] }
 0x4a4   : > { %v15222_v13 = vsel %vm15102_vm7, %v6321_v39, %v6326_v17  ;;  %v10619_v57 = vld [vmem:[#allocation22 + $0x488] sm:$0xf]  ;;  %v12690_v39 = vld [vmem:[#allocation22 + $0x494] sm:$0xf0] }
 0x4a5   : > { %5699 = vmatpush.bf16.msra.mxu0 %v10628_v32  ;;  %5712 = vmatpush.bf16.msra.mxu1 %v10756_v23  ;;  %v10693_v32 = vld [vmem:[#allocation22 + $0x530] sm:$0xf0]  ;;  %v10564_v23 = vor.u32 %v12677_v16, %v10563_v6  ;;  %6397 = vst [vmem:[#allocation1 + $0x1] ss:$9 sm:$0xff] %v15222_v13  ;;  %v10763_v6 = vld [vmem:[#allocation22 + $0x5a8] sm:$0xf]  ;;  %v10620_v9 = vor.u32 %v12690_v39, %v10619_v57 }
 0x4a6   : > { %5725 = vmatpush.bf16.msra.mxu2 %v10632_v61  ;;  %5738 = vmatpush.bf16.msra.mxu3 %v10760_v14  ;;  %v10547_v61 = vld [vmem:[#allocation22 + $0x400] sm:$0xf]  ;;  %v12705_v14 = vld [vmem:[#allocation22 + $0x50c] sm:$0xf0]  ;;  %v10696_v43 = vor.u32 %v12707_v11, %v10693_v32  ;;  %v12726_v16 = vld [vmem:[#allocation22 + $0x5b4] sm:$0xf0]  ;;  %v10640_v32 = vor.u32 %v12692_v5, %v10637_v7 }
 0x4a7   : > { %v10676_v33 = vor.u32 %v12705_v14, %v10675_v40  ;;  %v10764_v11 = vor.u32 %v12726_v16, %v10763_v6  ;;  %v12688_v40 = vld [vmem:[#allocation22 + $0x48c] sm:$0xf]  ;;  %v10749_v14 = vld [vmem:[#allocation22 + $0x598] sm:$0xf0]  ;;  %v10603_v25 = vld [vmem:[#allocation22 + $0x468] sm:$0xf] }
 0x4a8   : > { %v12710_v6 = vld [vmem:[#allocation22 + $0x534] sm:$0xf0]  ;;  %v12676_v16 = vld [vmem:[#allocation22 + $0x42c] sm:$0xf]  ;;  %v10555_v57 = vld [vmem:[#allocation22 + $0x408] sm:$0xf] }
 0x4a9   : > { %5700 = vmatpush.bf16.msra.mxu0 %v10612_v59  ;;  %5713 = vmatpush.bf16.msra.mxu1 %v10740_v22  ;;  %v10548_v59 = vor.u32 %v12673_v27, %v10547_v61  ;;  %v12734_v22 = vld [vmem:[#allocation22 + $0x5f4] sm:$0xf0] }
 0x4aa   : > { %5726 = vmatpush.bf16.msra.mxu2 %v10616_v4  ;;  %5739 = vmatpush.bf16.msra.mxu3 %v10744_v36  ;;  %v12700_v4 = vld [vmem:[#allocation22 + $0x4ec] sm:$0xf]  ;;  %v10797_v36 = vld [vmem:[#allocation22 + $0x5f8] sm:$0xf0]  ;;  %v10796_v50 = vor.u32 %v12734_v22, %v10795_v29  ;;  %v12722_v61 = vld [vmem:[#allocation22 + $0x594] sm:$0xf0] }
 0x4ab   : > { %v10672_v48 = vor.u32 %v12700_v4, %v10669_v45  ;;  %v10800_v42 = vor.u32 %v12732_v20, %v10797_v36  ;;  %v12684_v29 = vld [vmem:[#allocation22 + $0x46c] sm:$0xf]  ;;  %v15235_v22 = vld [vmem:[#allocation4 + $0xc] sm:$0xf]  ;;  %v10733_v45 = vld [vmem:[#allocation22 + $0x578] sm:$0xf0] }
 0x4ac   : > { %v15226_v17 = vld [vmem:[#allocation1] sm:$0xff]  ;;  %v15230_v1 = vld [vmem:[#allocation1 + $0x9] sm:$0xff]  ;;  %v12682_v20 = vld [vmem:[#allocation22 + $0x454] sm:$0xf0]  ;;  %v7338_v5 = vrot.slane %v15235_v22, 2  ;;  %v7339_v7 = vrot.slane %v15235_v22, 3 }
 0x4ad   : > { %5701 = vmatpush.bf16.msra.mxu0 %v10596_v41  ;;  %5714 = vmatpush.bf16.msra.mxu1 %v10724_v58  ;;  %v12698_v41 = vld [vmem:[#allocation22 + $0x4d4] sm:$0xf0]  ;;  %6830 = vst [vmem:[#allocation1] sm:$0xff] %v15139_v8  ;;  %v12716_v4 = vld [vmem:[#allocation22 + $0x56c] sm:$0xf] }
 0x4ae   : > { %5727 = vmatpush.bf16.msra.mxu2 %v10600_v31  ;;  %5740 = vmatpush.bf16.msra.mxu3 %v10728_v47  ;;  %v12730_v58 = vld [vmem:[#allocation22 + $0x5d4] sm:$0xf0]  ;;  %v12696_v31 = vld [vmem:[#allocation22 + $0x4cc] sm:$0xf]  ;;  %v10652_v47 = vor.u32 %v12698_v41, %v10651_v0  ;;  %6833 = vst [vmem:[#allocation1 + $0x10] sm:$0xff] %v15190_v15  ;;  %v10736_v41 = vor.u32 %v12716_v4, %v10733_v45 }
 0x4af   : > { %v10780_v2 = vor.u32 %v12730_v58, %v10779_v62  ;;  %v10656_v37 = vor.u32 %v12696_v31, %v10653_v28  ;;  %v12718_v8 = vld [vmem:[#allocation22 + $0x574] sm:$0xf0]  ;;  %v10715_v36 = vld [vmem:[#allocation22 + $0x548] sm:$0xf]  ;;  %v12680_v62 = vld [vmem:[#allocation22 + $0x44c] sm:$0xf]  ;;  %v7345_v45 = vsel %vm15562_vm2, %v7338_v5, %v7339_v7 }
 0x4b0   : > { %v12712_v58 = vld [vmem:[#allocation22 + $0x54c] sm:$0xf]  ;;  %v10717_v31 = vld [vmem:[#allocation22 + $0x558] sm:$0xf0]  ;;  %v7337_v28 = vrot.slane %v15235_v22, 1 }
 0x4b1   : > { %5702 = vmatpush.bf16.msra.mxu0 %v10580_v38  ;;  %5715 = vmatpush.bf16.msra.mxu1 %v10708_v12  ;;  %v10784_v38 = vor.u32 %v12728_v10, %v10781_v19  ;;  %v12724_v12 = vld [vmem:[#allocation22 + $0x5ac] sm:$0xf]  ;;  %v10571_v19 = vld [vmem:[#allocation22 + $0x428] sm:$0xf]  ;;  %v12674_v39 = vld [vmem:[#allocation22 + $0x414] sm:$0xf0] }
 0x4b2   : > { %5728 = vmatpush.bf16.msra.mxu2 %v10584_v30  ;;  %5741 = vmatpush.bf16.msra.mxu3 %v10712_v60  ;;  %v10765_v30 = vld [vmem:[#allocation22 + $0x5b8] sm:$0xf0]  ;;  %v10636_v60 = vor.u32 %v12694_v18, %v10635_v53  ;;  %v10720_v18 = vor.u32 %v12712_v58, %v10717_v31  ;;  %v12795_v4 = vld [vmem:[#allocation22 + $0x7e4] sm:$0xf]  ;;  %v11027_v58 = vld [vmem:[#allocation22 + $0x7c0] sm:$0xf] }
 0x4b3   : > { %v10768_v27 = vor.u32 %v12724_v12, %v10765_v30  ;;  %v12708_v12 = vld [vmem:[#allocation22 + $0x52c] sm:$0xf]  ;;  %v10701_v30 = vld [vmem:[#allocation22 + $0x538] sm:$0xf0] }
 0x4b5   : > { %5703 = vmatpush.bf16.msra.mxu0 %v10564_v23  ;;  %5716 = vmatpush.bf16.msra.mxu1 %v10692_v56  ;;  %v10747_v23 = vld [vmem:[#allocation22 + $0x588] sm:$0xf]  ;;  %v10621_v56 = vld [vmem:[#allocation22 + $0x498] sm:$0xf0] }
 0x4b6   : > { %5729 = vmatpush.bf16.msra.mxu2 %v10568_v26  ;;  %5742 = vmatpush.bf16.msra.mxu3 %v10696_v43  ;;  %v12720_v26 = vld [vmem:[#allocation22 + $0x58c] sm:$0xf]  ;;  %v10748_v43 = vor.u32 %v12722_v61, %v10747_v23  ;;  %v10624_v46 = vor.u32 %v12688_v40, %v10621_v56  ;;  %v6835_v0 = vld [vmem:[#allocation1 + $0x11] ss:$2 sm:$0xff]  ;;  %v10704_v56 = vor.u32 %v12708_v12, %v10701_v30  ;;  %v12789_v30 = vld [vmem:[#allocation22 + $0x7ac] sm:$0xf0] }
 0x4b7   : > { %v10752_v3 = vor.u32 %v12720_v26, %v10749_v14  ;;  %v12706_v61 = vld [vmem:[#allocation22 + $0x514] sm:$0xf0]  ;;  %v10557_v40 = vld [vmem:[#allocation22 + $0x418] sm:$0xf0]  ;;  %v12704_v26 = vld [vmem:[#allocation22 + $0x50c] sm:$0xf] }
 0x4b8   : > { %v10685_v14 = vld [vmem:[#allocation22 + $0x518] sm:$0xf0] }
 0x4b9   : > { %5704 = vmatpush.bf16.msra.mxu0 %v10548_v59  ;;  %5717 = vmatpush.bf16.msra.mxu1 %v10676_v33  ;;  %v10605_v59 = vld [vmem:[#allocation22 + $0x478] sm:$0xf0]  ;;  %v10604_v33 = vor.u32 %v12686_v34, %v10603_v25  ;;  %v12797_v25 = vld [vmem:[#allocation22 + $0x7ec] sm:$0xf0]  ;;  %v7342_v34 = vsel %vm15559_vm15, %v15235_v22, %v7337_v28 }
 0x4ba   : > { %5730 = vmatpush.bf16.msra.mxu2 %v10552_v24  ;;  %5743 = vmatpush.bf16.msra.mxu3 %v10680_v63  ;;  %v10587_v24 = vld [vmem:[#allocation22 + $0x448] sm:$0xf]  ;;  %v10732_v63 = vor.u32 %v12718_v8, %v10731_v51  ;;  %v7847_v51 = vsel %vm15560_vm5, %v15235_v22, %v7337_v28  ;;  %v10556_v8 = vor.u32 %v12674_v39, %v10555_v57  ;;  %v10885_v57 = vld [vmem:[#allocation22 + $0x6b0] sm:$0xf0] }
 0x4bb   : > { %v10588_v10 = vor.u32 %v12682_v20, %v10587_v24  ;;  %v11045_v20 = vld [vmem:[#allocation22 + $0x7f0] sm:$0xf0]  ;;  %v15253_v31 = vsel %vm1237_vm10, %v7342_v34, %v7345_v45 }
 0x4bc   : > { %5705 = vmatmul.bf16.vlgmr.msra.gmra.mxu0 %v15194_v49  ;;  %5718 = vmatmul.bf16.vlgmr.msra.gmra.mxu1 %v15196_v54  ;;  %v11048_v28 = vor.u32 %v12795_v4, %v11045_v20  ;;  %v10869_v34 = vld [vmem:[#allocation22 + $0x690] sm:$0xf0] }
 0x4bd   : > { %5749 = vmatpush.bf16.msrb.mxu0 %v10668_v55  ;;  %5762 = vmatpush.bf16.msrb.mxu1 %v10796_v50  ;;  %v10608_v55 = vor.u32 %v12684_v29, %v10605_v59  ;;  %v12714_v50 = vld [vmem:[#allocation22 + $0x554] sm:$0xf0]  ;;  %v12763_v29 = vld [vmem:[#allocation22 + $0x6e4] sm:$0xf]  ;;  %v10917_v59 = vld [vmem:[#allocation22 + $0x6f0] sm:$0xf0] }
 0x4be   : > { %5775 = vmatpush.bf16.msrb.mxu2 %v10672_v48  ;;  %5788 = vmatpush.bf16.msrb.mxu3 %v10800_v42  ;;  %v6832_v48 = vld [vmem:[#allocation1 + $0x1] ss:$2 sm:$0xff]  ;;  %v10589_v42 = vld [vmem:[#allocation22 + $0x458] sm:$0xf0] }
 0x4bf   : > { %5731 = vmatmul.bf16.vlgmr.msra.gmra.mxu2 %v15194_v49  ;;  %5744 = vmatmul.bf16.vlgmr.msra.gmra.mxu3 %v15196_v54  ;;  %6901 = vst [vmem:[#allocation1] ss:$9 sm:$0xff] %v6832_v48  ;;  %v10592_v53 = vor.u32 %v12680_v62, %v10589_v42  ;;  %v10899_v62 = vld [vmem:[#allocation22 + $0x6c0] sm:$0xf]  ;;  %v12761_v42 = vld [vmem:[#allocation22 + $0x6cc] sm:$0xf0] }
 0x4c0   : > { %6903 = vst [vmem:[#allocation1 + $0x1] ss:$9 sm:$0xff] %v6835_v0 }
 0x4c1   : > { %5750 = vmatpush.bf16.msrb.mxu0 %v10652_v47  ;;  %5763 = vmatpush.bf16.msrb.mxu1 %v10780_v2  ;;  %v10716_v47 = vor.u32 %v12714_v50, %v10715_v36  ;;  %v12678_v2 = vld [vmem:[#allocation22 + $0x434] sm:$0xf0] }
 0x4c2   : > { %5776 = vmatpush.bf16.msrb.mxu2 %v10656_v37  ;;  %5789 = vmatpush.bf16.msrb.mxu3 %v10784_v38  ;;  %v10699_v37 = vld [vmem:[#allocation22 + $0x528] sm:$0xf]  ;;  %v10573_v38 = vld [vmem:[#allocation22 + $0x438] sm:$0xf0] }
 0x4c3   : > { %v10576_v23 = vor.u32 %v12676_v16, %v10573_v38  ;;  %v12757_v38 = vld [vmem:[#allocation22 + $0x6ac] sm:$0xf0] }
 0x4c5   : > { %5751 = vmatpush.bf16.msrb.mxu0 %v10636_v60  ;;  %5764 = vmatpush.bf16.msrb.mxu1 %v10764_v11  ;;  %v10572_v60 = vor.u32 %v12678_v2, %v10571_v19  ;;  %v10683_v11 = vld [vmem:[#allocation22 + $0x508] sm:$0xf]  ;;  %v12759_v19 = vld [vmem:[#allocation22 + $0x6c4] sm:$0xf]  ;;  %v11029_v2 = vld [vmem:[#allocation22 + $0x7d0] sm:$0xf0] }
 0x4c6   : > { %5777 = vmatpush.bf16.msrb.mxu2 %v10640_v32  ;;  %5790 = vmatpush.bf16.msrb.mxu3 %v10768_v27  ;;  %v10700_v32 = vor.u32 %v12710_v6, %v10699_v37  ;;  %v12672_v27 = vld [vmem:[#allocation22 + $0x40c] sm:$0xf]  ;;  %v10900_v37 = vor.u32 %v12761_v42, %v10899_v62  ;;  %v12747_v62 = vld [vmem:[#allocation22 + $0x664] sm:$0xf]  ;;  %v10853_v42 = vld [vmem:[#allocation22 + $0x670] sm:$0xf0] }
 0x4c7   : > { %v10560_v24 = vor.u32 %v12672_v27, %v10557_v40  ;;  %v15246_v36 = vld [vmem:[#allocation1] sm:$0xff] }
 0x4c9   : > { %5752 = vmatpush.bf16.msrb.mxu0 %v10620_v9  ;;  %5765 = vmatpush.bf16.msrb.mxu1 %v10748_v43  ;;  %v10915_v9 = vld [vmem:[#allocation22 + $0x6e0] sm:$0xf]  ;;  %v12765_v43 = vld [vmem:[#allocation22 + $0x6ec] sm:$0xf0] }
 0x4ca   : > { %5778 = vmatpush.bf16.msrb.mxu2 %v10624_v46  ;;  %5791 = vmatpush.bf16.msrb.mxu3 %v10752_v3  ;;  %v11043_v46 = vld [vmem:[#allocation22 + $0x7e0] sm:$0xf]  ;;  %v7848_v3 = vsel %vm15561_vm6, %v7338_v5, %v7339_v7  ;;  %v10916_v50 = vor.u32 %v12765_v43, %v10915_v9  ;;  %v12753_v9 = vld [vmem:[#allocation22 + $0x68c] sm:$0xf0] }
 0x4cb   : > { %v7849_v48 = vsel %vm15563_vm0, %v7847_v51, %v7848_v3  ;;  %v11044_v0 = vor.u32 %v12797_v25, %v11043_v46  ;;  %v11011_v5 = vld [vmem:[#allocation22 + $0x7a0] sm:$0xf]  ;;  %v12785_v46 = vld [vmem:[#allocation22 + $0x78c] sm:$0xf0]  ;;  %v12751_v25 = vld [vmem:[#allocation22 + $0x684] sm:$0xf] }
 0x4cc   : > { %v10995_v43 = vld [vmem:[#allocation22 + $0x780] sm:$0xf]  ;;  %v12783_v51 = vld [vmem:[#allocation22 + $0x784] sm:$0xf]  ;;  %v10997_v3 = vld [vmem:[#allocation22 + $0x790] sm:$0xf0]  ;;  %v10872_v45 = vor.u32 %v12751_v25, %v10869_v34 }
 0x4cd   : > { %5753 = vmatpush.bf16.msrb.mxu0 %v10604_v33  ;;  %5766 = vmatpush.bf16.msrb.mxu1 %v10732_v63  ;;  %v10684_v33 = vor.u32 %v12706_v61, %v10683_v11  ;;  %v15248_v63 = vld [vmem:[#allocation1 + $0x9] sm:$0xff]  ;;  %v12787_v11 = vld [vmem:[#allocation22 + $0x7a4] sm:$0xf]  ;;  %v7852_v61 = vshrl.u32 %v15253_v31, 16  ;;  %v10996_v4 = vor.u32 %v12785_v46, %v10995_v43  ;;  %v10931_v25 = vld [vmem:[#allocation22 + $0x700] sm:$0xf] }
 0x4ce   : > { %5779 = vmatpush.bf16.msrb.mxu2 %v10608_v55  ;;  %5792 = vmatpush.bf16.msrb.mxu3 %v10736_v41  ;;  %v10688_v55 = vor.u32 %v12704_v26, %v10685_v14  ;;  %7412 = vst [vmem:[#allocation1] ss:$9 sm:$0xff] %v15207_v52  ;;  %v10920_v41 = vor.u32 %v12763_v29, %v10917_v59  ;;  %v7851_v52 = vrot.slane %v7849_v48, 1  ;;  %v10867_v14 = vld [vmem:[#allocation22 + $0x680] sm:$0xf] }
 0x4cf   : > { %7414 = vst [vmem:[#allocation1 + $0x1] ss:$9 sm:$0xff] %v15253_v31  ;;  %v10851_v29 = vld [vmem:[#allocation22 + $0x660] sm:$0xf]  ;;  %v11000_v48 = vor.u32 %v12783_v51, %v10997_v3  ;;  %v12779_v31 = vld [vmem:[#allocation22 + $0x764] sm:$0xf] }
 0x4d0   : > { %v7857_v27 = vshll.u32 %v7851_v52, 16  ;;  %v10979_v59 = vld [vmem:[#allocation22 + $0x760] sm:$0xf]  ;;  %v12737_v46 = vld [vmem:[#allocation22 + $0x60c] sm:$0xf0] }
 0x4d1   : > { %5754 = vmatpush.bf16.msrb.mxu0 %v10588_v10  ;;  %5767 = vmatpush.bf16.msrb.mxu1 %v10716_v47  ;;  %v12793_v10 = vld [vmem:[#allocation22 + $0x7cc] sm:$0xf0]  ;;  %v10901_v47 = vld [vmem:[#allocation22 + $0x6d0] sm:$0xf0]  ;;  %v10963_v52 = vld [vmem:[#allocation22 + $0x740] sm:$0xf] }
 0x4d2   : > { %5780 = vmatpush.bf16.msrb.mxu2 %v10592_v53  ;;  %5793 = vmatpush.bf16.msrb.mxu3 %v10720_v18  ;;  %v12791_v53 = vld [vmem:[#allocation22 + $0x7c4] sm:$0xf]  ;;  %v10883_v18 = vld [vmem:[#allocation22 + $0x6a0] sm:$0xf]  ;;  %v11028_v6 = vor.u32 %v12793_v10, %v11027_v58  ;;  %v10904_v16 = vor.u32 %v12759_v19, %v10901_v47  ;;  %v12769_v34 = vld [vmem:[#allocation22 + $0x70c] sm:$0xf0] }
 0x4d3   : > { %v11032_v12 = vor.u32 %v12791_v53, %v11029_v2  ;;  %v10884_v40 = vor.u32 %v12757_v38, %v10883_v18  ;;  %v10835_v47 = vld [vmem:[#allocation22 + $0x640] sm:$0xf]  ;;  %v10856_v53 = vor.u32 %v12747_v62, %v10853_v42  ;;  %v12745_v2 = vld [vmem:[#allocation22 + $0x64c] sm:$0xf0]  ;;  %v10965_v38 = vld [vmem:[#allocation22 + $0x750] sm:$0xf0] }
 0x4d4   : > { %v12777_v18 = vld [vmem:[#allocation22 + $0x74c] sm:$0xf0]  ;;  %v12798_v62 = vld [vmem:[#allocation22 + $0x7f4] sm:$0xf0]  ;;  %v12764_v42 = vld [vmem:[#allocation22 + $0x6ec] sm:$0xf] }
 0x4d5   : > { %5755 = vmatpush.bf16.msrb.mxu0 %v10572_v60  ;;  %5768 = vmatpush.bf16.msrb.mxu1 %v10700_v32  ;;  %v12755_v60 = vld [vmem:[#allocation22 + $0x6a4] sm:$0xf]  ;;  %v11013_v32 = vld [vmem:[#allocation22 + $0x7b0] sm:$0xf0] }
 0x4d6   : > { %5781 = vmatpush.bf16.msrb.mxu2 %v10576_v23  ;;  %5794 = vmatpush.bf16.msrb.mxu3 %v10704_v56  ;;  %v11012_v56 = vor.u32 %v12789_v30, %v11011_v5  ;;  %v10888_v26 = vor.u32 %v12755_v60, %v10885_v57  ;;  %v15263_v20 = vld [vmem:[#allocation1] sm:$0xff]  ;;  %v10836_v5 = vor.u32 %v12745_v2, %v10835_v47  ;;  %v10819_v30 = vld [vmem:[#allocation22 + $0x620] sm:$0xf]  ;;  %v12741_v60 = vld [vmem:[#allocation22 + $0x62c] sm:$0xf0] }
 0x4d7   : > { %v10947_v57 = vld [vmem:[#allocation22 + $0x720] sm:$0xf]  ;;  %v10820_v43 = vor.u32 %v12741_v60, %v10819_v30  ;;  %v11053_v47 = vld [vmem:[#allocation22 + $0x7f8] sm:$0xf0]  ;;  %v12760_v30 = vld [vmem:[#allocation22 + $0x6cc] sm:$0xf] }
 0x4d8   : > { %v4773_v7 = vpop.f32.mrf.mxu0  ;;  %v4786_v39 = vpop.f32.mrf.mxu1  ;;  %v10909_v60 = vld [vmem:[#allocation22 + $0x6d8] sm:$0xf0] }
 0x4d9   : > { %5756 = vmatpush.bf16.msrb.mxu0 %v10556_v8  ;;  %5769 = vmatpush.bf16.msrb.mxu1 %v10684_v33  ;;  %v15259_v23 = vadd.f32 %v4786_v39, %v4773_v7  ;;  %v10868_v8 = vor.u32 %v12753_v9, %v10867_v14  ;;  %v12781_v33 = vld [vmem:[#allocation22 + $0x76c] sm:$0xf0]  ;;  %v10964_v7 = vor.u32 %v12777_v18, %v10963_v52  ;;  %v10803_v9 = vld [vmem:[#allocation22 + $0x600] sm:$0xf] }
 0x4da   : > { %5782 = vmatpush.bf16.msrb.mxu2 %v10560_v24  ;;  %5795 = vmatpush.bf16.msrb.mxu3 %v10688_v55  ;;  %v15265_v55 = vld [vmem:[#allocation1 + $0x9] sm:$0xff]  ;;  %v10980_v44 = vor.u32 %v12781_v33, %v10979_v59 }
 0x4db   : > { %7925 = vst [vmem:[#allocation1] ss:$9 sm:$0xff] %v15222_v13  ;;  %v10837_v13 = vld [vmem:[#allocation22 + $0x650] sm:$0xf0] }
 0x4dc   : > { %5757 = vmatmul.bf16.vlgmr.msrb.gmra.mxu0 %v15194_v49  ;;  %5770 = vmatmul.bf16.vlgmr.msrb.gmra.mxu1 %v15196_v54  ;;  %v10933_v33 = vld [vmem:[#allocation22 + $0x710] sm:$0xf0] }
 0x4dd   : > { %6208 = vmatpush.bf16.msra.mxu0 %v10916_v50  ;;  %6221 = vmatpush.bf16.msra.mxu1 %v11044_v0  ;;  %v7859_v50 = vsel %vm15102_vm7, %v7852_v61, %v7857_v27  ;;  %v12773_v61 = vld [vmem:[#allocation22 + $0x72c] sm:$0xf0]  ;;  %v12739_v27 = vld [vmem:[#allocation22 + $0x624] sm:$0xf]  ;;  %vm15564_vm7 = vcmask 1043458  }
 0x4de   : > { %6234 = vmatpush.bf16.msra.mxu2 %v10920_v41  ;;  %6247 = vmatpush.bf16.msra.mxu3 %v11048_v28  ;;  %v10981_v28 = vld [vmem:[#allocation22 + $0x770] sm:$0xf0]  ;;  %7928 = vst [vmem:[#allocation1 + $0x1] ss:$9 sm:$0xff] %v7859_v50  ;;  %v10948_v51 = vor.u32 %v12773_v61, %v10947_v57  ;;  %v10923_v50 = vld [vmem:[#allocation22 + $0x6e8] sm:$0xf] }
 0x4df   : > { %5783 = vmatmul.bf16.vlgmr.msrb.gmra.mxu2 %v15194_v49  ;;  %5796 = vmatmul.bf16.vlgmr.msrb.gmra.mxu3 %v15196_v54  ;;  %v11016_v49 = vor.u32 %v12787_v11, %v11013_v32  ;;  %v12749_v54 = vld [vmem:[#allocation22 + $0x66c] sm:$0xf0]  ;;  %v4799_v0 = vpop.f32.mrf.mxu2  ;;  %v4812_v41 = vpop.f32.mrf.mxu3  ;;  %v11037_v57 = vld [vmem:[#allocation22 + $0x7d8] sm:$0xf0]  ;;  %v10891_v61 = vld [vmem:[#allocation22 + $0x6a8] sm:$0xf] }
 0x4e0   : > { %v4775_v24 = vpop.f32.mrf.mxu0  ;;  %v15270_v58 = vadd.f32 %v4812_v41, %v4799_v0  ;;  %v4788_v10 = vpop.f32.mrf.mxu1  ;;  %v10852_v19 = vor.u32 %v12749_v54, %v10851_v29  ;;  %v12735_v29 = vld [vmem:[#allocation22 + $0x604] sm:$0xf]  ;;  %v10805_v54 = vld [vmem:[#allocation22 + $0x610] sm:$0xf0]  ;;  %v11051_v0 = vld [vmem:[#allocation22 + $0x7e8] sm:$0xf]  ;;  %v10804_v41 = vor.u32 %v12737_v46, %v10803_v9 }
 0x4e1   : > { %6209 = vmatpush.bf16.msra.mxu0 %v10900_v37  ;;  %6222 = vmatpush.bf16.msra.mxu1 %v11028_v6  ;;  %v10984_v37 = vor.u32 %v12779_v31, %v10981_v28  ;;  %v12743_v6 = vld [vmem:[#allocation22 + $0x644] sm:$0xf]  ;;  %v10925_v31 = vld [vmem:[#allocation22 + $0x6f8] sm:$0xf0]  ;;  %v10932_v28 = vor.u32 %v12769_v34, %v10931_v25  ;;  %v10808_v10 = vor.u32 %v12735_v29, %v10805_v54 }
 0x4e2   : > { %6235 = vmatpush.bf16.msra.mxu2 %v10904_v16  ;;  %6248 = vmatpush.bf16.msra.mxu3 %v11032_v12  ;;  %v12775_v16 = vld [vmem:[#allocation22 + $0x744] sm:$0xf]  ;;  %v10840_v12 = vor.u32 %v12743_v6, %v10837_v13  ;;  %v11052_v2 = vor.u32 %v12798_v62, %v11051_v0  ;;  %v10928_v52 = vor.u32 %v12764_v42, %v10925_v31  ;;  %v10907_v6 = vld [vmem:[#allocation22 + $0x6c8] sm:$0xf]  ;;  %v12762_v13 = vld [vmem:[#allocation22 + $0x6d4] sm:$0xf0] }
 0x4e3   : > { %v10968_v39 = vor.u32 %v12775_v16, %v10965_v38  ;;  %v11035_v16 = vld [vmem:[#allocation22 + $0x7c8] sm:$0xf]  ;;  %v10893_v9 = vld [vmem:[#allocation22 + $0x6b8] sm:$0xf0]  ;;  %v12752_v0 = vld [vmem:[#allocation22 + $0x68c] sm:$0xf] }
 0x4e4   : > { %v12784_v42 = vld [vmem:[#allocation22 + $0x78c] sm:$0xf]  ;;  %v11005_v31 = vld [vmem:[#allocation22 + $0x798] sm:$0xf0] }
 0x4e5   : > { %6210 = vmatpush.bf16.msra.mxu0 %v10884_v40  ;;  %6223 = vmatpush.bf16.msra.mxu1 %v11012_v56  ;;  %v10821_v40 = vld [vmem:[#allocation22 + $0x630] sm:$0xf0]  ;;  %v12771_v56 = vld [vmem:[#allocation22 + $0x724] sm:$0xf] }
 0x4e6   : > { %6236 = vmatpush.bf16.msra.mxu2 %v10888_v26  ;;  %6249 = vmatpush.bf16.msra.mxu3 %v11016_v49  ;;  %v10949_v26 = vld [vmem:[#allocation22 + $0x730] sm:$0xf0]  ;;  %v10824_v3 = vor.u32 %v12739_v27, %v10821_v40  ;;  %v15274_v59 = vld [vmem:[#allocation1] sm:$0xff]  ;;  %v12758_v27 = vld [vmem:[#allocation22 + $0x6b4] sm:$0xf0] }
 0x4e7   : > { %v4801_v11 = vpop.f32.mrf.mxu2  ;;  %v4814_v32 = vpop.f32.mrf.mxu3  ;;  %8361 = vst [vmem:[#allocation1] sm:$0xff] %v15190_v15  ;;  %v15277_v24 = vld [vmem:[#allocation1 + $0x9] sm:$0xff]  ;;  %v11019_v40 = vld [vmem:[#allocation22 + $0x7a8] sm:$0xf]  ;;  %v10892_v25 = vor.u32 %v12758_v27, %v10891_v61  ;;  %v10845_v61 = vld [vmem:[#allocation22 + $0x658] sm:$0xf0] }
 0x4e8   : > { %v4825_v14 = vpop.f32.mrf.mxu0  ;;  %v4838_v49 = vpop.f32.mrf.mxu1  ;;  %8364 = vst [vmem:[#allocation1 + $0x10] sm:$0xff] %v15235_v22  ;;  %v12792_v22 = vld [vmem:[#allocation22 + $0x7cc] sm:$0xf]  ;;  %v10912_v32 = vor.u32 %v12760_v30, %v10909_v60  ;;  %v10843_v30 = vld [vmem:[#allocation22 + $0x648] sm:$0xf] }
 0x4e9   : > { %6211 = vmatpush.bf16.msra.mxu0 %v10868_v8  ;;  %6224 = vmatpush.bf16.msra.mxu1 %v10996_v4  ;;  %v15272_v8 = vadd.f32 %v4838_v49, %v4825_v14  ;;  %v10952_v4 = vor.u32 %v12771_v56, %v10949_v26  ;;  %v11040_v56 = vor.u32 %v12792_v22, %v11037_v57  ;;  %v12790_v26 = vld [vmem:[#allocation22 + $0x7b4] sm:$0xf0]  ;;  %v12756_v14 = vld [vmem:[#allocation22 + $0x6ac] sm:$0xf]  ;;  %v11021_v49 = vld [vmem:[#allocation22 + $0x7b8] sm:$0xf0] }
 0x4ea   : > { %6237 = vmatpush.bf16.msra.mxu2 %v10872_v45  ;;  %6250 = vmatpush.bf16.msra.mxu3 %v11000_v48  ;;  %v12767_v45 = vld [vmem:[#allocation22 + $0x704] sm:$0xf]  ;;  %v12766_v48 = vld [vmem:[#allocation22 + $0x6f4] sm:$0xf0]  ;;  %v11020_v29 = vor.u32 %v12790_v26, %v11019_v40  ;;  %v10896_v54 = vor.u32 %v12756_v14, %v10893_v9  ;;  %v10971_v22 = vld [vmem:[#allocation22 + $0x748] sm:$0xf] }
 0x4eb   : > { %v10936_v15 = vor.u32 %v12767_v45, %v10933_v33  ;;  %v11003_v45 = vld [vmem:[#allocation22 + $0x788] sm:$0xf]  ;;  %v12786_v33 = vld [vmem:[#allocation22 + $0x794] sm:$0xf0]  ;;  %v12776_v26 = vld [vmem:[#allocation22 + $0x74c] sm:$0xf] }
 0x4ec   : > { %v12746_v60 = vld [vmem:[#allocation22 + $0x654] sm:$0xf0]  ;;  %v10973_v14 = vld [vmem:[#allocation22 + $0x758] sm:$0xf0] }
 0x4ed   : > { %6212 = vmatpush.bf16.msra.mxu0 %v10852_v19  ;;  %6225 = vmatpush.bf16.msra.mxu1 %v10980_v44  ;;  %v12796_v19 = vld [vmem:[#allocation22 + $0x7ec] sm:$0xf]  ;;  %v10924_v44 = vor.u32 %v12766_v48, %v10923_v50 }
 0x4ee   : > { %6238 = vmatpush.bf16.msra.mxu2 %v10856_v53  ;;  %6251 = vmatpush.bf16.msra.mxu3 %v10984_v37  ;;  %v11056_v38 = vor.u32 %v12796_v19, %v11053_v47  ;;  %v8363_v46 = vld [vmem:[#allocation1 + $0x1] ss:$2 sm:$0xff] }
 0x4ef   : > { %v4851_v53 = vpop.f32.mrf.mxu2  ;;  %v4864_v37 = vpop.f32.mrf.mxu3  ;;  %v8366_v50 = vld [vmem:[#allocation1 + $0x11] ss:$2 sm:$0xff]  ;;  %v10859_v47 = vld [vmem:[#allocation22 + $0x668] sm:$0xf] }
 0x4f0   : > { %v4827_v18 = vpop.f32.mrf.mxu0  ;;  %8432 = vst [vmem:[#allocation1] ss:$9 sm:$0xff] %v8363_v46 }
 0x4f1   : > { %6213 = vmatpush.bf16.msra.mxu0 %v10836_v5  ;;  %6226 = vmatpush.bf16.msra.mxu1 %v10964_v7  ;;  %v15280_v5 = vadd.f32 %v4864_v37, %v4851_v53  ;;  %v4840_v7 = vpop.f32.mrf.mxu1  ;;  %v12750_v53 = vld [vmem:[#allocation22 + $0x674] sm:$0xf0]  ;;  %8434 = vst [vmem:[#allocation1 + $0x1] ss:$9 sm:$0xff] %v8366_v50  ;;  %v11008_v37 = vor.u32 %v12784_v42, %v11005_v31  ;;  %v10939_v42 = vld [vmem:[#allocation22 + $0x708] sm:$0xf] }
 0x4f2   : > { %6239 = vmatpush.bf16.msra.mxu2 %v10840_v12  ;;  %6252 = vmatpush.bf16.msra.mxu3 %v10968_v39  ;;  %v12794_v12 = vld [vmem:[#allocation22 + $0x7d4] sm:$0xf0]  ;;  %v10908_v39 = vor.u32 %v12762_v13, %v10907_v6  ;;  %v12748_v6 = vld [vmem:[#allocation22 + $0x66c] sm:$0xf]  ;;  %v10861_v13 = vld [vmem:[#allocation22 + $0x678] sm:$0xf0] }
 0x4f3   : > { %v11036_v11 = vor.u32 %v12794_v12, %v11035_v16  ;;  %v12782_v18 = vld [vmem:[#allocation22 + $0x774] sm:$0xf0]  ;;  %v12780_v16 = vld [vmem:[#allocation22 + $0x76c] sm:$0xf]  ;;  %v10864_v12 = vor.u32 %v12748_v6, %v10861_v13  ;;  %v12861_v13 = vld [vmem:[#allocation22 + $0x9ec] sm:$0xf0] }
 0x4f4   : > { %v12770_v31 = vld [vmem:[#allocation22 + $0x714] sm:$0xf0] }
 0x4f5   : > { %6214 = vmatpush.bf16.msra.mxu0 %v10820_v43  ;;  %6227 = vmatpush.bf16.msra.mxu1 %v10948_v51  ;;  %v12788_v43 = vld [vmem:[#allocation22 + $0x7ac] sm:$0xf]  ;;  %v10875_v51 = vld [vmem:[#allocation22 + $0x688] sm:$0xf] }
 0x4f6   : > { %6240 = vmatpush.bf16.msra.mxu2 %v10824_v3  ;;  %6253 = vmatpush.bf16.msra.mxu3 %v10952_v4  ;;  %v12754_v3 = vld [vmem:[#allocation22 + $0x694] sm:$0xf0]  ;;  %v11024_v48 = vor.u32 %v12788_v43, %v11021_v49  ;;  %v10844_v43 = vor.u32 %v12746_v60, %v10843_v30  ;;  %v11302_v30 = vld [vmem:[#allocation22 + $0x9f0] sm:$0xf0] }
 0x4f7   : > { %v4853_v34 = vpop.f32.mrf.mxu2  ;;  %v4866_v4 = vpop.f32.mrf.mxu3  ;;  %v10876_v19 = vor.u32 %v12754_v3, %v10875_v51  ;;  %v12742_v51 = vld [vmem:[#allocation22 + $0x634] sm:$0xf0]  ;;  %v10955_v3 = vld [vmem:[#allocation22 + $0x728] sm:$0xf] }
 0x4f8   : > { %v10827_v34 = vld [vmem:[#allocation22 + $0x628] sm:$0xf]  ;;  %v10829_v4 = vld [vmem:[#allocation22 + $0x638] sm:$0xf0] }
 0x4f9   : > { %6215 = vmatpush.bf16.msra.mxu0 %v10804_v41  ;;  %6228 = vmatpush.bf16.msra.mxu1 %v10932_v28  ;;  %v10877_v41 = vld [vmem:[#allocation22 + $0x698] sm:$0xf0]  ;;  %v5204_v62 = vpop.f32.mrf.mxu0  ;;  %v10828_v50 = vor.u32 %v12742_v51, %v10827_v34  ;;  %v11140_v34 = vld [vmem:[#allocation22 + $0x8a0] sm:$0xf]  ;;  %v12821_v51 = vld [vmem:[#allocation22 + $0x8ac] sm:$0xf0] }
 0x4fa   : > { %6241 = vmatpush.bf16.msra.mxu2 %v10808_v10  ;;  %6254 = vmatpush.bf16.msra.mxu3 %v10936_v15  ;;  %v5205_v28 = vadd.f32 %v5204_v62, %v15259_v23  ;;  %v5217_v10 = vpop.f32.mrf.mxu1  ;;  %v11004_v15 = vor.u32 %v12786_v33, %v11003_v45  ;;  %v10860_v23 = vor.u32 %v12750_v53, %v10859_v47  ;;  %v12772_v45 = vld [vmem:[#allocation22 + $0x72c] sm:$0xf]  ;;  %v10957_v33 = vld [vmem:[#allocation22 + $0x738] sm:$0xf0] }
 0x4fb   : > { %v10813_v47 = vld [vmem:[#allocation22 + $0x618] sm:$0xf0] }
 0x4fc   : > { %6216 = vmatmul.bf16.vlgmr.msra.gmra.mxu0 %v15214_v21  ;;  %6229 = vmatmul.bf16.vlgmr.msra.gmra.mxu1 %v15216_v35 }
 0x4fd   : > { %6260 = vmatpush.bf16.msrb.mxu0 %v10924_v44  ;;  %6273 = vmatpush.bf16.msrb.mxu1 %v11052_v2  ;;  %v10880_v44 = vor.u32 %v12752_v0, %v10877_v41  ;;  %v10987_v2 = vld [vmem:[#allocation22 + $0x768] sm:$0xf]  ;;  %v12738_v0 = vld [vmem:[#allocation22 + $0x614] sm:$0xf0] }
 0x4fe   : > { %6286 = vmatpush.bf16.msrb.mxu2 %v10928_v52  ;;  %6299 = vmatpush.bf16.msrb.mxu3 %v11056_v38  ;;  %v15287_v52 = vadd.f32 %v5217_v10, %v5205_v28  ;;  %v10989_v38 = vld [vmem:[#allocation22 + $0x778] sm:$0xf0]  ;;  %v10988_v7 = vor.u32 %v12782_v18, %v10987_v2  ;;  %v12736_v28 = vld [vmem:[#allocation22 + $0x60c] sm:$0xf]  ;;  %v10960_v10 = vor.u32 %v12772_v45, %v10957_v33  ;;  %v11172_v2 = vld [vmem:[#allocation22 + $0x8e0] sm:$0xf] }
 0x4ff   : > { %6242 = vmatmul.bf16.vlgmr.msra.gmra.mxu2 %v15214_v21  ;;  %6255 = vmatmul.bf16.vlgmr.msra.gmra.mxu3 %v15216_v35  ;;  %v10992_v57 = vor.u32 %v12780_v16, %v10989_v38  ;;  %v11300_v18 = vld [vmem:[#allocation22 + $0x9e0] sm:$0xf]  ;;  %v12827_v16 = vld [vmem:[#allocation22 + $0x8e4] sm:$0xf]  ;;  %v11174_v38 = vld [vmem:[#allocation22 + $0x8f0] sm:$0xf0] }
 0x500   : > { %v12851_v45 = vld [vmem:[#allocation22 + $0x9a4] sm:$0xf]  ;;  %v11270_v33 = vld [vmem:[#allocation22 + $0x9b0] sm:$0xf0] }
 0x501   : > { %6261 = vmatpush.bf16.msrb.mxu0 %v10908_v39  ;;  %6274 = vmatpush.bf16.msrb.mxu1 %v11036_v11  ;;  %v12778_v11 = vld [vmem:[#allocation22 + $0x754] sm:$0xf0] }
 0x502   : > { %6287 = vmatpush.bf16.msrb.mxu2 %v10912_v32  ;;  %6300 = vmatpush.bf16.msrb.mxu3 %v11040_v56  ;;  %v5230_v39 = vpop.f32.mrf.mxu2  ;;  %v12744_v32 = vld [vmem:[#allocation22 + $0x64c] sm:$0xf]  ;;  %v5243_v40 = vpop.f32.mrf.mxu3  ;;  %v10972_v46 = vor.u32 %v12778_v11, %v10971_v22  ;;  %v11156_v11 = vld [vmem:[#allocation22 + $0x8c0] sm:$0xf] }
 0x503   : > { %v5231_v27 = vadd.f32 %v5230_v39, %v15270_v58  ;;  %v5206_v56 = vpop.f32.mrf.mxu0  ;;  %v5219_v9 = vpop.f32.mrf.mxu1  ;;  %v12740_v58 = vld [vmem:[#allocation22 + $0x62c] sm:$0xf]  ;;  %v11177_v39 = vor.u32 %v12827_v16, %v11174_v38 }
 0x504   : > { %v10832_v62 = vor.u32 %v12740_v58, %v10829_v4  ;;  %v12823_v56 = vld [vmem:[#allocation22 + $0x8c4] sm:$0xf]  ;;  %v11286_v9 = vld [vmem:[#allocation22 + $0x9d0] sm:$0xf0] }
 0x505   : > { %6262 = vmatpush.bf16.msrb.mxu0 %v10892_v25  ;;  %6275 = vmatpush.bf16.msrb.mxu1 %v11020_v29  ;;  %v15290_v49 = vadd.f32 %v5243_v40, %v5231_v27  ;;  %v10848_v25 = vor.u32 %v12744_v32, %v10845_v61  ;;  %v10976_v29 = vor.u32 %v12776_v26, %v10973_v14  ;;  %v12825_v32 = vld [vmem:[#allocation22 + $0x8cc] sm:$0xf0]  ;;  %v11284_v61 = vld [vmem:[#allocation22 + $0x9c0] sm:$0xf]  ;;  %v11158_v26 = vld [vmem:[#allocation22 + $0x8d0] sm:$0xf0] }
 0x506   : > { %6288 = vmatpush.bf16.msrb.mxu2 %v10896_v54  ;;  %6301 = vmatpush.bf16.msrb.mxu3 %v11024_v48  ;;  %v12774_v54 = vld [vmem:[#allocation22 + $0x734] sm:$0xf0]  ;;  %v10811_v48 = vld [vmem:[#allocation22 + $0x608] sm:$0xf]  ;;  %v12857_v40 = vld [vmem:[#allocation22 + $0x9cc] sm:$0xf0] }
 0x507   : > { %v10956_v41 = vor.u32 %v12774_v54, %v10955_v3  ;;  %v10812_v6 = vor.u32 %v12738_v0, %v10811_v48  ;;  %v12855_v14 = vld [vmem:[#allocation22 + $0x9c4] sm:$0xf]  ;;  %v11268_v3 = vld [vmem:[#allocation22 + $0x9a0] sm:$0xf]  ;;  %v12853_v54 = vld [vmem:[#allocation22 + $0x9ac] sm:$0xf0] }
 0x508   : > { %v12819_v58 = vld [vmem:[#allocation22 + $0x8a4] sm:$0xf]  ;;  %v11142_v4 = vld [vmem:[#allocation22 + $0x8b0] sm:$0xf0]  ;;  %v11269_v48 = vor.u32 %v12853_v54, %v11268_v3 }
 0x509   : > { %6263 = vmatpush.bf16.msrb.mxu0 %v10876_v19  ;;  %6276 = vmatpush.bf16.msrb.mxu1 %v11004_v15  ;;  %v12768_v15 = vld [vmem:[#allocation22 + $0x70c] sm:$0xf]  ;;  %v11145_v0 = vor.u32 %v12819_v58, %v11142_v4  ;;  %v11076_v58 = vld [vmem:[#allocation22 + $0x820] sm:$0xf]  ;;  %v12805_v4 = vld [vmem:[#allocation22 + $0x82c] sm:$0xf0] }
 0x50a   : > { %6289 = vmatpush.bf16.msrb.mxu2 %v10880_v44  ;;  %6302 = vmatpush.bf16.msrb.mxu3 %v11008_v37  ;;  %v5232_v19 = vpop.f32.mrf.mxu2  ;;  %v10941_v44 = vld [vmem:[#allocation22 + $0x718] sm:$0xf0]  ;;  %v5245_v53 = vpop.f32.mrf.mxu3  ;;  %v12829_v37 = vld [vmem:[#allocation22 + $0x8ec] sm:$0xf0] }
 0x50b   : > { %v10944_v60 = vor.u32 %v12768_v15, %v10941_v44  ;;  %v11173_v22 = vor.u32 %v12829_v37, %v11172_v2  ;;  %v11126_v19 = vld [vmem:[#allocation22 + $0x890] sm:$0xf0] }
 0x50c   : > { %v11254_v15 = vld [vmem:[#allocation22 + $0x990] sm:$0xf0] }
 0x50d   : > { %6264 = vmatpush.bf16.msrb.mxu0 %v10860_v23  ;;  %6277 = vmatpush.bf16.msrb.mxu1 %v10988_v7  ;;  %v10940_v23 = vor.u32 %v12770_v31, %v10939_v42  ;;  %v10816_v7 = vor.u32 %v12736_v28, %v10813_v47  ;;  %v11252_v42 = vld [vmem:[#allocation22 + $0x980] sm:$0xf]  ;;  %v11273_v31 = vor.u32 %v12851_v45, %v11270_v33  ;;  %v12849_v28 = vld [vmem:[#allocation22 + $0x98c] sm:$0xf0] }
 0x50e   : > { %6290 = vmatpush.bf16.msrb.mxu2 %v10864_v12  ;;  %6303 = vmatpush.bf16.msrb.mxu3 %v10992_v57  ;;  %v12859_v12 = vld [vmem:[#allocation22 + $0x9e4] sm:$0xf]  ;;  %v11301_v57 = vor.u32 %v12861_v13, %v11300_v18  ;;  %v11253_v2 = vor.u32 %v12849_v28, %v11252_v42  ;;  %v11108_v18 = vld [vmem:[#allocation22 + $0x860] sm:$0xf] }
 0x50f   : > { %v11305_v27 = vor.u32 %v12859_v12, %v11302_v30  ;;  %v11236_v13 = vld [vmem:[#allocation22 + $0x960] sm:$0xf]  ;;  %v11110_v12 = vld [vmem:[#allocation22 + $0x870] sm:$0xf0]  ;;  %v12843_v30 = vld [vmem:[#allocation22 + $0x964] sm:$0xf] }
 0x510   : > { %v11204_v45 = vld [vmem:[#allocation22 + $0x920] sm:$0xf] }
 0x511   : > { %6265 = vmatpush.bf16.msrb.mxu0 %v10844_v43  ;;  %6278 = vmatpush.bf16.msrb.mxu1 %v10972_v46  ;;  %v11157_v43 = vor.u32 %v12825_v32, %v11156_v11  ;;  %v11285_v46 = vor.u32 %v12857_v40, %v11284_v61  ;;  %v12809_v11 = vld [vmem:[#allocation22 + $0x84c] sm:$0xf0]  ;;  %v11220_v32 = vld [vmem:[#allocation22 + $0x940] sm:$0xf] }
 0x512   : > { %6291 = vmatpush.bf16.msrb.mxu2 %v10848_v25  ;;  %6304 = vmatpush.bf16.msrb.mxu3 %v10976_v29  ;;  %v11161_v25 = vor.u32 %v12823_v56, %v11158_v26  ;;  %v11289_v29 = vor.u32 %v12855_v14, %v11286_v9  ;;  %v12841_v40 = vld [vmem:[#allocation22 + $0x94c] sm:$0xf0]  ;;  %v12807_v56 = vld [vmem:[#allocation22 + $0x844] sm:$0xf]  ;;  %v11094_v26 = vld [vmem:[#allocation22 + $0x850] sm:$0xf0] }
 0x513   : > { %v11097_v54 = vor.u32 %v12807_v56, %v11094_v26  ;;  %v11060_v42 = vld [vmem:[#allocation22 + $0x800] sm:$0xf]  ;;  %v12858_v26 = vld [vmem:[#allocation22 + $0x9d4] sm:$0xf0] }
 0x515   : > { %6266 = vmatpush.bf16.msrb.mxu0 %v10828_v50  ;;  %6279 = vmatpush.bf16.msrb.mxu1 %v10956_v41  ;;  %v11141_v50 = vor.u32 %v12821_v51, %v11140_v34  ;;  %v11124_v41 = vld [vmem:[#allocation22 + $0x880] sm:$0xf] }
 0x516   : > { %6292 = vmatpush.bf16.msrb.mxu2 %v10832_v62  ;;  %6305 = vmatpush.bf16.msrb.mxu3 %v10960_v10  ;;  %v12817_v62 = vld [vmem:[#allocation22 + $0x88c] sm:$0xf0]  ;;  %v12815_v10 = vld [vmem:[#allocation22 + $0x884] sm:$0xf] }
 0x517   : > { %v11125_v53 = vor.u32 %v12817_v62, %v11124_v41  ;;  %v11129_v37 = vor.u32 %v12815_v10, %v11126_v19  ;;  %v11206_v41 = vld [vmem:[#allocation22 + $0x930] sm:$0xf0]  ;;  %v11077_v62 = vor.u32 %v12805_v4, %v11076_v58  ;;  %v11188_v19 = vld [vmem:[#allocation22 + $0x900] sm:$0xf]  ;;  %v11276_v58 = vld [vmem:[#allocation22 + $0x9a8] sm:$0xf] }
 0x519   : > { %6267 = vmatpush.bf16.msrb.mxu0 %v10812_v6  ;;  %6280 = vmatpush.bf16.msrb.mxu1 %v10940_v23  ;;  %v5256_v47 = vpop.f32.mrf.mxu0  ;;  %v5269_v44 = vpop.f32.mrf.mxu1  ;;  %v12813_v6 = vld [vmem:[#allocation22 + $0x86c] sm:$0xf0] }
 0x51a   : > { %6293 = vmatpush.bf16.msrb.mxu2 %v10816_v7  ;;  %6306 = vmatpush.bf16.msrb.mxu3 %v10944_v60  ;;  %v12845_v23 = vld [vmem:[#allocation22 + $0x96c] sm:$0xf0]  ;;  %v12811_v7 = vld [vmem:[#allocation22 + $0x864] sm:$0xf]  ;;  %v11238_v60 = vld [vmem:[#allocation22 + $0x970] sm:$0xf0] }
 0x51b   : > { %v11241_v61 = vor.u32 %v12843_v30, %v11238_v60 }
 0x51c   : > { %6268 = vmatmul.bf16.vlgmr.msrb.gmra.mxu0 %v15214_v21  ;;  %6281 = vmatmul.bf16.vlgmr.msrb.gmra.mxu1 %v15216_v35 }
 0x51d   : > { %6722 = vmatpush.bf16.msra.mxu0 %v11173_v22  ;;  %6735 = vmatpush.bf16.msra.mxu1 %v11301_v57  ;;  %v11237_v22 = vor.u32 %v12845_v23, %v11236_v13  ;;  %v11113_v57 = vor.u32 %v12811_v7, %v11110_v12  ;;  %v11308_v13 = vld [vmem:[#allocation22 + $0x9e8] sm:$0xf]  ;;  %v12862_v23 = vld [vmem:[#allocation22 + $0x9f4] sm:$0xf0]  ;;  %v12828_v7 = vld [vmem:[#allocation22 + $0x8ec] sm:$0xf] }
 0x51e   : > { %6748 = vmatpush.bf16.msra.mxu2 %v11177_v39  ;;  %6761 = vmatpush.bf16.msra.mxu3 %v11305_v27  ;;  %v11092_v39 = vld [vmem:[#allocation22 + $0x840] sm:$0xf]  ;;  %v11182_v12 = vld [vmem:[#allocation22 + $0x8f8] sm:$0xf0] }
 0x51f   : > { %6294 = vmatmul.bf16.vlgmr.msrb.gmra.mxu2 %v15214_v21  ;;  %6307 = vmatmul.bf16.vlgmr.msrb.gmra.mxu3 %v15216_v35  ;;  %v12847_v21 = vld [vmem:[#allocation22 + $0x984] sm:$0xf]  ;;  %v5257_v35 = vadd.f32 %v5256_v47, %v15272_v8  ;;  %v11109_v8 = vor.u32 %v12813_v6, %v11108_v18  ;;  %v11093_v51 = vor.u32 %v12809_v11, %v11092_v39  ;;  %v12833_v47 = vld [vmem:[#allocation22 + $0x90c] sm:$0xf0]  ;;  %v11180_v18 = vld [vmem:[#allocation22 + $0x8e8] sm:$0xf] }
 0x520   : > { %v11257_v38 = vor.u32 %v12847_v21, %v11254_v15  ;;  %v12799_v21 = vld [vmem:[#allocation22 + $0x804] sm:$0xf]  ;;  %v12830_v6 = vld [vmem:[#allocation22 + $0x8f4] sm:$0xf0]  ;;  %v11189_v30 = vor.u32 %v12833_v47, %v11188_v19  ;;  %v11309_v11 = vor.u32 %v12862_v23, %v11308_v13  ;;  %v12816_v47 = vld [vmem:[#allocation22 + $0x88c] sm:$0xf] }
 0x521   : > { %6723 = vmatpush.bf16.msra.mxu0 %v11157_v43  ;;  %6736 = vmatpush.bf16.msra.mxu1 %v11285_v46  ;;  %v15297_v16 = vadd.f32 %v5269_v44, %v5257_v35  ;;  %v5258_v43 = vpop.f32.mrf.mxu0  ;;  %v12839_v46 = vld [vmem:[#allocation22 + $0x944] sm:$0xf]  ;;  %v5271_v34 = vpop.f32.mrf.mxu1  ;;  %v11062_v44 = vld [vmem:[#allocation22 + $0x810] sm:$0xf0]  ;;  %v11181_v39 = vor.u32 %v12830_v6, %v11180_v18  ;;  %v12850_v19 = vld [vmem:[#allocation22 + $0x994] sm:$0xf0] }
 0x522   : > { %6749 = vmatpush.bf16.msra.mxu2 %v11161_v25  ;;  %6762 = vmatpush.bf16.msra.mxu3 %v11289_v29  ;;  %v5282_v27 = vpop.f32.mrf.mxu2  ;;  %v5295_v9 = vpop.f32.mrf.mxu3  ;;  %v11222_v25 = vld [vmem:[#allocation22 + $0x950] sm:$0xf0]  ;;  %v11221_v29 = vor.u32 %v12841_v40, %v11220_v32  ;;  %v11065_v60 = vor.u32 %v12799_v21, %v11062_v44  ;;  %v11185_v32 = vor.u32 %v12828_v7, %v11182_v12  ;;  %v11292_v40 = vld [vmem:[#allocation22 + $0x9c8] sm:$0xf]  ;;  %v12856_v43 = vld [vmem:[#allocation22 + $0x9cc] sm:$0xf] }
 0x523   : > { %v5283_v14 = vadd.f32 %v5282_v27, %v15280_v5  ;;  %v11225_v33 = vor.u32 %v12839_v46, %v11222_v25  ;;  %v12803_v5 = vld [vmem:[#allocation22 + $0x824] sm:$0xf]  ;;  %v12826_v27 = vld [vmem:[#allocation22 + $0x8d4] sm:$0xf0]  ;;  %v11294_v46 = vld [vmem:[#allocation22 + $0x9d8] sm:$0xf0]  ;;  %v11293_v34 = vor.u32 %v12858_v26, %v11292_v40 }
 0x524   : > { %v11297_v4 = vor.u32 %v12856_v43, %v11294_v46  ;;  %v11134_v21 = vld [vmem:[#allocation22 + $0x898] sm:$0xf0]  ;;  %v11116_v13 = vld [vmem:[#allocation22 + $0x868] sm:$0xf]  ;;  %v12846_v12 = vld [vmem:[#allocation22 + $0x974] sm:$0xf0] }
 0x525   : > { %6724 = vmatpush.bf16.msra.mxu0 %v11141_v50  ;;  %6737 = vmatpush.bf16.msra.mxu1 %v11269_v48  ;;  %v15300_v3 = vadd.f32 %v5295_v9, %v5283_v14  ;;  %v12837_v50 = vld [vmem:[#allocation22 + $0x92c] sm:$0xf0]  ;;  %v11078_v48 = vld [vmem:[#allocation22 + $0x830] sm:$0xf0]  ;;  %v12824_v14 = vld [vmem:[#allocation22 + $0x8cc] sm:$0xf]  ;;  %v11137_v6 = vor.u32 %v12816_v47, %v11134_v21 }
 0x526   : > { %6750 = vmatpush.bf16.msra.mxu2 %v11145_v0  ;;  %6763 = vmatpush.bf16.msra.mxu3 %v11273_v31  ;;  %v12835_v0 = vld [vmem:[#allocation22 + $0x924] sm:$0xf]  ;;  %v12801_v31 = vld [vmem:[#allocation22 + $0x80c] sm:$0xf0]  ;;  %v11205_v28 = vor.u32 %v12837_v50, %v11204_v45  ;;  %v11081_v10 = vor.u32 %v12803_v5, %v11078_v48  ;;  %v11166_v9 = vld [vmem:[#allocation22 + $0x8d8] sm:$0xf0] }
 0x527   : > { %v11209_v15 = vor.u32 %v12835_v0, %v11206_v41  ;;  %v12854_v45 = vld [vmem:[#allocation22 + $0x9b4] sm:$0xf0]  ;;  %v11150_v50 = vld [vmem:[#allocation22 + $0x8b8] sm:$0xf0]  ;;  %v12852_v5 = vld [vmem:[#allocation22 + $0x9ac] sm:$0xf] }
 0x528   : > { %v11278_v48 = vld [vmem:[#allocation22 + $0x9b8] sm:$0xf0]  ;;  %v11277_v41 = vor.u32 %v12854_v45, %v11276_v58  ;;  %v11244_v23 = vld [vmem:[#allocation22 + $0x968] sm:$0xf] }
 0x529   : > { %6725 = vmatpush.bf16.msra.mxu0 %v11125_v53  ;;  %6738 = vmatpush.bf16.msra.mxu1 %v11253_v2  ;;  %v12831_v53 = vld [vmem:[#allocation22 + $0x904] sm:$0xf]  ;;  %v11190_v2 = vld [vmem:[#allocation22 + $0x910] sm:$0xf0]  ;;  %v11262_v44 = vld [vmem:[#allocation22 + $0x998] sm:$0xf0] }
 0x52a   : > { %6751 = vmatpush.bf16.msra.mxu2 %v11129_v37  ;;  %6764 = vmatpush.bf16.msra.mxu3 %v11257_v38  ;;  %v5284_v35 = vpop.f32.mrf.mxu2  ;;  %v5297_v37 = vpop.f32.mrf.mxu3  ;;  %v11061_v38 = vor.u32 %v12801_v31, %v11060_v42  ;;  %v11132_v42 = vld [vmem:[#allocation22 + $0x888] sm:$0xf]  ;;  %v12818_v31 = vld [vmem:[#allocation22 + $0x894] sm:$0xf0]  ;;  %v11102_v43 = vld [vmem:[#allocation22 + $0x858] sm:$0xf0] }
 0x52b   : > { %v12848_v35 = vld [vmem:[#allocation22 + $0x98c] sm:$0xf]  ;;  %v11228_v40 = vld [vmem:[#allocation22 + $0x948] sm:$0xf] }
 0x52c   : > { %v11265_v7 = vor.u32 %v12848_v35, %v11262_v44  ;;  %v11084_v45 = vld [vmem:[#allocation22 + $0x828] sm:$0xf]  ;;  %v12834_v35 = vld [vmem:[#allocation22 + $0x914] sm:$0xf0]  ;;  %v12800_v44 = vld [vmem:[#allocation22 + $0x80c] sm:$0xf] }
 0x52d   : > { %6726 = vmatpush.bf16.msra.mxu0 %v11109_v8  ;;  %6739 = vmatpush.bf16.msra.mxu1 %v11237_v22  ;;  %v12860_v8 = vld [vmem:[#allocation22 + $0x9ec] sm:$0xf]  ;;  %v11310_v22 = vld [vmem:[#allocation22 + $0x9f8] sm:$0xf0] }
 0x52e   : > { %6752 = vmatpush.bf16.msra.mxu2 %v11113_v57  ;;  %6765 = vmatpush.bf16.msra.mxu3 %v11241_v61  ;;  %v11193_v57 = vor.u32 %v12831_v53, %v11190_v2  ;;  %v11164_v61 = vld [vmem:[#allocation22 + $0x8c8] sm:$0xf]  ;;  %v11313_v56 = vor.u32 %v12860_v8, %v11310_v22  ;;  %v11133_v2 = vor.u32 %v12818_v31, %v11132_v42  ;;  %v12844_v22 = vld [vmem:[#allocation22 + $0x96c] sm:$0xf]  ;;  %v11214_v31 = vld [vmem:[#allocation22 + $0x938] sm:$0xf0] }
 0x52f   : > { %v11165_v25 = vor.u32 %v12826_v27, %v11164_v61  ;;  %v11100_v61 = vld [vmem:[#allocation22 + $0x848] sm:$0xf]  ;;  %v12810_v27 = vld [vmem:[#allocation22 + $0x854] sm:$0xf0]  ;;  %v12836_v42 = vld [vmem:[#allocation22 + $0x92c] sm:$0xf] }
 0x531   : > { %6727 = vmatpush.bf16.msra.mxu0 %v11093_v51  ;;  %6740 = vmatpush.bf16.msra.mxu1 %v11221_v29  ;;  %v11169_v51 = vor.u32 %v12824_v14, %v11166_v9  ;;  %v11148_v29 = vld [vmem:[#allocation22 + $0x8a8] sm:$0xf]  ;;  %v12842_v14 = vld [vmem:[#allocation22 + $0x954] sm:$0xf0]  ;;  %v12808_v9 = vld [vmem:[#allocation22 + $0x84c] sm:$0xf] }
 0x532   : > { %6753 = vmatpush.bf16.msra.mxu2 %v11097_v54  ;;  %6766 = vmatpush.bf16.msra.mxu3 %v11225_v33  ;;  %v12822_v54 = vld [vmem:[#allocation22 + $0x8b4] sm:$0xf0]  ;;  %v12820_v33 = vld [vmem:[#allocation22 + $0x8ac] sm:$0xf]  ;;  %v11229_v58 = vor.u32 %v12842_v14, %v11228_v40  ;;  %v11540_v14 = vld [vmem:[#allocation22 + $0xbc0] sm:$0xf] }
 0x533   : > { %v11149_v0 = vor.u32 %v12822_v54, %v11148_v29  ;;  %v11101_v54 = vor.u32 %v12810_v27, %v11100_v61 }
 0x535   : > { %6728 = vmatpush.bf16.msra.mxu0 %v11077_v62  ;;  %6741 = vmatpush.bf16.msra.mxu1 %v11205_v28  ;;  %v11153_v62 = vor.u32 %v12820_v33, %v11150_v50  ;;  %v11260_v28 = vld [vmem:[#allocation22 + $0x988] sm:$0xf]  ;;  %v12806_v33 = vld [vmem:[#allocation22 + $0x834] sm:$0xf0] }
 0x536   : > { %6754 = vmatpush.bf16.msra.mxu2 %v11081_v10  ;;  %6767 = vmatpush.bf16.msra.mxu3 %v11209_v15  ;;  %v11281_v10 = vor.u32 %v12852_v5, %v11278_v48  ;;  %v11261_v18 = vor.u32 %v12850_v19, %v11260_v28  ;;  %v11212_v50 = vld [vmem:[#allocation22 + $0x928] sm:$0xf]  ;;  %v11085_v28 = vor.u32 %v12806_v33, %v11084_v45  ;;  %v12802_v19 = vld [vmem:[#allocation22 + $0x814] sm:$0xf0]  ;;  %v11524_v45 = vld [vmem:[#allocation22 + $0xba0] sm:$0xf] }
 0x539   : > { %6729 = vmatpush.bf16.msra.mxu0 %v11061_v38  ;;  %6742 = vmatpush.bf16.msra.mxu1 %v11189_v30  ;;  %v5706_v15 = vpop.f32.mrf.mxu0  ;;  %v5719_v53 = vpop.f32.mrf.mxu1  ;;  %v12814_v38 = vld [vmem:[#allocation22 + $0x874] sm:$0xf0]  ;;  %v12812_v30 = vld [vmem:[#allocation22 + $0x86c] sm:$0xf] }
 0x53a   : > { %6755 = vmatpush.bf16.msra.mxu2 %v11065_v60  ;;  %6768 = vmatpush.bf16.msra.mxu3 %v11193_v57  ;;  %v5720_v37 = vadd.f32 %v5719_v53, %v5706_v15  ;;  %v11118_v60 = vld [vmem:[#allocation22 + $0x878] sm:$0xf0]  ;;  %v11196_v15 = vld [vmem:[#allocation22 + $0x908] sm:$0xf] }
 0x53b   : > { %v11246_v57 = vld [vmem:[#allocation22 + $0x978] sm:$0xf0] }
 0x53c   : > { %6730 = vmatmul.bf16.vlgmr.msra.gmra.mxu0 %v15226_v17  ;;  %6743 = vmatmul.bf16.vlgmr.msra.gmra.mxu1 %v15230_v1  ;;  %v15307_v8 = vadd.f32 %v5720_v37, %v15287_v52  ;;  %v12832_v37 = vld [vmem:[#allocation22 + $0x90c] sm:$0xf] }
 0x53d   : > { %6774 = vmatpush.bf16.msrb.mxu0 %v11181_v39  ;;  %6787 = vmatpush.bf16.msrb.mxu1 %v11309_v11  ;;  %v11117_v39 = vor.u32 %v12814_v38, %v11116_v13  ;;  %v11245_v11 = vor.u32 %v12846_v12, %v11244_v23  ;;  %v11428_v13 = vld [vmem:[#allocation22 + $0xae0] sm:$0xf]  ;;  %v12893_v38 = vld [vmem:[#allocation22 + $0xaec] sm:$0xf0] }
 0x53e   : > { %6800 = vmatpush.bf16.msrb.mxu2 %v11185_v32  ;;  %6813 = vmatpush.bf16.msrb.mxu3 %v11313_v56  ;;  %v11121_v32 = vor.u32 %v12812_v30, %v11118_v60  ;;  %v11249_v56 = vor.u32 %v12844_v22, %v11246_v57  ;;  %v11556_v23 = vld [vmem:[#allocation22 + $0xbe0] sm:$0xf]  ;;  %v12925_v12 = vld [vmem:[#allocation22 + $0xbec] sm:$0xf0]  ;;  %v12891_v30 = vld [vmem:[#allocation22 + $0xae4] sm:$0xf]  ;;  %v11197_v22 = vor.u32 %v12834_v35, %v11196_v15 }
 0x53f   : > { %6756 = vmatmul.bf16.vlgmr.msra.gmra.mxu2 %v15226_v17  ;;  %6769 = vmatmul.bf16.vlgmr.msra.gmra.mxu3 %v15230_v1  ;;  %v11430_v60 = vld [vmem:[#allocation22 + $0xaf0] sm:$0xf0]  ;;  %v11429_v61 = vor.u32 %v12893_v38, %v11428_v13  ;;  %v11557_v27 = vor.u32 %v12925_v12, %v11556_v23  ;;  %v12913_v15 = vld [vmem:[#allocation22 + $0xb8c] sm:$0xf0]  ;;  %v12879_v35 = vld [vmem:[#allocation22 + $0xa84] sm:$0xf] }
 0x540   : > { %v11433_v40 = vor.u32 %v12891_v30, %v11430_v60  ;;  %v11364_v13 = vld [vmem:[#allocation22 + $0xa60] sm:$0xf]  ;;  %v12877_v38 = vld [vmem:[#allocation22 + $0xa6c] sm:$0xf0]  ;;  %v12875_v30 = vld [vmem:[#allocation22 + $0xa64] sm:$0xf] }
 0x541   : > { %6775 = vmatpush.bf16.msrb.mxu0 %v11165_v25  ;;  %6788 = vmatpush.bf16.msrb.mxu1 %v11293_v34  ;;  %v5708_v52 = vpop.f32.mrf.mxu0  ;;  %v12840_v25 = vld [vmem:[#allocation22 + $0x94c] sm:$0xf]  ;;  %v11230_v34 = vld [vmem:[#allocation22 + $0x958] sm:$0xf0]  ;;  %v5721_v29 = vpop.f32.mrf.mxu1  ;;  %v11492_v23 = vld [vmem:[#allocation22 + $0xb60] sm:$0xf] }
 0x542   : > { %6801 = vmatpush.bf16.msrb.mxu2 %v11169_v51  ;;  %6814 = vmatpush.bf16.msrb.mxu3 %v11297_v4  ;;  %v5732_v26 = vpop.f32.mrf.mxu2  ;;  %v5745_v46 = vpop.f32.mrf.mxu3  ;;  %v11105_v4 = vor.u32 %v12808_v9, %v11102_v43  ;;  %v11233_v48 = vor.u32 %v12840_v25, %v11230_v34  ;;  %v12921_v43 = vld [vmem:[#allocation22 + $0xbcc] sm:$0xf0]  ;;  %v11414_v52 = vld [vmem:[#allocation22 + $0xad0] sm:$0xf0]  ;;  %v12919_v25 = vld [vmem:[#allocation22 + $0xbc4] sm:$0xf] }
 0x543   : > { %v5746_v51 = vadd.f32 %v5745_v46, %v5732_v26  ;;  %v12889_v26 = vld [vmem:[#allocation22 + $0xacc] sm:$0xf0]  ;;  %v12887_v46 = vld [vmem:[#allocation22 + $0xac4] sm:$0xf]  ;;  %v11542_v34 = vld [vmem:[#allocation22 + $0xbd0] sm:$0xf0]  ;;  %v11541_v29 = vor.u32 %v12921_v43, %v11540_v14 }
 0x544   : > { %v11545_v33 = vor.u32 %v12919_v25, %v11542_v34  ;;  %v12909_v12 = vld [vmem:[#allocation22 + $0xb6c] sm:$0xf0]  ;;  %v11366_v60 = vld [vmem:[#allocation22 + $0xa70] sm:$0xf0]  ;;  %v12871_v43 = vld [vmem:[#allocation22 + $0xa44] sm:$0xf] }
 0x545   : > { %6776 = vmatpush.bf16.msrb.mxu0 %v11149_v0  ;;  %6789 = vmatpush.bf16.msrb.mxu1 %v11277_v41  ;;  %v15310_v5 = vadd.f32 %v5746_v51, %v15290_v49  ;;  %v12838_v0 = vld [vmem:[#allocation22 + $0x934] sm:$0xf0]  ;;  %v12804_v41 = vld [vmem:[#allocation22 + $0x82c] sm:$0xf]  ;;  %v11217_v49 = vor.u32 %v12836_v42, %v11214_v31  ;;  %v12903_v25 = vld [vmem:[#allocation22 + $0xb44] sm:$0xf] }
 0x546   : > { %6802 = vmatpush.bf16.msrb.mxu2 %v11153_v62  ;;  %6815 = vmatpush.bf16.msrb.mxu3 %v11281_v10  ;;  %v11086_v62 = vld [vmem:[#allocation22 + $0x838] sm:$0xf0]  ;;  %v11068_v10 = vld [vmem:[#allocation22 + $0x808] sm:$0xf]  ;;  %v11213_v47 = vor.u32 %v12838_v0, %v11212_v50  ;;  %v12917_v50 = vld [vmem:[#allocation22 + $0xbac] sm:$0xf0] }
 0x547   : > { %v11089_v21 = vor.u32 %v12804_v41, %v11086_v62  ;;  %v11398_v0 = vld [vmem:[#allocation22 + $0xab0] sm:$0xf0]  ;;  %v12915_v41 = vld [vmem:[#allocation22 + $0xba4] sm:$0xf]  ;;  %v11525_v31 = vor.u32 %v12917_v50, %v11524_v45  ;;  %v11332_v45 = vld [vmem:[#allocation22 + $0xa20] sm:$0xf] }
 0x548   : > { %v11526_v62 = vld [vmem:[#allocation22 + $0xbb0] sm:$0xf0]  ;;  %v11460_v50 = vld [vmem:[#allocation22 + $0xb20] sm:$0xf] }
 0x549   : > { %6777 = vmatpush.bf16.msrb.mxu0 %v11133_v2  ;;  %6790 = vmatpush.bf16.msrb.mxu1 %v11261_v18  ;;  %v11070_v2 = vld [vmem:[#allocation22 + $0x818] sm:$0xf0]  ;;  %v11478_v34 = vld [vmem:[#allocation22 + $0xb50] sm:$0xf0] }
 0x54a   : > { %6803 = vmatpush.bf16.msrb.mxu2 %v11137_v6  ;;  %6816 = vmatpush.bf16.msrb.mxu3 %v11265_v7  ;;  %v5734_v53 = vpop.f32.mrf.mxu2  ;;  %v11198_v18 = vld [vmem:[#allocation22 + $0x918] sm:$0xf0]  ;;  %v5747_v6 = vpop.f32.mrf.mxu3  ;;  %v11069_v7 = vor.u32 %v12802_v19, %v11068_v10  ;;  %v11073_v57 = vor.u32 %v12800_v44, %v11070_v2  ;;  %v11380_v10 = vld [vmem:[#allocation22 + $0xa80] sm:$0xf]  ;;  %v12881_v19 = vld [vmem:[#allocation22 + $0xa8c] sm:$0xf0] }
 0x54b   : > { %v11382_v44 = vld [vmem:[#allocation22 + $0xa90] sm:$0xf0] }
 0x54c   : > { %v11510_v53 = vld [vmem:[#allocation22 + $0xb90] sm:$0xf0]  ;;  %v11385_v6 = vor.u32 %v12879_v35, %v11382_v44  ;;  %v11444_v35 = vld [vmem:[#allocation22 + $0xb00] sm:$0xf]  ;;  %v12897_v44 = vld [vmem:[#allocation22 + $0xb0c] sm:$0xf0] }
 0x54d   : > { %6778 = vmatpush.bf16.msrb.mxu0 %v11117_v39  ;;  %6791 = vmatpush.bf16.msrb.mxu1 %v11245_v11  ;;  %v12923_v39 = vld [vmem:[#allocation22 + $0xbe4] sm:$0xf]  ;;  %v11558_v11 = vld [vmem:[#allocation22 + $0xbf0] sm:$0xf0] }
 0x54e   : > { %6804 = vmatpush.bf16.msrb.mxu2 %v11121_v32  ;;  %6817 = vmatpush.bf16.msrb.mxu3 %v11249_v56  ;;  %v11201_v32 = vor.u32 %v12832_v37, %v11198_v18  ;;  %v11412_v56 = vld [vmem:[#allocation22 + $0xac0] sm:$0xf]  ;;  %v11561_v9 = vor.u32 %v12923_v39, %v11558_v11  ;;  %v11494_v39 = vld [vmem:[#allocation22 + $0xb70] sm:$0xf0]  ;;  %v11365_v11 = vor.u32 %v12877_v38, %v11364_v13  ;;  %v11564_v13 = vld [vmem:[#allocation22 + $0xbe8] sm:$0xf] }
 0x54f   : > { %v11413_v51 = vor.u32 %v12889_v26, %v11412_v56  ;;  %v11476_v56 = vld [vmem:[#allocation22 + $0xb40] sm:$0xf] }
 0x551   : > { %6779 = vmatpush.bf16.msrb.mxu0 %v11101_v54  ;;  %6792 = vmatpush.bf16.msrb.mxu1 %v11229_v58  ;;  %v11417_v54 = vor.u32 %v12887_v46, %v11414_v52  ;;  %v11396_v58 = vld [vmem:[#allocation22 + $0xaa0] sm:$0xf]  ;;  %v11350_v46 = vld [vmem:[#allocation22 + $0xa50] sm:$0xf0] }
 0x552   : > { %6805 = vmatpush.bf16.msrb.mxu2 %v11105_v4  ;;  %6818 = vmatpush.bf16.msrb.mxu3 %v11233_v48  ;;  %v12885_v4 = vld [vmem:[#allocation22 + $0xaac] sm:$0xf0]  ;;  %v12883_v48 = vld [vmem:[#allocation22 + $0xaa4] sm:$0xf] }
 0x553   : > { %v11397_v42 = vor.u32 %v12885_v4, %v11396_v58  ;;  %v11353_v4 = vor.u32 %v12871_v43, %v11350_v46  ;;  %v12888_v43 = vld [vmem:[#allocation22 + $0xacc] sm:$0xf]  ;;  %v11422_v46 = vld [vmem:[#allocation22 + $0xad8] sm:$0xf0] }
 0x555   : > { %6780 = vmatpush.bf16.msrb.mxu0 %v11085_v28  ;;  %6793 = vmatpush.bf16.msrb.mxu1 %v11213_v47  ;;  %v11401_v28 = vor.u32 %v12883_v48, %v11398_v0  ;;  %v11508_v47 = vld [vmem:[#allocation22 + $0xb80] sm:$0xf]  ;;  %v11481_v0 = vor.u32 %v12903_v25, %v11478_v34 }
 0x556   : > { %6806 = vmatpush.bf16.msrb.mxu2 %v11089_v21  ;;  %6819 = vmatpush.bf16.msrb.mxu3 %v11217_v49  ;;  %v11529_v21 = vor.u32 %v12915_v41, %v11526_v62  ;;  %v11509_v18 = vor.u32 %v12913_v15, %v11508_v47  ;;  %v12901_v41 = vld [vmem:[#allocation22 + $0xb2c] sm:$0xf0]  ;;  %v12867_v62 = vld [vmem:[#allocation22 + $0xa24] sm:$0xf] }
 0x557   : > { %v12865_v47 = vld [vmem:[#allocation22 + $0xa0c] sm:$0xf0] }
 0x559   : > { %6781 = vmatpush.bf16.msrb.mxu0 %v11069_v7  ;;  %6794 = vmatpush.bf16.msrb.mxu1 %v11197_v22  ;;  %v5758_v49 = vpop.f32.mrf.mxu0  ;;  %v5771_v2 = vpop.f32.mrf.mxu1 }
 0x55a   : > { %6807 = vmatpush.bf16.msrb.mxu2 %v11073_v57  ;;  %6820 = vmatpush.bf16.msrb.mxu3 %v11201_v32  ;;  %v5772_v37 = vadd.f32 %v5771_v2, %v5758_v49  ;;  %v12907_v57 = vld [vmem:[#allocation22 + $0xb64] sm:$0xf]  ;;  %v11493_v32 = vor.u32 %v12909_v12, %v11492_v23  ;;  %v12926_v23 = vld [vmem:[#allocation22 + $0xbf4] sm:$0xf0]  ;;  %v11438_v12 = vld [vmem:[#allocation22 + $0xaf8] sm:$0xf0] }
 0x55b   : > { %v11497_v26 = vor.u32 %v12907_v57, %v11494_v39  ;;  %v12863_v49 = vld [vmem:[#allocation22 + $0xa04] sm:$0xf]  ;;  %v12924_v57 = vld [vmem:[#allocation22 + $0xbec] sm:$0xf]  ;;  %v11566_v39 = vld [vmem:[#allocation22 + $0xbf8] sm:$0xf0] }
 0x55c   : > { %6782 = vmatmul.bf16.vlgmr.msrb.gmra.mxu0 %v15226_v17  ;;  %6795 = vmatmul.bf16.vlgmr.msrb.gmra.mxu1 %v15230_v1  ;;  %v15317_v22 = vadd.f32 %v5772_v37, %v15297_v16  ;;  %v12895_v2 = vld [vmem:[#allocation22 + $0xb04] sm:$0xf] }
 0x55d   : > { %7228 = vmatpush.bf16.msra.mxu0 %v11429_v61  ;;  %7241 = vmatpush.bf16.msra.mxu1 %v11557_v27  ;;  %v11369_v61 = vor.u32 %v12875_v30, %v11366_v60  ;;  %v11348_v27 = vld [vmem:[#allocation22 + $0xa40] sm:$0xf]  ;;  %v11445_v30 = vor.u32 %v12897_v44, %v11444_v35  ;;  %v11390_v35 = vld [vmem:[#allocation22 + $0xa98] sm:$0xf0] }
 0x55e   : > { %7254 = vmatpush.bf16.msra.mxu2 %v11433_v40  ;;  %7267 = vmatpush.bf16.msra.mxu3 %v11561_v9  ;;  %v12873_v40 = vld [vmem:[#allocation22 + $0xa4c] sm:$0xf0] }
 0x55f   : > { %6808 = vmatmul.bf16.vlgmr.msrb.gmra.mxu2 %v15226_v17  ;;  %6821 = vmatmul.bf16.vlgmr.msrb.gmra.mxu3 %v15230_v1  ;;  %v12911_v17 = vld [vmem:[#allocation22 + $0xb84] sm:$0xf]  ;;  %v11381_v1 = vor.u32 %v12881_v19, %v11380_v10  ;;  %v12905_v9 = vld [vmem:[#allocation22 + $0xb4c] sm:$0xf0]  ;;  %v11316_v19 = vld [vmem:[#allocation22 + $0xa00] sm:$0xf] }
 0x560   : > { %v11513_v7 = vor.u32 %v12911_v17, %v11510_v53  ;;  %v11477_v58 = vor.u32 %v12905_v9, %v11476_v56  ;;  %v11318_v53 = vld [vmem:[#allocation22 + $0xa10] sm:$0xf0]  ;;  %v11317_v38 = vor.u32 %v12865_v47, %v11316_v19  ;;  %v12890_v56 = vld [vmem:[#allocation22 + $0xad4] sm:$0xf0]  ;;  %v11516_v19 = vld [vmem:[#allocation22 + $0xb88] sm:$0xf] }
 0x561   : > { %7229 = vmatpush.bf16.msra.mxu0 %v11413_v51  ;;  %7242 = vmatpush.bf16.msra.mxu1 %v11541_v29  ;;  %v5760_v16 = vpop.f32.mrf.mxu0  ;;  %v5773_v29 = vpop.f32.mrf.mxu1  ;;  %v11321_v60 = vor.u32 %v12863_v49, %v11318_v53  ;;  %v12922_v9 = vld [vmem:[#allocation22 + $0xbd4] sm:$0xf0]  ;;  %v12912_v49 = vld [vmem:[#allocation22 + $0xb8c] sm:$0xf] }
 0x562   : > { %7255 = vmatpush.bf16.msra.mxu2 %v11417_v54  ;;  %7268 = vmatpush.bf16.msra.mxu3 %v11545_v33  ;;  %v5784_v14 = vpop.f32.mrf.mxu2  ;;  %v5797_v52 = vpop.f32.mrf.mxu3  ;;  %v11349_v54 = vor.u32 %v12873_v40, %v11348_v27  ;;  %v12869_v33 = vld [vmem:[#allocation22 + $0xa2c] sm:$0xf0]  ;;  %v11420_v40 = vld [vmem:[#allocation22 + $0xac8] sm:$0xf]  ;;  %v11550_v16 = vld [vmem:[#allocation22 + $0xbd8] sm:$0xf0] }
 0x563   : > { %v5798_v51 = vadd.f32 %v5797_v52, %v5784_v14  ;;  %v11333_v10 = vor.u32 %v12869_v33, %v11332_v45  ;;  %v11569_v14 = vor.u32 %v12924_v57, %v11566_v39  ;;  %v12920_v52 = vld [vmem:[#allocation22 + $0xbcc] sm:$0xf]  ;;  %v11421_v25 = vor.u32 %v12890_v56, %v11420_v40  ;;  %v11404_v29 = vld [vmem:[#allocation22 + $0xaa8] sm:$0xf]  ;;  %v12918_v45 = vld [vmem:[#allocation22 + $0xbb4] sm:$0xf0] }
 0x564   : > { %v12884_v33 = vld [vmem:[#allocation22 + $0xaac] sm:$0xf]  ;;  %v11502_v57 = vld [vmem:[#allocation22 + $0xb78] sm:$0xf0]  ;;  %v11484_v40 = vld [vmem:[#allocation22 + $0xb48] sm:$0xf] }
 0x565   : > { %7230 = vmatpush.bf16.msra.mxu0 %v11397_v42  ;;  %7243 = vmatpush.bf16.msra.mxu1 %v11525_v31  ;;  %v15320_v48 = vadd.f32 %v5798_v51, %v15300_v3  ;;  %v11334_v42 = vld [vmem:[#allocation22 + $0xa30] sm:$0xf0]  ;;  %v12899_v31 = vld [vmem:[#allocation22 + $0xb24] sm:$0xf]  ;;  %v11425_v51 = vor.u32 %v12888_v43, %v11422_v46  ;;  %v11358_v43 = vld [vmem:[#allocation22 + $0xa58] sm:$0xf0] }
 0x566   : > { %7256 = vmatpush.bf16.msra.mxu2 %v11401_v28  ;;  %7269 = vmatpush.bf16.msra.mxu3 %v11529_v21  ;;  %v11462_v28 = vld [vmem:[#allocation22 + $0xb30] sm:$0xf0]  ;;  %v11461_v21 = vor.u32 %v12901_v41, %v11460_v50  ;;  %v11337_v15 = vor.u32 %v12867_v62, %v11334_v42  ;;  %v11406_v50 = vld [vmem:[#allocation22 + $0xab8] sm:$0xf0] }
 0x567   : > { %v11465_v3 = vor.u32 %v12899_v31, %v11462_v28  ;;  %v11534_v41 = vld [vmem:[#allocation22 + $0xbb8] sm:$0xf0]  ;;  %v11409_v31 = vor.u32 %v12884_v33, %v11406_v50  ;;  %v11388_v28 = vld [vmem:[#allocation22 + $0xa88] sm:$0xf] }
 0x569   : > { %7231 = vmatpush.bf16.msra.mxu0 %v11381_v1  ;;  %7244 = vmatpush.bf16.msra.mxu1 %v11509_v18  ;;  %v11446_v1 = vld [vmem:[#allocation22 + $0xb10] sm:$0xf0]  ;;  %v11436_v18 = vld [vmem:[#allocation22 + $0xae8] sm:$0xf] }
 0x56a   : > { %7257 = vmatpush.bf16.msra.mxu2 %v11385_v6  ;;  %7270 = vmatpush.bf16.msra.mxu3 %v11513_v7  ;;  %v5786_v17 = vpop.f32.mrf.mxu2  ;;  %v5799_v37 = vpop.f32.mrf.mxu3  ;;  %v12894_v6 = vld [vmem:[#allocation22 + $0xaf4] sm:$0xf0]  ;;  %v12892_v7 = vld [vmem:[#allocation22 + $0xaec] sm:$0xf] }
 0x56b   : > { %v11441_v27 = vor.u32 %v12892_v7, %v11438_v12  ;;  %v12876_v7 = vld [vmem:[#allocation22 + $0xa6c] sm:$0xf]  ;;  %v11374_v12 = vld [vmem:[#allocation22 + $0xa78] sm:$0xf0] }
 0x56d   : > { %7232 = vmatpush.bf16.msra.mxu0 %v11365_v11  ;;  %7245 = vmatpush.bf16.msra.mxu1 %v11493_v32  ;;  %v11449_v11 = vor.u32 %v12895_v2, %v11446_v1  ;;  %v11437_v32 = vor.u32 %v12894_v6, %v11436_v18  ;;  %v11372_v18 = vld [vmem:[#allocation22 + $0xa68] sm:$0xf]  ;;  %v12878_v6 = vld [vmem:[#allocation22 + $0xa74] sm:$0xf0] }
 0x56e   : > { %7258 = vmatpush.bf16.msra.mxu2 %v11369_v61  ;;  %7271 = vmatpush.bf16.msra.mxu3 %v11497_v26  ;;  %v11565_v61 = vor.u32 %v12926_v23, %v11564_v13  ;;  %v11548_v26 = vld [vmem:[#allocation22 + $0xbc8] sm:$0xf]  ;;  %v12910_v23 = vld [vmem:[#allocation22 + $0xb74] sm:$0xf0]  ;;  %v11373_v39 = vor.u32 %v12878_v6, %v11372_v18  ;;  %v11812_v18 = vld [vmem:[#allocation22 + $0xde0] sm:$0xf] }
 0x56f   : > { %v11549_v34 = vor.u32 %v12922_v9, %v11548_v26  ;;  %v11500_v13 = vld [vmem:[#allocation22 + $0xb68] sm:$0xf]  ;;  %v12872_v9 = vld [vmem:[#allocation22 + $0xa4c] sm:$0xf] }
 0x571   : > { %7233 = vmatpush.bf16.msra.mxu0 %v11349_v54  ;;  %7246 = vmatpush.bf16.msra.mxu1 %v11477_v58  ;;  %v12886_v54 = vld [vmem:[#allocation22 + $0xab4] sm:$0xf0]  ;;  %v11532_v58 = vld [vmem:[#allocation22 + $0xba8] sm:$0xf] }
 0x572   : > { %7259 = vmatpush.bf16.msra.mxu2 %v11353_v4  ;;  %7272 = vmatpush.bf16.msra.mxu3 %v11481_v0  ;;  %v11553_v4 = vor.u32 %v12920_v52, %v11550_v16  ;;  %v12916_v0 = vld [vmem:[#allocation22 + $0xbac] sm:$0xf]  ;;  %v11405_v62 = vor.u32 %v12886_v54, %v11404_v29  ;;  %v11533_v42 = vor.u32 %v12918_v45, %v11532_v58  ;;  %v11486_v16 = vld [vmem:[#allocation22 + $0xb58] sm:$0xf0]  ;;  %v11340_v58 = vld [vmem:[#allocation22 + $0xa28] sm:$0xf] }
 0x573   : > { %v11537_v47 = vor.u32 %v12916_v0, %v11534_v41  ;;  %v12904_v52 = vld [vmem:[#allocation22 + $0xb4c] sm:$0xf]  ;;  %v11361_v54 = vor.u32 %v12872_v9, %v11358_v43  ;;  %v11468_v45 = vld [vmem:[#allocation22 + $0xb28] sm:$0xf]  ;;  %v12902_v0 = vld [vmem:[#allocation22 + $0xb34] sm:$0xf0] }
 0x574   : > { %v11489_v50 = vor.u32 %v12904_v52, %v11486_v16  ;;  %v12868_v41 = vld [vmem:[#allocation22 + $0xa2c] sm:$0xf]  ;;  %v12951_v9 = vld [vmem:[#allocation22 + $0xcc4] sm:$0xf]  ;;  %v11670_v43 = vld [vmem:[#allocation22 + $0xcd0] sm:$0xf0] }
 0x575   : > { %7234 = vmatpush.bf16.msra.mxu0 %v11333_v10  ;;  %7247 = vmatpush.bf16.msra.mxu1 %v11461_v21  ;;  %v12882_v10 = vld [vmem:[#allocation22 + $0xa94] sm:$0xf0] }
 0x576   : > { %7260 = vmatpush.bf16.msra.mxu2 %v11337_v15  ;;  %7273 = vmatpush.bf16.msra.mxu3 %v11465_v3  ;;  %v12914_v21 = vld [vmem:[#allocation22 + $0xb94] sm:$0xf0]  ;;  %v12880_v15 = vld [vmem:[#allocation22 + $0xa8c] sm:$0xf]  ;;  %v11518_v3 = vld [vmem:[#allocation22 + $0xb98] sm:$0xf0]  ;;  %v11389_v53 = vor.u32 %v12882_v10, %v11388_v28 }
 0x577   : > { %v11517_v1 = vor.u32 %v12914_v21, %v11516_v19  ;;  %v11393_v37 = vor.u32 %v12880_v15, %v11390_v35  ;;  %v11324_v10 = vld [vmem:[#allocation22 + $0xa08] sm:$0xf]  ;;  %v12866_v19 = vld [vmem:[#allocation22 + $0xa14] sm:$0xf0] }
 0x578   : > { %v11452_v15 = vld [vmem:[#allocation22 + $0xb08] sm:$0xf]  ;;  %v12898_v35 = vld [vmem:[#allocation22 + $0xb14] sm:$0xf0]  ;;  %v11325_v6 = vor.u32 %v12866_v19, %v11324_v10  ;;  %v11764_v10 = vld [vmem:[#allocation22 + $0xd80] sm:$0xf] }
 0x579   : > { %7235 = vmatpush.bf16.msra.mxu0 %v11317_v38  ;;  %7248 = vmatpush.bf16.msra.mxu1 %v11445_v30  ;;  %v6217_v44 = vpop.f32.mrf.mxu0  ;;  %v6230_v17 = vpop.f32.mrf.mxu1  ;;  %v11521_v38 = vor.u32 %v12912_v49, %v11518_v3  ;;  %v11326_v3 = vld [vmem:[#allocation22 + $0xa18] sm:$0xf0] }
 0x57a   : > { %7261 = vmatpush.bf16.msra.mxu2 %v11321_v60  ;;  %7274 = vmatpush.bf16.msra.mxu3 %v11449_v11  ;;  %v6231_v2 = vadd.f32 %v6230_v17, %v6217_v44  ;;  %v12908_v60 = vld [vmem:[#allocation22 + $0xb6c] sm:$0xf]  ;;  %v11501_v11 = vor.u32 %v12910_v23, %v11500_v13  ;;  %v12989_v13 = vld [vmem:[#allocation22 + $0xdec] sm:$0xf0]  ;;  %v11686_v23 = vld [vmem:[#allocation22 + $0xcf0] sm:$0xf0] }
 0x57b   : > { %v11505_v56 = vor.u32 %v12908_v60, %v11502_v57  ;;  %v12864_v44 = vld [vmem:[#allocation22 + $0xa0c] sm:$0xf]  ;;  %v12987_v60 = vld [vmem:[#allocation22 + $0xde4] sm:$0xf]  ;;  %v11814_v57 = vld [vmem:[#allocation22 + $0xdf0] sm:$0xf0] }
 0x57c   : > { %7236 = vmatmul.bf16.vlgmr.msra.gmra.mxu0 %v15246_v36  ;;  %7249 = vmatmul.bf16.vlgmr.msra.gmra.mxu1 %v15248_v63  ;;  %v15327_v30 = vadd.f32 %v6231_v2, %v15307_v8  ;;  %v12896_v17 = vld [vmem:[#allocation22 + $0xb0c] sm:$0xf] }
 0x57d   : > { %7280 = vmatpush.bf16.msrb.mxu0 %v11437_v32  ;;  %7293 = vmatpush.bf16.msrb.mxu1 %v11565_v61  ;;  %v11377_v32 = vor.u32 %v12876_v7, %v11374_v12  ;;  %v11356_v61 = vld [vmem:[#allocation22 + $0xa48] sm:$0xf]  ;;  %v11453_v7 = vor.u32 %v12898_v35, %v11452_v15  ;;  %v11329_v12 = vor.u32 %v12864_v44, %v11326_v3  ;;  %v11638_v15 = vld [vmem:[#allocation22 + $0xc90] sm:$0xf0] }
 0x57e   : > { %7306 = vmatpush.bf16.msrb.mxu2 %v11441_v27  ;;  %7319 = vmatpush.bf16.msrb.mxu3 %v11569_v14  ;;  %v12874_v27 = vld [vmem:[#allocation22 + $0xa54] sm:$0xf0]  ;;  %v11766_v44 = vld [vmem:[#allocation22 + $0xd90] sm:$0xf0] }
 0x57f   : > { %7262 = vmatmul.bf16.vlgmr.msra.gmra.mxu2 %v15246_v36  ;;  %7275 = vmatmul.bf16.vlgmr.msra.gmra.mxu3 %v15248_v63  ;;  %v12906_v14 = vld [vmem:[#allocation22 + $0xb54] sm:$0xf0] }
 0x580   : > { %v11485_v29 = vor.u32 %v12906_v14, %v11484_v40  ;;  %v12953_v40 = vld [vmem:[#allocation22 + $0xccc] sm:$0xf0] }
 0x581   : > { %7281 = vmatpush.bf16.msrb.mxu0 %v11421_v25  ;;  %7294 = vmatpush.bf16.msrb.mxu1 %v11549_v34  ;;  %v6219_v8 = vpop.f32.mrf.mxu0  ;;  %v6232_v34 = vpop.f32.mrf.mxu1  ;;  %v12985_v14 = vld [vmem:[#allocation22 + $0xdcc] sm:$0xf0] }
 0x582   : > { %7307 = vmatpush.bf16.msrb.mxu2 %v11425_v51  ;;  %7320 = vmatpush.bf16.msrb.mxu3 %v11553_v4  ;;  %v6243_v26 = vpop.f32.mrf.mxu2  ;;  %v6256_v46 = vpop.f32.mrf.mxu3  ;;  %v11357_v51 = vor.u32 %v12874_v27, %v11356_v61  ;;  %v12870_v4 = vld [vmem:[#allocation22 + $0xa34] sm:$0xf0]  ;;  %v11668_v27 = vld [vmem:[#allocation22 + $0xcc0] sm:$0xf]  ;;  %v11798_v8 = vld [vmem:[#allocation22 + $0xdd0] sm:$0xf0] }
 0x583   : > { %v6257_v25 = vadd.f32 %v6256_v46, %v6243_v26  ;;  %v11341_v28 = vor.u32 %v12870_v4, %v11340_v58  ;;  %v11817_v26 = vor.u32 %v12987_v60, %v11814_v57  ;;  %v12983_v46 = vld [vmem:[#allocation22 + $0xdc4] sm:$0xf]  ;;  %v11669_v52 = vor.u32 %v12953_v40, %v11668_v27  ;;  %v11652_v34 = vld [vmem:[#allocation22 + $0xca0] sm:$0xf]  ;;  %v12981_v58 = vld [vmem:[#allocation22 + $0xdac] sm:$0xf0] }
 0x584   : > { %v12947_v4 = vld [vmem:[#allocation22 + $0xca4] sm:$0xf]  ;;  %v12969_v40 = vld [vmem:[#allocation22 + $0xd4c] sm:$0xf0] }
 0x585   : > { %7282 = vmatpush.bf16.msrb.mxu0 %v11405_v62  ;;  %7295 = vmatpush.bf16.msrb.mxu1 %v11533_v42  ;;  %v15330_v33 = vadd.f32 %v6257_v25, %v15310_v5  ;;  %v11342_v62 = vld [vmem:[#allocation22 + $0xa38] sm:$0xf0]  ;;  %v12900_v42 = vld [vmem:[#allocation22 + $0xb2c] sm:$0xf]  ;;  %v11673_v25 = vor.u32 %v12951_v9, %v11670_v43  ;;  %v12967_v9 = vld [vmem:[#allocation22 + $0xd44] sm:$0xf] }
 0x586   : > { %7308 = vmatpush.bf16.msrb.mxu2 %v11409_v31  ;;  %7321 = vmatpush.bf16.msrb.mxu3 %v11537_v47  ;;  %v11470_v31 = vld [vmem:[#allocation22 + $0xb38] sm:$0xf0]  ;;  %v11469_v47 = vor.u32 %v12902_v0, %v11468_v45  ;;  %v11345_v21 = vor.u32 %v12868_v41, %v11342_v62  ;;  %v11654_v45 = vld [vmem:[#allocation22 + $0xcb0] sm:$0xf0] }
 0x587   : > { %v11473_v5 = vor.u32 %v12900_v42, %v11470_v31  ;;  %v11782_v0 = vld [vmem:[#allocation22 + $0xdb0] sm:$0xf0]  ;;  %v11657_v42 = vor.u32 %v12947_v4, %v11654_v45  ;;  %v11636_v31 = vld [vmem:[#allocation22 + $0xc80] sm:$0xf]  ;;  %v12965_v4 = vld [vmem:[#allocation22 + $0xd2c] sm:$0xf0] }
 0x588   : > { %v11734_v43 = vld [vmem:[#allocation22 + $0xd50] sm:$0xf0]  ;;  %v12931_v45 = vld [vmem:[#allocation22 + $0xc24] sm:$0xf] }
 0x589   : > { %7283 = vmatpush.bf16.msrb.mxu0 %v11389_v53  ;;  %7296 = vmatpush.bf16.msrb.mxu1 %v11517_v1  ;;  %v11454_v53 = vld [vmem:[#allocation22 + $0xb18] sm:$0xf0]  ;;  %v11684_v1 = vld [vmem:[#allocation22 + $0xce0] sm:$0xf] }
 0x58a   : > { %7309 = vmatpush.bf16.msrb.mxu2 %v11393_v37  ;;  %7322 = vmatpush.bf16.msrb.mxu3 %v11521_v38  ;;  %v6245_v49 = vpop.f32.mrf.mxu2  ;;  %v6258_v2 = vpop.f32.mrf.mxu3  ;;  %v12957_v37 = vld [vmem:[#allocation22 + $0xcec] sm:$0xf0]  ;;  %v12955_v38 = vld [vmem:[#allocation22 + $0xce4] sm:$0xf] }
 0x58b   : > { %v11689_v61 = vor.u32 %v12955_v38, %v11686_v23  ;;  %v12941_v2 = vld [vmem:[#allocation22 + $0xc6c] sm:$0xf0]  ;;  %v12971_v23 = vld [vmem:[#allocation22 + $0xd64] sm:$0xf] }
 0x58d   : > { %7284 = vmatpush.bf16.msrb.mxu0 %v11373_v39  ;;  %7297 = vmatpush.bf16.msrb.mxu1 %v11501_v11  ;;  %v11457_v39 = vor.u32 %v12896_v17, %v11454_v53  ;;  %v11685_v11 = vor.u32 %v12957_v37, %v11684_v1  ;;  %v11620_v53 = vld [vmem:[#allocation22 + $0xc60] sm:$0xf] }
 0x58e   : > { %7310 = vmatpush.bf16.msrb.mxu2 %v11377_v32  ;;  %7323 = vmatpush.bf16.msrb.mxu3 %v11505_v56  ;;  %v11813_v32 = vor.u32 %v12989_v13, %v11812_v18  ;;  %v11796_v56 = vld [vmem:[#allocation22 + $0xdc0] sm:$0xf]  ;;  %v12973_v18 = vld [vmem:[#allocation22 + $0xd6c] sm:$0xf0]  ;;  %v11622_v13 = vld [vmem:[#allocation22 + $0xc70] sm:$0xf0] }
 0x58f   : > { %v11797_v16 = vor.u32 %v12985_v14, %v11796_v56  ;;  %v11748_v1 = vld [vmem:[#allocation22 + $0xd60] sm:$0xf]  ;;  %v12935_v56 = vld [vmem:[#allocation22 + $0xc44] sm:$0xf] }
 0x590   : > { %v11749_v60 = vor.u32 %v12973_v18, %v11748_v1  ;;  %v11694_v1 = vld [vmem:[#allocation22 + $0xcf8] sm:$0xf0] }
 0x591   : > { %7285 = vmatpush.bf16.msrb.mxu0 %v11357_v51  ;;  %7298 = vmatpush.bf16.msrb.mxu1 %v11485_v29  ;;  %v12949_v51 = vld [vmem:[#allocation22 + $0xcac] sm:$0xf0]  ;;  %v11780_v29 = vld [vmem:[#allocation22 + $0xda0] sm:$0xf] }
 0x592   : > { %7311 = vmatpush.bf16.msrb.mxu2 %v11361_v54  ;;  %7324 = vmatpush.bf16.msrb.mxu3 %v11489_v50  ;;  %v11801_v54 = vor.u32 %v12983_v46, %v11798_v8  ;;  %v12979_v50 = vld [vmem:[#allocation22 + $0xda4] sm:$0xf]  ;;  %v11653_v41 = vor.u32 %v12949_v51, %v11652_v34  ;;  %v11781_v62 = vor.u32 %v12981_v58, %v11780_v29  ;;  %v11588_v34 = vld [vmem:[#allocation22 + $0xc20] sm:$0xf]  ;;  %v12933_v51 = vld [vmem:[#allocation22 + $0xc2c] sm:$0xf0] }
 0x593   : > { %v11785_v19 = vor.u32 %v12979_v50, %v11782_v0  ;;  %v11716_v29 = vld [vmem:[#allocation22 + $0xd20] sm:$0xf]  ;;  %v11737_v58 = vor.u32 %v12967_v9, %v11734_v43  ;;  %v11590_v50 = vld [vmem:[#allocation22 + $0xc30] sm:$0xf0]  ;;  %v12963_v0 = vld [vmem:[#allocation22 + $0xd24] sm:$0xf] }
 0x594   : > { %v11660_v43 = vld [vmem:[#allocation22 + $0xca8] sm:$0xf] }
 0x595   : > { %7286 = vmatpush.bf16.msrb.mxu0 %v11341_v28  ;;  %7299 = vmatpush.bf16.msrb.mxu1 %v11469_v47  ;;  %v12945_v28 = vld [vmem:[#allocation22 + $0xc8c] sm:$0xf0] }
 0x596   : > { %7312 = vmatpush.bf16.msrb.mxu2 %v11345_v21  ;;  %7325 = vmatpush.bf16.msrb.mxu3 %v11473_v5  ;;  %v12977_v47 = vld [vmem:[#allocation22 + $0xd8c] sm:$0xf0]  ;;  %v12943_v21 = vld [vmem:[#allocation22 + $0xc84] sm:$0xf] }
 0x597   : > { %v11765_v3 = vor.u32 %v12977_v47, %v11764_v10  ;;  %v11641_v17 = vor.u32 %v12943_v21, %v11638_v15  ;;  %v11593_v10 = vor.u32 %v12931_v45, %v11590_v50  ;;  %v12961_v47 = vld [vmem:[#allocation22 + $0xd0c] sm:$0xf0]  ;;  %v12927_v21 = vld [vmem:[#allocation22 + $0xc04] sm:$0xf]  ;;  %v11644_v50 = vld [vmem:[#allocation22 + $0xc88] sm:$0xf] }
 0x599   : > { %7287 = vmatpush.bf16.msrb.mxu0 %v11325_v6  ;;  %7300 = vmatpush.bf16.msrb.mxu1 %v11453_v7  ;;  %v6269_v35 = vpop.f32.mrf.mxu0  ;;  %v6282_v5 = vpop.f32.mrf.mxu1  ;;  %v12939_v6 = vld [vmem:[#allocation22 + $0xc64] sm:$0xf]  ;;  %v11750_v7 = vld [vmem:[#allocation22 + $0xd70] sm:$0xf0] }
 0x59a   : > { %7313 = vmatpush.bf16.msrb.mxu2 %v11329_v12  ;;  %7326 = vmatpush.bf16.msrb.mxu3 %v11457_v39  ;;  %v6283_v49 = vadd.f32 %v6282_v5, %v6269_v35  ;;  %v11621_v12 = vor.u32 %v12941_v2, %v11620_v53  ;;  %v11625_v57 = vor.u32 %v12939_v6, %v11622_v13  ;;  %v11604_v39 = vld [vmem:[#allocation22 + $0xc40] sm:$0xf]  ;;  %v11574_v35 = vld [vmem:[#allocation22 + $0xc10] sm:$0xf0]  ;;  %v12990_v53 = vld [vmem:[#allocation22 + $0xdf4] sm:$0xf0] }
 0x59b   : > { %v12956_v2 = vld [vmem:[#allocation22 + $0xcec] sm:$0xf]  ;;  %v11577_v18 = vor.u32 %v12927_v21, %v11574_v35  ;;  %v11822_v13 = vld [vmem:[#allocation22 + $0xdf8] sm:$0xf0] }
 0x59c   : > { %7288 = vmatmul.bf16.vlgmr.msrb.gmra.mxu0 %v15246_v36  ;;  %7301 = vmatmul.bf16.vlgmr.msrb.gmra.mxu1 %v15248_v63  ;;  %v15337_v38 = vadd.f32 %v6283_v49, %v15317_v22  ;;  %v12958_v49 = vld [vmem:[#allocation22 + $0xcf4] sm:$0xf0]  ;;  %v12988_v6 = vld [vmem:[#allocation22 + $0xdec] sm:$0xf] }
 0x59d   : > { %7739 = vmatpush.bf16.msra.mxu0 %v11685_v11  ;;  %7752 = vmatpush.bf16.msra.mxu1 %v11813_v32  ;;  %v12937_v11 = vld [vmem:[#allocation22 + $0xc4c] sm:$0xf0]  ;;  %v11732_v32 = vld [vmem:[#allocation22 + $0xd40] sm:$0xf] }
 0x59e   : > { %7765 = vmatpush.bf16.msra.mxu2 %v11689_v61  ;;  %7778 = vmatpush.bf16.msra.mxu3 %v11817_v26  ;;  %v11753_v61 = vor.u32 %v12971_v23, %v11750_v7  ;;  %v11606_v26 = vld [vmem:[#allocation22 + $0xc50] sm:$0xf0] }
 0x59f   : > { %7314 = vmatmul.bf16.vlgmr.msrb.gmra.mxu2 %v15246_v36  ;;  %7327 = vmatmul.bf16.vlgmr.msrb.gmra.mxu3 %v15248_v63  ;;  %v12975_v36 = vld [vmem:[#allocation22 + $0xd84] sm:$0xf]  ;;  %v11637_v63 = vor.u32 %v12945_v28, %v11636_v31  ;;  %v12929_v31 = vld [vmem:[#allocation22 + $0xc0c] sm:$0xf0]  ;;  %v11717_v28 = vor.u32 %v12965_v4, %v11716_v29  ;;  %v11790_v29 = vld [vmem:[#allocation22 + $0xdb8] sm:$0xf0] }
 0x5a0   : > { %v11769_v37 = vor.u32 %v12975_v36, %v11766_v44  ;;  %v12959_v36 = vld [vmem:[#allocation22 + $0xd04] sm:$0xf]  ;;  %v11702_v44 = vld [vmem:[#allocation22 + $0xd10] sm:$0xf0] }
 0x5a1   : > { %7740 = vmatpush.bf16.msra.mxu0 %v11669_v52  ;;  %7753 = vmatpush.bf16.msra.mxu1 %v11797_v16  ;;  %v6271_v22 = vpop.f32.mrf.mxu0  ;;  %v6284_v8 = vpop.f32.mrf.mxu1  ;;  %v11605_v52 = vor.u32 %v12937_v11, %v11604_v39  ;;  %v11733_v16 = vor.u32 %v12969_v40, %v11732_v32  ;;  %v11705_v23 = vor.u32 %v12959_v36, %v11702_v44  ;;  %v12954_v39 = vld [vmem:[#allocation22 + $0xcd4] sm:$0xf0]  ;;  %v11804_v11 = vld [vmem:[#allocation22 + $0xdc8] sm:$0xf]  ;;  %v11678_v40 = vld [vmem:[#allocation22 + $0xcd8] sm:$0xf0] }
 0x5a2   : > { %7766 = vmatpush.bf16.msra.mxu2 %v11673_v25  ;;  %7779 = vmatpush.bf16.msra.mxu3 %v11801_v54  ;;  %v6295_v27 = vpop.f32.mrf.mxu2  ;;  %v6308_v14 = vpop.f32.mrf.mxu3  ;;  %v11609_v25 = vor.u32 %v12935_v56, %v11606_v26  ;;  %v11825_v32 = vor.u32 %v12988_v6, %v11822_v13  ;;  %v12984_v56 = vld [vmem:[#allocation22 + $0xdcc] sm:$0xf]  ;;  %v11806_v26 = vld [vmem:[#allocation22 + $0xdd8] sm:$0xf0]  ;;  %v11788_v8 = vld [vmem:[#allocation22 + $0xda8] sm:$0xf] }
 0x5a3   : > { %v6309_v46 = vadd.f32 %v6308_v14, %v6295_v27  ;;  %v12952_v27 = vld [vmem:[#allocation22 + $0xccc] sm:$0xf]  ;;  %v11628_v44 = vld [vmem:[#allocation22 + $0xc68] sm:$0xf] }
 0x5a4   : > { %v11681_v9 = vor.u32 %v12952_v27, %v11678_v40  ;;  %v12968_v27 = vld [vmem:[#allocation22 + $0xd4c] sm:$0xf]  ;;  %v11742_v40 = vld [vmem:[#allocation22 + $0xd58] sm:$0xf0] }
 0x5a5   : > { %7741 = vmatpush.bf16.msra.mxu0 %v11653_v41  ;;  %7754 = vmatpush.bf16.msra.mxu1 %v11781_v62  ;;  %v15340_v54 = vadd.f32 %v6309_v46, %v15320_v48  ;;  %v11718_v41 = vld [vmem:[#allocation22 + $0xd30] sm:$0xf0]  ;;  %v11589_v62 = vor.u32 %v12933_v51, %v11588_v34  ;;  %v12950_v46 = vld [vmem:[#allocation22 + $0xcb4] sm:$0xf0]  ;;  %v11662_v34 = vld [vmem:[#allocation22 + $0xcb8] sm:$0xf0] }
 0x5a6   : > { %7767 = vmatpush.bf16.msra.mxu2 %v11657_v42  ;;  %7780 = vmatpush.bf16.msra.mxu3 %v11785_v19  ;;  %v11572_v42 = vld [vmem:[#allocation22 + $0xc00] sm:$0xf]  ;;  %v11721_v48 = vor.u32 %v12963_v0, %v11718_v41  ;;  %v12980_v51 = vld [vmem:[#allocation22 + $0xdac] sm:$0xf]  ;;  %v12946_v0 = vld [vmem:[#allocation22 + $0xc94] sm:$0xf0] }
 0x5a7   : > { %v11700_v19 = vld [vmem:[#allocation22 + $0xd00] sm:$0xf]  ;;  %v11772_v41 = vld [vmem:[#allocation22 + $0xd88] sm:$0xf] }
 0x5a9   : > { %7742 = vmatpush.bf16.msra.mxu0 %v11637_v63  ;;  %7755 = vmatpush.bf16.msra.mxu1 %v11765_v3  ;;  %v11692_v63 = vld [vmem:[#allocation22 + $0xce8] sm:$0xf] }
 0x5aa   : > { %7768 = vmatpush.bf16.msra.mxu2 %v11641_v17  ;;  %7781 = vmatpush.bf16.msra.mxu3 %v11769_v37  ;;  %v6297_v15 = vpop.f32.mrf.mxu2  ;;  %v6310_v5 = vpop.f32.mrf.mxu3  ;;  %v11820_v3 = vld [vmem:[#allocation22 + $0xde8] sm:$0xf]  ;;  %v11573_v17 = vor.u32 %v12929_v31, %v11572_v42  ;;  %v11701_v37 = vor.u32 %v12961_v47, %v11700_v19  ;;  %v11693_v7 = vor.u32 %v12958_v49, %v11692_v63  ;;  %v12978_v42 = vld [vmem:[#allocation22 + $0xd94] sm:$0xf0]  ;;  %v12944_v31 = vld [vmem:[#allocation22 + $0xc8c] sm:$0xf] }
 0x5ab   : > { %v12976_v19 = vld [vmem:[#allocation22 + $0xd8c] sm:$0xf]  ;;  %v11774_v47 = vld [vmem:[#allocation22 + $0xd98] sm:$0xf0]  ;;  %v11773_v35 = vor.u32 %v12978_v42, %v11772_v41  ;;  %v12942_v5 = vld [vmem:[#allocation22 + $0xc74] sm:$0xf0] }
 0x5ac   : > { %v11756_v63 = vld [vmem:[#allocation22 + $0xd68] sm:$0xf]  ;;  %v11777_v49 = vor.u32 %v12976_v19, %v11774_v47  ;;  %v12962_v42 = vld [vmem:[#allocation22 + $0xd14] sm:$0xf0]  ;;  %v12960_v19 = vld [vmem:[#allocation22 + $0xd0c] sm:$0xf] }
 0x5ad   : > { %7743 = vmatpush.bf16.msra.mxu0 %v11621_v12  ;;  %7756 = vmatpush.bf16.msra.mxu1 %v11749_v60  ;;  %v11821_v12 = vor.u32 %v12990_v53, %v11820_v3  ;;  %v11697_v60 = vor.u32 %v12956_v2, %v11694_v1  ;;  %v12974_v3 = vld [vmem:[#allocation22 + $0xd74] sm:$0xf0]  ;;  %v11630_v53 = vld [vmem:[#allocation22 + $0xc78] sm:$0xf0]  ;;  %v12972_v1 = vld [vmem:[#allocation22 + $0xd6c] sm:$0xf] }
 0x5ae   : > { %7769 = vmatpush.bf16.msra.mxu2 %v11625_v57  ;;  %7782 = vmatpush.bf16.msra.mxu3 %v11753_v61  ;;  %v11676_v57 = vld [vmem:[#allocation22 + $0xcc8] sm:$0xf]  ;;  %v12986_v61 = vld [vmem:[#allocation22 + $0xdd4] sm:$0xf0]  ;;  %v11757_v6 = vor.u32 %v12974_v3, %v11756_v63  ;;  %v11710_v47 = vld [vmem:[#allocation22 + $0xd18] sm:$0xf0] }
 0x5af   : > { %v11677_v14 = vor.u32 %v12954_v39, %v11676_v57  ;;  %v11805_v22 = vor.u32 %v12986_v61, %v11804_v11  ;;  %v12970_v39 = vld [vmem:[#allocation22 + $0xd54] sm:$0xf0]  ;;  %v12936_v11 = vld [vmem:[#allocation22 + $0xc4c] sm:$0xf]  ;;  %v11943_v63 = vld [vmem:[#allocation22 + $0xef0] sm:$0xf0] }
 0x5b1   : > { %7744 = vmatpush.bf16.msra.mxu0 %v11605_v52  ;;  %7757 = vmatpush.bf16.msra.mxu1 %v11733_v16  ;;  %v11809_v52 = vor.u32 %v12984_v56, %v11806_v26  ;;  %v12982_v16 = vld [vmem:[#allocation22 + $0xdb4] sm:$0xf0] }
 0x5b2   : > { %7770 = vmatpush.bf16.msra.mxu2 %v11609_v25  ;;  %7783 = vmatpush.bf16.msra.mxu3 %v11737_v58  ;;  %v12948_v25 = vld [vmem:[#allocation22 + $0xcac] sm:$0xf]  ;;  %v11661_v58 = vor.u32 %v12950_v46, %v11660_v43  ;;  %v11789_v4 = vor.u32 %v12982_v16, %v11788_v8  ;;  %v11596_v43 = vld [vmem:[#allocation22 + $0xc28] sm:$0xf]  ;;  %v12934_v46 = vld [vmem:[#allocation22 + $0xc34] sm:$0xf0]  ;;  %v11745_v16 = vor.u32 %v12968_v27, %v11742_v40 }
 0x5b3   : > { %v11665_v45 = vor.u32 %v12948_v25, %v11662_v34  ;;  %v11724_v8 = vld [vmem:[#allocation22 + $0xd28] sm:$0xf]  ;;  %v12966_v25 = vld [vmem:[#allocation22 + $0xd34] sm:$0xf0]  ;;  %v12932_v34 = vld [vmem:[#allocation22 + $0xc2c] sm:$0xf] }
 0x5b4   : > { %v11909_v40 = vld [vmem:[#allocation22 + $0xea0] sm:$0xf] }
 0x5b5   : > { %7745 = vmatpush.bf16.msra.mxu0 %v11589_v62  ;;  %7758 = vmatpush.bf16.msra.mxu1 %v11717_v28  ;;  %v11793_v62 = vor.u32 %v12980_v51, %v11790_v29  ;;  %v11646_v28 = vld [vmem:[#allocation22 + $0xc98] sm:$0xf0]  ;;  %v12964_v29 = vld [vmem:[#allocation22 + $0xd2c] sm:$0xf] }
 0x5b6   : > { %7771 = vmatpush.bf16.msra.mxu2 %v11593_v10  ;;  %7784 = vmatpush.bf16.msra.mxu3 %v11721_v48  ;;  %v11645_v48 = vor.u32 %v12946_v0, %v11644_v50  ;;  %v11649_v36 = vor.u32 %v12944_v31, %v11646_v28  ;;  %v11598_v51 = vld [vmem:[#allocation22 + $0xc38] sm:$0xf0]  ;;  %v12930_v50 = vld [vmem:[#allocation22 + $0xc14] sm:$0xf0]  ;;  %v11725_v0 = vor.u32 %v12966_v25, %v11724_v8  ;;  %v12928_v31 = vld [vmem:[#allocation22 + $0xc0c] sm:$0xf] }
 0x5b7   : > { %v11601_v41 = vor.u32 %v12932_v34, %v11598_v51  ;;  %v12039_v8 = vld [vmem:[#allocation22 + $0xfb0] sm:$0xf0]  ;;  %v11893_v51 = vld [vmem:[#allocation22 + $0xe80] sm:$0xf] }
 0x5b9   : > { %7746 = vmatpush.bf16.msra.mxu0 %v11573_v17  ;;  %7759 = vmatpush.bf16.msra.mxu1 %v11701_v37  ;;  %v6731_v10 = vpop.f32.mrf.mxu0  ;;  %v6744_v21 = vpop.f32.mrf.mxu1  ;;  %v12940_v17 = vld [vmem:[#allocation22 + $0xc6c] sm:$0xf]  ;;  %v11758_v37 = vld [vmem:[#allocation22 + $0xd78] sm:$0xf0] }
 0x5ba   : > { %7772 = vmatpush.bf16.msra.mxu2 %v11577_v18  ;;  %7785 = vmatpush.bf16.msra.mxu3 %v11705_v23  ;;  %v6745_v15 = vadd.f32 %v6744_v21, %v6731_v10  ;;  %v11629_v18 = vor.u32 %v12942_v5, %v11628_v44  ;;  %v11633_v13 = vor.u32 %v12940_v17, %v11630_v53  ;;  %v11612_v23 = vld [vmem:[#allocation22 + $0xc48] sm:$0xf]  ;;  %v11582_v10 = vld [vmem:[#allocation22 + $0xc18] sm:$0xf0]  ;;  %v13053_v44 = vld [vmem:[#allocation22 + $0xfec] sm:$0xf0] }
 0x5bb   : > { %v13019_v5 = vld [vmem:[#allocation22 + $0xee4] sm:$0xf]  ;;  %v11585_v3 = vor.u32 %v12928_v31, %v11582_v10  ;;  %v12071_v53 = vld [vmem:[#allocation22 + $0xff0] sm:$0xf0]  ;;  %v11877_v10 = vld [vmem:[#allocation22 + $0xe60] sm:$0xf] }
 0x5bc   : > { %7747 = vmatmul.bf16.vlgmr.msra.gmra.mxu0 %v15263_v20  ;;  %7760 = vmatmul.bf16.vlgmr.msra.gmra.mxu1 %v15265_v55  ;;  %v15347_v2 = vadd.f32 %v6745_v15, %v15327_v30  ;;  %v13021_v15 = vld [vmem:[#allocation22 + $0xeec] sm:$0xf0]  ;;  %v13051_v17 = vld [vmem:[#allocation22 + $0xfe4] sm:$0xf] }
 0x5bd   : > { %7791 = vmatpush.bf16.msrb.mxu0 %v11693_v7  ;;  %7804 = vmatpush.bf16.msrb.mxu1 %v11821_v12  ;;  %v12938_v7 = vld [vmem:[#allocation22 + $0xc54] sm:$0xf0]  ;;  %v11740_v12 = vld [vmem:[#allocation22 + $0xd48] sm:$0xf] }
 0x5be   : > { %7817 = vmatpush.bf16.msrb.mxu2 %v11697_v60  ;;  %7830 = vmatpush.bf16.msrb.mxu3 %v11825_v32  ;;  %v11761_v60 = vor.u32 %v12972_v1, %v11758_v37  ;;  %v11614_v32 = vld [vmem:[#allocation22 + $0xc58] sm:$0xf0]  ;;  %v11713_v1 = vor.u32 %v12960_v19, %v11710_v47  ;;  %v13005_v19 = vld [vmem:[#allocation22 + $0xe6c] sm:$0xf0]  ;;  %v12005_v47 = vld [vmem:[#allocation22 + $0xf60] sm:$0xf] }
 0x5bf   : > { %7773 = vmatmul.bf16.vlgmr.msra.gmra.mxu2 %v15263_v20  ;;  %7786 = vmatmul.bf16.vlgmr.msra.gmra.mxu3 %v15265_v55 }
 0x5c1   : > { %7792 = vmatpush.bf16.msrb.mxu0 %v11677_v14  ;;  %7805 = vmatpush.bf16.msrb.mxu1 %v11805_v22  ;;  %v6733_v30 = vpop.f32.mrf.mxu0  ;;  %v6746_v26 = vpop.f32.mrf.mxu1  ;;  %v11613_v14 = vor.u32 %v12938_v7, %v11612_v23  ;;  %v11741_v22 = vor.u32 %v12970_v39, %v11740_v12  ;;  %v13017_v23 = vld [vmem:[#allocation22 + $0xecc] sm:$0xf0]  ;;  %v12053_v7 = vld [vmem:[#allocation22 + $0xfc0] sm:$0xf]  ;;  %v12074_v12 = vor.u32 %v13051_v17, %v12071_v53  ;;  %v11927_v39 = vld [vmem:[#allocation22 + $0xed0] sm:$0xf0] }
 0x5c2   : > { %7818 = vmatpush.bf16.msrb.mxu2 %v11681_v9  ;;  %7831 = vmatpush.bf16.msrb.mxu3 %v11809_v52  ;;  %v6757_v57 = vpop.f32.mrf.mxu2  ;;  %v6770_v61 = vpop.f32.mrf.mxu3  ;;  %v11617_v9 = vor.u32 %v12936_v11, %v11614_v32  ;;  %v13047_v11 = vld [vmem:[#allocation22 + $0xfc4] sm:$0xf]  ;;  %v12055_v32 = vld [vmem:[#allocation22 + $0xfd0] sm:$0xf0]  ;;  %v12037_v26 = vld [vmem:[#allocation22 + $0xfa0] sm:$0xf] }
 0x5c3   : > { %v6771_v56 = vadd.f32 %v6770_v61, %v6757_v57  ;;  %v13015_v57 = vld [vmem:[#allocation22 + $0xec4] sm:$0xf]  ;;  %v11861_v17 = vld [vmem:[#allocation22 + $0xe40] sm:$0xf]  ;;  %v13001_v53 = vld [vmem:[#allocation22 + $0xe4c] sm:$0xf0] }
 0x5c4   : > { %v11930_v27 = vor.u32 %v13015_v57, %v11927_v39 }
 0x5c5   : > { %7793 = vmatpush.bf16.msrb.mxu0 %v11661_v58  ;;  %7806 = vmatpush.bf16.msrb.mxu1 %v11789_v4  ;;  %v15350_v52 = vadd.f32 %v6771_v56, %v15330_v33  ;;  %v11726_v58 = vld [vmem:[#allocation22 + $0xd38] sm:$0xf0]  ;;  %v11597_v4 = vor.u32 %v12934_v46, %v11596_v43  ;;  %v13013_v56 = vld [vmem:[#allocation22 + $0xeac] sm:$0xf0]  ;;  %v11911_v43 = vld [vmem:[#allocation22 + $0xeb0] sm:$0xf0] }
 0x5c6   : > { %7819 = vmatpush.bf16.msrb.mxu2 %v11665_v45  ;;  %7832 = vmatpush.bf16.msrb.mxu3 %v11793_v62  ;;  %v11580_v45 = vld [vmem:[#allocation22 + $0xc08] sm:$0xf]  ;;  %v11729_v33 = vor.u32 %v12964_v29, %v11726_v58  ;;  %v13043_v46 = vld [vmem:[#allocation22 + $0xfa4] sm:$0xf]  ;;  %v13009_v29 = vld [vmem:[#allocation22 + $0xe8c] sm:$0xf0] }
 0x5c7   : > { %v11708_v62 = vld [vmem:[#allocation22 + $0xd08] sm:$0xf]  ;;  %v12021_v58 = vld [vmem:[#allocation22 + $0xf80] sm:$0xf] }
 0x5c9   : > { %7794 = vmatpush.bf16.msrb.mxu0 %v11645_v48  ;;  %7807 = vmatpush.bf16.msrb.mxu1 %v11773_v35  ;;  %v11941_v48 = vld [vmem:[#allocation22 + $0xee0] sm:$0xf] }
 0x5ca   : > { %7820 = vmatpush.bf16.msrb.mxu2 %v11649_v36  ;;  %7833 = vmatpush.bf16.msrb.mxu3 %v11777_v49  ;;  %v6759_v28 = vpop.f32.mrf.mxu2  ;;  %v6772_v21 = vpop.f32.mrf.mxu3  ;;  %v12069_v35 = vld [vmem:[#allocation22 + $0xfe0] sm:$0xf]  ;;  %v11581_v36 = vor.u32 %v12930_v50, %v11580_v45  ;;  %v11709_v49 = vor.u32 %v12962_v42, %v11708_v62  ;;  %v11942_v37 = vor.u32 %v13021_v15, %v11941_v48  ;;  %v13041_v45 = vld [vmem:[#allocation22 + $0xf8c] sm:$0xf0]  ;;  %v13007_v50 = vld [vmem:[#allocation22 + $0xe84] sm:$0xf] }
 0x5cb   : > { %v12023_v62 = vld [vmem:[#allocation22 + $0xf90] sm:$0xf0]  ;;  %v13037_v48 = vld [vmem:[#allocation22 + $0xf6c] sm:$0xf0]  ;;  %v13003_v15 = vld [vmem:[#allocation22 + $0xe64] sm:$0xf] }
 0x5cd   : > { %7795 = vmatpush.bf16.msrb.mxu0 %v11629_v18  ;;  %7808 = vmatpush.bf16.msrb.mxu1 %v11757_v6  ;;  %v12070_v18 = vor.u32 %v13053_v44, %v12069_v35  ;;  %v11946_v6 = vor.u32 %v13019_v5, %v11943_v63  ;;  %v11879_v35 = vld [vmem:[#allocation22 + $0xe70] sm:$0xf0]  ;;  %v13035_v44 = vld [vmem:[#allocation22 + $0xf64] sm:$0xf]  ;;  %v11878_v63 = vor.u32 %v13005_v19, %v11877_v10  ;;  %v11951_v10 = vld [vmem:[#allocation22 + $0xef8] sm:$0xf0] }
 0x5ce   : > { %7821 = vmatpush.bf16.msrb.mxu2 %v11633_v13  ;;  %7834 = vmatpush.bf16.msrb.mxu3 %v11761_v60  ;;  %v11925_v13 = vld [vmem:[#allocation22 + $0xec0] sm:$0xf]  ;;  %v13049_v60 = vld [vmem:[#allocation22 + $0xfcc] sm:$0xf0]  ;;  %v12007_v5 = vld [vmem:[#allocation22 + $0xf70] sm:$0xf0] }
 0x5cf   : > { %v11926_v61 = vor.u32 %v13017_v23, %v11925_v13  ;;  %v12054_v30 = vor.u32 %v13049_v60, %v12053_v7  ;;  %v12999_v13 = vld [vmem:[#allocation22 + $0xe44] sm:$0xf]  ;;  %v11863_v23 = vld [vmem:[#allocation22 + $0xe50] sm:$0xf0] }
 0x5d0   : > { %v11991_v60 = vld [vmem:[#allocation22 + $0xf50] sm:$0xf0] }
 0x5d1   : > { %7796 = vmatpush.bf16.msrb.mxu0 %v11613_v14  ;;  %7809 = vmatpush.bf16.msrb.mxu1 %v11741_v22  ;;  %v12058_v14 = vor.u32 %v13047_v11, %v12055_v32  ;;  %v13045_v22 = vld [vmem:[#allocation22 + $0xfac] sm:$0xf0]  ;;  %v11862_v11 = vor.u32 %v13001_v53, %v11861_v17  ;;  %v13050_v53 = vld [vmem:[#allocation22 + $0xfd4] sm:$0xf0] }
 0x5d2   : > { %7822 = vmatpush.bf16.msrb.mxu2 %v11617_v9  ;;  %7835 = vmatpush.bf16.msrb.mxu3 %v11745_v16  ;;  %v13011_v9 = vld [vmem:[#allocation22 + $0xea4] sm:$0xf]  ;;  %v11910_v16 = vor.u32 %v13013_v56, %v11909_v40  ;;  %v12038_v25 = vor.u32 %v13045_v22, %v12037_v26  ;;  %v11973_v40 = vld [vmem:[#allocation22 + $0xf20] sm:$0xf] }
 0x5d3   : > { %v11914_v34 = vor.u32 %v13011_v9, %v11911_v43  ;;  %v12995_v22 = vld [vmem:[#allocation22 + $0xe24] sm:$0xf]  ;;  %v11847_v9 = vld [vmem:[#allocation22 + $0xe30] sm:$0xf0] }
 0x5d4   : > { %v13027_v43 = vld [vmem:[#allocation22 + $0xf24] sm:$0xf] }
 0x5d5   : > { %7797 = vmatpush.bf16.msrb.mxu0 %v11597_v4  ;;  %7810 = vmatpush.bf16.msrb.mxu1 %v11725_v0  ;;  %v12042_v4 = vor.u32 %v13043_v46, %v12039_v8  ;;  %v11895_v0 = vld [vmem:[#allocation22 + $0xe90] sm:$0xf0] }
 0x5d6   : > { %7823 = vmatpush.bf16.msrb.mxu2 %v11601_v41  ;;  %7836 = vmatpush.bf16.msrb.mxu3 %v11729_v33  ;;  %v12022_v33 = vor.u32 %v13041_v45, %v12021_v58  ;;  %v11898_v28 = vor.u32 %v13007_v50, %v11895_v0  ;;  %v11975_v46 = vld [vmem:[#allocation22 + $0xf30] sm:$0xf0]  ;;  %v13025_v58 = vld [vmem:[#allocation22 + $0xf0c] sm:$0xf0]  ;;  %v13023_v0 = vld [vmem:[#allocation22 + $0xf04] sm:$0xf] }
 0x5d7   : > { %v11831_v50 = vld [vmem:[#allocation22 + $0xe10] sm:$0xf0] }
 0x5d9   : > { %7798 = vmatpush.bf16.msrb.mxu0 %v11581_v36  ;;  %7811 = vmatpush.bf16.msrb.mxu1 %v11709_v49  ;;  %v6783_v41 = vpop.f32.mrf.mxu0  ;;  %v6796_v42 = vpop.f32.mrf.mxu1  ;;  %v12006_v49 = vor.u32 %v13037_v48, %v12005_v47  ;;  %v12079_v48 = vld [vmem:[#allocation22 + $0xff8] sm:$0xf0] }
 0x5da   : > { %7824 = vmatpush.bf16.msrb.mxu2 %v11585_v3  ;;  %7837 = vmatpush.bf16.msrb.mxu3 %v11713_v1  ;;  %v6797_v31 = vadd.f32 %v6796_v42, %v6783_v41  ;;  %v11882_v3 = vor.u32 %v13003_v15, %v11879_v35  ;;  %v11989_v1 = vld [vmem:[#allocation22 + $0xf40] sm:$0xf]  ;;  %v11959_v41 = vld [vmem:[#allocation22 + $0xf10] sm:$0xf0]  ;;  %v13022_v42 = vld [vmem:[#allocation22 + $0xef4] sm:$0xf0] }
 0x5db   : > { %v11962_v15 = vor.u32 %v13023_v0, %v11959_v41  ;;  %v13006_v0 = vld [vmem:[#allocation22 + $0xe74] sm:$0xf0]  ;;  %v12013_v41 = vld [vmem:[#allocation22 + $0xf68] sm:$0xf] }
 0x5dc   : > { %7799 = vmatmul.bf16.vlgmr.msrb.gmra.mxu0 %v15263_v20  ;;  %7812 = vmatmul.bf16.vlgmr.msrb.gmra.mxu1 %v15265_v55  ;;  %v15357_v36 = vadd.f32 %v6797_v31, %v15337_v38 }
 0x5dd   : > { %8253 = vmatpush.bf16.msra.mxu0 %v11942_v37  ;;  %8266 = vmatpush.bf16.msra.mxu1 %v12070_v18  ;;  %v12010_v37 = vor.u32 %v13035_v44, %v12007_v5 }
 0x5de   : > { %8279 = vmatpush.bf16.msra.mxu2 %v11946_v6  ;;  %8292 = vmatpush.bf16.msra.mxu3 %v12074_v12  ;;  %v13033_v6 = vld [vmem:[#allocation22 + $0xf4c] sm:$0xf0]  ;;  %v13031_v12 = vld [vmem:[#allocation22 + $0xf44] sm:$0xf] }
 0x5df   : > { %7825 = vmatmul.bf16.vlgmr.msrb.gmra.mxu2 %v15263_v20  ;;  %7838 = vmatmul.bf16.vlgmr.msrb.gmra.mxu3 %v15265_v55  ;;  %v13039_v20 = vld [vmem:[#allocation22 + $0xf84] sm:$0xf]  ;;  %v11894_v55 = vor.u32 %v13009_v29, %v11893_v51  ;;  %v11990_v32 = vor.u32 %v13033_v6, %v11989_v1  ;;  %v11994_v26 = vor.u32 %v13031_v12, %v11991_v60  ;;  %v11957_v29 = vld [vmem:[#allocation22 + $0xf00] sm:$0xf]  ;;  %v13016_v1 = vld [vmem:[#allocation22 + $0xecc] sm:$0xf] }
 0x5e0   : > { %v12026_v21 = vor.u32 %v13039_v20, %v12023_v62  ;;  %v11850_v51 = vor.u32 %v12995_v22, %v11847_v9  ;;  %v11949_v62 = vld [vmem:[#allocation22 + $0xee8] sm:$0xf]  ;;  %v11958_v19 = vor.u32 %v13025_v58, %v11957_v29  ;;  %v12063_v6 = vld [vmem:[#allocation22 + $0xfd8] sm:$0xf0]  ;;  %v13014_v12 = vld [vmem:[#allocation22 + $0xeb4] sm:$0xf0] }
 0x5e1   : > { %8254 = vmatpush.bf16.msra.mxu0 %v11926_v61  ;;  %8267 = vmatpush.bf16.msra.mxu1 %v12054_v30  ;;  %v6785_v38 = vpop.f32.mrf.mxu0  ;;  %v6798_v39 = vpop.f32.mrf.mxu1  ;;  %v11866_v61 = vor.u32 %v12999_v13, %v11863_v23  ;;  %v11845_v30 = vld [vmem:[#allocation22 + $0xe20] sm:$0xf]  ;;  %v11950_v35 = vor.u32 %v13022_v42, %v11949_v62  ;;  %v12045_v60 = vld [vmem:[#allocation22 + $0xfa8] sm:$0xf]  ;;  %v13010_v22 = vld [vmem:[#allocation22 + $0xe94] sm:$0xf0] }
 0x5e2   : > { %8280 = vmatpush.bf16.msra.mxu2 %v11930_v27  ;;  %8293 = vmatpush.bf16.msra.mxu3 %v12058_v14  ;;  %v6809_v18 = vpop.f32.mrf.mxu2  ;;  %v6822_v7 = vpop.f32.mrf.mxu3  ;;  %v12997_v27 = vld [vmem:[#allocation22 + $0xe2c] sm:$0xf0]  ;;  %v11917_v38 = vld [vmem:[#allocation22 + $0xea8] sm:$0xf]  ;;  %v13046_v39 = vld [vmem:[#allocation22 + $0xfb4] sm:$0xf0] }
 0x5e3   : > { %v6823_v57 = vadd.f32 %v6822_v7, %v6809_v18  ;;  %v13029_v14 = vld [vmem:[#allocation22 + $0xf2c] sm:$0xf0]  ;;  %v11846_v8 = vor.u32 %v12997_v27, %v11845_v30  ;;  %v13048_v18 = vld [vmem:[#allocation22 + $0xfcc] sm:$0xf]  ;;  %v12047_v30 = vld [vmem:[#allocation22 + $0xfb8] sm:$0xf0]  ;;  %v11918_v27 = vor.u32 %v13014_v12, %v11917_v38 }
 0x5e4   : > { %v12029_v9 = vld [vmem:[#allocation22 + $0xf88] sm:$0xf]  ;;  %v13038_v62 = vld [vmem:[#allocation22 + $0xf74] sm:$0xf0]  ;;  %v13004_v42 = vld [vmem:[#allocation22 + $0xe6c] sm:$0xf] }
 0x5e5   : > { %8255 = vmatpush.bf16.msra.mxu0 %v11910_v16  ;;  %8268 = vmatpush.bf16.msra.mxu1 %v12038_v25  ;;  %v15360_v56 = vadd.f32 %v6823_v57, %v15340_v54  ;;  %v11829_v16 = vld [vmem:[#allocation22 + $0xe00] sm:$0xf]  ;;  %v12993_v25 = vld [vmem:[#allocation22 + $0xe0c] sm:$0xf0]  ;;  %v11978_v54 = vor.u32 %v13027_v43, %v11975_v46  ;;  %v12066_v57 = vor.u32 %v13048_v18, %v12063_v6  ;;  %v13042_v46 = vld [vmem:[#allocation22 + $0xf94] sm:$0xf0] }
 0x5e6   : > { %8281 = vmatpush.bf16.msra.mxu2 %v11914_v34  ;;  %8294 = vmatpush.bf16.msra.mxu3 %v12042_v4  ;;  %v11974_v34 = vor.u32 %v13029_v14, %v11973_v40  ;;  %v12991_v4 = vld [vmem:[#allocation22 + $0xe04] sm:$0xf]  ;;  %v11830_v31 = vor.u32 %v12993_v25, %v11829_v16  ;;  %v12046_v40 = vor.u32 %v13046_v39, %v12045_v60  ;;  %v11901_v14 = vld [vmem:[#allocation22 + $0xe88] sm:$0xf]  ;;  %v11903_v16 = vld [vmem:[#allocation22 + $0xe98] sm:$0xf0] }
 0x5e7   : > { %v11834_v47 = vor.u32 %v12991_v4, %v11831_v50  ;;  %v11902_v58 = vor.u32 %v13010_v22, %v11901_v14  ;;  %v11885_v50 = vld [vmem:[#allocation22 + $0xe68] sm:$0xf]  ;;  %v12996_v39 = vld [vmem:[#allocation22 + $0xe2c] sm:$0xf] }
 0x5e8   : > { %v11981_v38 = vld [vmem:[#allocation22 + $0xf28] sm:$0xf] }
 0x5e9   : > { %8256 = vmatpush.bf16.msra.mxu0 %v11894_v55  ;;  %8269 = vmatpush.bf16.msra.mxu1 %v12022_v33  ;;  %v12077_v55 = vld [vmem:[#allocation22 + $0xfe8] sm:$0xf]  ;;  %v13054_v33 = vld [vmem:[#allocation22 + $0xff4] sm:$0xf0] }
 0x5ea   : > { %8282 = vmatpush.bf16.msra.mxu2 %v11898_v28  ;;  %8295 = vmatpush.bf16.msra.mxu3 %v12026_v21  ;;  %v6811_v45 = vpop.f32.mrf.mxu2  ;;  %v6824_v20 = vpop.f32.mrf.mxu3  ;;  %v13020_v28 = vld [vmem:[#allocation22 + $0xeec] sm:$0xf]  ;;  %v12078_v44 = vor.u32 %v13054_v33, %v12077_v55  ;;  %v11887_v55 = vld [vmem:[#allocation22 + $0xe78] sm:$0xf0]  ;;  %v11965_v22 = vld [vmem:[#allocation22 + $0xf08] sm:$0xf] }
 0x5eb   : > { %v13052_v21 = vld [vmem:[#allocation22 + $0xfec] sm:$0xf]  ;;  %v11954_v5 = vor.u32 %v13020_v28, %v11951_v10  ;;  %v12015_v28 = vld [vmem:[#allocation22 + $0xf78] sm:$0xf0]  ;;  %v11886_v10 = vor.u32 %v13006_v0, %v11885_v50  ;;  %v12199_v50 = vld [vmem:[#allocation22 + $0x10f0] sm:$0xf0] }
 0x5ec   : > { %v12082_v17 = vor.u32 %v13052_v21, %v12079_v48  ;;  %v13036_v33 = vld [vmem:[#allocation22 + $0xf6c] sm:$0xf]  ;;  %v11869_v21 = vld [vmem:[#allocation22 + $0xe48] sm:$0xf]  ;;  %v13002_v48 = vld [vmem:[#allocation22 + $0xe54] sm:$0xf0] }
 0x5ed   : > { %8257 = vmatpush.bf16.msra.mxu0 %v11878_v63  ;;  %8270 = vmatpush.bf16.msra.mxu1 %v12006_v49  ;;  %v11933_v63 = vld [vmem:[#allocation22 + $0xec8] sm:$0xf]  ;;  %v13018_v49 = vld [vmem:[#allocation22 + $0xed4] sm:$0xf0]  ;;  %v11870_v18 = vor.u32 %v13002_v48, %v11869_v21  ;;  %v13113_v48 = vld [vmem:[#allocation22 + $0x11cc] sm:$0xf0] }
 0x5ee   : > { %8283 = vmatpush.bf16.msra.mxu2 %v11882_v3  ;;  %8296 = vmatpush.bf16.msra.mxu3 %v12010_v37  ;;  %v12061_v3 = vld [vmem:[#allocation22 + $0xfc8] sm:$0xf]  ;;  %v11935_v37 = vld [vmem:[#allocation22 + $0xed8] sm:$0xf0]  ;;  %v11934_v13 = vor.u32 %v13018_v49, %v11933_v63  ;;  %v13000_v63 = vld [vmem:[#allocation22 + $0xe4c] sm:$0xf] }
 0x5ef   : > { %v12062_v23 = vor.u32 %v13050_v53, %v12061_v3  ;;  %v11938_v7 = vor.u32 %v13016_v1, %v11935_v37  ;;  %v11871_v49 = vld [vmem:[#allocation22 + $0xe58] sm:$0xf0] }
 0x5f0   : > { %v11999_v53 = vld [vmem:[#allocation22 + $0xf58] sm:$0xf0] }
 0x5f1   : > { %8258 = vmatpush.bf16.msra.mxu0 %v11862_v11  ;;  %8271 = vmatpush.bf16.msra.mxu1 %v11990_v32  ;;  %v13012_v11 = vld [vmem:[#allocation22 + $0xeac] sm:$0xf]  ;;  %v11919_v32 = vld [vmem:[#allocation22 + $0xeb8] sm:$0xf0] }
 0x5f2   : > { %8284 = vmatpush.bf16.msra.mxu2 %v11866_v61  ;;  %8297 = vmatpush.bf16.msra.mxu3 %v11994_v26  ;;  %v13044_v61 = vld [vmem:[#allocation22 + $0xfac] sm:$0xf]  ;;  %v11922_v26 = vor.u32 %v13012_v11, %v11919_v32  ;;  %v11855_v11 = vld [vmem:[#allocation22 + $0xe38] sm:$0xf0] }
 0x5f3   : > { %v12050_v43 = vor.u32 %v13044_v61, %v12047_v30  ;;  %v13028_v32 = vld [vmem:[#allocation22 + $0xf2c] sm:$0xf]  ;;  %v11983_v61 = vld [vmem:[#allocation22 + $0xf38] sm:$0xf0]  ;;  %v11858_v14 = vor.u32 %v12996_v39, %v11855_v11  ;;  %v13073_v39 = vld [vmem:[#allocation22 + $0x108c] sm:$0xf0] }
 0x5f4   : > { %v12277_v11 = vld [vmem:[#allocation22 + $0x1180] sm:$0xf] }
 0x5f5   : > { %8259 = vmatpush.bf16.msra.mxu0 %v11846_v8  ;;  %8272 = vmatpush.bf16.msra.mxu1 %v11974_v34  ;;  %v13008_v8 = vld [vmem:[#allocation22 + $0xe8c] sm:$0xf] }
 0x5f6   : > { %8285 = vmatpush.bf16.msra.mxu2 %v11850_v51  ;;  %8298 = vmatpush.bf16.msra.mxu3 %v11978_v54  ;;  %v13040_v34 = vld [vmem:[#allocation22 + $0xf8c] sm:$0xf]  ;;  %v12031_v51 = vld [vmem:[#allocation22 + $0xf98] sm:$0xf0]  ;;  %v12030_v54 = vor.u32 %v13042_v46, %v12029_v9  ;;  %v11906_v45 = vor.u32 %v13008_v8, %v11903_v16  ;;  %v13026_v9 = vld [vmem:[#allocation22 + $0xf14] sm:$0xf0] }
 0x5f7   : > { %v12034_v20 = vor.u32 %v13040_v34, %v12031_v51  ;;  %v11839_v8 = vld [vmem:[#allocation22 + $0xe18] sm:$0xf0]  ;;  %v13024_v16 = vld [vmem:[#allocation22 + $0xf0c] sm:$0xf]  ;;  %v12197_v51 = vld [vmem:[#allocation22 + $0x10e0] sm:$0xf]  ;;  %v11966_v0 = vor.u32 %v13026_v9, %v11965_v22 }
 0x5f9   : > { %8260 = vmatpush.bf16.msra.mxu0 %v11830_v31  ;;  %8273 = vmatpush.bf16.msra.mxu1 %v11958_v19  ;;  %v7237_v25 = vpop.f32.mrf.mxu0  ;;  %v7250_v29 = vpop.f32.mrf.mxu1  ;;  %v12014_v19 = vor.u32 %v13038_v62, %v12013_v41  ;;  %v12327_v62 = vld [vmem:[#allocation22 + $0x11f0] sm:$0xf0] }
 0x5fa   : > { %8286 = vmatpush.bf16.msra.mxu2 %v11834_v47  ;;  %8299 = vmatpush.bf16.msra.mxu3 %v11962_v15  ;;  %v7251_v4 = vadd.f32 %v7250_v29, %v7237_v25  ;;  %v11890_v47 = vor.u32 %v13004_v42, %v11887_v55  ;;  %v11997_v15 = vld [vmem:[#allocation22 + $0xf48] sm:$0xf]  ;;  %v11967_v25 = vld [vmem:[#allocation22 + $0xf18] sm:$0xf0]  ;;  %v13085_v29 = vld [vmem:[#allocation22 + $0x10ec] sm:$0xf0] }
 0x5fb   : > { %v11970_v42 = vor.u32 %v13024_v16, %v11967_v25  ;;  %v12198_v55 = vor.u32 %v13085_v29, %v12197_v51  ;;  %v13101_v25 = vld [vmem:[#allocation22 + $0x116c] sm:$0xf0]  ;;  %v12135_v51 = vld [vmem:[#allocation22 + $0x1070] sm:$0xf0] }
 0x5fc   : > { %8261 = vmatmul.bf16.vlgmr.msra.gmra.mxu0 %v15274_v59  ;;  %8274 = vmatmul.bf16.vlgmr.msra.gmra.mxu1 %v15277_v24  ;;  %v15367_v31 = vadd.f32 %v7251_v4, %v15347_v2 }
 0x5fd   : > { %8305 = vmatpush.bf16.msrb.mxu0 %v11950_v35  ;;  %8318 = vmatpush.bf16.msrb.mxu1 %v12078_v44  ;;  %v12018_v35 = vor.u32 %v13036_v33, %v12015_v28 }
 0x5fe   : > { %8331 = vmatpush.bf16.msrb.mxu2 %v11954_v5  ;;  %8344 = vmatpush.bf16.msrb.mxu3 %v12082_v17  ;;  %v13034_v5 = vld [vmem:[#allocation22 + $0xf54] sm:$0xf0]  ;;  %v13032_v17 = vld [vmem:[#allocation22 + $0xf4c] sm:$0xf] }
 0x5ff   : > { %8287 = vmatmul.bf16.vlgmr.msra.gmra.mxu2 %v15274_v59  ;;  %8300 = vmatmul.bf16.vlgmr.msra.gmra.mxu3 %v15277_v24  ;;  %v11998_v6 = vor.u32 %v13034_v5, %v11997_v15  ;;  %v12002_v60 = vor.u32 %v13032_v17, %v11999_v53  ;;  %v13079_v15 = vld [vmem:[#allocation22 + $0x10c4] sm:$0xf]  ;;  %v12311_v5 = vld [vmem:[#allocation22 + $0x11d0] sm:$0xf0]  ;;  %v13077_v17 = vld [vmem:[#allocation22 + $0x10ac] sm:$0xf0] }
 0x600   : > { %v12293_v53 = vld [vmem:[#allocation22 + $0x11a0] sm:$0xf] }
 0x601   : > { %8306 = vmatpush.bf16.msrb.mxu0 %v11934_v13  ;;  %8319 = vmatpush.bf16.msrb.mxu1 %v12062_v23  ;;  %v7239_v2 = vpop.f32.mrf.mxu0  ;;  %v7252_v37 = vpop.f32.mrf.mxu1  ;;  %v11874_v13 = vor.u32 %v13000_v63, %v11871_v49  ;;  %v11853_v23 = vld [vmem:[#allocation22 + $0xe28] sm:$0xf] }
 0x602   : > { %8332 = vmatpush.bf16.msrb.mxu2 %v11938_v7  ;;  %8345 = vmatpush.bf16.msrb.mxu3 %v12066_v57  ;;  %v7263_v44 = vpop.f32.mrf.mxu2  ;;  %v7276_v3 = vpop.f32.mrf.mxu3  ;;  %v12998_v7 = vld [vmem:[#allocation22 + $0xe34] sm:$0xf0]  ;;  %v12165_v2 = vld [vmem:[#allocation22 + $0x10a0] sm:$0xf]  ;;  %v13109_v37 = vld [vmem:[#allocation22 + $0x11ac] sm:$0xf0] }
 0x603   : > { %v7277_v1 = vadd.f32 %v7276_v3, %v7263_v44  ;;  %v13030_v57 = vld [vmem:[#allocation22 + $0xf34] sm:$0xf0]  ;;  %v11854_v30 = vor.u32 %v12998_v7, %v11853_v23  ;;  %v13111_v44 = vld [vmem:[#allocation22 + $0x11c4] sm:$0xf]  ;;  %v12295_v23 = vld [vmem:[#allocation22 + $0x11b0] sm:$0xf0]  ;;  %v12166_v7 = vor.u32 %v13077_v17, %v12165_v2 }
 0x604   : > { %v13093_v17 = vld [vmem:[#allocation22 + $0x112c] sm:$0xf0] }
 0x605   : > { %8307 = vmatpush.bf16.msrb.mxu0 %v11918_v27  ;;  %8320 = vmatpush.bf16.msrb.mxu1 %v12046_v40  ;;  %v15370_v12 = vadd.f32 %v7277_v1, %v15350_v52  ;;  %v11837_v27 = vld [vmem:[#allocation22 + $0xe08] sm:$0xf]  ;;  %v12994_v40 = vld [vmem:[#allocation22 + $0xe14] sm:$0xf0]  ;;  %v11986_v52 = vor.u32 %v13028_v32, %v11983_v61  ;;  %v12314_v1 = vor.u32 %v13111_v44, %v12311_v5  ;;  %v13105_v61 = vld [vmem:[#allocation22 + $0x118c] sm:$0xf0] }
 0x606   : > { %8333 = vmatpush.bf16.msrb.mxu2 %v11922_v26  ;;  %8346 = vmatpush.bf16.msrb.mxu3 %v12050_v43  ;;  %v11982_v26 = vor.u32 %v13030_v57, %v11981_v38  ;;  %v12992_v43 = vld [vmem:[#allocation22 + $0xe0c] sm:$0xf]  ;;  %v11838_v4 = vor.u32 %v12994_v40, %v11837_v27  ;;  %v12294_v38 = vor.u32 %v13109_v37, %v12293_v53  ;;  %v12149_v57 = vld [vmem:[#allocation22 + $0x1080] sm:$0xf]  ;;  %v12151_v27 = vld [vmem:[#allocation22 + $0x1090] sm:$0xf0] }
 0x607   : > { %v11842_v41 = vor.u32 %v12992_v43, %v11839_v8  ;;  %v12278_v9 = vor.u32 %v13105_v61, %v12277_v11  ;;  %v12261_v8 = vld [vmem:[#allocation22 + $0x1160] sm:$0xf]  ;;  %v13059_v53 = vld [vmem:[#allocation22 + $0x1024] sm:$0xf] }
 0x608   : > { %v12101_v5 = vld [vmem:[#allocation22 + $0x1020] sm:$0xf]  ;;  %v13091_v37 = vld [vmem:[#allocation22 + $0x1124] sm:$0xf] }
 0x609   : > { %8308 = vmatpush.bf16.msrb.mxu0 %v11902_v58  ;;  %8321 = vmatpush.bf16.msrb.mxu1 %v12030_v54  ;;  %v12325_v58 = vld [vmem:[#allocation22 + $0x11e0] sm:$0xf]  ;;  %v13117_v54 = vld [vmem:[#allocation22 + $0x11ec] sm:$0xf0]  ;;  %v13087_v61 = vld [vmem:[#allocation22 + $0x1104] sm:$0xf] }
 0x60a   : > { %8334 = vmatpush.bf16.msrb.mxu2 %v11906_v45  ;;  %8347 = vmatpush.bf16.msrb.mxu3 %v12034_v20  ;;  %v7265_v46 = vpop.f32.mrf.mxu2  ;;  %v7278_v34 = vpop.f32.mrf.mxu3  ;;  %v13083_v45 = vld [vmem:[#allocation22 + $0x10e4] sm:$0xf]  ;;  %v12326_v33 = vor.u32 %v13117_v54, %v12325_v58 }
 0x60b   : > { %v13115_v20 = vld [vmem:[#allocation22 + $0x11e4] sm:$0xf]  ;;  %v12202_v28 = vor.u32 %v13083_v45, %v12199_v50  ;;  %v13069_v46 = vld [vmem:[#allocation22 + $0x106c] sm:$0xf0]  ;;  %v12262_v45 = vor.u32 %v13101_v25, %v12261_v8  ;;  %v12335_v8 = vld [vmem:[#allocation22 + $0x11f8] sm:$0xf0] }
 0x60c   : > { %v12330_v21 = vor.u32 %v13115_v20, %v12327_v62  ;;  %v13067_v34 = vld [vmem:[#allocation22 + $0x1064] sm:$0xf]  ;;  %v12245_v20 = vld [vmem:[#allocation22 + $0x1140] sm:$0xf] }
 0x60d   : > { %8309 = vmatpush.bf16.msrb.mxu0 %v11886_v10  ;;  %8322 = vmatpush.bf16.msrb.mxu1 %v12014_v19  ;;  %v12181_v10 = vld [vmem:[#allocation22 + $0x10c0] sm:$0xf]  ;;  %v13081_v19 = vld [vmem:[#allocation22 + $0x10cc] sm:$0xf0]  ;;  %v13099_v58 = vld [vmem:[#allocation22 + $0x1164] sm:$0xf]  ;;  %v12138_v50 = vor.u32 %v13067_v34, %v12135_v51 }
 0x60e   : > { %8335 = vmatpush.bf16.msrb.mxu2 %v11890_v47  ;;  %8348 = vmatpush.bf16.msrb.mxu3 %v12018_v35  ;;  %v12309_v47 = vld [vmem:[#allocation22 + $0x11c0] sm:$0xf]  ;;  %v12183_v35 = vld [vmem:[#allocation22 + $0x10d0] sm:$0xf0]  ;;  %v12182_v63 = vor.u32 %v13081_v19, %v12181_v10  ;;  %v13095_v19 = vld [vmem:[#allocation22 + $0x1144] sm:$0xf] }
 0x60f   : > { %v12310_v49 = vor.u32 %v13113_v48, %v12309_v47  ;;  %v12186_v3 = vor.u32 %v13079_v15, %v12183_v35  ;;  %v12247_v47 = vld [vmem:[#allocation22 + $0x1150] sm:$0xf0] }
 0x610   : > { %v12250_v2 = vor.u32 %v13095_v19, %v12247_v47  ;;  %v13078_v19 = vld [vmem:[#allocation22 + $0x10b4] sm:$0xf0]  ;;  %v12301_v47 = vld [vmem:[#allocation22 + $0x11a8] sm:$0xf] }
 0x611   : > { %8310 = vmatpush.bf16.msrb.mxu0 %v11870_v18  ;;  %8323 = vmatpush.bf16.msrb.mxu1 %v11998_v6  ;;  %v13075_v18 = vld [vmem:[#allocation22 + $0x10a4] sm:$0xf]  ;;  %v12167_v6 = vld [vmem:[#allocation22 + $0x10b0] sm:$0xf0] }
 0x612   : > { %8336 = vmatpush.bf16.msrb.mxu2 %v11874_v13  ;;  %8349 = vmatpush.bf16.msrb.mxu3 %v12002_v60  ;;  %v13107_v13 = vld [vmem:[#allocation22 + $0x11a4] sm:$0xf]  ;;  %v12170_v60 = vor.u32 %v13075_v18, %v12167_v6  ;;  %v12231_v18 = vld [vmem:[#allocation22 + $0x1130] sm:$0xf0] }
 0x613   : > { %v12298_v32 = vor.u32 %v13107_v13, %v12295_v23  ;;  %v12085_v13 = vld [vmem:[#allocation22 + $0x1000] sm:$0xf]  ;;  %v13057_v23 = vld [vmem:[#allocation22 + $0x100c] sm:$0xf0] }
 0x615   : > { %8311 = vmatpush.bf16.msrb.mxu0 %v11854_v30  ;;  %8324 = vmatpush.bf16.msrb.mxu1 %v11982_v26  ;;  %v13071_v30 = vld [vmem:[#allocation22 + $0x1084] sm:$0xf]  ;;  %v12279_v26 = vld [vmem:[#allocation22 + $0x1190] sm:$0xf0] }
 0x616   : > { %8337 = vmatpush.bf16.msrb.mxu2 %v11858_v14  ;;  %8350 = vmatpush.bf16.msrb.mxu3 %v11986_v52  ;;  %v12154_v43 = vor.u32 %v13071_v30, %v12151_v27  ;;  %v12133_v52 = vld [vmem:[#allocation22 + $0x1060] sm:$0xf]  ;;  %v12215_v30 = vld [vmem:[#allocation22 + $0x1110] sm:$0xf0] }
 0x617   : > { %v12134_v54 = vor.u32 %v13069_v46, %v12133_v52  ;;  %v13116_v46 = vld [vmem:[#allocation22 + $0x11ec] sm:$0xf] }
 0x619   : > { %8312 = vmatpush.bf16.msrb.mxu0 %v11838_v4  ;;  %8325 = vmatpush.bf16.msrb.mxu1 %v11966_v0  ;;  %v7289_v40 = vpop.f32.mrf.mxu0  ;;  %v7302_v14 = vpop.f32.mrf.mxu1  ;;  %v12263_v4 = vld [vmem:[#allocation22 + $0x1170] sm:$0xf0]  ;;  %v12117_v0 = vld [vmem:[#allocation22 + $0x1040] sm:$0xf] }
 0x61a   : > { %8338 = vmatpush.bf16.msrb.mxu2 %v11842_v41  ;;  %8351 = vmatpush.bf16.msrb.mxu3 %v11970_v42  ;;  %v7303_v22 = vadd.f32 %v7302_v14, %v7289_v40  ;;  %v13065_v41 = vld [vmem:[#allocation22 + $0x104c] sm:$0xf0]  ;;  %v12266_v62 = vor.u32 %v13099_v58, %v12263_v4  ;;  %v12205_v40 = vld [vmem:[#allocation22 + $0x10e8] sm:$0xf]  ;;  %v12086_v14 = vor.u32 %v13057_v23, %v12085_v13  ;;  %v13082_v4 = vld [vmem:[#allocation22 + $0x10d4] sm:$0xf0] }
 0x61b   : > { %v12118_v15 = vor.u32 %v13065_v41, %v12117_v0  ;;  %v12189_v58 = vld [vmem:[#allocation22 + $0x10c8] sm:$0xf]  ;;  %v13080_v0 = vld [vmem:[#allocation22 + $0x10cc] sm:$0xf]  ;;  %v12191_v41 = vld [vmem:[#allocation22 + $0x10d8] sm:$0xf0] }
 0x61c   : > { %8313 = vmatmul.bf16.vlgmr.msrb.gmra.mxu0 %v15274_v59  ;;  %8326 = vmatmul.bf16.vlgmr.msrb.gmra.mxu1 %v15277_v24  ;;  %v15377_v29 = vadd.f32 %v7303_v22, %v15357_v36  ;;  %v13084_v22 = vld [vmem:[#allocation22 + $0x10ec] sm:$0xf]  ;;  %v12159_v13 = vld [vmem:[#allocation22 + $0x1098] sm:$0xf0] }
 0x61d   : > { %8759 = vmatpush.bf16.msra.mxu0 %v12198_v55  ;;  %8772 = vmatpush.bf16.msra.mxu1 %v12326_v33  ;;  %v13097_v55 = vld [vmem:[#allocation22 + $0x114c] sm:$0xf0]  ;;  %v13063_v33 = vld [vmem:[#allocation22 + $0x1044] sm:$0xf] }
 0x61e   : > { %8785 = vmatpush.bf16.msra.mxu2 %v12202_v28  ;;  %8798 = vmatpush.bf16.msra.mxu3 %v12330_v21  ;;  %v12119_v28 = vld [vmem:[#allocation22 + $0x1050] sm:$0xf0]  ;;  %v12246_v35 = vor.u32 %v13097_v55, %v12245_v20  ;;  %v13112_v20 = vld [vmem:[#allocation22 + $0x11cc] sm:$0xf] }
 0x61f   : > { %8339 = vmatmul.bf16.vlgmr.msrb.gmra.mxu2 %v15274_v59  ;;  %8352 = vmatmul.bf16.vlgmr.msrb.gmra.mxu3 %v15277_v24  ;;  %v13103_v59 = vld [vmem:[#allocation22 + $0x1184] sm:$0xf]  ;;  %v12150_v24 = vor.u32 %v13073_v39, %v12149_v57  ;;  %v12122_v44 = vor.u32 %v13063_v33, %v12119_v28  ;;  %v13089_v57 = vld [vmem:[#allocation22 + $0x110c] sm:$0xf0]  ;;  %v12190_v33 = vor.u32 %v13082_v4, %v12189_v58  ;;  %v13064_v58 = vld [vmem:[#allocation22 + $0x104c] sm:$0xf] }
 0x620   : > { %v12282_v16 = vor.u32 %v13103_v59, %v12279_v26  ;;  %v13055_v39 = vld [vmem:[#allocation22 + $0x1004] sm:$0xf]  ;;  %v13086_v59 = vld [vmem:[#allocation22 + $0x10f4] sm:$0xf0]  ;;  %v12333_v26 = vld [vmem:[#allocation22 + $0x11e8] sm:$0xf] }
 0x621   : > { %8760 = vmatpush.bf16.msra.mxu0 %v12182_v63  ;;  %8773 = vmatpush.bf16.msra.mxu1 %v12310_v49  ;;  %v7291_v36 = vpop.f32.mrf.mxu0  ;;  %v7304_v48 = vpop.f32.mrf.mxu1  ;;  %v13061_v63 = vld [vmem:[#allocation22 + $0x102c] sm:$0xf0]  ;;  %v12229_v49 = vld [vmem:[#allocation22 + $0x1120] sm:$0xf]  ;;  %v12206_v25 = vor.u32 %v13086_v59, %v12205_v40  ;;  %v13102_v40 = vld [vmem:[#allocation22 + $0x1174] sm:$0xf0] }
 0x622   : > { %8786 = vmatpush.bf16.msra.mxu2 %v12186_v3  ;;  %8799 = vmatpush.bf16.msra.mxu3 %v12314_v1  ;;  %v7315_v42 = vpop.f32.mrf.mxu2  ;;  %v7328_v10 = vpop.f32.mrf.mxu3  ;;  %v12103_v1 = vld [vmem:[#allocation22 + $0x1030] sm:$0xf0]  ;;  %v12102_v6 = vor.u32 %v13061_v63, %v12101_v5  ;;  %v12173_v36 = vld [vmem:[#allocation22 + $0x10a8] sm:$0xf]  ;;  %v13110_v48 = vld [vmem:[#allocation22 + $0x11b4] sm:$0xf0] }
 0x623   : > { %v7329_v21 = vadd.f32 %v7328_v10, %v7315_v42  ;;  %v15382_v42 = vld [vmem:[#allocation1] sm:$0xff]  ;;  %v15384_v55 = vld [vmem:[#allocation1 + $0x9] sm:$0xff]  ;;  %v12194_v10 = vor.u32 %v13080_v0, %v12191_v41  ;;  %v12303_v5 = vld [vmem:[#allocation22 + $0x11b8] sm:$0xf0]  ;;  %v12174_v63 = vor.u32 %v13078_v19, %v12173_v36 }
 0x624   : > { %v13068_v59 = vld [vmem:[#allocation22 + $0x106c] sm:$0xf]  ;;  %v12127_v4 = vld [vmem:[#allocation22 + $0x1058] sm:$0xf0]  ;;  %v12237_v36 = vld [vmem:[#allocation22 + $0x1128] sm:$0xf] }
 0x625   : > { %8761 = vmatpush.bf16.msra.mxu0 %v12166_v7  ;;  %8774 = vmatpush.bf16.msra.mxu1 %v12294_v38  ;;  %v15380_v3 = vadd.f32 %v7329_v21, %v15360_v56  ;;  %v12230_v7 = vor.u32 %v13093_v17, %v12229_v49  ;;  %v12106_v38 = vor.u32 %v13059_v53, %v12103_v1  ;;  %v12157_v17 = vld [vmem:[#allocation22 + $0x1088] sm:$0xf]  ;;  %v13074_v53 = vld [vmem:[#allocation22 + $0x1094] sm:$0xf0] }
 0x626   : > { %8787 = vmatpush.bf16.msra.mxu2 %v12170_v60  ;;  %8800 = vmatpush.bf16.msra.mxu3 %v12298_v32  ;;  %v12213_v60 = vld [vmem:[#allocation22 + $0x1100] sm:$0xf]  ;;  %v12234_v56 = vor.u32 %v13091_v37, %v12231_v18  ;;  %v12087_v32 = vld [vmem:[#allocation22 + $0x1010] sm:$0xf0]  ;;  %v12302_v49 = vor.u32 %v13110_v48, %v12301_v47  ;;  %v12285_v1 = vld [vmem:[#allocation22 + $0x1188] sm:$0xf] }
 0x627   : > { %v12090_v52 = vor.u32 %v13055_v39, %v12087_v32  ;;  %v13106_v18 = vld [vmem:[#allocation22 + $0x1194] sm:$0xf0]  ;;  %v12141_v32 = vld [vmem:[#allocation22 + $0x1068] sm:$0xf]  ;;  %v13060_v48 = vld [vmem:[#allocation22 + $0x102c] sm:$0xf] }
 0x629   : > { %8762 = vmatpush.bf16.msra.mxu0 %v12150_v24  ;;  %8775 = vmatpush.bf16.msra.mxu1 %v12278_v9  ;;  %v13118_v24 = vld [vmem:[#allocation22 + $0x11f4] sm:$0xf0]  ;;  %v12207_v9 = vld [vmem:[#allocation22 + $0x10f8] sm:$0xf0] }
 0x62a   : > { %8788 = vmatpush.bf16.msra.mxu2 %v12154_v43  ;;  %8801 = vmatpush.bf16.msra.mxu3 %v12282_v16  ;;  %v7317_v11 = vpop.f32.mrf.mxu2  ;;  %v7330_v27 = vpop.f32.mrf.mxu3  ;;  %v12214_v43 = vor.u32 %v13089_v57, %v12213_v60  ;;  %v12218_v16 = vor.u32 %v13087_v61, %v12215_v30  ;;  %v12334_v34 = vor.u32 %v13118_v24, %v12333_v26  ;;  %v13070_v61 = vld [vmem:[#allocation22 + $0x1074] sm:$0xf0]  ;;  %v12269_v30 = vld [vmem:[#allocation22 + $0x1168] sm:$0xf]  ;;  %v12143_v26 = vld [vmem:[#allocation22 + $0x1078] sm:$0xf0] }
 0x62b   : > { %v12210_v51 = vor.u32 %v13084_v22, %v12207_v9  ;;  %v12158_v57 = vor.u32 %v13074_v53, %v12157_v17  ;;  %v13100_v24 = vld [vmem:[#allocation22 + $0x116c] sm:$0xf]  ;;  %v12271_v22 = vld [vmem:[#allocation22 + $0x1178] sm:$0xf0]  ;;  %v12142_v9 = vor.u32 %v13070_v61, %v12141_v32  ;;  %v13058_v17 = vld [vmem:[#allocation22 + $0x1014] sm:$0xf0] }
 0x62c   : > { %v12221_v53 = vld [vmem:[#allocation22 + $0x1108] sm:$0xf] }
 0x62d   : > { %8763 = vmatpush.bf16.msra.mxu0 %v12134_v54  ;;  %8776 = vmatpush.bf16.msra.mxu1 %v12262_v45  ;;  %v12317_v54 = vld [vmem:[#allocation22 + $0x11c8] sm:$0xf]  ;;  %v12338_v45 = vor.u32 %v13116_v46, %v12335_v8  ;;  %v13066_v8 = vld [vmem:[#allocation22 + $0x1054] sm:$0xf0] }
 0x62e   : > { %8789 = vmatpush.bf16.msra.mxu2 %v12138_v50  ;;  %8802 = vmatpush.bf16.msra.mxu3 %v12266_v62  ;;  %v13114_v50 = vld [vmem:[#allocation22 + $0x11d4] sm:$0xf0]  ;;  %v12319_v62 = vld [vmem:[#allocation22 + $0x11d8] sm:$0xf0]  ;;  %v12125_v46 = vld [vmem:[#allocation22 + $0x1048] sm:$0xf] }
 0x62f   : > { %v12318_v28 = vor.u32 %v13114_v50, %v12317_v54  ;;  %v12322_v21 = vor.u32 %v13112_v20, %v12319_v62  ;;  %v12255_v50 = vld [vmem:[#allocation22 + $0x1158] sm:$0xf0]  ;;  %v12126_v20 = vor.u32 %v13066_v8, %v12125_v46 }
 0x631   : > { %8764 = vmatpush.bf16.msra.mxu0 %v12118_v15  ;;  %8777 = vmatpush.bf16.msra.mxu1 %v12246_v35  ;;  %v13076_v15 = vld [vmem:[#allocation22 + $0x10ac] sm:$0xf]  ;;  %v12175_v35 = vld [vmem:[#allocation22 + $0x10b8] sm:$0xf0] }
 0x632   : > { %8790 = vmatpush.bf16.msra.mxu2 %v12122_v44  ;;  %8803 = vmatpush.bf16.msra.mxu3 %v12250_v2  ;;  %v13108_v44 = vld [vmem:[#allocation22 + $0x11ac] sm:$0xf]  ;;  %v12178_v2 = vor.u32 %v13076_v15, %v12175_v35  ;;  %v12111_v15 = vld [vmem:[#allocation22 + $0x1038] sm:$0xf0] }
 0x633   : > { %v12306_v37 = vor.u32 %v13108_v44, %v12303_v5  ;;  %v13092_v35 = vld [vmem:[#allocation22 + $0x112c] sm:$0xf]  ;;  %v12239_v44 = vld [vmem:[#allocation22 + $0x1138] sm:$0xf0] }
 0x635   : > { %8765 = vmatpush.bf16.msra.mxu0 %v12102_v6  ;;  %8778 = vmatpush.bf16.msra.mxu1 %v12230_v7  ;;  %v13072_v6 = vld [vmem:[#allocation22 + $0x108c] sm:$0xf] }
 0x636   : > { %8791 = vmatpush.bf16.msra.mxu2 %v12106_v38  ;;  %8804 = vmatpush.bf16.msra.mxu3 %v12234_v56  ;;  %v13104_v7 = vld [vmem:[#allocation22 + $0x118c] sm:$0xf]  ;;  %v12287_v38 = vld [vmem:[#allocation22 + $0x1198] sm:$0xf0]  ;;  %v12286_v56 = vor.u32 %v13106_v18, %v12285_v1  ;;  %v12162_v11 = vor.u32 %v13072_v6, %v12159_v13  ;;  %v12242_v1 = vor.u32 %v13092_v35, %v12239_v44  ;;  %v13090_v18 = vld [vmem:[#allocation22 + $0x1114] sm:$0xf0] }
 0x637   : > { %v12290_v27 = vor.u32 %v13104_v7, %v12287_v38  ;;  %v12095_v6 = vld [vmem:[#allocation22 + $0x1018] sm:$0xf0] }
 0x638   : > { %v12223_v7 = vld [vmem:[#allocation22 + $0x1118] sm:$0xf0] }
 0x639   : > { %8766 = vmatpush.bf16.msra.mxu0 %v12086_v14  ;;  %8779 = vmatpush.bf16.msra.mxu1 %v12214_v43  ;;  %v7748_v23 = vpop.f32.mrf.mxu0  ;;  %v7761_v60 = vpop.f32.mrf.mxu1  ;;  %v12270_v43 = vor.u32 %v13102_v40, %v12269_v30 }
 0x63a   : > { %8792 = vmatpush.bf16.msra.mxu2 %v12090_v52  ;;  %8805 = vmatpush.bf16.msra.mxu3 %v12218_v16  ;;  %v7762_v39 = vadd.f32 %v7761_v60, %v7748_v23  ;;  %v12146_v52 = vor.u32 %v13068_v59, %v12143_v26  ;;  %v12253_v16 = vld [vmem:[#allocation22 + $0x1148] sm:$0xf]  ;;  %v13088_v23 = vld [vmem:[#allocation22 + $0x110c] sm:$0xf]  ;;  %v12222_v60 = vor.u32 %v13090_v18, %v12221_v53 }
 0x63c   : > { %8767 = vmatmul.bf16.vlgmr.msra.gmra.mxu0 %v15382_v42  ;;  %8780 = vmatmul.bf16.vlgmr.msra.gmra.mxu1 %v15384_v55  ;;  %v15391_v14 = vadd.f32 %v7762_v39, %v15367_v31  ;;  %v12226_v39 = vor.u32 %v13088_v23, %v12223_v7 }
 0x63d   : > { %8811 = vmatpush.bf16.msrb.mxu0 %v12206_v25  ;;  %8824 = vmatpush.bf16.msrb.mxu1 %v12334_v34  ;;  %v12274_v25 = vor.u32 %v13100_v24, %v12271_v22 }
 0x63e   : > { %8837 = vmatpush.bf16.msrb.mxu2 %v12210_v51  ;;  %8850 = vmatpush.bf16.msrb.mxu3 %v12338_v45  ;;  %v13098_v51 = vld [vmem:[#allocation22 + $0x1154] sm:$0xf0]  ;;  %v13096_v45 = vld [vmem:[#allocation22 + $0x114c] sm:$0xf] }
 0x63f   : > { %8793 = vmatmul.bf16.vlgmr.msra.gmra.mxu2 %v15382_v42  ;;  %8806 = vmatmul.bf16.vlgmr.msra.gmra.mxu3 %v15384_v55  ;;  %v12254_v62 = vor.u32 %v13098_v51, %v12253_v16  ;;  %v12258_v47 = vor.u32 %v13096_v45, %v12255_v50 }
 0x641   : > { %8812 = vmatpush.bf16.msrb.mxu0 %v12190_v33  ;;  %8825 = vmatpush.bf16.msrb.mxu1 %v12318_v28  ;;  %v7750_v31 = vpop.f32.mrf.mxu0  ;;  %v7763_v41 = vpop.f32.mrf.mxu1  ;;  %v12130_v33 = vor.u32 %v13064_v58, %v12127_v4  ;;  %v12109_v28 = vld [vmem:[#allocation22 + $0x1028] sm:$0xf] }
 0x642   : > { %8838 = vmatpush.bf16.msrb.mxu2 %v12194_v10  ;;  %8851 = vmatpush.bf16.msrb.mxu3 %v12322_v21  ;;  %v7774_v34 = vpop.f32.mrf.mxu2  ;;  %v7787_v54 = vpop.f32.mrf.mxu3  ;;  %v13062_v10 = vld [vmem:[#allocation22 + $0x1034] sm:$0xf0] }
 0x643   : > { %v7788_v0 = vadd.f32 %v7787_v54, %v7774_v34  ;;  %v13094_v21 = vld [vmem:[#allocation22 + $0x1134] sm:$0xf0]  ;;  %v12110_v5 = vor.u32 %v13062_v10, %v12109_v28  ;;  %v8867_v10 = vld [vmem:[#allocation23] sm:$0xf] }
 0x644   : > { %v8870_v44 = vperm.slane %v8867_v10, 1 }
 0x645   : > { %8813 = vmatpush.bf16.msrb.mxu0 %v12174_v63  ;;  %8826 = vmatpush.bf16.msrb.mxu1 %v12302_v49  ;;  %v7844_v19 = vadd.f32 %v7788_v0, %v15370_v12  ;;  %v12238_v63 = vor.u32 %v13094_v21, %v12237_v36  ;;  %v12114_v49 = vor.u32 %v13060_v48, %v12111_v15  ;;  %v13056_v12 = vld [vmem:[#allocation22 + $0x100c] sm:$0xf] }
 0x646   : > { %8839 = vmatpush.bf16.msrb.mxu2 %v12178_v2  ;;  %8852 = vmatpush.bf16.msrb.mxu3 %v12306_v37  ;;  %v12093_v2 = vld [vmem:[#allocation22 + $0x1008] sm:$0xf] }
 0x647   : > { %v12094_v38 = vor.u32 %v13058_v17, %v12093_v2 }
 0x649   : > { %8814 = vmatpush.bf16.msrb.mxu0 %v12158_v57  ;;  %8827 = vmatpush.bf16.msrb.mxu1 %v12286_v56  ;;  %v12098_v57 = vor.u32 %v13056_v12, %v12095_v6 }
 0x64a   : > { %8840 = vmatpush.bf16.msrb.mxu2 %v12162_v11  ;;  %8853 = vmatpush.bf16.msrb.mxu3 %v12290_v27  ;;  %v7776_v37 = vpop.f32.mrf.mxu2  ;;  %v7789_v13 = vpop.f32.mrf.mxu3 }
 0x64d   : > { %8815 = vmatpush.bf16.msrb.mxu0 %v12142_v9  ;;  %8828 = vmatpush.bf16.msrb.mxu1 %v12270_v43 }
 0x64e   : > { %8841 = vmatpush.bf16.msrb.mxu2 %v12146_v52  ;;  %8854 = vmatpush.bf16.msrb.mxu3 %v12274_v25 }
 0x651   : > { %8816 = vmatpush.bf16.msrb.mxu0 %v12126_v20  ;;  %8829 = vmatpush.bf16.msrb.mxu1 %v12254_v62 }
 0x652   : > { %8842 = vmatpush.bf16.msrb.mxu2 %v12130_v33  ;;  %8855 = vmatpush.bf16.msrb.mxu3 %v12258_v47  ;;  %v8869_v47 = vperm.slane %v8867_v10, 0 }
 0x655   : > { %8817 = vmatpush.bf16.msrb.mxu0 %v12110_v5  ;;  %8830 = vmatpush.bf16.msrb.mxu1 %v12238_v63 }
 0x656   : > { %8843 = vmatpush.bf16.msrb.mxu2 %v12114_v49  ;;  %8856 = vmatpush.bf16.msrb.mxu3 %v12242_v1 }
 0x659   : > { %8818 = vmatpush.bf16.msrb.mxu0 %v12094_v38  ;;  %8831 = vmatpush.bf16.msrb.mxu1 %v12222_v60  ;;  %v7800_v56 = vpop.f32.mrf.mxu0  ;;  %v7813_v11 = vpop.f32.mrf.mxu1 }
 0x65a   : > { %8844 = vmatpush.bf16.msrb.mxu2 %v12098_v57  ;;  %8857 = vmatpush.bf16.msrb.mxu3 %v12226_v39  ;;  %v7814_v32 = vadd.f32 %v7813_v11, %v7800_v56  ;;  %v8871_v56 = vperm.slane %v8867_v10, 2 }
 0x65c   : > { %8819 = vmatmul.bf16.vlgmr.msrb.gmra.mxu0 %v15382_v42  ;;  %8832 = vmatmul.bf16.vlgmr.msrb.gmra.mxu1 %v15384_v55  ;;  %v7845_v61 = vadd.f32 %v7814_v32, %v15377_v29 }
 0x65d   : > { %8845 = vmatmul.bf16.vlgmr.msrb.gmra.mxu2 %v15382_v42  ;;  %8858 = vmatmul.bf16.vlgmr.msrb.gmra.mxu3 %v15384_v55 }
 0x661   : > { %v7802_v40 = vpop.f32.mrf.mxu0  ;;  %v7815_v26 = vpop.f32.mrf.mxu1 }
 0x662   : > { %v7826_v30 = vpop.f32.mrf.mxu2  ;;  %v7839_v27 = vpop.f32.mrf.mxu3 }
 0x663   : > { %v7840_v59 = vadd.f32 %v7839_v27, %v7826_v30 }
 0x665   : > { %v15400_v24 = vadd.f32 %v7840_v59, %v15380_v3 }
 0x66a   : > { %v7828_v22 = vpop.f32.mrf.mxu2  ;;  %v7841_v9 = vpop.f32.mrf.mxu3 }
 0x66b   : > { %v8872_v9 = vperm.slane %v8867_v10, 3 }
 0x679   : > { %v8262_v43 = vpop.f32.mrf.mxu0  ;;  %v8275_v52 = vpop.f32.mrf.mxu1 }
 0x67a   : > { %v8276_v42 = vadd.f32 %v8275_v52, %v8262_v43 }
 0x67c   : > { %v8357_v55 = vadd.f32 %v8276_v42, %v15391_v14 }
 0x681   : > { %v8264_v16 = vpop.f32.mrf.mxu0  ;;  %v8277_v29 = vpop.f32.mrf.mxu1 }
 0x682   : > { %v8288_v46 = vpop.f32.mrf.mxu2  ;;  %v8301_v8 = vpop.f32.mrf.mxu3 }
 0x683   : > { %v8302_v25 = vadd.f32 %v8301_v8, %v8288_v46 }
 0x685   : > { %v8358_v34 = vadd.f32 %v8302_v25, %v7844_v19  ;;  %v8881_v19 = vld [vmem:[#allocation25] sm:$0xf] }
 0x686   : > { %v8883_v49 = vperm.slane %v8881_v19, 0  ;;  %v8884_v17 = vperm.slane %v8881_v19, 1  ;;  %v8885_v30 = vperm.slane %v8881_v19, 2 }
 0x68a   : > { %v8290_v51 = vpop.f32.mrf.mxu2  ;;  %v8303_v58 = vpop.f32.mrf.mxu3 }
 0x699   : > { %v8314_v4 = vpop.f32.mrf.mxu0  ;;  %v8327_v54 = vpop.f32.mrf.mxu1 }
 0x69a   : > { %v8328_v31 = vadd.f32 %v8327_v54, %v8314_v4 }
 0x69c   : > { %v8359_v3 = vadd.f32 %v8328_v31, %v7845_v61 }
 0x6a1   : > { %v8316_v0 = vpop.f32.mrf.mxu0  ;;  %v8329_v41 = vpop.f32.mrf.mxu1 }
 0x6a2   : > { %v8340_v45 = vpop.f32.mrf.mxu2  ;;  %v8353_v50 = vpop.f32.mrf.mxu3  ;;  %v8931_v0 = vlaneseq }
 0x6a3   : > { %v8354_v32 = vadd.f32 %v8353_v50, %v8340_v45 }
 0x6a4   : > { %vm8933_vm11 = vcmp.lt.s32.totalorder %v8931_v0, 512 }
 0x6a5   : > { %v8360_v26 = vadd.f32 %v8354_v32, %v15400_v24 }
 0x6aa   : > { %v8342_v20 = vpop.f32.mrf.mxu2  ;;  %v8355_v62 = vpop.f32.mrf.mxu3 }
 0x6b9   : > { %v8768_v33 = vpop.f32.mrf.mxu0  ;;  %v8781_v14 = vpop.f32.mrf.mxu1 }
 0x6ba   : > { %v8782_v28 = vadd.f32 %v8781_v14, %v8768_v33 }
 0x6bc   : > { %v8863_v36 = vadd.f32 %v8782_v28, %v8357_v55  ;;  %v8886_v55 = vperm.slane %v8881_v19, 3 }
 0x6be   : > { %v8877_v63 = vmul.f32 %v8869_v47, %v8863_v36 }
 0x6c0   : > { %v8891_v1 = vadd.f32 %v8883_v49, %v8877_v63 }
 0x6c1   : > { %v8770_v15 = vpop.f32.mrf.mxu0  ;;  %v8783_v5 = vpop.f32.mrf.mxu1 }
 0x6c2   : > { %v8794_v21 = vpop.f32.mrf.mxu2  ;;  %v8807_v48 = vpop.f32.mrf.mxu3  ;;  %v8895_v13 = vmax.f32 %v8891_v1, 0.0 }
 0x6c3   : > { %v8808_v35 = vadd.f32 %v8807_v48, %v8794_v21 }
 0x6c5   : > { %v8864_v2 = vadd.f32 %v8808_v35, %v8358_v34 }
 0x6c7   : > { %v8878_v53 = vmul.f32 %v8870_v44, %v8864_v2 }
 0x6c9   : > { %v8892_v37 = vadd.f32 %v8884_v17, %v8878_v53 }
 0x6ca   : > { %v8796_v18 = vpop.f32.mrf.mxu2  ;;  %v8809_v12 = vpop.f32.mrf.mxu3 }
 0x6cb   : > { %v8896_v6 = vmax.f32 %v8892_v37, 0.0 }
 0x6cd   : > { %v8903_v23 = vrot.slane %v8896_v6, 6 }
 0x6cf   : > { %v8906_v7 = vsel %vm1237_vm10, %v8895_v13, %v8903_v23  ;;  %v8910_v38 = vsel %vm15564_vm7, %v8895_v13, %v8903_v23 }
 0x6d9   : > { %v8820_v60 = vpop.f32.mrf.mxu0  ;;  %v8833_v57 = vpop.f32.mrf.mxu1 }
 0x6da   : > { %v8834_v39 = vadd.f32 %v8833_v57, %v8820_v60 }
 0x6dc   : > { %v8865_v11 = vadd.f32 %v8834_v39, %v8359_v3 }
 0x6de   : > { %v8879_v61 = vmul.f32 %v8871_v56, %v8865_v11 }
 0x6e0   : > { %v8846_v27 = vpop.f32.mrf.mxu2  ;;  %v8859_v40 = vpop.f32.mrf.mxu3  ;;  %v8893_v52 = vadd.f32 %v8885_v30, %v8879_v61 }
 0x6e1   : > { %v8822_v59 = vpop.f32.mrf.mxu0  ;;  %v8860_v22 = vadd.f32 %v8859_v40, %v8846_v27  ;;  %v8835_v43 = vpop.f32.mrf.mxu1 }
 0x6e2   : > { %v8897_v8 = vmax.f32 %v8893_v52, 0.0 }
 0x6e3   : > { %v8866_v42 = vadd.f32 %v8860_v22, %v8360_v26 }
 0x6e4   : > { %v8904_v51 = vrot.slane %v8897_v8, 4 }
 0x6e5   : > { %v8880_v46 = vmul.f32 %v8872_v9, %v8866_v42 }
 0x6e7   : > { %v8894_v16 = vadd.f32 %v8886_v55, %v8880_v46 }
 0x6e8   : > { %v8848_v25 = vpop.f32.mrf.mxu2  ;;  %v8861_v29 = vpop.f32.mrf.mxu3 }
 0x6e9   : > { %v8898_v34 = vmax.f32 %v8894_v16, 0.0 }
 0x6eb   : > { %v8905_v58 = vrot.slane %v8898_v34, 2 }
 0x6ed   : > { %v8908_v4 = vsel %vm8907_vm8, %v8904_v51, %v8905_v58  ;;  %v8911_v24 = vsel %vm15565_vm3, %v8905_v58, %v8904_v51 }
 0x6ee   : > { %v8909_v54 = vsel %vm15566_vm1, %v8906_v7, %v8908_v4  ;;  %v8913_v31 = vsel %vm8912_vm14, %v8910_v38, %v8911_v24 }
 0x6ef   : > { %v8914_v3 = vrot.slane %v8913_v31, 2 }
 0x6f1   : > { %v8917_v45 = vmax.f32 %v8909_v54, %v8914_v3 }
 0x6f3   : > { %v12339_v50 = vrot.slane %v8917_v45, 9 }
 0x6f5   : > { %v8922_v41 = vmax.f32 %v8917_v45, %v12339_v50 }
 0x6f7   : > { %v8924_v20 = vrot.slane %v8922_v41, 1  ;;  %v8925_v62 = vrot.slane %v8922_v41, 2  ;;  %v8926_v33 = vrot.slane %v8922_v41, 3 }
 0x6f9   : > { %v8927_v14 = vsel %vm15568_vm12, %v8922_v41, %v8924_v20  ;;  %v8928_v28 = vsel %vm15569_vm9, %v8925_v62, %v8926_v33 }
 0x6fa   : > { %v8929_v10 = vsel %vm1237_vm10, %v8927_v14, %v8928_v28 }
 0x6fb   : > { %8935 = vst.msk [vmem:[%s642_s21] sm:$0xf] %vm8933_vm11, %v8929_v10 }
 0x6fc   : > { %13717 = shalt.err (!%p13714_p9)
}
 0x6fd   : > { %13169 = dma.vmem_to_hbm [thread:$0]  (%p14005_p4), %s8950_s14, 64, %s8952_s5, %s8937_s15  }
 0x6fe PF: > { %s8963_s13 = sand.u32 1, %s13768_s25   ;;  %p15570_p10 = scmp.ge.s32.totalorder %s13780_s28, 2 }
 0x6ff   : > { %s8964_s2 = scalar_lea.sflag [#allocation7], %s8963_s13 }
 0x700   : > { %p13213_p13 = pnand %p15570_p10, %p14009_p6 }
 0x702   : > { %p13214_p11 = pneg %p13213_p13 }
 0x704   : > { %13763 = dma.done.wait (%p13214_p11), %s8964_s2, 64  }
 0x705   : > { %13765 = vsyncadd (%p13214_p11), %s8964_s2, 4294967232  ;;  %p32_p0 = scmp.ge.s32.totalorder %s13979_s17, 4   ;;  %s15571_s25 = smov %s13772_s26 }
 0x706   : > { %s15572_s26 = smov %s13776_s27  ;;  %s15573_s27 = smov %s13990_s20 }
 0x707   : > { %s15574_s28 = smov %s13979_s17  ;;  %34 = sbr.rel (!%p32_p0) target bundleno = 21 (0x15), region = 237 }
 0x70c   :  { %8970 = vsyncpa [#allocation6], 1 }
 0x70d   :  { %8972 = vsyncpa [#allocation6 + $0x1], 1 }
 0x70e   :  { %8973 = vsyncpa [#allocation9], 1 }
 0x70f   :  { %8974 = vsyncpa [#allocation12], 1 }
 0x710   :  { %8975 = vsyncpa [#allocation15], 1 }
 0x711   :  { %8976 = vsyncpa [#allocation18], 1 }
 0x712   :  { %8977 = vsyncpa [#allocation21], 1 }
 0x713   :  { %8978 = vsyncpa [#allocation24], 1 }
 0x714   :  { %8979 = vsyncpa [#allocation7], 1 }
 0x715   :  { %8981 = vsyncpa [#allocation7 + $0x1], 1 }

</bundles_post_ra>
